<compile_context>
chip_gen: v6e
topology: v6e:2x2x1
jax: 0.10.0
libtpu: 0.0.40
codegen_flags: <defaults>
</compile_context>

<pallas_src>
import functools

import jax
import jax.numpy as jnp
from jax.experimental import pallas as pl
from jax.experimental.pallas import tpu as pltpu

BN_EPS = 1e-5
PMAX = 4  # largest halo needed: dil_conv_5x5 (k=5, dilation=2) -> pad 4

# Fixed architecture choices: node -> [(op_name, input_index), (op_name, input_index)]
# states = [s0_pre, s1_pre, n0, n1, n2, n3]
GENOTYPE = {
    0: [("sep_conv_3x3", 0), ("skip_connect", 1)],
    1: [("avg_pool_3x3", 0), ("dil_conv_3x3", 2)],
    2: [("max_pool_3x3", 1), ("sep_conv_5x5", 3)],
    3: [("skip_connect", 2), ("dil_conv_5x5", 4)],
}


# ---------------------------------------------------------------------------
# Single fused cell kernel (all work in flattened (H, W*C) layout)
# ---------------------------------------------------------------------------
def _cell_kernel(s0_ref, s1_ref, inv_ref, mb_ref,
                 pre0_w, pre0_b, pre1_w, pre1_b,
                 s3_dw1, s3_pw1, s3_b1, s3_dw2, s3_pw2, s3_b2,
                 d3_dw, d3_pw, d3_b,
                 s5_dw1, s5_pw1, s5_b1, s5_dw2, s5_pw2, s5_b2,
                 d5_dw, d5_pw, d5_b,
                 out_ref, pad_ref, *, C):
    H = s0_ref.shape[1]
    WC = inv_ref.shape[1]            # W * C (flattened lane width)
    PC = PMAX * C                    # halo width in flattened lanes

    # Zero the small halo scratch once per grid step (4 vregs).  Only the interior is
    # ever rewritten below, so the border stays zero for every windowed op.  Per-step
    # (not pl.when(pid==0)) so each core's scratch is valid under megacore sharding.
    pad_ref[...] = jnp.zeros_like(pad_ref)

    def pointwise(x, w_ref, b_ref, relu=False):
        # 1x1 conv (+ folded BN) as ONE MXU matmul in flattened layout: the weight was
        # pre-expanded to block-diagonal kron(I_W, Wc) in the wrapper, so no relayout.
        if relu:
            x = jnp.maximum(x, 0.0)
        return jnp.dot(x, w_ref[...], preferred_element_type=jnp.float32) + b_ref[...]

    def stage(x):
        pad_ref[PMAX:PMAX + H, PC:PC + WC] = x

    def depthwise(x, dw_ref, k, dil):
        # ReLU + depthwise kxk conv (stride 1, zero padding) via the halo scratch.
        p = dil * (k - 1) // 2
        stage(jnp.maximum(x, 0.0))                    # relu(0) == 0 zero padding
        dwv = dw_ref[...]                             # (k*k, W*C), weights pre-tiled
        acc = jnp.zeros((H, WC), jnp.float32)
        for i in range(k):                            # k sublane-offset row loads
            r0 = PMAX - p + i * dil
            rows = pad_ref[r0:r0 + H, :]              # (H, (W+2*PMAX)*C)
            for j in range(k):                        # lane shift by (j*dil - p)*C
                c0 = (PMAX - p + j * dil) * C
                acc = acc + rows[:, c0:c0 + WC] * dwv[i * k + j]
        return acc

    def pool3x3(x, mode):
        # 3x3 pooling, stride 1, padding 1.  Boundary handling uses the precomputed
        # grid-invariant inputs: mb_ref = -1e30 where a tap is out of bounds (max),
        # inv_ref = 1 / valid-count (avg, count_include_pad=False).
        stage(x)
        out = None
        for i in range(3):
            rows = pad_ref[PMAX - 1 + i:PMAX - 1 + i + H, :]
            for j in range(3):
                c0 = (PMAX - 1 + j) * C
                win = rows[:, c0:c0 + WC]
                if mode == "max":
                    win = win + mb_ref[i * 3 + j]
                    out = win if out is None else jnp.maximum(out, win)
                else:
                    out = win if out is None else out + win
        if mode == "max":
            return out
        return out * inv_ref[...]

    def sep_conv(x, dw1, pw1, b1, dw2, pw2, b2, k):
        # SepConv: (ReLU, dw kxk, pw 1x1, BN) x 2, dilation 1
        y = pointwise(depthwise(x, dw1, k, 1), pw1, b1)
        return pointwise(depthwise(y, dw2, k, 1), pw2, b2)

    def dil_conv(x, dw, pw, b, k):
        # DilConv: ReLU, dw kxk dilation 2, pw 1x1, BN
        return pointwise(depthwise(x, dw, k, 2), pw, b)

    s0 = s0_ref[0]                                    # (H, W*C_prev_prev)
    s1 = s1_ref[0]                                    # (H, W*C_prev)

    st0 = pointwise(s0, pre0_w, pre0_b, relu=True)    # ReLUConvBN 1x1 (BN folded)
    st1 = pointwise(s1, pre1_w, pre1_b, relu=True)

    # Genotype (see GENOTYPE above); branch adds fused in-register.
    n0 = sep_conv(st0, s3_dw1, s3_pw1, s3_b1, s3_dw2, s3_pw2, s3_b2, 3) + st1
    n1 = pool3x3(st0, "avg") + dil_conv(n0, d3_dw, d3_pw, d3_b, 3)
    n2 = pool3x3(st1, "max") + sep_conv(n1, s5_dw1, s5_pw1, s5_b1,
                                        s5_dw2, s5_pw2, s5_b2, 5)
    n3 = n0 + dil_conv(n2, d5_dw, d5_pw, d5_b, 5)

    # Channel concat as ONE lane-dense store (last dim 4*W*C, multiple of 128).
    out_ref[0] = jnp.concatenate([n0, n1, n2, n3], axis=-1)


def _zero_index(n, *, ndim):
    return (0,) * ndim


# ---------------------------------------------------------------------------
# Parameter packing into the kernel's flattened layout (done once, under jit)
# ---------------------------------------------------------------------------
def _pack_params(params, W):
    kinds = (["pw", "b"] * 2 +              # preprocess0 / preprocess1
             ["dw", "pw", "b"] * 2 +        # sep_conv_3x3 (two blocks)
             ["dw", "pw", "b"] +            # dil_conv_3x3
             ["dw", "pw", "b"] * 2 +        # sep_conv_5x5
             ["dw", "pw", "b"])             # dil_conv_5x5
    packed = []
    for kind, p in zip(kinds, params):
        if kind == "pw":
            # (Cin, Cout) -> block-diagonal (W*Cin, W*Cout): single MXU matmul in-kernel.
            packed.append(jnp.kron(jnp.eye(W, dtype=p.dtype), p))
        else:
            # depthwise taps (k*k, C) and biases (1, C) -> tiled to lane width W*C.
            packed.append(jnp.tile(p, (1, W)))
    return packed


def _pool_consts(H, W, C):
    hi = jnp.arange(H, dtype=jnp.int32)[:, None, None]
    wi = jnp.arange(W, dtype=jnp.int32)[None, :, None]
    ones_c = jnp.ones((1, 1, C), jnp.float32)
    # avg-pool 3x3 pad 1, count_include_pad=False: 1 / (#valid taps)
    ch = jnp.minimum(hi + 1, H - 1) - jnp.maximum(hi - 1, 0) + 1
    cw = jnp.minimum(wi + 1, W - 1) - jnp.maximum(wi - 1, 0) + 1
    inv_cnt = ((1.0 / (ch * cw).astype(jnp.float32)) * ones_c).reshape(H, W * C)
    # max-pool 3x3 pad 1: additive -1e30 bias where the tap reads padding.
    biases = []
    for i in range(3):
        for j in range(3):
            valid = ((hi + i - 1 >= 0) & (hi + i - 1 < H) &
                     (wi + j - 1 >= 0) & (wi + j - 1 < W))
            biases.append(jnp.where(valid, 0.0, -1e30) * ones_c)
    maxbias = jnp.stack(biases, 0).reshape(9, H, W * C)
    return inv_cnt, maxbias


# ---------------------------------------------------------------------------
# Cell forward (NCHW in / NCHW out, like the PyTorch module)
# ---------------------------------------------------------------------------
@jax.jit
def cell_forward(s0_nchw, s1_nchw, flat_params):
    N, Cpp, H, W = s0_nchw.shape
    Cp = s1_nchw.shape[1]
    C = flat_params[0].shape[1]          # pre0_w: (C_prev_prev, C)
    WC = W * C

    # NCHW -> flattened NHWC (N, H, W*Cin).
    # TODO(synk): drop these layout ops if the surrounding network carries NHWC.
    s0 = jnp.transpose(s0_nchw, (0, 2, 3, 1)).reshape(N, H, W * Cpp).astype(jnp.float32)
    s1 = jnp.transpose(s1_nchw, (0, 2, 3, 1)).reshape(N, H, W * Cp).astype(jnp.float32)

    packed = _pack_params(flat_params, W)
    inv_cnt, maxbias = _pool_consts(H, W, C)

    def const_spec(a):
        return pl.BlockSpec(a.shape, functools.partial(_zero_index, ndim=a.ndim))

    in_specs = [pl.BlockSpec((1, H, W * Cpp), lambda n: (n, 0, 0)),
                pl.BlockSpec((1, H, W * Cp), lambda n: (n, 0, 0)),
                const_spec(inv_cnt), const_spec(maxbias)]
    in_specs += [const_spec(p) for p in packed]

    out = pl.pallas_call(
        functools.partial(_cell_kernel, C=C),
        grid=(N,),
        in_specs=in_specs,
        out_specs=pl.BlockSpec((1, H, 4 * WC), lambda n: (n, 0, 0)),
        out_shape=jax.ShapeDtypeStruct((N, H, 4 * WC), jnp.float32),
        scratch_shapes=[pltpu.VMEM((H + 2 * PMAX, (W + 2 * PMAX) * C), jnp.float32)],
        compiler_params=pltpu.CompilerParams(
            dimension_semantics=("parallel",)),
    )(s0, s1, inv_cnt, maxbias, *packed)

    # (N, H, node*W*C + w*C + c) -> NCHW with channel = node*C + c
    out = out.reshape(N, H, 4, W, C)
    out = jnp.transpose(out, (0, 2, 4, 1, 3)).reshape(N, 4 * C, H, W)
    return out


# ---------------------------------------------------------------------------
# Deterministic parameter construction (BN scale folded into conv weights)
# ---------------------------------------------------------------------------
def init_params(key, C_pp, C_p, C):
    keys = iter(jax.random.split(key, 64))
    bn_g = 1.0 / float(jnp.sqrt(1.0 + BN_EPS))   # eval-mode BN (mean=0, var=1), folded

    def nrm(shape, scale=0.1):
        return jax.random.normal(next(keys), shape, jnp.float32) * scale

    def zb(c):
        return jnp.zeros((1, c), jnp.float32)

    def relu_conv_bn_p(cin, cout):
        return [nrm((cin, cout)) * bn_g, zb(cout)]

    def sep_conv_p(c, k):
        return [nrm((k * k, c)), nrm((c, c)) * bn_g, zb(c),
                nrm((k * k, c)), nrm((c, c)) * bn_g, zb(c)]

    def dil_conv_p(c, k):
        return [nrm((k * k, c)), nrm((c, c)) * bn_g, zb(c)]

    flat = []
    flat += relu_conv_bn_p(C_pp, C)   # preprocess0
    flat += relu_conv_bn_p(C_p, C)    # preprocess1
    flat += sep_conv_p(C, 3)          # node0 branch0: sep_conv_3x3
    flat += dil_conv_p(C, 3)          # node1 branch1: dil_conv_3x3
    flat += sep_conv_p(C, 5)          # node2 branch1: sep_conv_5x5
    flat += dil_conv_p(C, 5)          # node3 branch1: dil_conv_5x5
    return flat                        # pools / skip_connect have no parameters


if __name__ == "__main__":
    key = jax.random.PRNGKey(0)
    N, H, W = 4, 8, 8
    C_prev_prev, C_prev, C = 16, 32, 16   # W*C = 128 -> lane-dense working tensors

    k_params, k0, k1 = jax.random.split(key, 3)
    params = init_params(k_params, C_prev_prev, C_prev, C)
    s0 = jax.random.normal(k0, (N, C_prev_prev, H, W), jnp.float32)  # NCHW like PyTorch
    s1 = jax.random.normal(k1, (N, C_prev, H, W), jnp.float32)

    out = jax.block_until_ready(cell_forward(s0, s1, params))
    assert out.shape == (N, 4 * C, H, W), out.shape
    assert bool(jnp.all(jnp.isfinite(out)))
    print("KERNEL_OK")
</pallas_src>

<mosaic_0001>
module attributes {stable_mosaic.version = 11 : i64} {
  func.func @_cell_kernel(%arg0: i32, %arg1: memref<1x8x128xf32, #tpu.memory_space<vmem>>, %arg2: memref<1x8x256xf32, #tpu.memory_space<vmem>>, %arg3: memref<8x128xf32, #tpu.memory_space<vmem>>, %arg4: memref<9x8x128xf32, #tpu.memory_space<vmem>>, %arg5: memref<128x128xf32, #tpu.memory_space<vmem>>, %arg6: memref<1x128xf32, #tpu.memory_space<vmem>>, %arg7: memref<256x128xf32, #tpu.memory_space<vmem>>, %arg8: memref<1x128xf32, #tpu.memory_space<vmem>>, %arg9: memref<9x128xf32, #tpu.memory_space<vmem>>, %arg10: memref<128x128xf32, #tpu.memory_space<vmem>>, %arg11: memref<1x128xf32, #tpu.memory_space<vmem>>, %arg12: memref<9x128xf32, #tpu.memory_space<vmem>>, %arg13: memref<128x128xf32, #tpu.memory_space<vmem>>, %arg14: memref<1x128xf32, #tpu.memory_space<vmem>>, %arg15: memref<9x128xf32, #tpu.memory_space<vmem>>, %arg16: memref<128x128xf32, #tpu.memory_space<vmem>>, %arg17: memref<1x128xf32, #tpu.memory_space<vmem>>, %arg18: memref<25x128xf32, #tpu.memory_space<vmem>>, %arg19: memref<128x128xf32, #tpu.memory_space<vmem>>, %arg20: memref<1x128xf32, #tpu.memory_space<vmem>>, %arg21: memref<25x128xf32, #tpu.memory_space<vmem>>, %arg22: memref<128x128xf32, #tpu.memory_space<vmem>>, %arg23: memref<1x128xf32, #tpu.memory_space<vmem>>, %arg24: memref<25x128xf32, #tpu.memory_space<vmem>>, %arg25: memref<128x128xf32, #tpu.memory_space<vmem>>, %arg26: memref<1x128xf32, #tpu.memory_space<vmem>>, %arg27: memref<1x8x512xf32, #tpu.memory_space<vmem>>, %arg28: memref<16x256xf32, #tpu.memory_space<vmem>>) attributes {dimension_semantics = [#tpu.dimension_semantics<parallel>], iteration_bounds = array<i64: 4>, scalar_prefetch = 0 : i64, scratch_operands = 1 : i64, tpu.core_type = #tpu.core_type<tc>, window_params = [{transform_indices = @transform_0, window_bounds = array<i64: 1, 8, 128>}, {transform_indices = @transform_1, window_bounds = array<i64: 1, 8, 256>}, {pipeline_mode = #tpu.pipeline_mode<synchronous>, transform_indices = @transform_2, window_bounds = array<i64: 8, 128>}, {pipeline_mode = #tpu.pipeline_mode<synchronous>, transform_indices = @transform_3, window_bounds = array<i64: 9, 8, 128>}, {pipeline_mode = #tpu.pipeline_mode<synchronous>, transform_indices = @transform_4, window_bounds = array<i64: 128, 128>}, {pipeline_mode = #tpu.pipeline_mode<synchronous>, transform_indices = @transform_5, window_bounds = array<i64: 1, 128>}, {pipeline_mode = #tpu.pipeline_mode<synchronous>, transform_indices = @transform_6, window_bounds = array<i64: 256, 128>}, {pipeline_mode = #tpu.pipeline_mode<synchronous>, transform_indices = @transform_7, window_bounds = array<i64: 1, 128>}, {pipeline_mode = #tpu.pipeline_mode<synchronous>, transform_indices = @transform_8, window_bounds = array<i64: 9, 128>}, {pipeline_mode = #tpu.pipeline_mode<synchronous>, transform_indices = @transform_9, window_bounds = array<i64: 128, 128>}, {pipeline_mode = #tpu.pipeline_mode<synchronous>, transform_indices = @transform_10, window_bounds = array<i64: 1, 128>}, {pipeline_mode = #tpu.pipeline_mode<synchronous>, transform_indices = @transform_11, window_bounds = array<i64: 9, 128>}, {pipeline_mode = #tpu.pipeline_mode<synchronous>, transform_indices = @transform_12, window_bounds = array<i64: 128, 128>}, {pipeline_mode = #tpu.pipeline_mode<synchronous>, transform_indices = @transform_13, window_bounds = array<i64: 1, 128>}, {pipeline_mode = #tpu.pipeline_mode<synchronous>, transform_indices = @transform_14, window_bounds = array<i64: 9, 128>}, {pipeline_mode = #tpu.pipeline_mode<synchronous>, transform_indices = @transform_15, window_bounds = array<i64: 128, 128>}, {pipeline_mode = #tpu.pipeline_mode<synchronous>, transform_indices = @transform_16, window_bounds = array<i64: 1, 128>}, {pipeline_mode = #tpu.pipeline_mode<synchronous>, transform_indices = @transform_17, window_bounds = array<i64: 25, 128>}, {pipeline_mode = #tpu.pipeline_mode<synchronous>, transform_indices = @transform_18, window_bounds = array<i64: 128, 128>}, {pipeline_mode = #tpu.pipeline_mode<synchronous>, transform_indices = @transform_19, window_bounds = array<i64: 1, 128>}, {pipeline_mode = #tpu.pipeline_mode<synchronous>, transform_indices = @transform_20, window_bounds = array<i64: 25, 128>}, {pipeline_mode = #tpu.pipeline_mode<synchronous>, transform_indices = @transform_21, window_bounds = array<i64: 128, 128>}, {pipeline_mode = #tpu.pipeline_mode<synchronous>, transform_indices = @transform_22, window_bounds = array<i64: 1, 128>}, {pipeline_mode = #tpu.pipeline_mode<synchronous>, transform_indices = @transform_23, window_bounds = array<i64: 25, 128>}, {pipeline_mode = #tpu.pipeline_mode<synchronous>, transform_indices = @transform_24, window_bounds = array<i64: 128, 128>}, {pipeline_mode = #tpu.pipeline_mode<synchronous>, transform_indices = @transform_25, window_bounds = array<i64: 1, 128>}, {transform_indices = @transform_26, window_bounds = array<i64: 1, 8, 512>}]} {
    %cst = arith.constant 0.000000e+00 : f32
    %0 = vector.broadcast %cst : f32 to vector<16x256xf32>
    %c0 = arith.constant 0 : index
    %c0_0 = arith.constant 0 : index
    %1 = vector.load %arg28[%c0, %c0_0] : memref<16x256xf32, #tpu.memory_space<vmem>>, vector<16x256xf32>
    tpu.vector_store %arg28[%c0, %c0_0], %0 {strides = array<i32>} : memref<16x256xf32, #tpu.memory_space<vmem>>, vector<16x256xf32>,
    %c0_1 = arith.constant 0 : index
    %c0_2 = arith.constant 0 : index
    %c0_3 = arith.constant 0 : index
    %2 = vector.load %arg1[%c0_1, %c0_2, %c0_3] : memref<1x8x128xf32, #tpu.memory_space<vmem>>, vector<1x8x128xf32>
    %3 = vector.shape_cast %2 : vector<1x8x128xf32> to vector<8x128xf32>
    %c0_4 = arith.constant 0 : index
    %c0_5 = arith.constant 0 : index
    %c0_6 = arith.constant 0 : index
    %4 = vector.load %arg2[%c0_4, %c0_5, %c0_6] : memref<1x8x256xf32, #tpu.memory_space<vmem>>, vector<1x8x256xf32>
    %5 = vector.shape_cast %4 : vector<1x8x256xf32> to vector<8x256xf32>
    %cst_7 = arith.constant 0.000000e+00 : f32
    %6 = vector.broadcast %cst_7 : f32 to vector<8x128xf32>
    %7 = arith.maximumf %3, %6 : vector<8x128xf32>
    %c0_8 = arith.constant 0 : index
    %c0_9 = arith.constant 0 : index
    %8 = vector.load %arg5[%c0_8, %c0_9] : memref<128x128xf32, #tpu.memory_space<vmem>>, vector<128x128xf32>
    %cst_10 = arith.constant dense<0.000000e+00> : vector<8x128xf32>
    %9 = tpu.matmul %7, %8, %cst_10 {dimension_numbers = #tpu.dot_dimension_numbers<[1], [0], [0], [1], [0, 0, 1, 1], [], []>} : vector<8x128xf32>, vector<128x128xf32>, vector<8x128xf32> -> vector<8x128xf32>
    %c0_11 = arith.constant 0 : index
    %c0_12 = arith.constant 0 : index
    %10 = vector.load %arg6[%c0_11, %c0_12] : memref<1x128xf32, #tpu.memory_space<vmem>>, vector<1x128xf32>
    %11 = vector.broadcast %10 : vector<1x128xf32> to vector<8x128xf32>
    %12 = arith.addf %9, %11 : vector<8x128xf32>
    %cst_13 = arith.constant 0.000000e+00 : f32
    %13 = vector.broadcast %cst_13 : f32 to vector<8x256xf32>
    %14 = arith.maximumf %5, %13 : vector<8x256xf32>
    %c0_14 = arith.constant 0 : index
    %c0_15 = arith.constant 0 : index
    %15 = vector.load %arg7[%c0_14, %c0_15] : memref<256x128xf32, #tpu.memory_space<vmem>>, vector<256x128xf32>
    %cst_16 = arith.constant dense<0.000000e+00> : vector<8x128xf32>
    %16 = tpu.matmul %14, %15, %cst_16 {dimension_numbers = #tpu.dot_dimension_numbers<[1], [0], [0], [1], [0, 0, 1, 1], [], []>} : vector<8x256xf32>, vector<256x128xf32>, vector<8x128xf32> -> vector<8x128xf32>
    %c0_17 = arith.constant 0 : index
    %c0_18 = arith.constant 0 : index
    %17 = vector.load %arg8[%c0_17, %c0_18] : memref<1x128xf32, #tpu.memory_space<vmem>>, vector<1x128xf32>
    %18 = vector.broadcast %17 : vector<1x128xf32> to vector<8x128xf32>
    %19 = arith.addf %16, %18 : vector<8x128xf32>
    %cst_19 = arith.constant 0.000000e+00 : f32
    %20 = vector.broadcast %cst_19 : f32 to vector<8x128xf32>
    %21 = arith.maximumf %12, %20 : vector<8x128xf32>
    %c4 = arith.constant 4 : index
    %c64 = arith.constant 64 : index
    %22 = vector.load %arg28[%c4, %c64] : memref<16x256xf32, #tpu.memory_space<vmem>>, vector<8x128xf32>
    tpu.vector_store %arg28[%c4, %c64], %21 {strides = array<i32>} : memref<16x256xf32, #tpu.memory_space<vmem>>, vector<8x128xf32>,
    %c0_20 = arith.constant 0 : index
    %c0_21 = arith.constant 0 : index
    %23 = vector.load %arg9[%c0_20, %c0_21] : memref<9x128xf32, #tpu.memory_space<vmem>>, vector<9x128xf32>
    %cst_22 = arith.constant 0.000000e+00 : f32
    %24 = vector.broadcast %cst_22 : f32 to vector<8x128xf32>
    %c3 = arith.constant 3 : index
    %c0_23 = arith.constant 0 : index
    %25 = vector.load %arg28[%c3, %c0_23] : memref<16x256xf32, #tpu.memory_space<vmem>>, vector<8x256xf32>
    %26 = vector.extract_strided_slice %25 {offsets = [0, 48], sizes = [8, 128], strides = [1, 1]} : vector<8x256xf32> to vector<8x128xf32>
    %27 = vector.extract_strided_slice %23 {offsets = [0, 0], sizes = [1, 128], strides = [1, 1]} : vector<9x128xf32> to vector<1x128xf32>
    %28 = vector.shape_cast %27 : vector<1x128xf32> to vector<128xf32>
    %29 = vector.shape_cast %28 : vector<128xf32> to vector<1x128xf32>
    %30 = vector.broadcast %29 : vector<1x128xf32> to vector<8x128xf32>
    %31 = arith.mulf %26, %30 : vector<8x128xf32>
    %32 = arith.addf %24, %31 : vector<8x128xf32>
    %33 = vector.extract_strided_slice %25 {offsets = [0, 64], sizes = [8, 128], strides = [1, 1]} : vector<8x256xf32> to vector<8x128xf32>
    %34 = vector.extract_strided_slice %23 {offsets = [1, 0], sizes = [1, 128], strides = [1, 1]} : vector<9x128xf32> to vector<1x128xf32>
    %35 = vector.shape_cast %34 : vector<1x128xf32> to vector<128xf32>
    %36 = vector.shape_cast %35 : vector<128xf32> to vector<1x128xf32>
    %37 = vector.broadcast %36 : vector<1x128xf32> to vector<8x128xf32>
    %38 = arith.mulf %33, %37 : vector<8x128xf32>
    %39 = arith.addf %32, %38 : vector<8x128xf32>
    %40 = vector.extract_strided_slice %25 {offsets = [0, 80], sizes = [8, 128], strides = [1, 1]} : vector<8x256xf32> to vector<8x128xf32>
    %41 = vector.extract_strided_slice %23 {offsets = [2, 0], sizes = [1, 128], strides = [1, 1]} : vector<9x128xf32> to vector<1x128xf32>
    %42 = vector.shape_cast %41 : vector<1x128xf32> to vector<128xf32>
    %43 = vector.shape_cast %42 : vector<128xf32> to vector<1x128xf32>
    %44 = vector.broadcast %43 : vector<1x128xf32> to vector<8x128xf32>
    %45 = arith.mulf %40, %44 : vector<8x128xf32>
    %46 = arith.addf %39, %45 : vector<8x128xf32>
    %c4_24 = arith.constant 4 : index
    %c0_25 = arith.constant 0 : index
    %47 = vector.load %arg28[%c4_24, %c0_25] : memref<16x256xf32, #tpu.memory_space<vmem>>, vector<8x256xf32>
    %48 = vector.extract_strided_slice %47 {offsets = [0, 48], sizes = [8, 128], strides = [1, 1]} : vector<8x256xf32> to vector<8x128xf32>
    %49 = vector.extract_strided_slice %23 {offsets = [3, 0], sizes = [1, 128], strides = [1, 1]} : vector<9x128xf32> to vector<1x128xf32>
    %50 = vector.shape_cast %49 : vector<1x128xf32> to vector<128xf32>
    %51 = vector.shape_cast %50 : vector<128xf32> to vector<1x128xf32>
    %52 = vector.broadcast %51 : vector<1x128xf32> to vector<8x128xf32>
    %53 = arith.mulf %48, %52 : vector<8x128xf32>
    %54 = arith.addf %46, %53 : vector<8x128xf32>
    %55 = vector.extract_strided_slice %47 {offsets = [0, 64], sizes = [8, 128], strides = [1, 1]} : vector<8x256xf32> to vector<8x128xf32>
    %56 = vector.extract_strided_slice %23 {offsets = [4, 0], sizes = [1, 128], strides = [1, 1]} : vector<9x128xf32> to vector<1x128xf32>
    %57 = vector.shape_cast %56 : vector<1x128xf32> to vector<128xf32>
    %58 = vector.shape_cast %57 : vector<128xf32> to vector<1x128xf32>
    %59 = vector.broadcast %58 : vector<1x128xf32> to vector<8x128xf32>
    %60 = arith.mulf %55, %59 : vector<8x128xf32>
    %61 = arith.addf %54, %60 : vector<8x128xf32>
    %62 = vector.extract_strided_slice %47 {offsets = [0, 80], sizes = [8, 128], strides = [1, 1]} : vector<8x256xf32> to vector<8x128xf32>
    %63 = vector.extract_strided_slice %23 {offsets = [5, 0], sizes = [1, 128], strides = [1, 1]} : vector<9x128xf32> to vector<1x128xf32>
    %64 = vector.shape_cast %63 : vector<1x128xf32> to vector<128xf32>
    %65 = vector.shape_cast %64 : vector<128xf32> to vector<1x128xf32>
    %66 = vector.broadcast %65 : vector<1x128xf32> to vector<8x128xf32>
    %67 = arith.mulf %62, %66 : vector<8x128xf32>
    %68 = arith.addf %61, %67 : vector<8x128xf32>
    %c5 = arith.constant 5 : index
    %c0_26 = arith.constant 0 : index
    %69 = vector.load %arg28[%c5, %c0_26] : memref<16x256xf32, #tpu.memory_space<vmem>>, vector<8x256xf32>
    %70 = vector.extract_strided_slice %69 {offsets = [0, 48], sizes = [8, 128], strides = [1, 1]} : vector<8x256xf32> to vector<8x128xf32>
    %71 = vector.extract_strided_slice %23 {offsets = [6, 0], sizes = [1, 128], strides = [1, 1]} : vector<9x128xf32> to vector<1x128xf32>
    %72 = vector.shape_cast %71 : vector<1x128xf32> to vector<128xf32>
    %73 = vector.shape_cast %72 : vector<128xf32> to vector<1x128xf32>
    %74 = vector.broadcast %73 : vector<1x128xf32> to vector<8x128xf32>
    %75 = arith.mulf %70, %74 : vector<8x128xf32>
    %76 = arith.addf %68, %75 : vector<8x128xf32>
    %77 = vector.extract_strided_slice %69 {offsets = [0, 64], sizes = [8, 128], strides = [1, 1]} : vector<8x256xf32> to vector<8x128xf32>
    %78 = vector.extract_strided_slice %23 {offsets = [7, 0], sizes = [1, 128], strides = [1, 1]} : vector<9x128xf32> to vector<1x128xf32>
    %79 = vector.shape_cast %78 : vector<1x128xf32> to vector<128xf32>
    %80 = vector.shape_cast %79 : vector<128xf32> to vector<1x128xf32>
    %81 = vector.broadcast %80 : vector<1x128xf32> to vector<8x128xf32>
    %82 = arith.mulf %77, %81 : vector<8x128xf32>
    %83 = arith.addf %76, %82 : vector<8x128xf32>
    %84 = vector.extract_strided_slice %69 {offsets = [0, 80], sizes = [8, 128], strides = [1, 1]} : vector<8x256xf32> to vector<8x128xf32>
    %85 = vector.extract_strided_slice %23 {offsets = [8, 0], sizes = [1, 128], strides = [1, 1]} : vector<9x128xf32> to vector<1x128xf32>
    %86 = vector.shape_cast %85 : vector<1x128xf32> to vector<128xf32>
    %87 = vector.shape_cast %86 : vector<128xf32> to vector<1x128xf32>
    %88 = vector.broadcast %87 : vector<1x128xf32> to vector<8x128xf32>
    %89 = arith.mulf %84, %88 : vector<8x128xf32>
    %90 = arith.addf %83, %89 : vector<8x128xf32>
    %c0_27 = arith.constant 0 : index
    %c0_28 = arith.constant 0 : index
    %91 = vector.load %arg10[%c0_27, %c0_28] : memref<128x128xf32, #tpu.memory_space<vmem>>, vector<128x128xf32>
    %cst_29 = arith.constant dense<0.000000e+00> : vector<8x128xf32>
    %92 = tpu.matmul %90, %91, %cst_29 {dimension_numbers = #tpu.dot_dimension_numbers<[1], [0], [0], [1], [0, 0, 1, 1], [], []>} : vector<8x128xf32>, vector<128x128xf32>, vector<8x128xf32> -> vector<8x128xf32>
    %c0_30 = arith.constant 0 : index
    %c0_31 = arith.constant 0 : index
    %93 = vector.load %arg11[%c0_30, %c0_31] : memref<1x128xf32, #tpu.memory_space<vmem>>, vector<1x128xf32>
    %94 = vector.broadcast %93 : vector<1x128xf32> to vector<8x128xf32>
    %95 = arith.addf %92, %94 : vector<8x128xf32>
    %cst_32 = arith.constant 0.000000e+00 : f32
    %96 = vector.broadcast %cst_32 : f32 to vector<8x128xf32>
    %97 = arith.maximumf %95, %96 : vector<8x128xf32>
    %c4_33 = arith.constant 4 : index
    %c64_34 = arith.constant 64 : index
    %98 = vector.load %arg28[%c4_33, %c64_34] : memref<16x256xf32, #tpu.memory_space<vmem>>, vector<8x128xf32>
    tpu.vector_store %arg28[%c4_33, %c64_34], %97 {strides = array<i32>} : memref<16x256xf32, #tpu.memory_space<vmem>>, vector<8x128xf32>,
    %c0_35 = arith.constant 0 : index
    %c0_36 = arith.constant 0 : index
    %99 = vector.load %arg12[%c0_35, %c0_36] : memref<9x128xf32, #tpu.memory_space<vmem>>, vector<9x128xf32>
    %cst_37 = arith.constant 0.000000e+00 : f32
    %100 = vector.broadcast %cst_37 : f32 to vector<8x128xf32>
    %c3_38 = arith.constant 3 : index
    %c0_39 = arith.constant 0 : index
    %101 = vector.load %arg28[%c3_38, %c0_39] : memref<16x256xf32, #tpu.memory_space<vmem>>, vector<8x256xf32>
    %102 = vector.extract_strided_slice %101 {offsets = [0, 48], sizes = [8, 128], strides = [1, 1]} : vector<8x256xf32> to vector<8x128xf32>
    %103 = vector.extract_strided_slice %99 {offsets = [0, 0], sizes = [1, 128], strides = [1, 1]} : vector<9x128xf32> to vector<1x128xf32>
    %104 = vector.shape_cast %103 : vector<1x128xf32> to vector<128xf32>
    %105 = vector.shape_cast %104 : vector<128xf32> to vector<1x128xf32>
    %106 = vector.broadcast %105 : vector<1x128xf32> to vector<8x128xf32>
    %107 = arith.mulf %102, %106 : vector<8x128xf32>
    %108 = arith.addf %100, %107 : vector<8x128xf32>
    %109 = vector.extract_strided_slice %101 {offsets = [0, 64], sizes = [8, 128], strides = [1, 1]} : vector<8x256xf32> to vector<8x128xf32>
    %110 = vector.extract_strided_slice %99 {offsets = [1, 0], sizes = [1, 128], strides = [1, 1]} : vector<9x128xf32> to vector<1x128xf32>
    %111 = vector.shape_cast %110 : vector<1x128xf32> to vector<128xf32>
    %112 = vector.shape_cast %111 : vector<128xf32> to vector<1x128xf32>
    %113 = vector.broadcast %112 : vector<1x128xf32> to vector<8x128xf32>
    %114 = arith.mulf %109, %113 : vector<8x128xf32>
    %115 = arith.addf %108, %114 : vector<8x128xf32>
    %116 = vector.extract_strided_slice %101 {offsets = [0, 80], sizes = [8, 128], strides = [1, 1]} : vector<8x256xf32> to vector<8x128xf32>
    %117 = vector.extract_strided_slice %99 {offsets = [2, 0], sizes = [1, 128], strides = [1, 1]} : vector<9x128xf32> to vector<1x128xf32>
    %118 = vector.shape_cast %117 : vector<1x128xf32> to vector<128xf32>
    %119 = vector.shape_cast %118 : vector<128xf32> to vector<1x128xf32>
    %120 = vector.broadcast %119 : vector<1x128xf32> to vector<8x128xf32>
    %121 = arith.mulf %116, %120 : vector<8x128xf32>
    %122 = arith.addf %115, %121 : vector<8x128xf32>
    %c4_40 = arith.constant 4 : index
    %c0_41 = arith.constant 0 : index
    %123 = vector.load %arg28[%c4_40, %c0_41] : memref<16x256xf32, #tpu.memory_space<vmem>>, vector<8x256xf32>
    %124 = vector.extract_strided_slice %123 {offsets = [0, 48], sizes = [8, 128], strides = [1, 1]} : vector<8x256xf32> to vector<8x128xf32>
    %125 = vector.extract_strided_slice %99 {offsets = [3, 0], sizes = [1, 128], strides = [1, 1]} : vector<9x128xf32> to vector<1x128xf32>
    %126 = vector.shape_cast %125 : vector<1x128xf32> to vector<128xf32>
    %127 = vector.shape_cast %126 : vector<128xf32> to vector<1x128xf32>
    %128 = vector.broadcast %127 : vector<1x128xf32> to vector<8x128xf32>
    %129 = arith.mulf %124, %128 : vector<8x128xf32>
    %130 = arith.addf %122, %129 : vector<8x128xf32>
    %131 = vector.extract_strided_slice %123 {offsets = [0, 64], sizes = [8, 128], strides = [1, 1]} : vector<8x256xf32> to vector<8x128xf32>
    %132 = vector.extract_strided_slice %99 {offsets = [4, 0], sizes = [1, 128], strides = [1, 1]} : vector<9x128xf32> to vector<1x128xf32>
    %133 = vector.shape_cast %132 : vector<1x128xf32> to vector<128xf32>
    %134 = vector.shape_cast %133 : vector<128xf32> to vector<1x128xf32>
    %135 = vector.broadcast %134 : vector<1x128xf32> to vector<8x128xf32>
    %136 = arith.mulf %131, %135 : vector<8x128xf32>
    %137 = arith.addf %130, %136 : vector<8x128xf32>
    %138 = vector.extract_strided_slice %123 {offsets = [0, 80], sizes = [8, 128], strides = [1, 1]} : vector<8x256xf32> to vector<8x128xf32>
    %139 = vector.extract_strided_slice %99 {offsets = [5, 0], sizes = [1, 128], strides = [1, 1]} : vector<9x128xf32> to vector<1x128xf32>
    %140 = vector.shape_cast %139 : vector<1x128xf32> to vector<128xf32>
    %141 = vector.shape_cast %140 : vector<128xf32> to vector<1x128xf32>
    %142 = vector.broadcast %141 : vector<1x128xf32> to vector<8x128xf32>
    %143 = arith.mulf %138, %142 : vector<8x128xf32>
    %144 = arith.addf %137, %143 : vector<8x128xf32>
    %c5_42 = arith.constant 5 : index
    %c0_43 = arith.constant 0 : index
    %145 = vector.load %arg28[%c5_42, %c0_43] : memref<16x256xf32, #tpu.memory_space<vmem>>, vector<8x256xf32>
    %146 = vector.extract_strided_slice %145 {offsets = [0, 48], sizes = [8, 128], strides = [1, 1]} : vector<8x256xf32> to vector<8x128xf32>
    %147 = vector.extract_strided_slice %99 {offsets = [6, 0], sizes = [1, 128], strides = [1, 1]} : vector<9x128xf32> to vector<1x128xf32>
    %148 = vector.shape_cast %147 : vector<1x128xf32> to vector<128xf32>
    %149 = vector.shape_cast %148 : vector<128xf32> to vector<1x128xf32>
    %150 = vector.broadcast %149 : vector<1x128xf32> to vector<8x128xf32>
    %151 = arith.mulf %146, %150 : vector<8x128xf32>
    %152 = arith.addf %144, %151 : vector<8x128xf32>
    %153 = vector.extract_strided_slice %145 {offsets = [0, 64], sizes = [8, 128], strides = [1, 1]} : vector<8x256xf32> to vector<8x128xf32>
    %154 = vector.extract_strided_slice %99 {offsets = [7, 0], sizes = [1, 128], strides = [1, 1]} : vector<9x128xf32> to vector<1x128xf32>
    %155 = vector.shape_cast %154 : vector<1x128xf32> to vector<128xf32>
    %156 = vector.shape_cast %155 : vector<128xf32> to vector<1x128xf32>
    %157 = vector.broadcast %156 : vector<1x128xf32> to vector<8x128xf32>
    %158 = arith.mulf %153, %157 : vector<8x128xf32>
    %159 = arith.addf %152, %158 : vector<8x128xf32>
    %160 = vector.extract_strided_slice %145 {offsets = [0, 80], sizes = [8, 128], strides = [1, 1]} : vector<8x256xf32> to vector<8x128xf32>
    %161 = vector.extract_strided_slice %99 {offsets = [8, 0], sizes = [1, 128], strides = [1, 1]} : vector<9x128xf32> to vector<1x128xf32>
    %162 = vector.shape_cast %161 : vector<1x128xf32> to vector<128xf32>
    %163 = vector.shape_cast %162 : vector<128xf32> to vector<1x128xf32>
    %164 = vector.broadcast %163 : vector<1x128xf32> to vector<8x128xf32>
    %165 = arith.mulf %160, %164 : vector<8x128xf32>
    %166 = arith.addf %159, %165 : vector<8x128xf32>
    %c0_44 = arith.constant 0 : index
    %c0_45 = arith.constant 0 : index
    %167 = vector.load %arg13[%c0_44, %c0_45] : memref<128x128xf32, #tpu.memory_space<vmem>>, vector<128x128xf32>
    %cst_46 = arith.constant dense<0.000000e+00> : vector<8x128xf32>
    %168 = tpu.matmul %166, %167, %cst_46 {dimension_numbers = #tpu.dot_dimension_numbers<[1], [0], [0], [1], [0, 0, 1, 1], [], []>} : vector<8x128xf32>, vector<128x128xf32>, vector<8x128xf32> -> vector<8x128xf32>
    %c0_47 = arith.constant 0 : index
    %c0_48 = arith.constant 0 : index
    %169 = vector.load %arg14[%c0_47, %c0_48] : memref<1x128xf32, #tpu.memory_space<vmem>>, vector<1x128xf32>
    %170 = vector.broadcast %169 : vector<1x128xf32> to vector<8x128xf32>
    %171 = arith.addf %168, %170 : vector<8x128xf32>
    %172 = arith.addf %171, %19 : vector<8x128xf32>
    %c4_49 = arith.constant 4 : index
    %c64_50 = arith.constant 64 : index
    %173 = vector.load %arg28[%c4_49, %c64_50] : memref<16x256xf32, #tpu.memory_space<vmem>>, vector<8x128xf32>
    tpu.vector_store %arg28[%c4_49, %c64_50], %12 {strides = array<i32>} : memref<16x256xf32, #tpu.memory_space<vmem>>, vector<8x128xf32>,
    %c3_51 = arith.constant 3 : index
    %c0_52 = arith.constant 0 : index
    %174 = vector.load %arg28[%c3_51, %c0_52] : memref<16x256xf32, #tpu.memory_space<vmem>>, vector<8x256xf32>
    %175 = vector.extract_strided_slice %174 {offsets = [0, 48], sizes = [8, 128], strides = [1, 1]} : vector<8x256xf32> to vector<8x128xf32>
    %176 = vector.extract_strided_slice %174 {offsets = [0, 64], sizes = [8, 128], strides = [1, 1]} : vector<8x256xf32> to vector<8x128xf32>
    %177 = arith.addf %175, %176 : vector<8x128xf32>
    %178 = vector.extract_strided_slice %174 {offsets = [0, 80], sizes = [8, 128], strides = [1, 1]} : vector<8x256xf32> to vector<8x128xf32>
    %179 = arith.addf %177, %178 : vector<8x128xf32>
    %c4_53 = arith.constant 4 : index
    %c0_54 = arith.constant 0 : index
    %180 = vector.load %arg28[%c4_53, %c0_54] : memref<16x256xf32, #tpu.memory_space<vmem>>, vector<8x256xf32>
    %181 = vector.extract_strided_slice %180 {offsets = [0, 48], sizes = [8, 128], strides = [1, 1]} : vector<8x256xf32> to vector<8x128xf32>
    %182 = arith.addf %179, %181 : vector<8x128xf32>
    %183 = vector.extract_strided_slice %180 {offsets = [0, 64], sizes = [8, 128], strides = [1, 1]} : vector<8x256xf32> to vector<8x128xf32>
    %184 = arith.addf %182, %183 : vector<8x128xf32>
    %185 = vector.extract_strided_slice %180 {offsets = [0, 80], sizes = [8, 128], strides = [1, 1]} : vector<8x256xf32> to vector<8x128xf32>
    %186 = arith.addf %184, %185 : vector<8x128xf32>
    %c5_55 = arith.constant 5 : index
    %c0_56 = arith.constant 0 : index
    %187 = vector.load %arg28[%c5_55, %c0_56] : memref<16x256xf32, #tpu.memory_space<vmem>>, vector<8x256xf32>
    %188 = vector.extract_strided_slice %187 {offsets = [0, 48], sizes = [8, 128], strides = [1, 1]} : vector<8x256xf32> to vector<8x128xf32>
    %189 = arith.addf %186, %188 : vector<8x128xf32>
    %190 = vector.extract_strided_slice %187 {offsets = [0, 64], sizes = [8, 128], strides = [1, 1]} : vector<8x256xf32> to vector<8x128xf32>
    %191 = arith.addf %189, %190 : vector<8x128xf32>
    %192 = vector.extract_strided_slice %187 {offsets = [0, 80], sizes = [8, 128], strides = [1, 1]} : vector<8x256xf32> to vector<8x128xf32>
    %193 = arith.addf %191, %192 : vector<8x128xf32>
    %c0_57 = arith.constant 0 : index
    %c0_58 = arith.constant 0 : index
    %194 = vector.load %arg3[%c0_57, %c0_58] : memref<8x128xf32, #tpu.memory_space<vmem>>, vector<8x128xf32>
    %195 = arith.mulf %193, %194 : vector<8x128xf32>
    %cst_59 = arith.constant 0.000000e+00 : f32
    %196 = vector.broadcast %cst_59 : f32 to vector<8x128xf32>
    %197 = arith.maximumf %172, %196 : vector<8x128xf32>
    %c4_60 = arith.constant 4 : index
    %c64_61 = arith.constant 64 : index
    %198 = vector.load %arg28[%c4_60, %c64_61] : memref<16x256xf32, #tpu.memory_space<vmem>>, vector<8x128xf32>
    tpu.vector_store %arg28[%c4_60, %c64_61], %197 {strides = array<i32>} : memref<16x256xf32, #tpu.memory_space<vmem>>, vector<8x128xf32>,
    %c0_62 = arith.constant 0 : index
    %c0_63 = arith.constant 0 : index
    %199 = vector.load %arg15[%c0_62, %c0_63] : memref<9x128xf32, #tpu.memory_space<vmem>>, vector<9x128xf32>
    %cst_64 = arith.constant 0.000000e+00 : f32
    %200 = vector.broadcast %cst_64 : f32 to vector<8x128xf32>
    %c2 = arith.constant 2 : index
    %c0_65 = arith.constant 0 : index
    %201 = vector.load %arg28[%c2, %c0_65] : memref<16x256xf32, #tpu.memory_space<vmem>>, vector<8x256xf32>
    %202 = vector.extract_strided_slice %201 {offsets = [0, 32], sizes = [8, 128], strides = [1, 1]} : vector<8x256xf32> to vector<8x128xf32>
    %203 = vector.extract_strided_slice %199 {offsets = [0, 0], sizes = [1, 128], strides = [1, 1]} : vector<9x128xf32> to vector<1x128xf32>
    %204 = vector.shape_cast %203 : vector<1x128xf32> to vector<128xf32>
    %205 = vector.shape_cast %204 : vector<128xf32> to vector<1x128xf32>
    %206 = vector.broadcast %205 : vector<1x128xf32> to vector<8x128xf32>
    %207 = arith.mulf %202, %206 : vector<8x128xf32>
    %208 = arith.addf %200, %207 : vector<8x128xf32>
    %209 = vector.extract_strided_slice %201 {offsets = [0, 64], sizes = [8, 128], strides = [1, 1]} : vector<8x256xf32> to vector<8x128xf32>
    %210 = vector.extract_strided_slice %199 {offsets = [1, 0], sizes = [1, 128], strides = [1, 1]} : vector<9x128xf32> to vector<1x128xf32>
    %211 = vector.shape_cast %210 : vector<1x128xf32> to vector<128xf32>
    %212 = vector.shape_cast %211 : vector<128xf32> to vector<1x128xf32>
    %213 = vector.broadcast %212 : vector<1x128xf32> to vector<8x128xf32>
    %214 = arith.mulf %209, %213 : vector<8x128xf32>
    %215 = arith.addf %208, %214 : vector<8x128xf32>
    %216 = vector.extract_strided_slice %201 {offsets = [0, 96], sizes = [8, 128], strides = [1, 1]} : vector<8x256xf32> to vector<8x128xf32>
    %217 = vector.extract_strided_slice %199 {offsets = [2, 0], sizes = [1, 128], strides = [1, 1]} : vector<9x128xf32> to vector<1x128xf32>
    %218 = vector.shape_cast %217 : vector<1x128xf32> to vector<128xf32>
    %219 = vector.shape_cast %218 : vector<128xf32> to vector<1x128xf32>
    %220 = vector.broadcast %219 : vector<1x128xf32> to vector<8x128xf32>
    %221 = arith.mulf %216, %220 : vector<8x128xf32>
    %222 = arith.addf %215, %221 : vector<8x128xf32>
    %c4_66 = arith.constant 4 : index
    %c0_67 = arith.constant 0 : index
    %223 = vector.load %arg28[%c4_66, %c0_67] : memref<16x256xf32, #tpu.memory_space<vmem>>, vector<8x256xf32>
    %224 = vector.extract_strided_slice %223 {offsets = [0, 32], sizes = [8, 128], strides = [1, 1]} : vector<8x256xf32> to vector<8x128xf32>
    %225 = vector.extract_strided_slice %199 {offsets = [3, 0], sizes = [1, 128], strides = [1, 1]} : vector<9x128xf32> to vector<1x128xf32>
    %226 = vector.shape_cast %225 : vector<1x128xf32> to vector<128xf32>
    %227 = vector.shape_cast %226 : vector<128xf32> to vector<1x128xf32>
    %228 = vector.broadcast %227 : vector<1x128xf32> to vector<8x128xf32>
    %229 = arith.mulf %224, %228 : vector<8x128xf32>
    %230 = arith.addf %222, %229 : vector<8x128xf32>
    %231 = vector.extract_strided_slice %223 {offsets = [0, 64], sizes = [8, 128], strides = [1, 1]} : vector<8x256xf32> to vector<8x128xf32>
    %232 = vector.extract_strided_slice %199 {offsets = [4, 0], sizes = [1, 128], strides = [1, 1]} : vector<9x128xf32> to vector<1x128xf32>
    %233 = vector.shape_cast %232 : vector<1x128xf32> to vector<128xf32>
    %234 = vector.shape_cast %233 : vector<128xf32> to vector<1x128xf32>
    %235 = vector.broadcast %234 : vector<1x128xf32> to vector<8x128xf32>
    %236 = arith.mulf %231, %235 : vector<8x128xf32>
    %237 = arith.addf %230, %236 : vector<8x128xf32>
    %238 = vector.extract_strided_slice %223 {offsets = [0, 96], sizes = [8, 128], strides = [1, 1]} : vector<8x256xf32> to vector<8x128xf32>
    %239 = vector.extract_strided_slice %199 {offsets = [5, 0], sizes = [1, 128], strides = [1, 1]} : vector<9x128xf32> to vector<1x128xf32>
    %240 = vector.shape_cast %239 : vector<1x128xf32> to vector<128xf32>
    %241 = vector.shape_cast %240 : vector<128xf32> to vector<1x128xf32>
    %242 = vector.broadcast %241 : vector<1x128xf32> to vector<8x128xf32>
    %243 = arith.mulf %238, %242 : vector<8x128xf32>
    %244 = arith.addf %237, %243 : vector<8x128xf32>
    %c6 = arith.constant 6 : index
    %c0_68 = arith.constant 0 : index
    %245 = vector.load %arg28[%c6, %c0_68] : memref<16x256xf32, #tpu.memory_space<vmem>>, vector<8x256xf32>
    %246 = vector.extract_strided_slice %245 {offsets = [0, 32], sizes = [8, 128], strides = [1, 1]} : vector<8x256xf32> to vector<8x128xf32>
    %247 = vector.extract_strided_slice %199 {offsets = [6, 0], sizes = [1, 128], strides = [1, 1]} : vector<9x128xf32> to vector<1x128xf32>
    %248 = vector.shape_cast %247 : vector<1x128xf32> to vector<128xf32>
    %249 = vector.shape_cast %248 : vector<128xf32> to vector<1x128xf32>
    %250 = vector.broadcast %249 : vector<1x128xf32> to vector<8x128xf32>
    %251 = arith.mulf %246, %250 : vector<8x128xf32>
    %252 = arith.addf %244, %251 : vector<8x128xf32>
    %253 = vector.extract_strided_slice %245 {offsets = [0, 64], sizes = [8, 128], strides = [1, 1]} : vector<8x256xf32> to vector<8x128xf32>
    %254 = vector.extract_strided_slice %199 {offsets = [7, 0], sizes = [1, 128], strides = [1, 1]} : vector<9x128xf32> to vector<1x128xf32>
    %255 = vector.shape_cast %254 : vector<1x128xf32> to vector<128xf32>
    %256 = vector.shape_cast %255 : vector<128xf32> to vector<1x128xf32>
    %257 = vector.broadcast %256 : vector<1x128xf32> to vector<8x128xf32>
    %258 = arith.mulf %253, %257 : vector<8x128xf32>
    %259 = arith.addf %252, %258 : vector<8x128xf32>
    %260 = vector.extract_strided_slice %245 {offsets = [0, 96], sizes = [8, 128], strides = [1, 1]} : vector<8x256xf32> to vector<8x128xf32>
    %261 = vector.extract_strided_slice %199 {offsets = [8, 0], sizes = [1, 128], strides = [1, 1]} : vector<9x128xf32> to vector<1x128xf32>
    %262 = vector.shape_cast %261 : vector<1x128xf32> to vector<128xf32>
    %263 = vector.shape_cast %262 : vector<128xf32> to vector<1x128xf32>
    %264 = vector.broadcast %263 : vector<1x128xf32> to vector<8x128xf32>
    %265 = arith.mulf %260, %264 : vector<8x128xf32>
    %266 = arith.addf %259, %265 : vector<8x128xf32>
    %c0_69 = arith.constant 0 : index
    %c0_70 = arith.constant 0 : index
    %267 = vector.load %arg16[%c0_69, %c0_70] : memref<128x128xf32, #tpu.memory_space<vmem>>, vector<128x128xf32>
    %cst_71 = arith.constant dense<0.000000e+00> : vector<8x128xf32>
    %268 = tpu.matmul %266, %267, %cst_71 {dimension_numbers = #tpu.dot_dimension_numbers<[1], [0], [0], [1], [0, 0, 1, 1], [], []>} : vector<8x128xf32>, vector<128x128xf32>, vector<8x128xf32> -> vector<8x128xf32>
    %c0_72 = arith.constant 0 : index
    %c0_73 = arith.constant 0 : index
    %269 = vector.load %arg17[%c0_72, %c0_73] : memref<1x128xf32, #tpu.memory_space<vmem>>, vector<1x128xf32>
    %270 = vector.broadcast %269 : vector<1x128xf32> to vector<8x128xf32>
    %271 = arith.addf %268, %270 : vector<8x128xf32>
    %272 = arith.addf %195, %271 : vector<8x128xf32>
    %c4_74 = arith.constant 4 : index
    %c64_75 = arith.constant 64 : index
    %273 = vector.load %arg28[%c4_74, %c64_75] : memref<16x256xf32, #tpu.memory_space<vmem>>, vector<8x128xf32>
    tpu.vector_store %arg28[%c4_74, %c64_75], %19 {strides = array<i32>} : memref<16x256xf32, #tpu.memory_space<vmem>>, vector<8x128xf32>,
    %c3_76 = arith.constant 3 : index
    %c0_77 = arith.constant 0 : index
    %274 = vector.load %arg28[%c3_76, %c0_77] : memref<16x256xf32, #tpu.memory_space<vmem>>, vector<8x256xf32>
    %275 = vector.extract_strided_slice %274 {offsets = [0, 48], sizes = [8, 128], strides = [1, 1]} : vector<8x256xf32> to vector<8x128xf32>
    %c0_78 = arith.constant 0 : index
    %c0_79 = arith.constant 0 : index
    %c0_80 = arith.constant 0 : index
    %276 = vector.load %arg4[%c0_78, %c0_79, %c0_80] : memref<9x8x128xf32, #tpu.memory_space<vmem>>, vector<1x8x128xf32>
    %277 = vector.shape_cast %276 : vector<1x8x128xf32> to vector<8x128xf32>
    %278 = arith.addf %275, %277 : vector<8x128xf32>
    %279 = vector.extract_strided_slice %274 {offsets = [0, 64], sizes = [8, 128], strides = [1, 1]} : vector<8x256xf32> to vector<8x128xf32>
    %c1 = arith.constant 1 : index
    %c0_81 = arith.constant 0 : index
    %c0_82 = arith.constant 0 : index
    %280 = vector.load %arg4[%c1, %c0_81, %c0_82] : memref<9x8x128xf32, #tpu.memory_space<vmem>>, vector<1x8x128xf32>
    %281 = vector.shape_cast %280 : vector<1x8x128xf32> to vector<8x128xf32>
    %282 = arith.addf %279, %281 : vector<8x128xf32>
    %283 = arith.maximumf %278, %282 : vector<8x128xf32>
    %284 = vector.extract_strided_slice %274 {offsets = [0, 80], sizes = [8, 128], strides = [1, 1]} : vector<8x256xf32> to vector<8x128xf32>
    %c2_83 = arith.constant 2 : index
    %c0_84 = arith.constant 0 : index
    %c0_85 = arith.constant 0 : index
    %285 = vector.load %arg4[%c2_83, %c0_84, %c0_85] : memref<9x8x128xf32, #tpu.memory_space<vmem>>, vector<1x8x128xf32>
    %286 = vector.shape_cast %285 : vector<1x8x128xf32> to vector<8x128xf32>
    %287 = arith.addf %284, %286 : vector<8x128xf32>
    %288 = arith.maximumf %283, %287 : vector<8x128xf32>
    %c4_86 = arith.constant 4 : index
    %c0_87 = arith.constant 0 : index
    %289 = vector.load %arg28[%c4_86, %c0_87] : memref<16x256xf32, #tpu.memory_space<vmem>>, vector<8x256xf32>
    %290 = vector.extract_strided_slice %289 {offsets = [0, 48], sizes = [8, 128], strides = [1, 1]} : vector<8x256xf32> to vector<8x128xf32>
    %c3_88 = arith.constant 3 : index
    %c0_89 = arith.constant 0 : index
    %c0_90 = arith.constant 0 : index
    %291 = vector.load %arg4[%c3_88, %c0_89, %c0_90] : memref<9x8x128xf32, #tpu.memory_space<vmem>>, vector<1x8x128xf32>
    %292 = vector.shape_cast %291 : vector<1x8x128xf32> to vector<8x128xf32>
    %293 = arith.addf %290, %292 : vector<8x128xf32>
    %294 = arith.maximumf %288, %293 : vector<8x128xf32>
    %295 = vector.extract_strided_slice %289 {offsets = [0, 64], sizes = [8, 128], strides = [1, 1]} : vector<8x256xf32> to vector<8x128xf32>
    %c4_91 = arith.constant 4 : index
    %c0_92 = arith.constant 0 : index
    %c0_93 = arith.constant 0 : index
    %296 = vector.load %arg4[%c4_91, %c0_92, %c0_93] : memref<9x8x128xf32, #tpu.memory_space<vmem>>, vector<1x8x128xf32>
    %297 = vector.shape_cast %296 : vector<1x8x128xf32> to vector<8x128xf32>
    %298 = arith.addf %295, %297 : vector<8x128xf32>
    %299 = arith.maximumf %294, %298 : vector<8x128xf32>
    %300 = vector.extract_strided_slice %289 {offsets = [0, 80], sizes = [8, 128], strides = [1, 1]} : vector<8x256xf32> to vector<8x128xf32>
    %c5_94 = arith.constant 5 : index
    %c0_95 = arith.constant 0 : index
    %c0_96 = arith.constant 0 : index
    %301 = vector.load %arg4[%c5_94, %c0_95, %c0_96] : memref<9x8x128xf32, #tpu.memory_space<vmem>>, vector<1x8x128xf32>
    %302 = vector.shape_cast %301 : vector<1x8x128xf32> to vector<8x128xf32>
    %303 = arith.addf %300, %302 : vector<8x128xf32>
    %304 = arith.maximumf %299, %303 : vector<8x128xf32>
    %c5_97 = arith.constant 5 : index
    %c0_98 = arith.constant 0 : index
    %305 = vector.load %arg28[%c5_97, %c0_98] : memref<16x256xf32, #tpu.memory_space<vmem>>, vector<8x256xf32>
    %306 = vector.extract_strided_slice %305 {offsets = [0, 48], sizes = [8, 128], strides = [1, 1]} : vector<8x256xf32> to vector<8x128xf32>
    %c6_99 = arith.constant 6 : index
    %c0_100 = arith.constant 0 : index
    %c0_101 = arith.constant 0 : index
    %307 = vector.load %arg4[%c6_99, %c0_100, %c0_101] : memref<9x8x128xf32, #tpu.memory_space<vmem>>, vector<1x8x128xf32>
    %308 = vector.shape_cast %307 : vector<1x8x128xf32> to vector<8x128xf32>
    %309 = arith.addf %306, %308 : vector<8x128xf32>
    %310 = arith.maximumf %304, %309 : vector<8x128xf32>
    %311 = vector.extract_strided_slice %305 {offsets = [0, 64], sizes = [8, 128], strides = [1, 1]} : vector<8x256xf32> to vector<8x128xf32>
    %c7 = arith.constant 7 : index
    %c0_102 = arith.constant 0 : index
    %c0_103 = arith.constant 0 : index
    %312 = vector.load %arg4[%c7, %c0_102, %c0_103] : memref<9x8x128xf32, #tpu.memory_space<vmem>>, vector<1x8x128xf32>
    %313 = vector.shape_cast %312 : vector<1x8x128xf32> to vector<8x128xf32>
    %314 = arith.addf %311, %313 : vector<8x128xf32>
    %315 = arith.maximumf %310, %314 : vector<8x128xf32>
    %316 = vector.extract_strided_slice %305 {offsets = [0, 80], sizes = [8, 128], strides = [1, 1]} : vector<8x256xf32> to vector<8x128xf32>
    %c8 = arith.constant 8 : index
    %c0_104 = arith.constant 0 : index
    %c0_105 = arith.constant 0 : index
    %317 = vector.load %arg4[%c8, %c0_104, %c0_105] : memref<9x8x128xf32, #tpu.memory_space<vmem>>, vector<1x8x128xf32>
    %318 = vector.shape_cast %317 : vector<1x8x128xf32> to vector<8x128xf32>
    %319 = arith.addf %316, %318 : vector<8x128xf32>
    %320 = arith.maximumf %315, %319 : vector<8x128xf32>
    %cst_106 = arith.constant 0.000000e+00 : f32
    %321 = vector.broadcast %cst_106 : f32 to vector<8x128xf32>
    %322 = arith.maximumf %272, %321 : vector<8x128xf32>
    %c4_107 = arith.constant 4 : index
    %c64_108 = arith.constant 64 : index
    %323 = vector.load %arg28[%c4_107, %c64_108] : memref<16x256xf32, #tpu.memory_space<vmem>>, vector<8x128xf32>
    tpu.vector_store %arg28[%c4_107, %c64_108], %322 {strides = array<i32>} : memref<16x256xf32, #tpu.memory_space<vmem>>, vector<8x128xf32>,
    %c0_109 = arith.constant 0 : index
    %c0_110 = arith.constant 0 : index
    %324 = vector.load %arg18[%c0_109, %c0_110] : memref<25x128xf32, #tpu.memory_space<vmem>>, vector<25x128xf32>
    %cst_111 = arith.constant 0.000000e+00 : f32
    %325 = vector.broadcast %cst_111 : f32 to vector<8x128xf32>
    %c2_112 = arith.constant 2 : index
    %c0_113 = arith.constant 0 : index
    %326 = vector.load %arg28[%c2_112, %c0_113] : memref<16x256xf32, #tpu.memory_space<vmem>>, vector<8x256xf32>
    %327 = vector.extract_strided_slice %326 {offsets = [0, 32], sizes = [8, 128], strides = [1, 1]} : vector<8x256xf32> to vector<8x128xf32>
    %328 = vector.extract_strided_slice %324 {offsets = [0, 0], sizes = [1, 128], strides = [1, 1]} : vector<25x128xf32> to vector<1x128xf32>
    %329 = vector.shape_cast %328 : vector<1x128xf32> to vector<128xf32>
    %330 = vector.shape_cast %329 : vector<128xf32> to vector<1x128xf32>
    %331 = vector.broadcast %330 : vector<1x128xf32> to vector<8x128xf32>
    %332 = arith.mulf %327, %331 : vector<8x128xf32>
    %333 = arith.addf %325, %332 : vector<8x128xf32>
    %334 = vector.extract_strided_slice %326 {offsets = [0, 48], sizes = [8, 128], strides = [1, 1]} : vector<8x256xf32> to vector<8x128xf32>
    %335 = vector.extract_strided_slice %324 {offsets = [1, 0], sizes = [1, 128], strides = [1, 1]} : vector<25x128xf32> to vector<1x128xf32>
    %336 = vector.shape_cast %335 : vector<1x128xf32> to vector<128xf32>
    %337 = vector.shape_cast %336 : vector<128xf32> to vector<1x128xf32>
    %338 = vector.broadcast %337 : vector<1x128xf32> to vector<8x128xf32>
    %339 = arith.mulf %334, %338 : vector<8x128xf32>
    %340 = arith.addf %333, %339 : vector<8x128xf32>
    %341 = vector.extract_strided_slice %326 {offsets = [0, 64], sizes = [8, 128], strides = [1, 1]} : vector<8x256xf32> to vector<8x128xf32>
    %342 = vector.extract_strided_slice %324 {offsets = [2, 0], sizes = [1, 128], strides = [1, 1]} : vector<25x128xf32> to vector<1x128xf32>
    %343 = vector.shape_cast %342 : vector<1x128xf32> to vector<128xf32>
    %344 = vector.shape_cast %343 : vector<128xf32> to vector<1x128xf32>
    %345 = vector.broadcast %344 : vector<1x128xf32> to vector<8x128xf32>
    %346 = arith.mulf %341, %345 : vector<8x128xf32>
    %347 = arith.addf %340, %346 : vector<8x128xf32>
    %348 = vector.extract_strided_slice %326 {offsets = [0, 80], sizes = [8, 128], strides = [1, 1]} : vector<8x256xf32> to vector<8x128xf32>
    %349 = vector.extract_strided_slice %324 {offsets = [3, 0], sizes = [1, 128], strides = [1, 1]} : vector<25x128xf32> to vector<1x128xf32>
    %350 = vector.shape_cast %349 : vector<1x128xf32> to vector<128xf32>
    %351 = vector.shape_cast %350 : vector<128xf32> to vector<1x128xf32>
    %352 = vector.broadcast %351 : vector<1x128xf32> to vector<8x128xf32>
    %353 = arith.mulf %348, %352 : vector<8x128xf32>
    %354 = arith.addf %347, %353 : vector<8x128xf32>
    %355 = vector.extract_strided_slice %326 {offsets = [0, 96], sizes = [8, 128], strides = [1, 1]} : vector<8x256xf32> to vector<8x128xf32>
    %356 = vector.extract_strided_slice %324 {offsets = [4, 0], sizes = [1, 128], strides = [1, 1]} : vector<25x128xf32> to vector<1x128xf32>
    %357 = vector.shape_cast %356 : vector<1x128xf32> to vector<128xf32>
    %358 = vector.shape_cast %357 : vector<128xf32> to vector<1x128xf32>
    %359 = vector.broadcast %358 : vector<1x128xf32> to vector<8x128xf32>
    %360 = arith.mulf %355, %359 : vector<8x128xf32>
    %361 = arith.addf %354, %360 : vector<8x128xf32>
    %c3_114 = arith.constant 3 : index
    %c0_115 = arith.constant 0 : index
    %362 = vector.load %arg28[%c3_114, %c0_115] : memref<16x256xf32, #tpu.memory_space<vmem>>, vector<8x256xf32>
    %363 = vector.extract_strided_slice %362 {offsets = [0, 32], sizes = [8, 128], strides = [1, 1]} : vector<8x256xf32> to vector<8x128xf32>
    %364 = vector.extract_strided_slice %324 {offsets = [5, 0], sizes = [1, 128], strides = [1, 1]} : vector<25x128xf32> to vector<1x128xf32>
    %365 = vector.shape_cast %364 : vector<1x128xf32> to vector<128xf32>
    %366 = vector.shape_cast %365 : vector<128xf32> to vector<1x128xf32>
    %367 = vector.broadcast %366 : vector<1x128xf32> to vector<8x128xf32>
    %368 = arith.mulf %363, %367 : vector<8x128xf32>
    %369 = arith.addf %361, %368 : vector<8x128xf32>
    %370 = vector.extract_strided_slice %362 {offsets = [0, 48], sizes = [8, 128], strides = [1, 1]} : vector<8x256xf32> to vector<8x128xf32>
    %371 = vector.extract_strided_slice %324 {offsets = [6, 0], sizes = [1, 128], strides = [1, 1]} : vector<25x128xf32> to vector<1x128xf32>
    %372 = vector.shape_cast %371 : vector<1x128xf32> to vector<128xf32>
    %373 = vector.shape_cast %372 : vector<128xf32> to vector<1x128xf32>
    %374 = vector.broadcast %373 : vector<1x128xf32> to vector<8x128xf32>
    %375 = arith.mulf %370, %374 : vector<8x128xf32>
    %376 = arith.addf %369, %375 : vector<8x128xf32>
    %377 = vector.extract_strided_slice %362 {offsets = [0, 64], sizes = [8, 128], strides = [1, 1]} : vector<8x256xf32> to vector<8x128xf32>
    %378 = vector.extract_strided_slice %324 {offsets = [7, 0], sizes = [1, 128], strides = [1, 1]} : vector<25x128xf32> to vector<1x128xf32>
    %379 = vector.shape_cast %378 : vector<1x128xf32> to vector<128xf32>
    %380 = vector.shape_cast %379 : vector<128xf32> to vector<1x128xf32>
    %381 = vector.broadcast %380 : vector<1x128xf32> to vector<8x128xf32>
    %382 = arith.mulf %377, %381 : vector<8x128xf32>
    %383 = arith.addf %376, %382 : vector<8x128xf32>
    %384 = vector.extract_strided_slice %362 {offsets = [0, 80], sizes = [8, 128], strides = [1, 1]} : vector<8x256xf32> to vector<8x128xf32>
    %385 = vector.extract_strided_slice %324 {offsets = [8, 0], sizes = [1, 128], strides = [1, 1]} : vector<25x128xf32> to vector<1x128xf32>
    %386 = vector.shape_cast %385 : vector<1x128xf32> to vector<128xf32>
    %387 = vector.shape_cast %386 : vector<128xf32> to vector<1x128xf32>
    %388 = vector.broadcast %387 : vector<1x128xf32> to vector<8x128xf32>
    %389 = arith.mulf %384, %388 : vector<8x128xf32>
    %390 = arith.addf %383, %389 : vector<8x128xf32>
    %391 = vector.extract_strided_slice %362 {offsets = [0, 96], sizes = [8, 128], strides = [1, 1]} : vector<8x256xf32> to vector<8x128xf32>
    %392 = vector.extract_strided_slice %324 {offsets = [9, 0], sizes = [1, 128], strides = [1, 1]} : vector<25x128xf32> to vector<1x128xf32>
    %393 = vector.shape_cast %392 : vector<1x128xf32> to vector<128xf32>
    %394 = vector.shape_cast %393 : vector<128xf32> to vector<1x128xf32>
    %395 = vector.broadcast %394 : vector<1x128xf32> to vector<8x128xf32>
    %396 = arith.mulf %391, %395 : vector<8x128xf32>
    %397 = arith.addf %390, %396 : vector<8x128xf32>
    %c4_116 = arith.constant 4 : index
    %c0_117 = arith.constant 0 : index
    %398 = vector.load %arg28[%c4_116, %c0_117] : memref<16x256xf32, #tpu.memory_space<vmem>>, vector<8x256xf32>
    %399 = vector.extract_strided_slice %398 {offsets = [0, 32], sizes = [8, 128], strides = [1, 1]} : vector<8x256xf32> to vector<8x128xf32>
    %400 = vector.extract_strided_slice %324 {offsets = [10, 0], sizes = [1, 128], strides = [1, 1]} : vector<25x128xf32> to vector<1x128xf32>
    %401 = vector.shape_cast %400 : vector<1x128xf32> to vector<128xf32>
    %402 = vector.shape_cast %401 : vector<128xf32> to vector<1x128xf32>
    %403 = vector.broadcast %402 : vector<1x128xf32> to vector<8x128xf32>
    %404 = arith.mulf %399, %403 : vector<8x128xf32>
    %405 = arith.addf %397, %404 : vector<8x128xf32>
    %406 = vector.extract_strided_slice %398 {offsets = [0, 48], sizes = [8, 128], strides = [1, 1]} : vector<8x256xf32> to vector<8x128xf32>
    %407 = vector.extract_strided_slice %324 {offsets = [11, 0], sizes = [1, 128], strides = [1, 1]} : vector<25x128xf32> to vector<1x128xf32>
    %408 = vector.shape_cast %407 : vector<1x128xf32> to vector<128xf32>
    %409 = vector.shape_cast %408 : vector<128xf32> to vector<1x128xf32>
    %410 = vector.broadcast %409 : vector<1x128xf32> to vector<8x128xf32>
    %411 = arith.mulf %406, %410 : vector<8x128xf32>
    %412 = arith.addf %405, %411 : vector<8x128xf32>
    %413 = vector.extract_strided_slice %398 {offsets = [0, 64], sizes = [8, 128], strides = [1, 1]} : vector<8x256xf32> to vector<8x128xf32>
    %414 = vector.extract_strided_slice %324 {offsets = [12, 0], sizes = [1, 128], strides = [1, 1]} : vector<25x128xf32> to vector<1x128xf32>
    %415 = vector.shape_cast %414 : vector<1x128xf32> to vector<128xf32>
    %416 = vector.shape_cast %415 : vector<128xf32> to vector<1x128xf32>
    %417 = vector.broadcast %416 : vector<1x128xf32> to vector<8x128xf32>
    %418 = arith.mulf %413, %417 : vector<8x128xf32>
    %419 = arith.addf %412, %418 : vector<8x128xf32>
    %420 = vector.extract_strided_slice %398 {offsets = [0, 80], sizes = [8, 128], strides = [1, 1]} : vector<8x256xf32> to vector<8x128xf32>
    %421 = vector.extract_strided_slice %324 {offsets = [13, 0], sizes = [1, 128], strides = [1, 1]} : vector<25x128xf32> to vector<1x128xf32>
    %422 = vector.shape_cast %421 : vector<1x128xf32> to vector<128xf32>
    %423 = vector.shape_cast %422 : vector<128xf32> to vector<1x128xf32>
    %424 = vector.broadcast %423 : vector<1x128xf32> to vector<8x128xf32>
    %425 = arith.mulf %420, %424 : vector<8x128xf32>
    %426 = arith.addf %419, %425 : vector<8x128xf32>
    %427 = vector.extract_strided_slice %398 {offsets = [0, 96], sizes = [8, 128], strides = [1, 1]} : vector<8x256xf32> to vector<8x128xf32>
    %428 = vector.extract_strided_slice %324 {offsets = [14, 0], sizes = [1, 128], strides = [1, 1]} : vector<25x128xf32> to vector<1x128xf32>
    %429 = vector.shape_cast %428 : vector<1x128xf32> to vector<128xf32>
    %430 = vector.shape_cast %429 : vector<128xf32> to vector<1x128xf32>
    %431 = vector.broadcast %430 : vector<1x128xf32> to vector<8x128xf32>
    %432 = arith.mulf %427, %431 : vector<8x128xf32>
    %433 = arith.addf %426, %432 : vector<8x128xf32>
    %c5_118 = arith.constant 5 : index
    %c0_119 = arith.constant 0 : index
    %434 = vector.load %arg28[%c5_118, %c0_119] : memref<16x256xf32, #tpu.memory_space<vmem>>, vector<8x256xf32>
    %435 = vector.extract_strided_slice %434 {offsets = [0, 32], sizes = [8, 128], strides = [1, 1]} : vector<8x256xf32> to vector<8x128xf32>
    %436 = vector.extract_strided_slice %324 {offsets = [15, 0], sizes = [1, 128], strides = [1, 1]} : vector<25x128xf32> to vector<1x128xf32>
    %437 = vector.shape_cast %436 : vector<1x128xf32> to vector<128xf32>
    %438 = vector.shape_cast %437 : vector<128xf32> to vector<1x128xf32>
    %439 = vector.broadcast %438 : vector<1x128xf32> to vector<8x128xf32>
    %440 = arith.mulf %435, %439 : vector<8x128xf32>
    %441 = arith.addf %433, %440 : vector<8x128xf32>
    %442 = vector.extract_strided_slice %434 {offsets = [0, 48], sizes = [8, 128], strides = [1, 1]} : vector<8x256xf32> to vector<8x128xf32>
    %443 = vector.extract_strided_slice %324 {offsets = [16, 0], sizes = [1, 128], strides = [1, 1]} : vector<25x128xf32> to vector<1x128xf32>
    %444 = vector.shape_cast %443 : vector<1x128xf32> to vector<128xf32>
    %445 = vector.shape_cast %444 : vector<128xf32> to vector<1x128xf32>
    %446 = vector.broadcast %445 : vector<1x128xf32> to vector<8x128xf32>
    %447 = arith.mulf %442, %446 : vector<8x128xf32>
    %448 = arith.addf %441, %447 : vector<8x128xf32>
    %449 = vector.extract_strided_slice %434 {offsets = [0, 64], sizes = [8, 128], strides = [1, 1]} : vector<8x256xf32> to vector<8x128xf32>
    %450 = vector.extract_strided_slice %324 {offsets = [17, 0], sizes = [1, 128], strides = [1, 1]} : vector<25x128xf32> to vector<1x128xf32>
    %451 = vector.shape_cast %450 : vector<1x128xf32> to vector<128xf32>
    %452 = vector.shape_cast %451 : vector<128xf32> to vector<1x128xf32>
    %453 = vector.broadcast %452 : vector<1x128xf32> to vector<8x128xf32>
    %454 = arith.mulf %449, %453 : vector<8x128xf32>
    %455 = arith.addf %448, %454 : vector<8x128xf32>
    %456 = vector.extract_strided_slice %434 {offsets = [0, 80], sizes = [8, 128], strides = [1, 1]} : vector<8x256xf32> to vector<8x128xf32>
    %457 = vector.extract_strided_slice %324 {offsets = [18, 0], sizes = [1, 128], strides = [1, 1]} : vector<25x128xf32> to vector<1x128xf32>
    %458 = vector.shape_cast %457 : vector<1x128xf32> to vector<128xf32>
    %459 = vector.shape_cast %458 : vector<128xf32> to vector<1x128xf32>
    %460 = vector.broadcast %459 : vector<1x128xf32> to vector<8x128xf32>
    %461 = arith.mulf %456, %460 : vector<8x128xf32>
    %462 = arith.addf %455, %461 : vector<8x128xf32>
    %463 = vector.extract_strided_slice %434 {offsets = [0, 96], sizes = [8, 128], strides = [1, 1]} : vector<8x256xf32> to vector<8x128xf32>
    %464 = vector.extract_strided_slice %324 {offsets = [19, 0], sizes = [1, 128], strides = [1, 1]} : vector<25x128xf32> to vector<1x128xf32>
    %465 = vector.shape_cast %464 : vector<1x128xf32> to vector<128xf32>
    %466 = vector.shape_cast %465 : vector<128xf32> to vector<1x128xf32>
    %467 = vector.broadcast %466 : vector<1x128xf32> to vector<8x128xf32>
    %468 = arith.mulf %463, %467 : vector<8x128xf32>
    %469 = arith.addf %462, %468 : vector<8x128xf32>
    %c6_120 = arith.constant 6 : index
    %c0_121 = arith.constant 0 : index
    %470 = vector.load %arg28[%c6_120, %c0_121] : memref<16x256xf32, #tpu.memory_space<vmem>>, vector<8x256xf32>
    %471 = vector.extract_strided_slice %470 {offsets = [0, 32], sizes = [8, 128], strides = [1, 1]} : vector<8x256xf32> to vector<8x128xf32>
    %472 = vector.extract_strided_slice %324 {offsets = [20, 0], sizes = [1, 128], strides = [1, 1]} : vector<25x128xf32> to vector<1x128xf32>
    %473 = vector.shape_cast %472 : vector<1x128xf32> to vector<128xf32>
    %474 = vector.shape_cast %473 : vector<128xf32> to vector<1x128xf32>
    %475 = vector.broadcast %474 : vector<1x128xf32> to vector<8x128xf32>
    %476 = arith.mulf %471, %475 : vector<8x128xf32>
    %477 = arith.addf %469, %476 : vector<8x128xf32>
    %478 = vector.extract_strided_slice %470 {offsets = [0, 48], sizes = [8, 128], strides = [1, 1]} : vector<8x256xf32> to vector<8x128xf32>
    %479 = vector.extract_strided_slice %324 {offsets = [21, 0], sizes = [1, 128], strides = [1, 1]} : vector<25x128xf32> to vector<1x128xf32>
    %480 = vector.shape_cast %479 : vector<1x128xf32> to vector<128xf32>
    %481 = vector.shape_cast %480 : vector<128xf32> to vector<1x128xf32>
    %482 = vector.broadcast %481 : vector<1x128xf32> to vector<8x128xf32>
    %483 = arith.mulf %478, %482 : vector<8x128xf32>
    %484 = arith.addf %477, %483 : vector<8x128xf32>
    %485 = vector.extract_strided_slice %470 {offsets = [0, 64], sizes = [8, 128], strides = [1, 1]} : vector<8x256xf32> to vector<8x128xf32>
    %486 = vector.extract_strided_slice %324 {offsets = [22, 0], sizes = [1, 128], strides = [1, 1]} : vector<25x128xf32> to vector<1x128xf32>
    %487 = vector.shape_cast %486 : vector<1x128xf32> to vector<128xf32>
    %488 = vector.shape_cast %487 : vector<128xf32> to vector<1x128xf32>
    %489 = vector.broadcast %488 : vector<1x128xf32> to vector<8x128xf32>
    %490 = arith.mulf %485, %489 : vector<8x128xf32>
    %491 = arith.addf %484, %490 : vector<8x128xf32>
    %492 = vector.extract_strided_slice %470 {offsets = [0, 80], sizes = [8, 128], strides = [1, 1]} : vector<8x256xf32> to vector<8x128xf32>
    %493 = vector.extract_strided_slice %324 {offsets = [23, 0], sizes = [1, 128], strides = [1, 1]} : vector<25x128xf32> to vector<1x128xf32>
    %494 = vector.shape_cast %493 : vector<1x128xf32> to vector<128xf32>
    %495 = vector.shape_cast %494 : vector<128xf32> to vector<1x128xf32>
    %496 = vector.broadcast %495 : vector<1x128xf32> to vector<8x128xf32>
    %497 = arith.mulf %492, %496 : vector<8x128xf32>
    %498 = arith.addf %491, %497 : vector<8x128xf32>
    %499 = vector.extract_strided_slice %470 {offsets = [0, 96], sizes = [8, 128], strides = [1, 1]} : vector<8x256xf32> to vector<8x128xf32>
    %500 = vector.extract_strided_slice %324 {offsets = [24, 0], sizes = [1, 128], strides = [1, 1]} : vector<25x128xf32> to vector<1x128xf32>
    %501 = vector.shape_cast %500 : vector<1x128xf32> to vector<128xf32>
    %502 = vector.shape_cast %501 : vector<128xf32> to vector<1x128xf32>
    %503 = vector.broadcast %502 : vector<1x128xf32> to vector<8x128xf32>
    %504 = arith.mulf %499, %503 : vector<8x128xf32>
    %505 = arith.addf %498, %504 : vector<8x128xf32>
    %c0_122 = arith.constant 0 : index
    %c0_123 = arith.constant 0 : index
    %506 = vector.load %arg19[%c0_122, %c0_123] : memref<128x128xf32, #tpu.memory_space<vmem>>, vector<128x128xf32>
    %cst_124 = arith.constant dense<0.000000e+00> : vector<8x128xf32>
    %507 = tpu.matmul %505, %506, %cst_124 {dimension_numbers = #tpu.dot_dimension_numbers<[1], [0], [0], [1], [0, 0, 1, 1], [], []>} : vector<8x128xf32>, vector<128x128xf32>, vector<8x128xf32> -> vector<8x128xf32>
    %c0_125 = arith.constant 0 : index
    %c0_126 = arith.constant 0 : index
    %508 = vector.load %arg20[%c0_125, %c0_126] : memref<1x128xf32, #tpu.memory_space<vmem>>, vector<1x128xf32>
    %509 = vector.broadcast %508 : vector<1x128xf32> to vector<8x128xf32>
    %510 = arith.addf %507, %509 : vector<8x128xf32>
    %cst_127 = arith.constant 0.000000e+00 : f32
    %511 = vector.broadcast %cst_127 : f32 to vector<8x128xf32>
    %512 = arith.maximumf %510, %511 : vector<8x128xf32>
    %c4_128 = arith.constant 4 : index
    %c64_129 = arith.constant 64 : index
    %513 = vector.load %arg28[%c4_128, %c64_129] : memref<16x256xf32, #tpu.memory_space<vmem>>, vector<8x128xf32>
    tpu.vector_store %arg28[%c4_128, %c64_129], %512 {strides = array<i32>} : memref<16x256xf32, #tpu.memory_space<vmem>>, vector<8x128xf32>,
    %c0_130 = arith.constant 0 : index
    %c0_131 = arith.constant 0 : index
    %514 = vector.load %arg21[%c0_130, %c0_131] : memref<25x128xf32, #tpu.memory_space<vmem>>, vector<25x128xf32>
    %cst_132 = arith.constant 0.000000e+00 : f32
    %515 = vector.broadcast %cst_132 : f32 to vector<8x128xf32>
    %c2_133 = arith.constant 2 : index
    %c0_134 = arith.constant 0 : index
    %516 = vector.load %arg28[%c2_133, %c0_134] : memref<16x256xf32, #tpu.memory_space<vmem>>, vector<8x256xf32>
    %517 = vector.extract_strided_slice %516 {offsets = [0, 32], sizes = [8, 128], strides = [1, 1]} : vector<8x256xf32> to vector<8x128xf32>
    %518 = vector.extract_strided_slice %514 {offsets = [0, 0], sizes = [1, 128], strides = [1, 1]} : vector<25x128xf32> to vector<1x128xf32>
    %519 = vector.shape_cast %518 : vector<1x128xf32> to vector<128xf32>
    %520 = vector.shape_cast %519 : vector<128xf32> to vector<1x128xf32>
    %521 = vector.broadcast %520 : vector<1x128xf32> to vector<8x128xf32>
    %522 = arith.mulf %517, %521 : vector<8x128xf32>
    %523 = arith.addf %515, %522 : vector<8x128xf32>
    %524 = vector.extract_strided_slice %516 {offsets = [0, 48], sizes = [8, 128], strides = [1, 1]} : vector<8x256xf32> to vector<8x128xf32>
    %525 = vector.extract_strided_slice %514 {offsets = [1, 0], sizes = [1, 128], strides = [1, 1]} : vector<25x128xf32> to vector<1x128xf32>
    %526 = vector.shape_cast %525 : vector<1x128xf32> to vector<128xf32>
    %527 = vector.shape_cast %526 : vector<128xf32> to vector<1x128xf32>
    %528 = vector.broadcast %527 : vector<1x128xf32> to vector<8x128xf32>
    %529 = arith.mulf %524, %528 : vector<8x128xf32>
    %530 = arith.addf %523, %529 : vector<8x128xf32>
    %531 = vector.extract_strided_slice %516 {offsets = [0, 64], sizes = [8, 128], strides = [1, 1]} : vector<8x256xf32> to vector<8x128xf32>
    %532 = vector.extract_strided_slice %514 {offsets = [2, 0], sizes = [1, 128], strides = [1, 1]} : vector<25x128xf32> to vector<1x128xf32>
    %533 = vector.shape_cast %532 : vector<1x128xf32> to vector<128xf32>
    %534 = vector.shape_cast %533 : vector<128xf32> to vector<1x128xf32>
    %535 = vector.broadcast %534 : vector<1x128xf32> to vector<8x128xf32>
    %536 = arith.mulf %531, %535 : vector<8x128xf32>
    %537 = arith.addf %530, %536 : vector<8x128xf32>
    %538 = vector.extract_strided_slice %516 {offsets = [0, 80], sizes = [8, 128], strides = [1, 1]} : vector<8x256xf32> to vector<8x128xf32>
    %539 = vector.extract_strided_slice %514 {offsets = [3, 0], sizes = [1, 128], strides = [1, 1]} : vector<25x128xf32> to vector<1x128xf32>
    %540 = vector.shape_cast %539 : vector<1x128xf32> to vector<128xf32>
    %541 = vector.shape_cast %540 : vector<128xf32> to vector<1x128xf32>
    %542 = vector.broadcast %541 : vector<1x128xf32> to vector<8x128xf32>
    %543 = arith.mulf %538, %542 : vector<8x128xf32>
    %544 = arith.addf %537, %543 : vector<8x128xf32>
    %545 = vector.extract_strided_slice %516 {offsets = [0, 96], sizes = [8, 128], strides = [1, 1]} : vector<8x256xf32> to vector<8x128xf32>
    %546 = vector.extract_strided_slice %514 {offsets = [4, 0], sizes = [1, 128], strides = [1, 1]} : vector<25x128xf32> to vector<1x128xf32>
    %547 = vector.shape_cast %546 : vector<1x128xf32> to vector<128xf32>
    %548 = vector.shape_cast %547 : vector<128xf32> to vector<1x128xf32>
    %549 = vector.broadcast %548 : vector<1x128xf32> to vector<8x128xf32>
    %550 = arith.mulf %545, %549 : vector<8x128xf32>
    %551 = arith.addf %544, %550 : vector<8x128xf32>
    %c3_135 = arith.constant 3 : index
    %c0_136 = arith.constant 0 : index
    %552 = vector.load %arg28[%c3_135, %c0_136] : memref<16x256xf32, #tpu.memory_space<vmem>>, vector<8x256xf32>
    %553 = vector.extract_strided_slice %552 {offsets = [0, 32], sizes = [8, 128], strides = [1, 1]} : vector<8x256xf32> to vector<8x128xf32>
    %554 = vector.extract_strided_slice %514 {offsets = [5, 0], sizes = [1, 128], strides = [1, 1]} : vector<25x128xf32> to vector<1x128xf32>
    %555 = vector.shape_cast %554 : vector<1x128xf32> to vector<128xf32>
    %556 = vector.shape_cast %555 : vector<128xf32> to vector<1x128xf32>
    %557 = vector.broadcast %556 : vector<1x128xf32> to vector<8x128xf32>
    %558 = arith.mulf %553, %557 : vector<8x128xf32>
    %559 = arith.addf %551, %558 : vector<8x128xf32>
    %560 = vector.extract_strided_slice %552 {offsets = [0, 48], sizes = [8, 128], strides = [1, 1]} : vector<8x256xf32> to vector<8x128xf32>
    %561 = vector.extract_strided_slice %514 {offsets = [6, 0], sizes = [1, 128], strides = [1, 1]} : vector<25x128xf32> to vector<1x128xf32>
    %562 = vector.shape_cast %561 : vector<1x128xf32> to vector<128xf32>
    %563 = vector.shape_cast %562 : vector<128xf32> to vector<1x128xf32>
    %564 = vector.broadcast %563 : vector<1x128xf32> to vector<8x128xf32>
    %565 = arith.mulf %560, %564 : vector<8x128xf32>
    %566 = arith.addf %559, %565 : vector<8x128xf32>
    %567 = vector.extract_strided_slice %552 {offsets = [0, 64], sizes = [8, 128], strides = [1, 1]} : vector<8x256xf32> to vector<8x128xf32>
    %568 = vector.extract_strided_slice %514 {offsets = [7, 0], sizes = [1, 128], strides = [1, 1]} : vector<25x128xf32> to vector<1x128xf32>
    %569 = vector.shape_cast %568 : vector<1x128xf32> to vector<128xf32>
    %570 = vector.shape_cast %569 : vector<128xf32> to vector<1x128xf32>
    %571 = vector.broadcast %570 : vector<1x128xf32> to vector<8x128xf32>
    %572 = arith.mulf %567, %571 : vector<8x128xf32>
    %573 = arith.addf %566, %572 : vector<8x128xf32>
    %574 = vector.extract_strided_slice %552 {offsets = [0, 80], sizes = [8, 128], strides = [1, 1]} : vector<8x256xf32> to vector<8x128xf32>
    %575 = vector.extract_strided_slice %514 {offsets = [8, 0], sizes = [1, 128], strides = [1, 1]} : vector<25x128xf32> to vector<1x128xf32>
    %576 = vector.shape_cast %575 : vector<1x128xf32> to vector<128xf32>
    %577 = vector.shape_cast %576 : vector<128xf32> to vector<1x128xf32>
    %578 = vector.broadcast %577 : vector<1x128xf32> to vector<8x128xf32>
    %579 = arith.mulf %574, %578 : vector<8x128xf32>
    %580 = arith.addf %573, %579 : vector<8x128xf32>
    %581 = vector.extract_strided_slice %552 {offsets = [0, 96], sizes = [8, 128], strides = [1, 1]} : vector<8x256xf32> to vector<8x128xf32>
    %582 = vector.extract_strided_slice %514 {offsets = [9, 0], sizes = [1, 128], strides = [1, 1]} : vector<25x128xf32> to vector<1x128xf32>
    %583 = vector.shape_cast %582 : vector<1x128xf32> to vector<128xf32>
    %584 = vector.shape_cast %583 : vector<128xf32> to vector<1x128xf32>
    %585 = vector.broadcast %584 : vector<1x128xf32> to vector<8x128xf32>
    %586 = arith.mulf %581, %585 : vector<8x128xf32>
    %587 = arith.addf %580, %586 : vector<8x128xf32>
    %c4_137 = arith.constant 4 : index
    %c0_138 = arith.constant 0 : index
    %588 = vector.load %arg28[%c4_137, %c0_138] : memref<16x256xf32, #tpu.memory_space<vmem>>, vector<8x256xf32>
    %589 = vector.extract_strided_slice %588 {offsets = [0, 32], sizes = [8, 128], strides = [1, 1]} : vector<8x256xf32> to vector<8x128xf32>
    %590 = vector.extract_strided_slice %514 {offsets = [10, 0], sizes = [1, 128], strides = [1, 1]} : vector<25x128xf32> to vector<1x128xf32>
    %591 = vector.shape_cast %590 : vector<1x128xf32> to vector<128xf32>
    %592 = vector.shape_cast %591 : vector<128xf32> to vector<1x128xf32>
    %593 = vector.broadcast %592 : vector<1x128xf32> to vector<8x128xf32>
    %594 = arith.mulf %589, %593 : vector<8x128xf32>
    %595 = arith.addf %587, %594 : vector<8x128xf32>
    %596 = vector.extract_strided_slice %588 {offsets = [0, 48], sizes = [8, 128], strides = [1, 1]} : vector<8x256xf32> to vector<8x128xf32>
    %597 = vector.extract_strided_slice %514 {offsets = [11, 0], sizes = [1, 128], strides = [1, 1]} : vector<25x128xf32> to vector<1x128xf32>
    %598 = vector.shape_cast %597 : vector<1x128xf32> to vector<128xf32>
    %599 = vector.shape_cast %598 : vector<128xf32> to vector<1x128xf32>
    %600 = vector.broadcast %599 : vector<1x128xf32> to vector<8x128xf32>
    %601 = arith.mulf %596, %600 : vector<8x128xf32>
    %602 = arith.addf %595, %601 : vector<8x128xf32>
    %603 = vector.extract_strided_slice %588 {offsets = [0, 64], sizes = [8, 128], strides = [1, 1]} : vector<8x256xf32> to vector<8x128xf32>
    %604 = vector.extract_strided_slice %514 {offsets = [12, 0], sizes = [1, 128], strides = [1, 1]} : vector<25x128xf32> to vector<1x128xf32>
    %605 = vector.shape_cast %604 : vector<1x128xf32> to vector<128xf32>
    %606 = vector.shape_cast %605 : vector<128xf32> to vector<1x128xf32>
    %607 = vector.broadcast %606 : vector<1x128xf32> to vector<8x128xf32>
    %608 = arith.mulf %603, %607 : vector<8x128xf32>
    %609 = arith.addf %602, %608 : vector<8x128xf32>
    %610 = vector.extract_strided_slice %588 {offsets = [0, 80], sizes = [8, 128], strides = [1, 1]} : vector<8x256xf32> to vector<8x128xf32>
    %611 = vector.extract_strided_slice %514 {offsets = [13, 0], sizes = [1, 128], strides = [1, 1]} : vector<25x128xf32> to vector<1x128xf32>
    %612 = vector.shape_cast %611 : vector<1x128xf32> to vector<128xf32>
    %613 = vector.shape_cast %612 : vector<128xf32> to vector<1x128xf32>
    %614 = vector.broadcast %613 : vector<1x128xf32> to vector<8x128xf32>
    %615 = arith.mulf %610, %614 : vector<8x128xf32>
    %616 = arith.addf %609, %615 : vector<8x128xf32>
    %617 = vector.extract_strided_slice %588 {offsets = [0, 96], sizes = [8, 128], strides = [1, 1]} : vector<8x256xf32> to vector<8x128xf32>
    %618 = vector.extract_strided_slice %514 {offsets = [14, 0], sizes = [1, 128], strides = [1, 1]} : vector<25x128xf32> to vector<1x128xf32>
    %619 = vector.shape_cast %618 : vector<1x128xf32> to vector<128xf32>
    %620 = vector.shape_cast %619 : vector<128xf32> to vector<1x128xf32>
    %621 = vector.broadcast %620 : vector<1x128xf32> to vector<8x128xf32>
    %622 = arith.mulf %617, %621 : vector<8x128xf32>
    %623 = arith.addf %616, %622 : vector<8x128xf32>
    %c5_139 = arith.constant 5 : index
    %c0_140 = arith.constant 0 : index
    %624 = vector.load %arg28[%c5_139, %c0_140] : memref<16x256xf32, #tpu.memory_space<vmem>>, vector<8x256xf32>
    %625 = vector.extract_strided_slice %624 {offsets = [0, 32], sizes = [8, 128], strides = [1, 1]} : vector<8x256xf32> to vector<8x128xf32>
    %626 = vector.extract_strided_slice %514 {offsets = [15, 0], sizes = [1, 128], strides = [1, 1]} : vector<25x128xf32> to vector<1x128xf32>
    %627 = vector.shape_cast %626 : vector<1x128xf32> to vector<128xf32>
    %628 = vector.shape_cast %627 : vector<128xf32> to vector<1x128xf32>
    %629 = vector.broadcast %628 : vector<1x128xf32> to vector<8x128xf32>
    %630 = arith.mulf %625, %629 : vector<8x128xf32>
    %631 = arith.addf %623, %630 : vector<8x128xf32>
    %632 = vector.extract_strided_slice %624 {offsets = [0, 48], sizes = [8, 128], strides = [1, 1]} : vector<8x256xf32> to vector<8x128xf32>
    %633 = vector.extract_strided_slice %514 {offsets = [16, 0], sizes = [1, 128], strides = [1, 1]} : vector<25x128xf32> to vector<1x128xf32>
    %634 = vector.shape_cast %633 : vector<1x128xf32> to vector<128xf32>
    %635 = vector.shape_cast %634 : vector<128xf32> to vector<1x128xf32>
    %636 = vector.broadcast %635 : vector<1x128xf32> to vector<8x128xf32>
    %637 = arith.mulf %632, %636 : vector<8x128xf32>
    %638 = arith.addf %631, %637 : vector<8x128xf32>
    %639 = vector.extract_strided_slice %624 {offsets = [0, 64], sizes = [8, 128], strides = [1, 1]} : vector<8x256xf32> to vector<8x128xf32>
    %640 = vector.extract_strided_slice %514 {offsets = [17, 0], sizes = [1, 128], strides = [1, 1]} : vector<25x128xf32> to vector<1x128xf32>
    %641 = vector.shape_cast %640 : vector<1x128xf32> to vector<128xf32>
    %642 = vector.shape_cast %641 : vector<128xf32> to vector<1x128xf32>
    %643 = vector.broadcast %642 : vector<1x128xf32> to vector<8x128xf32>
    %644 = arith.mulf %639, %643 : vector<8x128xf32>
    %645 = arith.addf %638, %644 : vector<8x128xf32>
    %646 = vector.extract_strided_slice %624 {offsets = [0, 80], sizes = [8, 128], strides = [1, 1]} : vector<8x256xf32> to vector<8x128xf32>
    %647 = vector.extract_strided_slice %514 {offsets = [18, 0], sizes = [1, 128], strides = [1, 1]} : vector<25x128xf32> to vector<1x128xf32>
    %648 = vector.shape_cast %647 : vector<1x128xf32> to vector<128xf32>
    %649 = vector.shape_cast %648 : vector<128xf32> to vector<1x128xf32>
    %650 = vector.broadcast %649 : vector<1x128xf32> to vector<8x128xf32>
    %651 = arith.mulf %646, %650 : vector<8x128xf32>
    %652 = arith.addf %645, %651 : vector<8x128xf32>
    %653 = vector.extract_strided_slice %624 {offsets = [0, 96], sizes = [8, 128], strides = [1, 1]} : vector<8x256xf32> to vector<8x128xf32>
    %654 = vector.extract_strided_slice %514 {offsets = [19, 0], sizes = [1, 128], strides = [1, 1]} : vector<25x128xf32> to vector<1x128xf32>
    %655 = vector.shape_cast %654 : vector<1x128xf32> to vector<128xf32>
    %656 = vector.shape_cast %655 : vector<128xf32> to vector<1x128xf32>
    %657 = vector.broadcast %656 : vector<1x128xf32> to vector<8x128xf32>
    %658 = arith.mulf %653, %657 : vector<8x128xf32>
    %659 = arith.addf %652, %658 : vector<8x128xf32>
    %c6_141 = arith.constant 6 : index
    %c0_142 = arith.constant 0 : index
    %660 = vector.load %arg28[%c6_141, %c0_142] : memref<16x256xf32, #tpu.memory_space<vmem>>, vector<8x256xf32>
    %661 = vector.extract_strided_slice %660 {offsets = [0, 32], sizes = [8, 128], strides = [1, 1]} : vector<8x256xf32> to vector<8x128xf32>
    %662 = vector.extract_strided_slice %514 {offsets = [20, 0], sizes = [1, 128], strides = [1, 1]} : vector<25x128xf32> to vector<1x128xf32>
    %663 = vector.shape_cast %662 : vector<1x128xf32> to vector<128xf32>
    %664 = vector.shape_cast %663 : vector<128xf32> to vector<1x128xf32>
    %665 = vector.broadcast %664 : vector<1x128xf32> to vector<8x128xf32>
    %666 = arith.mulf %661, %665 : vector<8x128xf32>
    %667 = arith.addf %659, %666 : vector<8x128xf32>
    %668 = vector.extract_strided_slice %660 {offsets = [0, 48], sizes = [8, 128], strides = [1, 1]} : vector<8x256xf32> to vector<8x128xf32>
    %669 = vector.extract_strided_slice %514 {offsets = [21, 0], sizes = [1, 128], strides = [1, 1]} : vector<25x128xf32> to vector<1x128xf32>
    %670 = vector.shape_cast %669 : vector<1x128xf32> to vector<128xf32>
    %671 = vector.shape_cast %670 : vector<128xf32> to vector<1x128xf32>
    %672 = vector.broadcast %671 : vector<1x128xf32> to vector<8x128xf32>
    %673 = arith.mulf %668, %672 : vector<8x128xf32>
    %674 = arith.addf %667, %673 : vector<8x128xf32>
    %675 = vector.extract_strided_slice %660 {offsets = [0, 64], sizes = [8, 128], strides = [1, 1]} : vector<8x256xf32> to vector<8x128xf32>
    %676 = vector.extract_strided_slice %514 {offsets = [22, 0], sizes = [1, 128], strides = [1, 1]} : vector<25x128xf32> to vector<1x128xf32>
    %677 = vector.shape_cast %676 : vector<1x128xf32> to vector<128xf32>
    %678 = vector.shape_cast %677 : vector<128xf32> to vector<1x128xf32>
    %679 = vector.broadcast %678 : vector<1x128xf32> to vector<8x128xf32>
    %680 = arith.mulf %675, %679 : vector<8x128xf32>
    %681 = arith.addf %674, %680 : vector<8x128xf32>
    %682 = vector.extract_strided_slice %660 {offsets = [0, 80], sizes = [8, 128], strides = [1, 1]} : vector<8x256xf32> to vector<8x128xf32>
    %683 = vector.extract_strided_slice %514 {offsets = [23, 0], sizes = [1, 128], strides = [1, 1]} : vector<25x128xf32> to vector<1x128xf32>
    %684 = vector.shape_cast %683 : vector<1x128xf32> to vector<128xf32>
    %685 = vector.shape_cast %684 : vector<128xf32> to vector<1x128xf32>
    %686 = vector.broadcast %685 : vector<1x128xf32> to vector<8x128xf32>
    %687 = arith.mulf %682, %686 : vector<8x128xf32>
    %688 = arith.addf %681, %687 : vector<8x128xf32>
    %689 = vector.extract_strided_slice %660 {offsets = [0, 96], sizes = [8, 128], strides = [1, 1]} : vector<8x256xf32> to vector<8x128xf32>
    %690 = vector.extract_strided_slice %514 {offsets = [24, 0], sizes = [1, 128], strides = [1, 1]} : vector<25x128xf32> to vector<1x128xf32>
    %691 = vector.shape_cast %690 : vector<1x128xf32> to vector<128xf32>
    %692 = vector.shape_cast %691 : vector<128xf32> to vector<1x128xf32>
    %693 = vector.broadcast %692 : vector<1x128xf32> to vector<8x128xf32>
    %694 = arith.mulf %689, %693 : vector<8x128xf32>
    %695 = arith.addf %688, %694 : vector<8x128xf32>
    %c0_143 = arith.constant 0 : index
    %c0_144 = arith.constant 0 : index
    %696 = vector.load %arg22[%c0_143, %c0_144] : memref<128x128xf32, #tpu.memory_space<vmem>>, vector<128x128xf32>
    %cst_145 = arith.constant dense<0.000000e+00> : vector<8x128xf32>
    %697 = tpu.matmul %695, %696, %cst_145 {dimension_numbers = #tpu.dot_dimension_numbers<[1], [0], [0], [1], [0, 0, 1, 1], [], []>} : vector<8x128xf32>, vector<128x128xf32>, vector<8x128xf32> -> vector<8x128xf32>
    %c0_146 = arith.constant 0 : index
    %c0_147 = arith.constant 0 : index
    %698 = vector.load %arg23[%c0_146, %c0_147] : memref<1x128xf32, #tpu.memory_space<vmem>>, vector<1x128xf32>
    %699 = vector.broadcast %698 : vector<1x128xf32> to vector<8x128xf32>
    %700 = arith.addf %697, %699 : vector<8x128xf32>
    %701 = arith.addf %320, %700 : vector<8x128xf32>
    %cst_148 = arith.constant 0.000000e+00 : f32
    %702 = vector.broadcast %cst_148 : f32 to vector<8x128xf32>
    %703 = arith.maximumf %701, %702 : vector<8x128xf32>
    %c4_149 = arith.constant 4 : index
    %c64_150 = arith.constant 64 : index
    %704 = vector.load %arg28[%c4_149, %c64_150] : memref<16x256xf32, #tpu.memory_space<vmem>>, vector<8x128xf32>
    tpu.vector_store %arg28[%c4_149, %c64_150], %703 {strides = array<i32>} : memref<16x256xf32, #tpu.memory_space<vmem>>, vector<8x128xf32>,
    %c0_151 = arith.constant 0 : index
    %c0_152 = arith.constant 0 : index
    %705 = vector.load %arg24[%c0_151, %c0_152] : memref<25x128xf32, #tpu.memory_space<vmem>>, vector<25x128xf32>
    %cst_153 = arith.constant 0.000000e+00 : f32
    %706 = vector.broadcast %cst_153 : f32 to vector<8x128xf32>
    %c0_154 = arith.constant 0 : index
    %c0_155 = arith.constant 0 : index
    %707 = vector.load %arg28[%c0_154, %c0_155] : memref<16x256xf32, #tpu.memory_space<vmem>>, vector<8x256xf32>
    %708 = vector.extract_strided_slice %707 {offsets = [0, 0], sizes = [8, 128], strides = [1, 1]} : vector<8x256xf32> to vector<8x128xf32>
    %709 = vector.extract_strided_slice %705 {offsets = [0, 0], sizes = [1, 128], strides = [1, 1]} : vector<25x128xf32> to vector<1x128xf32>
    %710 = vector.shape_cast %709 : vector<1x128xf32> to vector<128xf32>
    %711 = vector.shape_cast %710 : vector<128xf32> to vector<1x128xf32>
    %712 = vector.broadcast %711 : vector<1x128xf32> to vector<8x128xf32>
    %713 = arith.mulf %708, %712 : vector<8x128xf32>
    %714 = arith.addf %706, %713 : vector<8x128xf32>
    %715 = vector.extract_strided_slice %707 {offsets = [0, 32], sizes = [8, 128], strides = [1, 1]} : vector<8x256xf32> to vector<8x128xf32>
    %716 = vector.extract_strided_slice %705 {offsets = [1, 0], sizes = [1, 128], strides = [1, 1]} : vector<25x128xf32> to vector<1x128xf32>
    %717 = vector.shape_cast %716 : vector<1x128xf32> to vector<128xf32>
    %718 = vector.shape_cast %717 : vector<128xf32> to vector<1x128xf32>
    %719 = vector.broadcast %718 : vector<1x128xf32> to vector<8x128xf32>
    %720 = arith.mulf %715, %719 : vector<8x128xf32>
    %721 = arith.addf %714, %720 : vector<8x128xf32>
    %722 = vector.extract_strided_slice %707 {offsets = [0, 64], sizes = [8, 128], strides = [1, 1]} : vector<8x256xf32> to vector<8x128xf32>
    %723 = vector.extract_strided_slice %705 {offsets = [2, 0], sizes = [1, 128], strides = [1, 1]} : vector<25x128xf32> to vector<1x128xf32>
    %724 = vector.shape_cast %723 : vector<1x128xf32> to vector<128xf32>
    %725 = vector.shape_cast %724 : vector<128xf32> to vector<1x128xf32>
    %726 = vector.broadcast %725 : vector<1x128xf32> to vector<8x128xf32>
    %727 = arith.mulf %722, %726 : vector<8x128xf32>
    %728 = arith.addf %721, %727 : vector<8x128xf32>
    %729 = vector.extract_strided_slice %707 {offsets = [0, 96], sizes = [8, 128], strides = [1, 1]} : vector<8x256xf32> to vector<8x128xf32>
    %730 = vector.extract_strided_slice %705 {offsets = [3, 0], sizes = [1, 128], strides = [1, 1]} : vector<25x128xf32> to vector<1x128xf32>
    %731 = vector.shape_cast %730 : vector<1x128xf32> to vector<128xf32>
    %732 = vector.shape_cast %731 : vector<128xf32> to vector<1x128xf32>
    %733 = vector.broadcast %732 : vector<1x128xf32> to vector<8x128xf32>
    %734 = arith.mulf %729, %733 : vector<8x128xf32>
    %735 = arith.addf %728, %734 : vector<8x128xf32>
    %736 = vector.extract_strided_slice %707 {offsets = [0, 128], sizes = [8, 128], strides = [1, 1]} : vector<8x256xf32> to vector<8x128xf32>
    %737 = vector.extract_strided_slice %705 {offsets = [4, 0], sizes = [1, 128], strides = [1, 1]} : vector<25x128xf32> to vector<1x128xf32>
    %738 = vector.shape_cast %737 : vector<1x128xf32> to vector<128xf32>
    %739 = vector.shape_cast %738 : vector<128xf32> to vector<1x128xf32>
    %740 = vector.broadcast %739 : vector<1x128xf32> to vector<8x128xf32>
    %741 = arith.mulf %736, %740 : vector<8x128xf32>
    %742 = arith.addf %735, %741 : vector<8x128xf32>
    %c2_156 = arith.constant 2 : index
    %c0_157 = arith.constant 0 : index
    %743 = vector.load %arg28[%c2_156, %c0_157] : memref<16x256xf32, #tpu.memory_space<vmem>>, vector<8x256xf32>
    %744 = vector.extract_strided_slice %743 {offsets = [0, 0], sizes = [8, 128], strides = [1, 1]} : vector<8x256xf32> to vector<8x128xf32>
    %745 = vector.extract_strided_slice %705 {offsets = [5, 0], sizes = [1, 128], strides = [1, 1]} : vector<25x128xf32> to vector<1x128xf32>
    %746 = vector.shape_cast %745 : vector<1x128xf32> to vector<128xf32>
    %747 = vector.shape_cast %746 : vector<128xf32> to vector<1x128xf32>
    %748 = vector.broadcast %747 : vector<1x128xf32> to vector<8x128xf32>
    %749 = arith.mulf %744, %748 : vector<8x128xf32>
    %750 = arith.addf %742, %749 : vector<8x128xf32>
    %751 = vector.extract_strided_slice %743 {offsets = [0, 32], sizes = [8, 128], strides = [1, 1]} : vector<8x256xf32> to vector<8x128xf32>
    %752 = vector.extract_strided_slice %705 {offsets = [6, 0], sizes = [1, 128], strides = [1, 1]} : vector<25x128xf32> to vector<1x128xf32>
    %753 = vector.shape_cast %752 : vector<1x128xf32> to vector<128xf32>
    %754 = vector.shape_cast %753 : vector<128xf32> to vector<1x128xf32>
    %755 = vector.broadcast %754 : vector<1x128xf32> to vector<8x128xf32>
    %756 = arith.mulf %751, %755 : vector<8x128xf32>
    %757 = arith.addf %750, %756 : vector<8x128xf32>
    %758 = vector.extract_strided_slice %743 {offsets = [0, 64], sizes = [8, 128], strides = [1, 1]} : vector<8x256xf32> to vector<8x128xf32>
    %759 = vector.extract_strided_slice %705 {offsets = [7, 0], sizes = [1, 128], strides = [1, 1]} : vector<25x128xf32> to vector<1x128xf32>
    %760 = vector.shape_cast %759 : vector<1x128xf32> to vector<128xf32>
    %761 = vector.shape_cast %760 : vector<128xf32> to vector<1x128xf32>
    %762 = vector.broadcast %761 : vector<1x128xf32> to vector<8x128xf32>
    %763 = arith.mulf %758, %762 : vector<8x128xf32>
    %764 = arith.addf %757, %763 : vector<8x128xf32>
    %765 = vector.extract_strided_slice %743 {offsets = [0, 96], sizes = [8, 128], strides = [1, 1]} : vector<8x256xf32> to vector<8x128xf32>
    %766 = vector.extract_strided_slice %705 {offsets = [8, 0], sizes = [1, 128], strides = [1, 1]} : vector<25x128xf32> to vector<1x128xf32>
    %767 = vector.shape_cast %766 : vector<1x128xf32> to vector<128xf32>
    %768 = vector.shape_cast %767 : vector<128xf32> to vector<1x128xf32>
    %769 = vector.broadcast %768 : vector<1x128xf32> to vector<8x128xf32>
    %770 = arith.mulf %765, %769 : vector<8x128xf32>
    %771 = arith.addf %764, %770 : vector<8x128xf32>
    %772 = vector.extract_strided_slice %743 {offsets = [0, 128], sizes = [8, 128], strides = [1, 1]} : vector<8x256xf32> to vector<8x128xf32>
    %773 = vector.extract_strided_slice %705 {offsets = [9, 0], sizes = [1, 128], strides = [1, 1]} : vector<25x128xf32> to vector<1x128xf32>
    %774 = vector.shape_cast %773 : vector<1x128xf32> to vector<128xf32>
    %775 = vector.shape_cast %774 : vector<128xf32> to vector<1x128xf32>
    %776 = vector.broadcast %775 : vector<1x128xf32> to vector<8x128xf32>
    %777 = arith.mulf %772, %776 : vector<8x128xf32>
    %778 = arith.addf %771, %777 : vector<8x128xf32>
    %c4_158 = arith.constant 4 : index
    %c0_159 = arith.constant 0 : index
    %779 = vector.load %arg28[%c4_158, %c0_159] : memref<16x256xf32, #tpu.memory_space<vmem>>, vector<8x256xf32>
    %780 = vector.extract_strided_slice %779 {offsets = [0, 0], sizes = [8, 128], strides = [1, 1]} : vector<8x256xf32> to vector<8x128xf32>
    %781 = vector.extract_strided_slice %705 {offsets = [10, 0], sizes = [1, 128], strides = [1, 1]} : vector<25x128xf32> to vector<1x128xf32>
    %782 = vector.shape_cast %781 : vector<1x128xf32> to vector<128xf32>
    %783 = vector.shape_cast %782 : vector<128xf32> to vector<1x128xf32>
    %784 = vector.broadcast %783 : vector<1x128xf32> to vector<8x128xf32>
    %785 = arith.mulf %780, %784 : vector<8x128xf32>
    %786 = arith.addf %778, %785 : vector<8x128xf32>
    %787 = vector.extract_strided_slice %779 {offsets = [0, 32], sizes = [8, 128], strides = [1, 1]} : vector<8x256xf32> to vector<8x128xf32>
    %788 = vector.extract_strided_slice %705 {offsets = [11, 0], sizes = [1, 128], strides = [1, 1]} : vector<25x128xf32> to vector<1x128xf32>
    %789 = vector.shape_cast %788 : vector<1x128xf32> to vector<128xf32>
    %790 = vector.shape_cast %789 : vector<128xf32> to vector<1x128xf32>
    %791 = vector.broadcast %790 : vector<1x128xf32> to vector<8x128xf32>
    %792 = arith.mulf %787, %791 : vector<8x128xf32>
    %793 = arith.addf %786, %792 : vector<8x128xf32>
    %794 = vector.extract_strided_slice %779 {offsets = [0, 64], sizes = [8, 128], strides = [1, 1]} : vector<8x256xf32> to vector<8x128xf32>
    %795 = vector.extract_strided_slice %705 {offsets = [12, 0], sizes = [1, 128], strides = [1, 1]} : vector<25x128xf32> to vector<1x128xf32>
    %796 = vector.shape_cast %795 : vector<1x128xf32> to vector<128xf32>
    %797 = vector.shape_cast %796 : vector<128xf32> to vector<1x128xf32>
    %798 = vector.broadcast %797 : vector<1x128xf32> to vector<8x128xf32>
    %799 = arith.mulf %794, %798 : vector<8x128xf32>
    %800 = arith.addf %793, %799 : vector<8x128xf32>
    %801 = vector.extract_strided_slice %779 {offsets = [0, 96], sizes = [8, 128], strides = [1, 1]} : vector<8x256xf32> to vector<8x128xf32>
    %802 = vector.extract_strided_slice %705 {offsets = [13, 0], sizes = [1, 128], strides = [1, 1]} : vector<25x128xf32> to vector<1x128xf32>
    %803 = vector.shape_cast %802 : vector<1x128xf32> to vector<128xf32>
    %804 = vector.shape_cast %803 : vector<128xf32> to vector<1x128xf32>
    %805 = vector.broadcast %804 : vector<1x128xf32> to vector<8x128xf32>
    %806 = arith.mulf %801, %805 : vector<8x128xf32>
    %807 = arith.addf %800, %806 : vector<8x128xf32>
    %808 = vector.extract_strided_slice %779 {offsets = [0, 128], sizes = [8, 128], strides = [1, 1]} : vector<8x256xf32> to vector<8x128xf32>
    %809 = vector.extract_strided_slice %705 {offsets = [14, 0], sizes = [1, 128], strides = [1, 1]} : vector<25x128xf32> to vector<1x128xf32>
    %810 = vector.shape_cast %809 : vector<1x128xf32> to vector<128xf32>
    %811 = vector.shape_cast %810 : vector<128xf32> to vector<1x128xf32>
    %812 = vector.broadcast %811 : vector<1x128xf32> to vector<8x128xf32>
    %813 = arith.mulf %808, %812 : vector<8x128xf32>
    %814 = arith.addf %807, %813 : vector<8x128xf32>
    %c6_160 = arith.constant 6 : index
    %c0_161 = arith.constant 0 : index
    %815 = vector.load %arg28[%c6_160, %c0_161] : memref<16x256xf32, #tpu.memory_space<vmem>>, vector<8x256xf32>
    %816 = vector.extract_strided_slice %815 {offsets = [0, 0], sizes = [8, 128], strides = [1, 1]} : vector<8x256xf32> to vector<8x128xf32>
    %817 = vector.extract_strided_slice %705 {offsets = [15, 0], sizes = [1, 128], strides = [1, 1]} : vector<25x128xf32> to vector<1x128xf32>
    %818 = vector.shape_cast %817 : vector<1x128xf32> to vector<128xf32>
    %819 = vector.shape_cast %818 : vector<128xf32> to vector<1x128xf32>
    %820 = vector.broadcast %819 : vector<1x128xf32> to vector<8x128xf32>
    %821 = arith.mulf %816, %820 : vector<8x128xf32>
    %822 = arith.addf %814, %821 : vector<8x128xf32>
    %823 = vector.extract_strided_slice %815 {offsets = [0, 32], sizes = [8, 128], strides = [1, 1]} : vector<8x256xf32> to vector<8x128xf32>
    %824 = vector.extract_strided_slice %705 {offsets = [16, 0], sizes = [1, 128], strides = [1, 1]} : vector<25x128xf32> to vector<1x128xf32>
    %825 = vector.shape_cast %824 : vector<1x128xf32> to vector<128xf32>
    %826 = vector.shape_cast %825 : vector<128xf32> to vector<1x128xf32>
    %827 = vector.broadcast %826 : vector<1x128xf32> to vector<8x128xf32>
    %828 = arith.mulf %823, %827 : vector<8x128xf32>
    %829 = arith.addf %822, %828 : vector<8x128xf32>
    %830 = vector.extract_strided_slice %815 {offsets = [0, 64], sizes = [8, 128], strides = [1, 1]} : vector<8x256xf32> to vector<8x128xf32>
    %831 = vector.extract_strided_slice %705 {offsets = [17, 0], sizes = [1, 128], strides = [1, 1]} : vector<25x128xf32> to vector<1x128xf32>
    %832 = vector.shape_cast %831 : vector<1x128xf32> to vector<128xf32>
    %833 = vector.shape_cast %832 : vector<128xf32> to vector<1x128xf32>
    %834 = vector.broadcast %833 : vector<1x128xf32> to vector<8x128xf32>
    %835 = arith.mulf %830, %834 : vector<8x128xf32>
    %836 = arith.addf %829, %835 : vector<8x128xf32>
    %837 = vector.extract_strided_slice %815 {offsets = [0, 96], sizes = [8, 128], strides = [1, 1]} : vector<8x256xf32> to vector<8x128xf32>
    %838 = vector.extract_strided_slice %705 {offsets = [18, 0], sizes = [1, 128], strides = [1, 1]} : vector<25x128xf32> to vector<1x128xf32>
    %839 = vector.shape_cast %838 : vector<1x128xf32> to vector<128xf32>
    %840 = vector.shape_cast %839 : vector<128xf32> to vector<1x128xf32>
    %841 = vector.broadcast %840 : vector<1x128xf32> to vector<8x128xf32>
    %842 = arith.mulf %837, %841 : vector<8x128xf32>
    %843 = arith.addf %836, %842 : vector<8x128xf32>
    %844 = vector.extract_strided_slice %815 {offsets = [0, 128], sizes = [8, 128], strides = [1, 1]} : vector<8x256xf32> to vector<8x128xf32>
    %845 = vector.extract_strided_slice %705 {offsets = [19, 0], sizes = [1, 128], strides = [1, 1]} : vector<25x128xf32> to vector<1x128xf32>
    %846 = vector.shape_cast %845 : vector<1x128xf32> to vector<128xf32>
    %847 = vector.shape_cast %846 : vector<128xf32> to vector<1x128xf32>
    %848 = vector.broadcast %847 : vector<1x128xf32> to vector<8x128xf32>
    %849 = arith.mulf %844, %848 : vector<8x128xf32>
    %850 = arith.addf %843, %849 : vector<8x128xf32>
    %c8_162 = arith.constant 8 : index
    %c0_163 = arith.constant 0 : index
    %851 = vector.load %arg28[%c8_162, %c0_163] : memref<16x256xf32, #tpu.memory_space<vmem>>, vector<8x256xf32>
    %852 = vector.extract_strided_slice %851 {offsets = [0, 0], sizes = [8, 128], strides = [1, 1]} : vector<8x256xf32> to vector<8x128xf32>
    %853 = vector.extract_strided_slice %705 {offsets = [20, 0], sizes = [1, 128], strides = [1, 1]} : vector<25x128xf32> to vector<1x128xf32>
    %854 = vector.shape_cast %853 : vector<1x128xf32> to vector<128xf32>
    %855 = vector.shape_cast %854 : vector<128xf32> to vector<1x128xf32>
    %856 = vector.broadcast %855 : vector<1x128xf32> to vector<8x128xf32>
    %857 = arith.mulf %852, %856 : vector<8x128xf32>
    %858 = arith.addf %850, %857 : vector<8x128xf32>
    %859 = vector.extract_strided_slice %851 {offsets = [0, 32], sizes = [8, 128], strides = [1, 1]} : vector<8x256xf32> to vector<8x128xf32>
    %860 = vector.extract_strided_slice %705 {offsets = [21, 0], sizes = [1, 128], strides = [1, 1]} : vector<25x128xf32> to vector<1x128xf32>
    %861 = vector.shape_cast %860 : vector<1x128xf32> to vector<128xf32>
    %862 = vector.shape_cast %861 : vector<128xf32> to vector<1x128xf32>
    %863 = vector.broadcast %862 : vector<1x128xf32> to vector<8x128xf32>
    %864 = arith.mulf %859, %863 : vector<8x128xf32>
    %865 = arith.addf %858, %864 : vector<8x128xf32>
    %866 = vector.extract_strided_slice %851 {offsets = [0, 64], sizes = [8, 128], strides = [1, 1]} : vector<8x256xf32> to vector<8x128xf32>
    %867 = vector.extract_strided_slice %705 {offsets = [22, 0], sizes = [1, 128], strides = [1, 1]} : vector<25x128xf32> to vector<1x128xf32>
    %868 = vector.shape_cast %867 : vector<1x128xf32> to vector<128xf32>
    %869 = vector.shape_cast %868 : vector<128xf32> to vector<1x128xf32>
    %870 = vector.broadcast %869 : vector<1x128xf32> to vector<8x128xf32>
    %871 = arith.mulf %866, %870 : vector<8x128xf32>
    %872 = arith.addf %865, %871 : vector<8x128xf32>
    %873 = vector.extract_strided_slice %851 {offsets = [0, 96], sizes = [8, 128], strides = [1, 1]} : vector<8x256xf32> to vector<8x128xf32>
    %874 = vector.extract_strided_slice %705 {offsets = [23, 0], sizes = [1, 128], strides = [1, 1]} : vector<25x128xf32> to vector<1x128xf32>
    %875 = vector.shape_cast %874 : vector<1x128xf32> to vector<128xf32>
    %876 = vector.shape_cast %875 : vector<128xf32> to vector<1x128xf32>
    %877 = vector.broadcast %876 : vector<1x128xf32> to vector<8x128xf32>
    %878 = arith.mulf %873, %877 : vector<8x128xf32>
    %879 = arith.addf %872, %878 : vector<8x128xf32>
    %880 = vector.extract_strided_slice %851 {offsets = [0, 128], sizes = [8, 128], strides = [1, 1]} : vector<8x256xf32> to vector<8x128xf32>
    %881 = vector.extract_strided_slice %705 {offsets = [24, 0], sizes = [1, 128], strides = [1, 1]} : vector<25x128xf32> to vector<1x128xf32>
    %882 = vector.shape_cast %881 : vector<1x128xf32> to vector<128xf32>
    %883 = vector.shape_cast %882 : vector<128xf32> to vector<1x128xf32>
    %884 = vector.broadcast %883 : vector<1x128xf32> to vector<8x128xf32>
    %885 = arith.mulf %880, %884 : vector<8x128xf32>
    %886 = arith.addf %879, %885 : vector<8x128xf32>
    %c0_164 = arith.constant 0 : index
    %c0_165 = arith.constant 0 : index
    %887 = vector.load %arg25[%c0_164, %c0_165] : memref<128x128xf32, #tpu.memory_space<vmem>>, vector<128x128xf32>
    %cst_166 = arith.constant dense<0.000000e+00> : vector<8x128xf32>
    %888 = tpu.matmul %886, %887, %cst_166 {dimension_numbers = #tpu.dot_dimension_numbers<[1], [0], [0], [1], [0, 0, 1, 1], [], []>} : vector<8x128xf32>, vector<128x128xf32>, vector<8x128xf32> -> vector<8x128xf32>
    %c0_167 = arith.constant 0 : index
    %c0_168 = arith.constant 0 : index
    %889 = vector.load %arg26[%c0_167, %c0_168] : memref<1x128xf32, #tpu.memory_space<vmem>>, vector<1x128xf32>
    %890 = vector.broadcast %889 : vector<1x128xf32> to vector<8x128xf32>
    %891 = arith.addf %888, %890 : vector<8x128xf32>
    %892 = arith.addf %172, %891 : vector<8x128xf32>
    %893 = tpu.concatenate %172, %272, %701, %892 in 1 : vector<8x128xf32>, vector<8x128xf32>, vector<8x128xf32>, vector<8x128xf32> -> vector<8x512xf32>
    %c0_169 = arith.constant 0 : index
    %c0_170 = arith.constant 0 : index
    %c0_171 = arith.constant 0 : index
    %894 = vector.load %arg27[%c0_169, %c0_170, %c0_171] : memref<1x8x512xf32, #tpu.memory_space<vmem>>, vector<1x8x512xf32>
    %895 = vector.shape_cast %894 : vector<1x8x512xf32> to vector<8x512xf32>
    %896 = vector.shape_cast %893 : vector<8x512xf32> to vector<1x8x512xf32>
    tpu.vector_store %arg27[%c0_169, %c0_170, %c0_171], %896 {strides = array<i32>} : memref<1x8x512xf32, #tpu.memory_space<vmem>>, vector<1x8x512xf32>,
    return
  }
  func.func @transform_0(%arg0: i32) -> (i32, i32, i32) {
    %c0_i32 = arith.constant 0 : i32
    %c0_i32_0 = arith.constant 0 : i32
    %c0_i32_1 = arith.constant 0 : i32
    return %arg0, %c0_i32, %c0_i32_0 : i32, i32, i32
  }
  func.func @transform_1(%arg0: i32) -> (i32, i32, i32) {
    %c0_i32 = arith.constant 0 : i32
    %c0_i32_0 = arith.constant 0 : i32
    %c0_i32_1 = arith.constant 0 : i32
    return %arg0, %c0_i32, %c0_i32_0 : i32, i32, i32
  }
  func.func @transform_2(%arg0: i32) -> (i32, i32) {
    %c0_i32 = arith.constant 0 : i32
    %c0_i32_0 = arith.constant 0 : i32
    %c0_i32_1 = arith.constant 0 : i32
    return %c0_i32, %c0_i32_0 : i32, i32
  }
  func.func @transform_3(%arg0: i32) -> (i32, i32, i32) {
    %c0_i32 = arith.constant 0 : i32
    %c0_i32_0 = arith.constant 0 : i32
    %c0_i32_1 = arith.constant 0 : i32
    %c0_i32_2 = arith.constant 0 : i32
    return %c0_i32, %c0_i32_0, %c0_i32_1 : i32, i32, i32
  }
  func.func @transform_4(%arg0: i32) -> (i32, i32) {
    %c0_i32 = arith.constant 0 : i32
    %c0_i32_0 = arith.constant 0 : i32
    %c0_i32_1 = arith.constant 0 : i32
    return %c0_i32, %c0_i32_0 : i32, i32
  }
  func.func @transform_5(%arg0: i32) -> (i32, i32) {
    %c0_i32 = arith.constant 0 : i32
    %c0_i32_0 = arith.constant 0 : i32
    %c0_i32_1 = arith.constant 0 : i32
    return %c0_i32, %c0_i32_0 : i32, i32
  }
  func.func @transform_6(%arg0: i32) -> (i32, i32) {
    %c0_i32 = arith.constant 0 : i32
    %c0_i32_0 = arith.constant 0 : i32
    %c0_i32_1 = arith.constant 0 : i32
    return %c0_i32, %c0_i32_0 : i32, i32
  }
  func.func @transform_7(%arg0: i32) -> (i32, i32) {
    %c0_i32 = arith.constant 0 : i32
    %c0_i32_0 = arith.constant 0 : i32
    %c0_i32_1 = arith.constant 0 : i32
    return %c0_i32, %c0_i32_0 : i32, i32
  }
  func.func @transform_8(%arg0: i32) -> (i32, i32) {
    %c0_i32 = arith.constant 0 : i32
    %c0_i32_0 = arith.constant 0 : i32
    %c0_i32_1 = arith.constant 0 : i32
    return %c0_i32, %c0_i32_0 : i32, i32
  }
  func.func @transform_9(%arg0: i32) -> (i32, i32) {
    %c0_i32 = arith.constant 0 : i32
    %c0_i32_0 = arith.constant 0 : i32
    %c0_i32_1 = arith.constant 0 : i32
    return %c0_i32, %c0_i32_0 : i32, i32
  }
  func.func @transform_10(%arg0: i32) -> (i32, i32) {
    %c0_i32 = arith.constant 0 : i32
    %c0_i32_0 = arith.constant 0 : i32
    %c0_i32_1 = arith.constant 0 : i32
    return %c0_i32, %c0_i32_0 : i32, i32
  }
  func.func @transform_11(%arg0: i32) -> (i32, i32) {
    %c0_i32 = arith.constant 0 : i32
    %c0_i32_0 = arith.constant 0 : i32
    %c0_i32_1 = arith.constant 0 : i32
    return %c0_i32, %c0_i32_0 : i32, i32
  }
  func.func @transform_12(%arg0: i32) -> (i32, i32) {
    %c0_i32 = arith.constant 0 : i32
    %c0_i32_0 = arith.constant 0 : i32
    %c0_i32_1 = arith.constant 0 : i32
    return %c0_i32, %c0_i32_0 : i32, i32
  }
  func.func @transform_13(%arg0: i32) -> (i32, i32) {
    %c0_i32 = arith.constant 0 : i32
    %c0_i32_0 = arith.constant 0 : i32
    %c0_i32_1 = arith.constant 0 : i32
    return %c0_i32, %c0_i32_0 : i32, i32
  }
  func.func @transform_14(%arg0: i32) -> (i32, i32) {
    %c0_i32 = arith.constant 0 : i32
    %c0_i32_0 = arith.constant 0 : i32
    %c0_i32_1 = arith.constant 0 : i32
    return %c0_i32, %c0_i32_0 : i32, i32
  }
  func.func @transform_15(%arg0: i32) -> (i32, i32) {
    %c0_i32 = arith.constant 0 : i32
    %c0_i32_0 = arith.constant 0 : i32
    %c0_i32_1 = arith.constant 0 : i32
    return %c0_i32, %c0_i32_0 : i32, i32
  }
  func.func @transform_16(%arg0: i32) -> (i32, i32) {
    %c0_i32 = arith.constant 0 : i32
    %c0_i32_0 = arith.constant 0 : i32
    %c0_i32_1 = arith.constant 0 : i32
    return %c0_i32, %c0_i32_0 : i32, i32
  }
  func.func @transform_17(%arg0: i32) -> (i32, i32) {
    %c0_i32 = arith.constant 0 : i32
    %c0_i32_0 = arith.constant 0 : i32
    %c0_i32_1 = arith.constant 0 : i32
    return %c0_i32, %c0_i32_0 : i32, i32
  }
  func.func @transform_18(%arg0: i32) -> (i32, i32) {
    %c0_i32 = arith.constant 0 : i32
    %c0_i32_0 = arith.constant 0 : i32
    %c0_i32_1 = arith.constant 0 : i32
    return %c0_i32, %c0_i32_0 : i32, i32
  }
  func.func @transform_19(%arg0: i32) -> (i32, i32) {
    %c0_i32 = arith.constant 0 : i32
    %c0_i32_0 = arith.constant 0 : i32
    %c0_i32_1 = arith.constant 0 : i32
    return %c0_i32, %c0_i32_0 : i32, i32
  }
  func.func @transform_20(%arg0: i32) -> (i32, i32) {
    %c0_i32 = arith.constant 0 : i32
    %c0_i32_0 = arith.constant 0 : i32
    %c0_i32_1 = arith.constant 0 : i32
    return %c0_i32, %c0_i32_0 : i32, i32
  }
  func.func @transform_21(%arg0: i32) -> (i32, i32) {
    %c0_i32 = arith.constant 0 : i32
    %c0_i32_0 = arith.constant 0 : i32
    %c0_i32_1 = arith.constant 0 : i32
    return %c0_i32, %c0_i32_0 : i32, i32
  }
  func.func @transform_22(%arg0: i32) -> (i32, i32) {
    %c0_i32 = arith.constant 0 : i32
    %c0_i32_0 = arith.constant 0 : i32
    %c0_i32_1 = arith.constant 0 : i32
    return %c0_i32, %c0_i32_0 : i32, i32
  }
  func.func @transform_23(%arg0: i32) -> (i32, i32) {
    %c0_i32 = arith.constant 0 : i32
    %c0_i32_0 = arith.constant 0 : i32
    %c0_i32_1 = arith.constant 0 : i32
    return %c0_i32, %c0_i32_0 : i32, i32
  }
  func.func @transform_24(%arg0: i32) -> (i32, i32) {
    %c0_i32 = arith.constant 0 : i32
    %c0_i32_0 = arith.constant 0 : i32
    %c0_i32_1 = arith.constant 0 : i32
    return %c0_i32, %c0_i32_0 : i32, i32
  }
  func.func @transform_25(%arg0: i32) -> (i32, i32) {
    %c0_i32 = arith.constant 0 : i32
    %c0_i32_0 = arith.constant 0 : i32
    %c0_i32_1 = arith.constant 0 : i32
    return %c0_i32, %c0_i32_0 : i32, i32
  }
  func.func @transform_26(%arg0: i32) -> (i32, i32, i32) {
    %c0_i32 = arith.constant 0 : i32
    %c0_i32_0 = arith.constant 0 : i32
    %c0_i32_1 = arith.constant 0 : i32
    return %arg0, %c0_i32, %c0_i32_0 : i32, i32, i32
  }
}

</mosaic_0001>

<bundles_post_ra>
// kernel: tile.114
= control target key start
LH: loop header
LB: loop body
LE: loop exit
PB: predicated region body
PF: predicated region fallthrough
CT: control target
= control target key end

     0   :  { %vm4_vm0 = vcmask 1047556   ;;  %s389_s14 = smov 112   ;;  %s390_s4 = smov 96   ;;  %vm6_vm1 = vcmask 130048   ;;  %vm39_vm2 = vcmask 1048448   ;;  %vm78_vm3 = vcmask 917248   ;;  %s698_s0 = inlined_call_operand.vmem [shape: f32[25,8,16], index: 0, kind: input, shape index: {}]   ;;  %s699_s1 = inlined_call_operand.vmem [shape: f32[25,128], index: 1, kind: output, shape index: {}]  }
   0x1   :  { %v317_v0 = vld [vmem:[%s698_s0 + $0x87] ss:$8 sm:$0xf]   ;;  %v324_v10 = vld [vmem:[%s698_s0 + $0x46] ss:$8 sm:$0xf]  }
   0x2   :  { %v318_v1 = vld [vmem:[%s698_s0 + $0x87] ss:$8 sm:$0xf0]   ;;  %v325_v11 = vld [vmem:[%s698_s0 + $0x46] ss:$8 sm:$0xf0]  }
   0x3   :  { %v57_v2 = vsel %vm4_vm0, %v318_v1, %v317_v0  ;;  %v312_v3 = vld [vmem:[%s698_s0 + $0x7] ss:$8 sm:$0xf]   ;;  %v322_v12 = vld [vmem:[%s698_s0 + $0x6] ss:$8 sm:$0xf]   ;;  %v85_v14 = vsel %vm4_vm0, %v325_v11, %v324_v10 }
   0x4   :  { %v313_v4 = vld [vmem:[%s698_s0 + $0x7] ss:$8 sm:$0xf0]   ;;  %58 = vrot.lane.b32.xlu1 %v57_v2, %s389_s14  ;;  %v323_v13 = vld [vmem:[%s698_s0 + $0x6] ss:$8 sm:$0xf0]  }
   0x5   :  { %v36_v5 = vsel %vm4_vm0, %v313_v4, %v312_v3  ;;  %v314_v6 = vld [vmem:[%s698_s0 + $0x47] ss:$8 sm:$0xf]   ;;  %v75_v15 = vsel %vm4_vm0, %v323_v13, %v322_v12  ;;  %v327_v16 = vld [vmem:[%s698_s0 + $0x86] ss:$8 sm:$0xf]  }
   0x6   :  { %37 = vrot.lane.b32.xlu0 %v36_v5, %s389_s14  ;;  %v320_v7 = vld [vmem:[%s698_s0 + $0xc7] sm:$0x1]   ;;  %v328_v17 = vld [vmem:[%s698_s0 + $0x86] ss:$8 sm:$0xf0]   ;;  %s391_s19 = smov 80  }
   0x7   :  { %v315_v8 = vld [vmem:[%s698_s0 + $0x47] ss:$8 sm:$0xf0]   ;;  %v330_v18 = vld [vmem:[%s698_s0 + $0xc6] sm:$0x1]   ;;  %v96_v19 = vsel %vm4_vm0, %v328_v17, %v327_v16  ;;  %s392_s13 = smov 64  }
   0x8   :  { %v46_v9 = vsel %vm4_vm0, %v315_v8, %v314_v6  ;;  %65 = vrot.lane.b32.xlu1 %v320_v7, %s389_s14  ;;  %v334_v20 = vld [vmem:[%s698_s0 + $0x45] ss:$8 sm:$0xf]   ;;  %v344_v30 = vld [vmem:[%s698_s0 + $0x44] ss:$8 sm:$0xf]  }
   0x9   :  { %v335_v21 = vld [vmem:[%s698_s0 + $0x45] ss:$8 sm:$0xf0]   ;;  %v345_v31 = vld [vmem:[%s698_s0 + $0x44] ss:$8 sm:$0xf0]  }
   0xa   :  { %47 = vrot.lane.b32.xlu0 %v46_v9, %s389_s14  ;;  %v332_v22 = vld [vmem:[%s698_s0 + $0x5] ss:$8 sm:$0xf]   ;;  %v124_v24 = vsel %vm4_vm0, %v335_v21, %v334_v20  ;;  %v342_v32 = vld [vmem:[%s698_s0 + $0x4] ss:$8 sm:$0xf]   ;;  %v163_v34 = vsel %vm4_vm0, %v345_v31, %v344_v30 }
   0xb   :  { %v333_v23 = vld [vmem:[%s698_s0 + $0x5] ss:$8 sm:$0xf0]   ;;  %v343_v33 = vld [vmem:[%s698_s0 + $0x4] ss:$8 sm:$0xf0]  }
   0xc   :  { %86 = vrot.lane.b32.xlu1 %v85_v14, %s390_s4  ;;  %v114_v25 = vsel %vm4_vm0, %v333_v23, %v332_v22  ;;  %v337_v26 = vld [vmem:[%s698_s0 + $0x85] ss:$8 sm:$0xf]   ;;  %v347_v35 = vld [vmem:[%s698_s0 + $0x84] ss:$8 sm:$0xf]   ;;  %v153_v36 = vsel %vm4_vm0, %v343_v33, %v342_v32 }
   0xd   :  { %v338_v27 = vld [vmem:[%s698_s0 + $0x85] ss:$8 sm:$0xf0]   ;;  %v348_v37 = vld [vmem:[%s698_s0 + $0x84] ss:$8 sm:$0xf0]  }
   0xe   :  { %76 = vrot.lane.b32.xlu0 %v75_v15, %s390_s4  ;;  %v340_v28 = vld [vmem:[%s698_s0 + $0xc5] sm:$0x1]   ;;  %v135_v29 = vsel %vm4_vm0, %v338_v27, %v337_v26  ;;  %v307_v38 = vld [vmem:[%s698_s0 + $0x80] ss:$8 sm:$0xf]   ;;  %v174_v48 = vsel %vm4_vm0, %v348_v37, %v347_v35  ;;  %s394_s28 = smov 32  }
   0xf   :  { %v350_v39 = vld [vmem:[%s698_s0 + $0xc4] sm:$0x1]   ;;  %v308_v40 = vld [vmem:[%s698_s0 + $0x80] ss:$8 sm:$0xf0]   ;;  %s395_s14 = smov 16  }
  0x10   :  { %104 = vrot.lane.b32.xlu1 %v330_v18, %s390_s4  ;;  %v2_v41 = vld [vmem:[%s698_s0] ss:$8 sm:$0xf]   ;;  %v22_v42 = vsel %vm4_vm0, %v308_v40, %v307_v38  ;;  %v354_v49 = vld [vmem:[%s698_s0 + $0x43] ss:$8 sm:$0xf]  }
  0x11   :  { %v3_v43 = vld [vmem:[%s698_s0] ss:$8 sm:$0xf0]   ;;  %309 = vst.msk [vmem:[%s699_s1 + $0x10] sm:$0xff] %vm6_vm1, %v22_v42   ;;  %v360_v58 = vld [vmem:[%s698_s0 + $0xc3] sm:$0x1]  }
  0x12   :  { %97 = vrot.lane.b32.xlu0 %v96_v19, %s390_s4  ;;  %v310_v44 = vld [vmem:[%s698_s0 + $0xc0] sm:$0x1]   ;;  %v5_v45 = vsel %vm4_vm0, %v3_v43, %v2_v41  ;;  %v355_v50 = vld [vmem:[%s698_s0 + $0x43] ss:$8 sm:$0xf0]   ;;  %vm117_vm4 = vcmask 786048  }
  0x13   :  { %311 = vst.msk [vmem:[%s699_s1 + $0x18] sm:$0x1] %vm6_vm1, %v310_v44   ;;  %v304_v46 = vld [vmem:[%s698_s0 + $0x40] ss:$8 sm:$0xf]   ;;  %7 = vst.msk [vmem:[%s699_s1] sm:$0xff] %vm6_vm1, %v5_v45   ;;  %v202_v54 = vsel %vm4_vm0, %v355_v50, %v354_v49 }
  0x14   :  { %125 = vrot.lane.b32.xlu1 %v124_v24, %s391_s19  ;;  %v305_v47 = vld [vmem:[%s698_s0 + $0x40] ss:$8 sm:$0xf0]   ;;  %v352_v52 = vld [vmem:[%s698_s0 + $0x3] ss:$8 sm:$0xf]  }
  0x15   :  { %v13_v51 = vsel %vm4_vm0, %v305_v47, %v304_v46  ;;  %v353_v53 = vld [vmem:[%s698_s0 + $0x3] ss:$8 sm:$0xf0]   ;;  %v364_v60 = vld [vmem:[%s698_s0 + $0x42] ss:$8 sm:$0xf]  }
  0x16   :  { %115 = vrot.lane.b32.xlu0 %v114_v25, %s391_s19  ;;  %306 = vst.msk [vmem:[%s699_s1 + $0x8] sm:$0xff] %vm6_vm1, %v13_v51   ;;  %v192_v55 = vsel %vm4_vm0, %v353_v53, %v352_v52  ;;  %v357_v56 = vld [vmem:[%s698_s0 + $0x83] ss:$8 sm:$0xf]   ;;  %v370_v4 = vld [vmem:[%s698_s0 + $0xc2] sm:$0x1]  }
  0x17   :  { %v358_v57 = vld [vmem:[%s698_s0 + $0x83] ss:$8 sm:$0xf0]   ;;  %v365_v61 = vld [vmem:[%s698_s0 + $0x42] ss:$8 sm:$0xf0]  }
  0x18   :  { %143 = vrot.lane.b32.xlu1 %v340_v28, %s391_s19  ;;  %v213_v59 = vsel %vm4_vm0, %v358_v57, %v357_v56  ;;  %v362_v62 = vld [vmem:[%s698_s0 + $0x2] ss:$8 sm:$0xf]   ;;  %v241_v0 = vsel %vm4_vm0, %v365_v61, %v364_v60  ;;  %v374_v6 = vld [vmem:[%s698_s0 + $0x41] ss:$8 sm:$0xf]  }
  0x19   :  { %v363_v63 = vld [vmem:[%s698_s0 + $0x2] ss:$8 sm:$0xf0]   ;;  %v375_v7 = vld [vmem:[%s698_s0 + $0x41] ss:$8 sm:$0xf0]  }
  0x1a   :  { %136 = vrot.lane.b32.xlu0 %v135_v29, %s391_s19  ;;  %v231_v1 = vsel %vm4_vm0, %v363_v63, %v362_v62  ;;  %v367_v2 = vld [vmem:[%s698_s0 + $0x82] ss:$8 sm:$0xf]   ;;  %v372_v8 = vld [vmem:[%s698_s0 + $0x1] ss:$8 sm:$0xf]   ;;  %v280_v10 = vsel %vm4_vm0, %v375_v7, %v374_v6 }
  0x1b   :  { %v368_v3 = vld [vmem:[%s698_s0 + $0x82] ss:$8 sm:$0xf0]   ;;  %v373_v9 = vld [vmem:[%s698_s0 + $0x1] ss:$8 sm:$0xf0]  }
  0x1c   :  { %164 = vrot.lane.b32.xlu1 %v163_v34, %s392_s13  ;;  %v252_v5 = vsel %vm4_vm0, %v368_v3, %v367_v2  ;;  %v270_v11 = vsel %vm4_vm0, %v373_v9, %v372_v8  ;;  %v377_v12 = vld [vmem:[%s698_s0 + $0x81] ss:$8 sm:$0xf]   ;;  %vm156_vm5 = vcmask 654848   ;;  %vm195_vm6 = vcmask 523648  }
  0x1d   :  { %v378_v13 = vld [vmem:[%s698_s0 + $0x81] ss:$8 sm:$0xf0]   ;;  %vm234_vm7 = vcmask 392448   ;;  %vm273_vm8 = vcmask 261248  }
  0x1e   :  { %154 = vrot.lane.b32.xlu0 %v153_v36, %s392_s13  ;;  %v380_v14 = vld [vmem:[%s698_s0 + $0xc1] sm:$0x1]   ;;  %v291_v15 = vsel %vm4_vm0, %v378_v13, %v377_v12 }
  0x20   :  { %182 = vrot.lane.b32.xlu1 %v350_v39, %s392_s13 }
  0x22   :  { %175 = vrot.lane.b32.xlu0 %v174_v48, %s392_s13  ;;  %s393_s13 = smov 48  }
  0x24   :  { %203 = vrot.lane.b32.xlu1 %v202_v54, %s393_s13 }
  0x26   :  { %193 = vrot.lane.b32.xlu0 %v192_v55, %s393_s13 }
  0x28   :  { %221 = vrot.lane.b32.xlu1 %v360_v58, %s393_s13 }
  0x2a   :  { %214 = vrot.lane.b32.xlu0 %v213_v59, %s393_s13 }
  0x2c   :  { %242 = vrot.lane.b32.xlu1 %v241_v0, %s394_s28 }
  0x2e   :  { %232 = vrot.lane.b32.xlu0 %v231_v1, %s394_s28 }
  0x30   :  { %260 = vrot.lane.b32.xlu1 %v370_v4, %s394_s28 }
  0x32   :  { %253 = vrot.lane.b32.xlu0 %v252_v5, %s394_s28 }
  0x34   :  { %281 = vrot.lane.b32.xlu1 %v280_v10, %s395_s14 }
  0x36   :  { %271 = vrot.lane.b32.xlu0 %v270_v11, %s395_s14 }
  0x38   :  { %299 = vrot.lane.b32.xlu1 %v380_v14, %s395_s14 }
  0x3a   :  { %292 = vrot.lane.b32.xlu0 %v291_v15, %s395_s14 }
  0x76   :  { %v59_v16 = vpop.permute.xlu1 %58  }
  0x77   :  { %319 = vst.msk [vmem:[%s699_s1 + $0x10] sm:$0xff] %vm39_vm2, %v59_v16  }
  0x78   :  { %v38_v17 = vpop.permute.xlu0 %37  }
  0x79   :  { %40 = vst.msk [vmem:[%s699_s1] sm:$0xff] %vm39_vm2, %v38_v17  }
  0x7a   :  { %v66_v18 = vpop.permute.xlu1 %65  }
  0x7b   :  { %321 = vst.msk [vmem:[%s699_s1 + $0x18] sm:$0x1] %vm39_vm2, %v66_v18  }
  0x7c   :  { %v48_v19 = vpop.permute.xlu0 %47  }
  0x7d   :  { %316 = vst.msk [vmem:[%s699_s1 + $0x8] sm:$0xff] %vm39_vm2, %v48_v19  }
  0x7e   :  { %v87_v20 = vpop.permute.xlu1 %86  }
  0x7f   :  { %326 = vst.msk [vmem:[%s699_s1 + $0x8] sm:$0xff] %vm78_vm3, %v87_v20  }
  0x80   :  { %v77_v21 = vpop.permute.xlu0 %76  }
  0x81   :  { %79 = vst.msk [vmem:[%s699_s1] sm:$0xff] %vm78_vm3, %v77_v21  }
  0x82   :  { %v105_v22 = vpop.permute.xlu1 %104  }
  0x83   :  { %331 = vst.msk [vmem:[%s699_s1 + $0x18] sm:$0x1] %vm78_vm3, %v105_v22  }
  0x84   :  { %v98_v23 = vpop.permute.xlu0 %97  }
  0x85   :  { %329 = vst.msk [vmem:[%s699_s1 + $0x10] sm:$0xff] %vm78_vm3, %v98_v23  }
  0x86   :  { %v126_v24 = vpop.permute.xlu1 %125  }
  0x87   :  { %336 = vst.msk [vmem:[%s699_s1 + $0x8] sm:$0xff] %vm117_vm4, %v126_v24  }
  0x88   :  { %v116_v25 = vpop.permute.xlu0 %115  }
  0x89   :  { %118 = vst.msk [vmem:[%s699_s1] sm:$0xff] %vm117_vm4, %v116_v25  }
  0x8a   :  { %v144_v26 = vpop.permute.xlu1 %143  }
  0x8b   :  { %341 = vst.msk [vmem:[%s699_s1 + $0x18] sm:$0x1] %vm117_vm4, %v144_v26  }
  0x8c   :  { %v137_v27 = vpop.permute.xlu0 %136  }
  0x8d   :  { %339 = vst.msk [vmem:[%s699_s1 + $0x10] sm:$0xff] %vm117_vm4, %v137_v27  }
  0x8e   :  { %v165_v28 = vpop.permute.xlu1 %164  }
  0x8f   :  { %346 = vst.msk [vmem:[%s699_s1 + $0x8] sm:$0xff] %vm156_vm5, %v165_v28  }
  0x90   :  { %v155_v29 = vpop.permute.xlu0 %154  }
  0x91   :  { %157 = vst.msk [vmem:[%s699_s1] sm:$0xff] %vm156_vm5, %v155_v29  }
  0x92   :  { %v183_v30 = vpop.permute.xlu1 %182  }
  0x93   :  { %351 = vst.msk [vmem:[%s699_s1 + $0x18] sm:$0x1] %vm156_vm5, %v183_v30  }
  0x94   :  { %v176_v31 = vpop.permute.xlu0 %175  }
  0x95   :  { %349 = vst.msk [vmem:[%s699_s1 + $0x10] sm:$0xff] %vm156_vm5, %v176_v31  }
  0x96   :  { %v204_v32 = vpop.permute.xlu1 %203  }
  0x97   :  { %356 = vst.msk [vmem:[%s699_s1 + $0x8] sm:$0xff] %vm195_vm6, %v204_v32  }
  0x98   :  { %v194_v33 = vpop.permute.xlu0 %193  }
  0x99   :  { %196 = vst.msk [vmem:[%s699_s1] sm:$0xff] %vm195_vm6, %v194_v33  }
  0x9a   :  { %v222_v34 = vpop.permute.xlu1 %221  }
  0x9b   :  { %361 = vst.msk [vmem:[%s699_s1 + $0x18] sm:$0x1] %vm195_vm6, %v222_v34  }
  0x9c   :  { %v215_v35 = vpop.permute.xlu0 %214  }
  0x9d   :  { %359 = vst.msk [vmem:[%s699_s1 + $0x10] sm:$0xff] %vm195_vm6, %v215_v35  }
  0x9e   :  { %v243_v36 = vpop.permute.xlu1 %242  }
  0x9f   :  { %366 = vst.msk [vmem:[%s699_s1 + $0x8] sm:$0xff] %vm234_vm7, %v243_v36  }
  0xa0   :  { %v233_v37 = vpop.permute.xlu0 %232  }
  0xa1   :  { %235 = vst.msk [vmem:[%s699_s1] sm:$0xff] %vm234_vm7, %v233_v37  }
  0xa2   :  { %v261_v38 = vpop.permute.xlu1 %260  }
  0xa3   :  { %371 = vst.msk [vmem:[%s699_s1 + $0x18] sm:$0x1] %vm234_vm7, %v261_v38  }
  0xa4   :  { %v254_v39 = vpop.permute.xlu0 %253  }
  0xa5   :  { %369 = vst.msk [vmem:[%s699_s1 + $0x10] sm:$0xff] %vm234_vm7, %v254_v39  }
  0xa6   :  { %v282_v40 = vpop.permute.xlu1 %281  }
  0xa7   :  { %376 = vst.msk [vmem:[%s699_s1 + $0x8] sm:$0xff] %vm273_vm8, %v282_v40  }
  0xa8   :  { %v272_v41 = vpop.permute.xlu0 %271  }
  0xa9   :  { %274 = vst.msk [vmem:[%s699_s1] sm:$0xff] %vm273_vm8, %v272_v41  }
  0xaa   :  { %v300_v42 = vpop.permute.xlu1 %299  }
  0xab   :  { %381 = vst.msk [vmem:[%s699_s1 + $0x18] sm:$0x1] %vm273_vm8, %v300_v42  }
  0xac   :  { %v293_v43 = vpop.permute.xlu0 %292  }
  0xad   :  { %379 = vst.msk [vmem:[%s699_s1 + $0x10] sm:$0xff] %vm273_vm8, %v293_v43  }

// kernel: tile.104
= control target key start
LH: loop header
LB: loop body
LE: loop exit
PB: predicated region body
PF: predicated region fallthrough
CT: control target
= control target key end

     0   :  { %vm4_vm0 = vcmask 1047556   ;;  %s169_s14 = smov 96   ;;  %s170_s15 = smov 112   ;;  %vm6_vm1 = vcmask 130048   ;;  %vm21_vm2 = vcmask 1048448   ;;  %vm38_vm3 = vcmask 917248   ;;  %s314_s0 = inlined_call_operand.vmem [shape: f32[9,8,16], index: 0, kind: input, shape index: {}]   ;;  %s315_s1 = inlined_call_operand.vmem [shape: f32[9,128], index: 1, kind: output, shape index: {}]  }
   0x1   :  { %v138_v0 = vld [vmem:[%s314_s0 + $0x6] ss:$8 sm:$0xf]   ;;  %v134_v3 = vld [vmem:[%s314_s0 + $0x7] ss:$8 sm:$0xf]  }
   0x2   :  { %v139_v1 = vld [vmem:[%s314_s0 + $0x6] ss:$8 sm:$0xf0]   ;;  %v135_v4 = vld [vmem:[%s314_s0 + $0x7] ss:$8 sm:$0xf0]  }
   0x3   :  { %v35_v2 = vsel %vm4_vm0, %v139_v1, %v138_v0  ;;  %v18_v5 = vsel %vm4_vm0, %v135_v4, %v134_v3  ;;  %v140_v6 = vld [vmem:[%s314_s0 + $0x46] sm:$0x1]   ;;  %v136_v7 = vld [vmem:[%s314_s0 + $0x47] sm:$0x1]   ;;  %v144_v10 = vld [vmem:[%s314_s0 + $0x45] sm:$0x1]  }
   0x4   :  { %36 = vrot.lane.b32.xlu1 %v35_v2, %s169_s14  ;;  %19 = vrot.lane.b32.xlu0 %v18_v5, %s170_s15  ;;  %v142_v8 = vld [vmem:[%s314_s0 + $0x5] ss:$8 sm:$0xf]   ;;  %v146_v12 = vld [vmem:[%s314_s0 + $0x4] ss:$8 sm:$0xf]  }
   0x5   :  { %v143_v9 = vld [vmem:[%s314_s0 + $0x5] ss:$8 sm:$0xf0]   ;;  %v147_v13 = vld [vmem:[%s314_s0 + $0x4] ss:$8 sm:$0xf0]  }
   0x6   :  { %v52_v11 = vsel %vm4_vm0, %v143_v9, %v142_v8  ;;  %s171_s30 = smov 80   ;;  %v148_v14 = vld [vmem:[%s314_s0 + $0x44] sm:$0x1]   ;;  %v2_v15 = vld [vmem:[%s314_s0] ss:$8 sm:$0xf]   ;;  %v69_v18 = vsel %vm4_vm0, %v147_v13, %v146_v12 }
   0x7   :  { %v3_v16 = vld [vmem:[%s314_s0] ss:$8 sm:$0xf0]   ;;  %v150_v20 = vld [vmem:[%s314_s0 + $0x3] ss:$8 sm:$0xf]  }
   0x8   :  { %42 = vrot.lane.b32.xlu1 %v140_v6, %s169_s14  ;;  %25 = vrot.lane.b32.xlu0 %v136_v7, %s170_s15  ;;  %v132_v17 = vld [vmem:[%s314_s0 + $0x40] sm:$0x1]   ;;  %v5_v19 = vsel %vm4_vm0, %v3_v16, %v2_v15  ;;  %v151_v21 = vld [vmem:[%s314_s0 + $0x3] ss:$8 sm:$0xf0]   ;;  %s172_s18 = smov 64  }
   0x9   :  { %133 = vst.msk [vmem:[%s315_s1 + $0x8] sm:$0x1] %vm6_vm1, %v132_v17   ;;  %7 = vst.msk [vmem:[%s315_s1] sm:$0xff] %vm6_vm1, %v5_v19   ;;  %v152_v22 = vld [vmem:[%s314_s0 + $0x43] sm:$0x1]   ;;  %v86_v23 = vsel %vm4_vm0, %v151_v21, %v150_v20  ;;  %s173_s25 = smov 48  }
   0xa   :  { %v154_v24 = vld [vmem:[%s314_s0 + $0x2] ss:$8 sm:$0xf]   ;;  %v158_v28 = vld [vmem:[%s314_s0 + $0x1] ss:$8 sm:$0xf]  }
   0xb   :  { %v155_v25 = vld [vmem:[%s314_s0 + $0x2] ss:$8 sm:$0xf0]   ;;  %v159_v29 = vld [vmem:[%s314_s0 + $0x1] ss:$8 sm:$0xf0]  }
   0xc   :  { %59 = vrot.lane.b32.xlu1 %v144_v10, %s171_s30  ;;  %53 = vrot.lane.b32.xlu0 %v52_v11, %s171_s30  ;;  %v156_v26 = vld [vmem:[%s314_s0 + $0x42] sm:$0x1]   ;;  %v103_v27 = vsel %vm4_vm0, %v155_v25, %v154_v24  ;;  %s174_s3 = smov 32   ;;  %v160_v30 = vld [vmem:[%s314_s0 + $0x41] sm:$0x1]   ;;  %v120_v31 = vsel %vm4_vm0, %v159_v29, %v158_v28  ;;  %s175_s0 = smov 16  }
   0xd   :  { %vm55_vm4 = vcmask 786048   ;;  %vm72_vm5 = vcmask 654848   ;;  %vm89_vm6 = vcmask 523648   ;;  %vm106_vm7 = vcmask 392448  }
   0xe   :  { %vm123_vm8 = vcmask 261248  }
  0x10   :  { %76 = vrot.lane.b32.xlu1 %v148_v14, %s172_s18  ;;  %70 = vrot.lane.b32.xlu0 %v69_v18, %s172_s18 }
  0x14   :  { %93 = vrot.lane.b32.xlu1 %v152_v22, %s173_s25  ;;  %87 = vrot.lane.b32.xlu0 %v86_v23, %s173_s25 }
  0x18   :  { %110 = vrot.lane.b32.xlu1 %v156_v26, %s174_s3  ;;  %104 = vrot.lane.b32.xlu0 %v103_v27, %s174_s3 }
  0x1c   :  { %127 = vrot.lane.b32.xlu1 %v160_v30, %s175_s0  ;;  %121 = vrot.lane.b32.xlu0 %v120_v31, %s175_s0 }
  0x76   :  { %v37_v32 = vpop.permute.xlu1 %36   ;;  %v20_v33 = vpop.permute.xlu0 %19  }
  0x77   :  { %22 = vst.msk [vmem:[%s315_s1] sm:$0xff] %vm21_vm2, %v20_v33  }
  0x78   :  { %39 = vst.msk [vmem:[%s315_s1] sm:$0xff] %vm38_vm3, %v37_v32  }
  0x7a   :  { %v43_v34 = vpop.permute.xlu1 %42   ;;  %v26_v35 = vpop.permute.xlu0 %25  }
  0x7b   :  { %137 = vst.msk [vmem:[%s315_s1 + $0x8] sm:$0x1] %vm21_vm2, %v26_v35  }
  0x7c   :  { %141 = vst.msk [vmem:[%s315_s1 + $0x8] sm:$0x1] %vm38_vm3, %v43_v34  }
  0x7e   :  { %v60_v36 = vpop.permute.xlu1 %59   ;;  %v54_v37 = vpop.permute.xlu0 %53  }
  0x7f   :  { %145 = vst.msk [vmem:[%s315_s1 + $0x8] sm:$0x1] %vm55_vm4, %v60_v36   ;;  %56 = vst.msk [vmem:[%s315_s1] sm:$0xff] %vm55_vm4, %v54_v37  }
  0x82   :  { %v77_v38 = vpop.permute.xlu1 %76   ;;  %v71_v39 = vpop.permute.xlu0 %70  }
  0x83   :  { %149 = vst.msk [vmem:[%s315_s1 + $0x8] sm:$0x1] %vm72_vm5, %v77_v38   ;;  %73 = vst.msk [vmem:[%s315_s1] sm:$0xff] %vm72_vm5, %v71_v39  }
  0x86   :  { %v94_v40 = vpop.permute.xlu1 %93   ;;  %v88_v41 = vpop.permute.xlu0 %87  }
  0x87   :  { %153 = vst.msk [vmem:[%s315_s1 + $0x8] sm:$0x1] %vm89_vm6, %v94_v40   ;;  %90 = vst.msk [vmem:[%s315_s1] sm:$0xff] %vm89_vm6, %v88_v41  }
  0x8a   :  { %v111_v42 = vpop.permute.xlu1 %110   ;;  %v105_v43 = vpop.permute.xlu0 %104  }
  0x8b   :  { %157 = vst.msk [vmem:[%s315_s1 + $0x8] sm:$0x1] %vm106_vm7, %v111_v42   ;;  %107 = vst.msk [vmem:[%s315_s1] sm:$0xff] %vm106_vm7, %v105_v43  }
  0x8e   :  { %v128_v44 = vpop.permute.xlu1 %127   ;;  %v122_v45 = vpop.permute.xlu0 %121  }
  0x8f   :  { %161 = vst.msk [vmem:[%s315_s1 + $0x8] sm:$0x1] %vm123_vm8, %v128_v44   ;;  %124 = vst.msk [vmem:[%s315_s1] sm:$0xff] %vm123_vm8, %v122_v45  }

// kernel: mul.74
= control target key start
LH: loop header
LB: loop body
LE: loop exit
PB: predicated region body
PF: predicated region fallthrough
CT: control target
= control target key end

     0   :  { %s130_s0 = inlined_call_operand.vmem [shape: f32[8,8], index: 0, kind: input, shape index: {}]   ;;  %s131_s1 = inlined_call_operand.vmem [shape: f32[8,8,16], index: 1, kind: output, shape index: {}]  }
   0x1   :  { %v60_v0 = vld [vmem:[%s130_s0 + $0x2] ss:$0 sm:$0xff]  ;;  %v4_v1 = vld [vmem:[%s130_s0] ss:$0 sm:$0xff]  ;;  %v62_v2 = vld [vmem:[%s130_s0 + $0x3] ss:$0 sm:$0xff] }
   0x2   :  { %19 = vbcast.lane.b32.xlu1 %v60_v0, 256  ;;  %6 = vbcast.lane.b32.xlu0 %v4_v1, 256  ;;  %v58_v3 = vld [vmem:[%s130_s0 + $0x1] ss:$0 sm:$0xff]  ;;  %v66_v4 = vld [vmem:[%s130_s0 + $0x5] ss:$0 sm:$0xff] }
   0x3   :  { %v64_v5 = vld [vmem:[%s130_s0 + $0x4] ss:$0 sm:$0xff]  ;;  %v70_v6 = vld [vmem:[%s130_s0 + $0x7] ss:$0 sm:$0xff]  ;;  %v68_v7 = vld [vmem:[%s130_s0 + $0x6] ss:$0 sm:$0xff] }
   0x6   :  { %26 = vbcast.lane.b32.xlu1 %v62_v2, 256  ;;  %12 = vbcast.lane.b32.xlu0 %v58_v3, 256 }
   0xa   :  { %40 = vbcast.lane.b32.xlu1 %v66_v4, 256  ;;  %33 = vbcast.lane.b32.xlu0 %v64_v5, 256 }
   0xe   :  { %54 = vbcast.lane.b32.xlu1 %v70_v6, 256  ;;  %47 = vbcast.lane.b32.xlu0 %v68_v7, 256 }
  0x74   :  { %v20_v8 = vpop.permute.xlu1 %19  ;;  %v7_v9 = vpop.permute.xlu0 %6 }
  0x75   :  { %61 = vst [vmem:[%s131_s1 + $0x10] sm:$0xff] %v20_v8  ;;  %8 = vst [vmem:[%s131_s1] sm:$0xff] %v7_v9 }
  0x78   :  { %v27_v10 = vpop.permute.xlu1 %26  ;;  %v13_v11 = vpop.permute.xlu0 %12 }
  0x79   :  { %63 = vst [vmem:[%s131_s1 + $0x18] sm:$0xff] %v27_v10  ;;  %59 = vst [vmem:[%s131_s1 + $0x8] sm:$0xff] %v13_v11 }
  0x7c   :  { %v41_v12 = vpop.permute.xlu1 %40  ;;  %v34_v13 = vpop.permute.xlu0 %33 }
  0x7d   :  { %67 = vst [vmem:[%s131_s1 + $0x28] sm:$0xff] %v41_v12  ;;  %65 = vst [vmem:[%s131_s1 + $0x20] sm:$0xff] %v34_v13 }
  0x80   :  { %v55_v14 = vpop.permute.xlu1 %54  ;;  %v48_v15 = vpop.permute.xlu0 %47 }
  0x81   :  { %71 = vst [vmem:[%s131_s1 + $0x38] sm:$0xff] %v55_v14  ;;  %69 = vst [vmem:[%s131_s1 + $0x30] sm:$0xff] %v48_v15 }

// kernel: cell_forward.1
= control target key start
LH: loop header
LB: loop body
LE: loop exit
PB: predicated region body
PF: predicated region fallthrough
CT: control target
= control target key end

     0   :  { %s6345_s27 = smov 0   ;;  %s9867_s0 = inlined_call_operand.vmem [shape: f32[4,8,128], index: 0, kind: input, shape index: {}]   ;;  %s9868_s1 = inlined_call_operand.vmem [shape: f32[4,8,256], index: 1, kind: input, shape index: {}]   ;;  %s9869_s2 = inlined_call_operand.vmem [shape: f32[8,128], index: 2, kind: input, shape index: {}]   ;;  %s9870_s3 = inlined_call_operand.vmem [shape: f32[9,8,128], index: 3, kind: input, shape index: {}]   ;;  %s9871_s4 = inlined_call_operand.vmem [shape: f32[128,128], index: 4, kind: input, shape index: {}]   ;;  %s9872_s5 = inlined_call_operand.vmem [shape: f32[1,128], index: 5, kind: input, shape index: {}]   ;;  %s9873_s6 = inlined_call_operand.vmem [shape: f32[256,128], index: 6, kind: input, shape index: {}]   ;;  %s9874_s7 = inlined_call_operand.vmem [shape: f32[1,128], index: 7, kind: input, shape index: {}]   ;;  %s9875_s8 = inlined_call_operand.vmem [shape: f32[9,128], index: 8, kind: input, shape index: {}]   ;;  %s9876_s9 = inlined_call_operand.vmem [shape: f32[128,128], index: 9, kind: input, shape index: {}]   ;;  %s9877_s10 = inlined_call_operand.vmem [shape: f32[1,128], index: 10, kind: input, shape index: {}]   ;;  %s9878_s11 = inlined_call_operand.vmem [shape: f32[9,128], index: 11, kind: input, shape index: {}]   ;;  %s9879_s12 = inlined_call_operand.vmem [shape: f32[128,128], index: 12, kind: input, shape index: {}]   ;;  %s9880_s13 = inlined_call_operand.vmem [shape: f32[1,128], index: 13, kind: input, shape index: {}]   ;;  %s9881_s14 = inlined_call_operand.vmem [shape: f32[9,128], index: 14, kind: input, shape index: {}]   ;;  %s9882_s15 = inlined_call_operand.vmem [shape: f32[128,128], index: 15, kind: input, shape index: {}]   ;;  %s9883_s16 = inlined_call_operand.vmem [shape: f32[1,128], index: 16, kind: input, shape index: {}]   ;;  %s9884_s17 = inlined_call_operand.vmem [shape: f32[25,128], index: 17, kind: input, shape index: {}]   ;;  %s9885_s18 = inlined_call_operand.vmem [shape: f32[128,128], index: 18, kind: input, shape index: {}]   ;;  %s9886_s19 = inlined_call_operand.vmem [shape: f32[1,128], index: 19, kind: input, shape index: {}]   ;;  %s9887_s20 = inlined_call_operand.vmem [shape: f32[25,128], index: 20, kind: input, shape index: {}]   ;;  %s9888_s21 = inlined_call_operand.vmem [shape: f32[128,128], index: 21, kind: input, shape index: {}]   ;;  %s9889_s22 = inlined_call_operand.vmem [shape: f32[1,128], index: 22, kind: input, shape index: {}]   ;;  %s9890_s23 = inlined_call_operand.vmem [shape: f32[25,128], index: 23, kind: input, shape index: {}]   ;;  %s9891_s24 = inlined_call_operand.vmem [shape: f32[128,128], index: 24, kind: input, shape index: {}]   ;;  %s9892_s25 = inlined_call_operand.vmem [shape: f32[1,128], index: 25, kind: input, shape index: {}]   ;;  %s9893_s26 = inlined_call_operand.vmem [shape: f32[4,8,512], index: 26, kind: output, shape index: {}]  }
   0x1   :  { %10034 = sst [smem:[#allocation49_spill]] %s9867_s0 }
   0x2   :  { %10035 = sst [smem:[#allocation50_spill]] %s9868_s1 }
   0x3   :  { %10036 = sst [smem:[#allocation51_spill]] %s9869_s2 }
   0x4   :  { %10037 = sst [smem:[#allocation52_spill]] %s9870_s3 }
   0x5   :  { %10038 = sst [smem:[#allocation53_spill]] %s9871_s4 }
   0x6   :  { %10039 = sst [smem:[#allocation54_spill]] %s9872_s5 }
   0x7   :  { %10040 = sst [smem:[#allocation55_spill]] %s9873_s6 }
   0x8   :  { %10041 = sst [smem:[#allocation56_spill]] %s9874_s7 }
   0x9   :  { %10042 = sst [smem:[#allocation57_spill]] %s9875_s8 }
   0xa   :  { %10043 = sst [smem:[#allocation58_spill]] %s9876_s9 }
   0xb   :  { %10044 = sst [smem:[#allocation59_spill]] %s9877_s10 }
   0xc   :  { %10045 = sst [smem:[#allocation60_spill]] %s9878_s11 }
   0xd   :  { %10046 = sst [smem:[#allocation61_spill]] %s9891_s24 }
   0xe   :  { %10047 = sst [smem:[#allocation62_spill]] %s9892_s25 }
   0xf LB: > { %10048 = sst [smem:[#allocation3_spill]] %s6199_s27  ;;  %s5715_s3 = sadd.s32 4294967295, %s6199_s27   ;;  %s6199_s27 = sphi %s6345_s27, %s36_s27  }
  0x10   : > { %p5719_p0 = scmp.ge.s32.totalorder %s6199_s27, 1  ;;  %p721_p1 = scmp.lt.s32.totalorder %s6199_s27, 5 }
  0x12   : > { %p722_p2 = pnand %p5719_p0, %p721_p1 }
  0x14   : > { %725 = sbr.rel (%p722_p2) target bundleno = 4278 (0x10b6), region = 124 }
  0x19   : > { %s10049_s8 = sld [smem:[#allocation53_spill]]  ;;  %v1041_v1 = vlaneseq  ;;  %v9914_v2 = vmov 0.0   ;;  %vm6202_vm0 = vmmov 0   ;;  %s9899_s28 = smov 80   ;;  %vm1027_vm1 = vcmask 1048068  }
  0x1a   : > { %5905 = vmatprep.subr.mxu0 %v9914_v2  ;;  %809 = vst [vmem:[#allocation2] sm:$0xff] %v9914_v2  ;;  %810 = vst [vmem:[#allocation2 + $0x8] sm:$0xff] %v9914_v2  ;;  %5937 = vmatprep.mubr.msk.f32.mxu0 %vm6202_vm0, %v9914_v2  ;;  %s10051_s6 = sld [smem:[#allocation57_spill]]  ;;  %p795_p3 = scmp.lt.s32.totalorder %s5715_s3, 3  ;;  %vm1029_vm2 = vcmask 523268   ;;  %vm1031_vm3 = vcmask 1043968  }
  0x1b   : > { %811 = vst [vmem:[#allocation2 + $0x10] sm:$0xff] %v9914_v2  ;;  %812 = vst [vmem:[#allocation2 + $0x18] sm:$0xff] %v9914_v2  ;;  %v6366_v4 = vshrl.u32 %v1041_v1, 7  ;;  %s10052_s7 = sld [smem:[#allocation49_spill]]  ;;  %s9905_s5 = smov 48   ;;  %vm1033_vm4 = vcmask 519168  }
  0x1c   : > { %s10264_s3 = smov (!%p795_p3, %s5715_s3), 3  ;;  %s9901_s30 = smov 112   ;;  %vm1147_vm5 = vcmask 1046528   ;;  %vm1262_vm6 = vcmask 1045504   ;;  %vm1081_vm7 = vcmask 916480   ;;  %vm1116_vm8 = vcmask 785408  }
  0x1d   : > { %v6373_v6 = vsub.s32 2, %v6366_v4  ;;  %s5720_s0 = sshll.u32 %s10264_s3, 3  ;;  %v6450_v24 = vsub.s32 4, %v6366_v4  ;;  %v6456_v26 = vsub.s32 7, %v6366_v4  ;;  %v6462_v28 = vsub.s32 0, %v6366_v4  ;;  %s9903_s2 = smov 96  }
  0x1e   : > { %v6468_v30 = vsub.s32 6, %v6366_v4  ;;  %v6480_v37 = vsub.s32 1, %v6366_v4  ;;  %v6486_v40 = vsub.s32 5, %v6366_v4  ;;  %v6493_v42 = vsub.s32 3, %v6366_v4  ;;  %s10062_s1 = sld [smem:[#allocation58_spill]]  ;;  %s10065_s9 = smov 112  }
  0x1f   : > { %v832_v0 = vld [vmem:[%s10049_s8 + $0x78] sm:$0xff]  ;;  %v831_v3 = vld [vmem:[%s10049_s8 + $0x70] sm:$0xff]  ;;  %v830_v5 = vld [vmem:[%s10049_s8 + $0x68] sm:$0xff]  ;;  %10050 = vst [vmem:[#allocation4_spill] sm:$0xff] %v6373_v6  ;;  %vm1384_vm9 = vcmask 1044480   ;;  %s10063_s11 = sld [smem:[#allocation60_spill]] }
  0x20   : > { %5906 = vmatpush3.msra.mxu0 %v832_v0  ;;  %v829_v7 = vld [vmem:[%s10049_s8 + $0x60] sm:$0xff]  ;;  %v828_v10 = vld [vmem:[%s10049_s8 + $0x58] sm:$0xff]  ;;  %v827_v11 = vld [vmem:[%s10049_s8 + $0x50] sm:$0xff]  ;;  %10053 = vst [vmem:[#allocation5_spill] sm:$0xff] %v6450_v24  ;;  %vm1395_vm10 = vcmask 654336   ;;  %s6208_s25 = smov 32  }
  0x21   : > { %5907 = vmatprep.subr.mxu0 %v9914_v2  ;;  %v6382_v8 = vld [vmem:[%s10051_s6] sm:$0xff]  ;;  %v826_v12 = vld [vmem:[%s10049_s8 + $0x48] sm:$0xff]  ;;  %v824_v14 = vld [vmem:[%s10049_s8 + $0x38] sm:$0xff]  ;;  %s798_s4 = scalar_lea.vmem %s10052_s7, %s5720_s0  ;;  %10054 = vst [vmem:[#allocation6_spill] sm:$0xff] %v6456_v26  ;;  %s10057_s7 = sld [smem:[#allocation54_spill]]  ;;  %vm2320_vm11 = vcmask 1043456  }
  0x22   : > { %5908 = vmatpush3.msra.mxu0 %v831_v3  ;;  %v1095_v9 = vrot.slane %v6382_v8, %v6373_v6  ;;  %v825_v13 = vld [vmem:[%s10049_s8 + $0x40] sm:$0xff]  ;;  %v823_v15 = vld [vmem:[%s10049_s8 + $0x30] sm:$0xff]  ;;  %v822_v16 = vld [vmem:[%s10049_s8 + $0x28] sm:$0xff]  ;;  %v1165_v25 = vrot.slane %v6382_v8, %v6450_v24  ;;  %v1280_v27 = vrot.slane %v6382_v8, %v6456_v26  ;;  %10055 = vst [vmem:[#allocation7_spill] sm:$0xff] %v6462_v28  ;;  %s10066_s0 = smov 96   ;;  %vm2175_vm12 = vcmask 523264  }
  0x23   : > { %5909 = vmatprep.subr.mxu0 %v9914_v2  ;;  %v821_v17 = vld [vmem:[%s10049_s8 + $0x20] sm:$0xff]  ;;  %v820_v18 = vld [vmem:[%s10049_s8 + $0x18] sm:$0xff]  ;;  %v819_v19 = vld [vmem:[%s10049_s8 + $0x10] sm:$0xff]  ;;  %v1044_v29 = vrot.slane %v6382_v8, %v6462_v28  ;;  %10056 = vst [vmem:[#allocation8_spill] sm:$0xff] %v6468_v30  ;;  %v1249_v31 = vrot.slane %v6382_v8, %v6468_v30  ;;  %v1060_v39 = vrot.slane %v6382_v8, %v6480_v37  ;;  %vm2852_vm13 = vcmask 1040384   ;;  %s10261_s10 = sld [smem:[#allocation62_spill]] }
  0x24   : > { %5910 = vmatpush3.msra.mxu0 %v830_v5  ;;  %1097 = vrot.lane.b32.xlu1 %v1095_v9, %s9899_s28  ;;  %v813_v20 = vld [vmem:[%s798_s4] sm:$0xff]  ;;  %v818_v21 = vld [vmem:[%s10049_s8 + $0x8] sm:$0xff]  ;;  %s9907_s28 = smov 64   ;;  %10058 = vst [vmem:[#allocation9_spill] sm:$0xff] %v6480_v37  ;;  %10059 = vst [vmem:[#allocation10_spill] sm:$0xff] %v6486_v40  ;;  %v1205_v41 = vrot.slane %v6382_v8, %v6486_v40  ;;  %s10060_s4 = smov 80   ;;  %v1134_v44 = vrot.slane %v6382_v8, %v6493_v42 }
  0x25   : > { %5911 = vmatprep.subr.mxu0 %v9914_v2  ;;  %v817_v22 = vld [vmem:[%s10049_s8] sm:$0xff]  ;;  %v816_v23 = vmax.f32 %v813_v20, 0.0  ;;  %10061 = vst [vmem:[#allocation11_spill] sm:$0xff] %v6493_v42  ;;  %v5727_v43 = vld [vmem:[%s10051_s6 + $0x8] ss:$0 sm:$0xff]  ;;  %s10069_s6 = sld [smem:[#allocation50_spill]] }
  0x26   : > { %5912 = vmatpush3.msra.mxu0 %v829_v7  ;;  %s5750_s8 = sshll.u32 %s10264_s3, 5  ;;  %vm2867_vm14 = vcmask 130048   ;;  %vm5341_vm15 = vcmask 1041408  }
  0x27   : > { %5913 = vmatprep.subr.mxu0 %v9914_v2  ;;  %v5725_v32 = vld [vmem:[%s10057_s7] ss:$0 sm:$0xff]  ;;  %s10064_s7 = sld [smem:[#allocation59_spill]]  ;;  %s7031_s29 = scalar_lea.vmem %s9893_s26, %s5750_s8 }
  0x28   : > { %5914 = vmatpush3.msra.mxu0 %v828_v10  ;;  %1167 = vrot.lane.b32.xlu1 %v1165_v25, %s9907_s28  ;;  %s6209_s8 = smov 16  }
  0x29   : > { %5915 = vmatprep.subr.mxu0 %v9914_v2 }
  0x2a   : > { %5916 = vmatpush3.msra.mxu0 %v827_v11 }
  0x2b   : > { %5917 = vmatprep.subr.mxu0 %v9914_v2 }
  0x2c   : > { %5918 = vmatpush3.msra.mxu0 %v826_v12  ;;  %1282 = vrot.lane.b32.xlu1 %v1280_v27, %s9907_s28 }
  0x2d   : > { %5919 = vmatprep.subr.mxu0 %v9914_v2 }
  0x2e   : > { %5920 = vmatpush3.msra.mxu0 %v825_v13 }
  0x2f   : > { %5921 = vmatprep.subr.mxu0 %v9914_v2 }
  0x30   : > { %5922 = vmatpush3.msra.mxu0 %v824_v14  ;;  %1046 = vrot.lane.b32.xlu1 %v1044_v29, %s9905_s5 }
  0x31   : > { %5923 = vmatprep.subr.mxu0 %v9914_v2 }
  0x32   : > { %5924 = vmatpush3.msra.mxu0 %v823_v15 }
  0x33   : > { %5925 = vmatprep.subr.mxu0 %v9914_v2 }
  0x34   : > { %5926 = vmatpush3.msra.mxu0 %v822_v16  ;;  %1251 = vrot.lane.b32.xlu1 %v1249_v31, %s9905_s5 }
  0x35   : > { %5927 = vmatprep.subr.mxu0 %v9914_v2 }
  0x36   : > { %5928 = vmatpush3.msra.mxu0 %v821_v17 }
  0x37   : > { %5929 = vmatprep.subr.mxu0 %v9914_v2 }
  0x38   : > { %5930 = vmatpush3.msra.mxu0 %v820_v18 }
  0x39   : > { %5931 = vmatprep.subr.mxu0 %v9914_v2 }
  0x3a   : > { %5932 = vmatpush3.msra.mxu0 %v819_v19 }
  0x3b   : > { %5933 = vmatprep.subr.mxu0 %v9914_v2 }
  0x3c   : > { %5934 = vmatpush3.msra.mxu0 %v818_v21 }
  0x3d   : > { %5935 = vmatprep.subr.mxu0 %v9914_v2 }
  0x3e   : > { %5936 = vmatpush3.msra.mxu0 %v817_v22 }
  0x3f   : > { %5938 = vmatmul.mubr.f32.vlgmr.msra.gmra.mxu0 %v816_v23  ;;  %5940 = vmatprep.subr.mxu0 %v9914_v2 }
  0x40   : > { %5972 = vmatprep.mubr.msk.f32.mxu0 %vm6202_vm0, %v9914_v2 }
  0x96   : > { %v1098_v54 = vpop.permute.xlu1 %1097 }
  0x9a   : > { %v1168_v60 = vpop.permute.xlu1 %1167 }
  0x9e   : > { %v1283_v11 = vpop.permute.xlu1 %1282 }
  0xff   : > { %v906_v33 = vpop.f32.mrf.mxu0 }
 0x100   : > { %v6476_v34 = vadd.f32 %v5725_v32, %v906_v33 }
 0x101   : > { %v5939_v35 = vpop.f32.mrf.mxu0 }
 0x102   : > { %v1021_v36 = vmax.f32 %v6476_v34, 0.0 }
 0x104   : > { %v1023_v38 = vrot.slane %v1021_v36, 4 }
 0x106   : > { %1024 = vrot.lane.b32.xlu0 %v1023_v38, %s9907_s28 }
 0x10a   : > { %1062 = vrot.lane.b32.xlu0 %v1060_v39, %s9907_s28 }
 0x10e   : > { %1207 = vrot.lane.b32.xlu0 %v1205_v41, %s10060_s4 }
 0x112   : > { %1322 = vrot.lane.b32.xlu0 %v5727_v43, %s10060_s4 }
 0x116   : > { %1136 = vrot.lane.b32.xlu0 %v1134_v44, %s9905_s5 }
 0x178   : > { %v1025_v45 = vpop.permute.xlu0 %1024 }
 0x179   : > { %1028 = vst.msk [vmem:[#allocation2] sm:$0xf0] %vm1027_vm1, %v1025_v45 }
 0x17a   : > { %1030 = vst.msk [vmem:[#allocation2 + $0x8] sm:$0xf0] %vm1029_vm2, %v1025_v45 }
 0x17b   : > { %1032 = vst.msk [vmem:[#allocation2 + $0x10] sm:$0xf] %vm1031_vm3, %v1025_v45 }
 0x17c   : > { %1034 = vst.msk [vmem:[#allocation2 + $0x18] sm:$0xf] %vm1033_vm4, %v1025_v45  ;;  %v1063_v46 = vpop.permute.xlu0 %1062 }
 0x180   : > { %v6509_v49 = vld [vmem:[#allocation2] sm:$0xf8]  ;;  %v1208_v63 = vpop.permute.xlu0 %1207 }
 0x181   : > { %v6506_v47 = vld [vmem:[#allocation2 + $0x8] sm:$0xf8]  ;;  %v1065_v50 = vmul.f32 %v1063_v46, %v6509_v49  ;;  %v1100_v56 = vmul.f32 %v1098_v54, %v6509_v49  ;;  %v6540_v9 = vld [vmem:[#allocation2] sm:$0xf0] }
 0x182   : > { %v1066_v48 = vmul.f32 %v1063_v46, %v6506_v47  ;;  %v6515_v52 = vld [vmem:[#allocation2 + $0x10] sm:$0x7]  ;;  %v1101_v58 = vmul.f32 %v1098_v54, %v6506_v47  ;;  %v6545_v12 = vld [vmem:[#allocation2 + $0x8] sm:$0xf0]  ;;  %v1170_v17 = vmul.f32 %v1168_v60, %v6540_v9  ;;  %v1210_v27 = vmul.f32 %v1208_v63, %v6540_v9  ;;  %v6559_v29 = vld [vmem:[#allocation2] sm:$0xe0] }
 0x183   : > { %v6512_v51 = vld [vmem:[#allocation2 + $0x18] sm:$0x7]  ;;  %1073 = vrot.lane.b32.xlu0 %v1065_v50, %s9901_s30  ;;  %v1067_v55 = vmul.f32 %v1063_v46, %v6515_v52  ;;  %v6523_v57 = vld [vmem:[#allocation2 + $0x10] sm:$0xf]  ;;  %v1102_v61 = vmul.f32 %v1098_v54, %v6515_v52  ;;  %v1171_v18 = vmul.f32 %v1168_v60, %v6545_v12  ;;  %v1211_v22 = vmul.f32 %v1208_v63, %v6545_v12  ;;  %v6555_v23 = vld [vmem:[#allocation2 + $0x8] sm:$0xe0] }
 0x184   : > { %1075 = vrot.lane.b32.xlu1 %v1066_v48, %s9901_s30  ;;  %v1068_v53 = vmul.f32 %v1063_v46, %v6512_v51  ;;  %v6527_v59 = vld [vmem:[#allocation2 + $0x18] sm:$0xf]  ;;  %v1172_v62 = vmul.f32 %v1168_v60, %v6523_v57  ;;  %v1103_v0 = vmul.f32 %v1098_v54, %v6512_v51  ;;  %v1212_v7 = vmul.f32 %v1208_v63, %v6523_v57  ;;  %v6543_v10 = vld [vmem:[#allocation2 + $0x10] sm:$0x1f]  ;;  %v1323_v35 = vpop.permute.xlu0 %1322 }
 0x185   : > { %v1173_v1 = vmul.f32 %v1168_v60, %v6527_v59  ;;  %v1213_v4 = vmul.f32 %v1208_v63, %v6527_v59  ;;  %v6538_v8 = vld [vmem:[#allocation2 + $0x18] sm:$0x1f]  ;;  %v1287_v16 = vmul.f32 %v1283_v11, %v6543_v10  ;;  %v1178_v21 = vrot.slane %v1170_v17, 1  ;;  %v1361_v17 = vld [vmem:[%s10062_s1 + $0x20] sm:$0xff] }
 0x186   : > { %v1179_v3 = vrot.slane %v1172_v62, 1  ;;  %v1288_v14 = vmul.f32 %v1283_v11, %v6538_v8  ;;  %v1219_v15 = vrot.slane %v1212_v7, 1  ;;  %v1181_v25 = vrot.slane %v1171_v18, 1  ;;  %v1367_v7 = vld [vmem:[%s10062_s1 + $0x50] sm:$0xff]  ;;  %v1360_v18 = vld [vmem:[%s10062_s1 + $0x18] sm:$0xff] }
 0x187   : > { %1077 = vrot.lane.b32.xlu0 %v1067_v55, %s9901_s30  ;;  %v1182_v5 = vrot.slane %v1173_v1, 1  ;;  %v1222_v13 = vrot.slane %v1213_v4, 1  ;;  %v1294_v20 = vrot.slane %v1287_v16, 2  ;;  %v1221_v32 = vrot.slane %v1211_v22, 1  ;;  %v1371_v1 = vld [vmem:[%s10062_s1 + $0x70] sm:$0xff]  ;;  %v1369_v4 = vld [vmem:[%s10062_s1 + $0x60] sm:$0xff] }
 0x188   : > { %1079 = vrot.lane.b32.xlu1 %v1068_v53, %s9901_s30  ;;  %v1297_v19 = vrot.slane %v1288_v14, 2  ;;  %v1180_v31 = vsel %vm1147_vm5, %v1178_v21, %v1179_v3  ;;  %v1286_v33 = vmul.f32 %v1283_v11, %v6555_v23  ;;  %v1218_v38 = vrot.slane %v1210_v27, 1  ;;  %v1364_v14 = vld [vmem:[%s10062_s1 + $0x38] sm:$0xff]  ;;  %v1362_v16 = vld [vmem:[%s10062_s1 + $0x28] sm:$0xff]  ;;  %v1137_v22 = vpop.permute.xlu0 %1136 }
 0x189   : > { %v1183_v36 = vsel %vm1147_vm5, %v1181_v25, %v1182_v5  ;;  %v1285_v39 = vmul.f32 %v1283_v11, %v6559_v29  ;;  %v1223_v41 = vsel %vm1147_vm5, %v1221_v32, %v1222_v13  ;;  %v1326_v44 = vmul.f32 %v1323_v35, %v6555_v23  ;;  %v1366_v11 = vld [vmem:[%s10062_s1 + $0x48] sm:$0xff] }
 0x18a   : > { %v1296_v43 = vrot.slane %v1286_v33, 2  ;;  %v1328_v45 = vmul.f32 %v1323_v35, %v6538_v8  ;;  %v1220_v46 = vsel %vm1147_vm5, %v1218_v38, %v1219_v15  ;;  %v1325_v50 = vmul.f32 %v1323_v35, %v6559_v29 }
 0x18b   : > { %1110 = vrot.lane.b32.xlu0 %v1101_v58, %s9903_s2  ;;  %v1293_v48 = vrot.slane %v1285_v39, 2  ;;  %v1327_v53 = vmul.f32 %v1323_v35, %v6543_v10  ;;  %v1336_v55 = vrot.slane %v1326_v44, 2  ;;  %v1142_v44 = vmul.f32 %v1137_v22, %v6527_v59 }
 0x18c   : > { %1108 = vrot.lane.b32.xlu1 %v1100_v56, %s9903_s2  ;;  %v1298_v54 = vsel %vm1262_vm6, %v1296_v43, %v1297_v19  ;;  %v1337_v56 = vrot.slane %v1328_v45, 2  ;;  %v1333_v60 = vrot.slane %v1325_v50, 2  ;;  %v1140_v43 = vmul.f32 %v1137_v22, %v6545_v12 }
 0x18d   : > { %v1295_v58 = vsel %vm1262_vm6, %v1293_v48, %v1294_v20 }
 0x18e   : > { %v1338_v62 = vsel %vm1262_vm6, %v1336_v55, %v1337_v56 }
 0x18f   : > { %1114 = vrot.lane.b32.xlu0 %v1103_v0, %s9903_s2  ;;  %v1372_v0 = vld [vmem:[%s10062_s1 + $0x78] sm:$0xff] }
 0x190   : > { %1112 = vrot.lane.b32.xlu1 %v1102_v61, %s9903_s2  ;;  %v1334_v61 = vrot.slane %v1327_v53, 2  ;;  %5941 = vmatpush3.msra.mxu0 %v1372_v0  ;;  %v1139_v53 = vmul.f32 %v1137_v22, %v6540_v9 }
 0x191   : > { %5942 = vmatprep.subr.mxu0 %v9914_v2 }
 0x192   : > { %v1335_v63 = vsel %vm1262_vm6, %v1333_v60, %v1334_v61  ;;  %5943 = vmatpush3.msra.mxu0 %v1371_v1 }
 0x193   : > { %1190 = vrot.lane.b32.xlu0 %v1182_v5, %s9901_s30  ;;  %5944 = vmatprep.subr.mxu0 %v9914_v2  ;;  %v1368_v5 = vld [vmem:[%s10062_s1 + $0x58] sm:$0xff] }
 0x194   : > { %1188 = vrot.lane.b32.xlu1 %v1179_v3, %s9901_s30  ;;  %v1370_v3 = vld [vmem:[%s10062_s1 + $0x68] sm:$0xff] }
 0x195   : > { %5945 = vmatpush3.msra.mxu0 %v1370_v3 }
 0x196   : > { %5946 = vmatprep.subr.mxu0 %v9914_v2 }
 0x197   : > { %1228 = vrot.lane.b32.xlu0 %v1219_v15, %s9903_s2  ;;  %5947 = vmatpush3.msra.mxu0 %v1369_v4  ;;  %v1363_v15 = vld [vmem:[%s10062_s1 + $0x30] sm:$0xff]  ;;  %v1148_v4 = vrot.slane %v1139_v53, 1 }
 0x198   : > { %1230 = vrot.lane.b32.xlu1 %v1222_v13, %s9903_s2  ;;  %5948 = vmatprep.subr.mxu0 %v9914_v2  ;;  %v1365_v13 = vld [vmem:[%s10062_s1 + $0x40] sm:$0xff] }
 0x199   : > { %5949 = vmatpush3.msra.mxu0 %v1368_v5 }
 0x19a   : > { %5950 = vmatprep.subr.mxu0 %v9914_v2 }
 0x19b   : > { %1303 = vrot.lane.b32.xlu0 %v1294_v20, %s9901_s30  ;;  %5951 = vmatpush3.msra.mxu0 %v1367_v7  ;;  %v1047_v20 = vpop.permute.xlu1 %1046 }
 0x19c   : > { %1305 = vrot.lane.b32.xlu1 %v1297_v19, %s9901_s30  ;;  %5952 = vmatprep.subr.mxu0 %v9914_v2  ;;  %v1359_v19 = vld [vmem:[%s10062_s1 + $0x10] sm:$0xff]  ;;  %v1052_v48 = vmul.f32 %v1047_v20, %v6512_v51  ;;  %v1049_v12 = vmul.f32 %v1047_v20, %v6509_v49  ;;  %v1051_v59 = vmul.f32 %v1047_v20, %v6515_v52 }
 0x19d   : > { %5953 = vmatpush3.msra.mxu0 %v1366_v11 }
 0x19e   : > { %5954 = vmatprep.subr.mxu0 %v9914_v2 }
 0x19f   : > { %1186 = vrot.lane.b32.xlu0 %v1183_v36, %s9901_s30  ;;  %5955 = vmatpush3.msra.mxu0 %v1365_v13  ;;  %v1252_v21 = vpop.permute.xlu1 %1251 }
 0x1a0   : > { %1184 = vrot.lane.b32.xlu1 %v1180_v31, %s9901_s30  ;;  %5956 = vmatprep.subr.mxu0 %v9914_v2  ;;  %v1255_v49 = vmul.f32 %v1252_v21, %v6555_v23  ;;  %v1257_v52 = vmul.f32 %v1252_v21, %v6538_v8 }
 0x1a1   : > { %5957 = vmatpush3.msra.mxu0 %v1364_v14 }
 0x1a2   : > { %5958 = vmatprep.subr.mxu0 %v9914_v2  ;;  %v1266_v23 = vrot.slane %v1255_v49, 2 }
 0x1a3   : > { %1224 = vrot.lane.b32.xlu0 %v1220_v46, %s9903_s2  ;;  %5959 = vmatpush3.msra.mxu0 %v1363_v15  ;;  %v1050_v46 = vmul.f32 %v1047_v20, %v6506_v47 }
 0x1a4   : > { %1226 = vrot.lane.b32.xlu1 %v1223_v41, %s9903_s2  ;;  %5960 = vmatprep.subr.mxu0 %v9914_v2 }
 0x1a5   : > { %5961 = vmatpush3.msra.mxu0 %v1362_v16 }
 0x1a6   : > { %5962 = vmatprep.subr.mxu0 %v9914_v2 }
 0x1a7   : > { %1299 = vrot.lane.b32.xlu0 %v1295_v58, %s9901_s30  ;;  %5963 = vmatpush3.msra.mxu0 %v1361_v17 }
 0x1a8   : > { %1301 = vrot.lane.b32.xlu1 %v1298_v54, %s9901_s30  ;;  %5964 = vmatprep.subr.mxu0 %v9914_v2  ;;  %v1141_v54 = vmul.f32 %v1137_v22, %v6523_v57 }
 0x1a9   : > { %5965 = vmatpush3.msra.mxu0 %v1360_v18  ;;  %v1254_v18 = vmul.f32 %v1252_v21, %v6559_v29 }
 0x1aa   : > { %5966 = vmatprep.subr.mxu0 %v9914_v2  ;;  %v1149_v5 = vrot.slane %v1141_v54, 1 }
 0x1ab   : > { %1339 = vrot.lane.b32.xlu0 %v1335_v63, %s9903_s2  ;;  %5967 = vmatpush3.msra.mxu0 %v1359_v19  ;;  %v1256_v19 = vmul.f32 %v1252_v21, %v6543_v10 }
 0x1ac   : > { %1341 = vrot.lane.b32.xlu1 %v1338_v62, %s9903_s2  ;;  %5968 = vmatprep.subr.mxu0 %v9914_v2  ;;  %v1152_v62 = vrot.slane %v1142_v44, 1  ;;  %v1150_v20 = vsel %vm1147_vm5, %v1148_v4, %v1149_v5  ;;  %v1263_v44 = vrot.slane %v1254_v18, 2 }
 0x1ad   : > { %v1264_v10 = vrot.slane %v1256_v19, 2  ;;  %v1478_v19 = vld [vmem:[%s10063_s11] sm:$0xff] }
 0x1af   : > { %1343 = vrot.lane.b32.xlu0 %v1334_v61, %s9903_s2  ;;  %v1151_v61 = vrot.slane %v1140_v43, 1 }
 0x1b0   : > { %1345 = vrot.lane.b32.xlu1 %v1337_v56, %s9903_s2  ;;  %s10068_s2 = smov 64  }
 0x1b1   : > { %v1153_v14 = vsel %vm1147_vm5, %v1151_v61, %v1152_v62 }
 0x1f5   : > { %v1074_v27 = vpop.permute.xlu0 %1073 }
 0x1f6   : > { %v1076_v25 = vpop.permute.xlu1 %1075 }
 0x1f7   : > { %v1082_v55 = vsel %vm1081_vm7, %v1074_v27, %v1076_v25  ;;  %v1089_v58 = vadd.f32 %v1076_v25, %v1050_v46 }
 0x1f8   : > { %v1088_v9 = vadd.f32 %v1082_v55, %v1049_v12 }
 0x1f9   : > { %v1078_v32 = vpop.permute.xlu0 %1077 }
 0x1fa   : > { %v1080_v31 = vpop.permute.xlu1 %1079 }
 0x1fb   : > { %v1083_v56 = vsel %vm1081_vm7, %v1078_v32, %v1080_v31  ;;  %v1091_v60 = vadd.f32 %v1080_v31, %v1052_v48  ;;  %v1267_v32 = vrot.slane %v1257_v52, 2 }
 0x1fc   : > { %v1090_v0 = vadd.f32 %v1083_v56, %v1051_v59 }
 0x1fd   : > { %v1111_v35 = vpop.permute.xlu0 %1110  ;;  %v1268_v54 = vsel %vm1262_vm6, %v1266_v23, %v1267_v32 }
 0x1fe   : > { %v1109_v33 = vpop.permute.xlu1 %1108  ;;  %v1124_v57 = vadd.f32 %v1111_v35, %v1089_v58 }
 0x1ff   : > { %v1117_v47 = vsel %vm1116_vm8, %v1109_v33, %v1111_v35 }
 0x200   : > { %v1123_v7 = vadd.f32 %v1117_v47, %v1088_v9  ;;  %v1159_v16 = vadd.f32 %v1153_v14, %v1124_v57 }
 0x201   : > { %v1115_v38 = vpop.permute.xlu0 %1114 }
 0x202   : > { %v1113_v36 = vpop.permute.xlu1 %1112  ;;  %v1126_v1 = vadd.f32 %v1115_v38, %v1091_v60  ;;  %v1158_v27 = vadd.f32 %v1150_v20, %v1123_v7 }
 0x203   : > { %v1118_v51 = vsel %vm1116_vm8, %v1113_v36, %v1115_v38 }
 0x204   : > { %v1125_v11 = vadd.f32 %v1118_v51, %v1090_v0  ;;  %v1161_v15 = vadd.f32 %v1152_v62, %v1126_v1  ;;  %v1357_v62 = vld [vmem:[%s10062_s1] sm:$0xff] }
 0x205   : > { %v1191_v41 = vpop.permute.xlu0 %1190 }
 0x206   : > { %v1189_v39 = vpop.permute.xlu1 %1188  ;;  %v1160_v25 = vadd.f32 %v1149_v5, %v1125_v11  ;;  %v1201_v35 = vadd.f32 %v1191_v41, %v1161_v15 }
 0x207   : > { %v1193_v8 = vsel %vm1081_vm7, %v1189_v39, %v1191_v41  ;;  %v1265_v41 = vsel %vm1262_vm6, %v1263_v44, %v1264_v10 }
 0x208   : > { %v1200_v46 = vadd.f32 %v1193_v8, %v1160_v25  ;;  %v1605_v8 = vrot.slane %v1478_v19, %v6450_v24 }
 0x209   : > { %v1229_v50 = vpop.permute.xlu0 %1228 }
 0x20a   : > { %v1231_v45 = vpop.permute.xlu1 %1230 }
 0x20b   : > { %v1233_v29 = vsel %vm1116_vm8, %v1229_v50, %v1231_v45  ;;  %v1241_v48 = vadd.f32 %v1231_v45, %v1201_v35  ;;  %v1358_v45 = vld [vmem:[%s10062_s1 + $0x8] sm:$0xff]  ;;  %v1689_v35 = vrot.slane %v1478_v19, %v6468_v30 }
 0x20c   : > { %v1240_v56 = vadd.f32 %v1233_v29, %v1200_v46  ;;  %5969 = vmatpush3.msra.mxu0 %v1358_v45  ;;  %v1645_v46 = vrot.slane %v1478_v19, %v6486_v40 }
 0x20d   : > { %v1304_v3 = vpop.permute.xlu0 %1303  ;;  %v1276_v12 = vadd.f32 %v1267_v32, %v1241_v48  ;;  %5970 = vmatprep.subr.mxu0 %v9914_v2  ;;  %v1719_v32 = vrot.slane %v1478_v19, %v6456_v26  ;;  %v5729_v48 = vld [vmem:[%s10063_s11 + $0x8] ss:$0 sm:$0xff]  ;;  %s5749_s11 = sshll.u32 %s10264_s3, 4 }
 0x20e   : > { %v1306_v63 = vpop.permute.xlu1 %1305  ;;  %v1275_v50 = vadd.f32 %v1264_v10, %v1240_v56  ;;  %5971 = vmatpush3.msra.mxu0 %v1357_v62  ;;  %s6834_s1 = scalar_lea.vmem %s10069_s6, %s5749_s11  ;;  %s10201_s6 = sld [smem:[#allocation52_spill]] }
 0x20f   : > { %v1308_v9 = vsel %vm1081_vm7, %v1304_v3, %v1306_v63  ;;  %v1316_v57 = vadd.f32 %v1306_v63, %v1276_v12  ;;  %6010 = vmatprep.subr.mxu0 %v9914_v2 }
 0x210   : > { %v1315_v7 = vadd.f32 %v1308_v9, %v1275_v50 }
 0x211   : > { %v1187_v17 = vpop.permute.xlu0 %1186 }
 0x212   : > { %v1185_v13 = vpop.permute.xlu1 %1184  ;;  %v1199_v31 = vadd.f32 %v1187_v17, %v1159_v16 }
 0x213   : > { %v1192_v22 = vsel %vm1081_vm7, %v1185_v13, %v1187_v17 }
 0x214   : > { %v1198_v36 = vadd.f32 %v1192_v22, %v1158_v27  ;;  %v1503_v22 = vrot.slane %v1478_v19, %v6480_v37 }
 0x215   : > { %v1225_v43 = vpop.permute.xlu0 %1224 }
 0x216   : > { %v1227_v33 = vpop.permute.xlu1 %1226 }
 0x217   : > { %v1239_v38 = vadd.f32 %v1227_v33, %v1199_v31  ;;  %v1232_v21 = vsel %vm1116_vm8, %v1225_v43, %v1227_v33  ;;  %v1487_v33 = vrot.slane %v1478_v19, %v6462_v28 }
 0x218   : > { %v1238_v53 = vadd.f32 %v1232_v21, %v1198_v36  ;;  %v5728_v36 = vld [vmem:[%s10064_s7] ss:$0 sm:$0xff]  ;;  %v1537_v21 = vrot.slane %v1478_v19, %v6373_v6  ;;  %s10067_s7 = sld [smem:[#allocation55_spill]] }
 0x219   : > { %v1274_v39 = vadd.f32 %v1268_v54, %v1239_v38  ;;  %v1300_v58 = vpop.permute.xlu0 %1299 }
 0x21a   : > { %v1302_v55 = vpop.permute.xlu1 %1301  ;;  %v1273_v60 = vadd.f32 %v1265_v41, %v1238_v53  ;;  %v1575_v53 = vrot.slane %v1478_v19, %v6493_v42 }
 0x21b   : > { %v1307_v59 = vsel %vm1081_vm7, %v1300_v58, %v1302_v55  ;;  %v1314_v47 = vadd.f32 %v1302_v55, %v1274_v39 }
 0x21c   : > { %v1313_v1 = vadd.f32 %v1307_v59, %v1273_v60 }
 0x21d   : > { %v1340_v51 = vpop.permute.xlu0 %1339 }
 0x21e   : > { %v1342_v61 = vpop.permute.xlu1 %1341 }
 0x21f   : > { %v1347_v0 = vsel %vm1116_vm8, %v1340_v51, %v1342_v61  ;;  %v1354_v4 = vadd.f32 %v1342_v61, %v1314_v47 }
 0x220   : > { %v1353_v11 = vadd.f32 %v1347_v0, %v1313_v1 }
 0x221   : > { %v1344_v52 = vpop.permute.xlu0 %1343  ;;  %v1388_v3 = vrot.slane %v1354_v4, 3 }
 0x222   : > { %v1346_v5 = vpop.permute.xlu1 %1345  ;;  %v1385_v16 = vrot.slane %v1353_v11, 3 }
 0x223   : > { %v1356_v49 = vadd.f32 %v1346_v5, %v1316_v57  ;;  %v1348_v13 = vsel %vm1116_vm8, %v1344_v52, %v1346_v5 }
 0x224   : > { %v1355_v15 = vadd.f32 %v1348_v13, %v1315_v7 }
 0x225   : > { %v1389_v14 = vrot.slane %v1356_v49, 3 }
 0x226   : > { %v1386_v63 = vrot.slane %v1355_v15, 3 }
 0x227   : > { %v1390_v17 = vsel %vm1384_vm9, %v1388_v3, %v1389_v14 }
 0x228   : > { %v1387_v18 = vsel %vm1384_vm9, %v1385_v16, %v1386_v63 }
 0x229   : > { %v6167_v20 = vpack.i.bf16 %v1390_v17, %v1387_v18 }
 0x22b   : > { %6168 = vrot.lane.b32.xlu0 %v6167_v20, %s10060_s4 }
 0x22f   : > { %1505 = vrot.lane.b32.xlu0 %v1503_v22, %s9907_s28 }
 0x233   : > { %1607 = vrot.lane.b32.xlu0 %v1605_v8, %s9907_s28 }
 0x237   : > { %1721 = vrot.lane.b32.xlu0 %v1719_v32, %s9907_s28 }
 0x23b   : > { %1489 = vrot.lane.b32.xlu0 %v1487_v33, %s9905_s5 }
 0x23f   : > { %1691 = vrot.lane.b32.xlu0 %v1689_v35, %s9905_s5 }
 0x29d   : > { %v6169_v25 = vpop.permute.xlu0 %6168 }
 0x29e   : > { %v6171_v27 = vunpack.i.h.bf16 %v6169_v25  ;;  %v6170_v31 = vunpack.i.l.bf16 %v6169_v25 }
 0x2a0   : > { %v1396_v23 = vsel %vm1395_vm10, %v6170_v31, %v6171_v27 }
 0x2a1   : > { %5973 = vmatmul.mubr.f32.vlgmr.msra.gmra.mxu0 %v1396_v23  ;;  %v1506_v55 = vpop.permute.xlu0 %1505 }
 0x2a2   : > { %6042 = vmatprep.mubr.msk.f32.mxu0 %vm6202_vm0, %v9914_v2 }
 0x2a5   : > { %v1608_v9 = vpop.permute.xlu0 %1607 }
 0x2a9   : > { %v1722_v15 = vpop.permute.xlu0 %1721 }
 0x361   : > { %v1464_v38 = vpop.f32.mrf.mxu0 }
 0x362   : > { %v1465_v43 = vadd.f32 %v5728_v36, %v1464_v38 }
 0x363   : > { %v5974_v44 = vpop.f32.mrf.mxu0 }
 0x364   : > { %v1468_v29 = vmax.f32 %v1465_v43, 0.0 }
 0x366   : > { %v1470_v10 = vrot.slane %v1468_v29, 4 }
 0x368   : > { %1471 = vrot.lane.b32.xlu1 %v1470_v10, %s9907_s28  ;;  %s10071_s28 = sld [smem:[#allocation51_spill]] }
 0x36c   : > { %1539 = vrot.lane.b32.xlu1 %v1537_v21, %s10060_s4 }
 0x370   : > { %1647 = vrot.lane.b32.xlu1 %v1645_v46, %s10060_s4 }
 0x374   : > { %1761 = vrot.lane.b32.xlu1 %v5729_v48, %s10060_s4 }
 0x378   : > { %1577 = vrot.lane.b32.xlu1 %v1575_v53, %s9905_s5  ;;  %s10258_s5 = sld [smem:[#allocation61_spill]] }
 0x3da   : > { %v1472_v54 = vpop.permute.xlu1 %1471 }
 0x3db   : > { %1474 = vst.msk [vmem:[#allocation2] sm:$0xf0] %vm1027_vm1, %v1472_v54 }
 0x3dc   : > { %1475 = vst.msk [vmem:[#allocation2 + $0x8] sm:$0xf0] %vm1029_vm2, %v1472_v54 }
 0x3dd   : > { %1476 = vst.msk [vmem:[#allocation2 + $0x10] sm:$0xf] %vm1031_vm3, %v1472_v54 }
 0x3de   : > { %1477 = vst.msk [vmem:[#allocation2 + $0x18] sm:$0xf] %vm1033_vm4, %v1472_v54  ;;  %v1540_v50 = vpop.permute.xlu1 %1539 }
 0x3e2   : > { %v6718_v58 = vld [vmem:[#allocation2] sm:$0xf8]  ;;  %v1648_v1 = vpop.permute.xlu1 %1647 }
 0x3e3   : > { %v6715_v56 = vld [vmem:[#allocation2 + $0x8] sm:$0xf8]  ;;  %v1508_v41 = vmul.f32 %v1506_v55, %v6718_v58  ;;  %v1542_v47 = vmul.f32 %v1540_v50, %v6718_v58  ;;  %v6749_v3 = vld [vmem:[#allocation2] sm:$0xf0] }
 0x3e4   : > { %v1509_v39 = vmul.f32 %v1506_v55, %v6715_v56  ;;  %v6724_v60 = vld [vmem:[#allocation2 + $0x10] sm:$0x7]  ;;  %v1543_v45 = vmul.f32 %v1540_v50, %v6715_v56  ;;  %v6754_v16 = vld [vmem:[#allocation2 + $0x8] sm:$0xf0]  ;;  %v1610_v20 = vmul.f32 %v1608_v9, %v6749_v3  ;;  %v1650_v33 = vmul.f32 %v1648_v1, %v6749_v3  ;;  %v6768_v35 = vld [vmem:[#allocation2] sm:$0xe0] }
 0x3e5   : > { %v6721_v12 = vld [vmem:[#allocation2 + $0x18] sm:$0x7]  ;;  %1516 = vrot.lane.b32.xlu1 %v1508_v41, %s10065_s9  ;;  %v1510_v61 = vmul.f32 %v1506_v55, %v6724_v60  ;;  %v6732_v51 = vld [vmem:[#allocation2 + $0x10] sm:$0xf]  ;;  %v1544_v0 = vmul.f32 %v1540_v50, %v6724_v60  ;;  %v1611_v22 = vmul.f32 %v1608_v9, %v6754_v16  ;;  %v1651_v23 = vmul.f32 %v1648_v1, %v6754_v16  ;;  %v6764_v8 = vld [vmem:[#allocation2 + $0x8] sm:$0xe0] }
 0x3e6   : > { %1518 = vrot.lane.b32.xlu0 %v1509_v39, %s10065_s9  ;;  %v1511_v59 = vmul.f32 %v1506_v55, %v6721_v12  ;;  %v6736_v62 = vld [vmem:[#allocation2 + $0x18] sm:$0xf]  ;;  %v1612_v57 = vmul.f32 %v1608_v9, %v6732_v51  ;;  %v1545_v4 = vmul.f32 %v1540_v50, %v6721_v12  ;;  %v1652_v52 = vmul.f32 %v1648_v1, %v6732_v51  ;;  %v6752_v14 = vld [vmem:[#allocation2 + $0x10] sm:$0x1f]  ;;  %v1762_v44 = vpop.permute.xlu1 %1761 }
 0x3e7   : > { %v1613_v5 = vmul.f32 %v1608_v9, %v6736_v62  ;;  %v1653_v11 = vmul.f32 %v1648_v1, %v6736_v62  ;;  %v6747_v13 = vld [vmem:[#allocation2 + $0x18] sm:$0x1f]  ;;  %v1726_v19 = vmul.f32 %v1722_v15, %v6752_v14  ;;  %v1618_v31 = vrot.slane %v1610_v20, 1  ;;  %v922_v20 = vld [vmem:[%s10067_s7 + $0x50] sm:$0xff] }
 0x3e8   : > { %v1619_v7 = vrot.slane %v1612_v57, 1  ;;  %v1727_v17 = vmul.f32 %v1722_v15, %v6747_v13  ;;  %v1659_v18 = vrot.slane %v1652_v52, 1  ;;  %v1621_v32 = vrot.slane %v1611_v22, 1  ;;  %v941_v52 = vld [vmem:[%s10067_s7 + $0xe8] sm:$0xff] }
 0x3e9   : > { %1520 = vrot.lane.b32.xlu1 %v1510_v61, %s10065_s9  ;;  %v1622_v49 = vrot.slane %v1613_v5, 1  ;;  %v1662_v63 = vrot.slane %v1653_v11, 1  ;;  %v1733_v27 = vrot.slane %v1726_v19, 2  ;;  %v1661_v38 = vrot.slane %v1651_v23, 1  ;;  %v927_v5 = vld [vmem:[%s10067_s7 + $0x78] sm:$0xff]  ;;  %v938_v19 = vld [vmem:[%s10067_s7 + $0xd0] sm:$0xff] }
 0x3ea   : > { %1522 = vrot.lane.b32.xlu0 %v1511_v59, %s10065_s9  ;;  %v1736_v25 = vrot.slane %v1727_v17, 2  ;;  %v1620_v36 = vsel %vm1147_vm5, %v1618_v31, %v1619_v7  ;;  %v1725_v43 = vmul.f32 %v1722_v15, %v6764_v8  ;;  %v1658_v10 = vrot.slane %v1650_v33, 1  ;;  %v939_v17 = vld [vmem:[%s10067_s7 + $0xd8] sm:$0xff]  ;;  %v937_v22 = vld [vmem:[%s10067_s7 + $0xc8] sm:$0xff]  ;;  %v936_v31 = vld [vmem:[%s10067_s7 + $0xc0] sm:$0xff] }
 0x3eb   : > { %v1623_v29 = vsel %vm1147_vm5, %v1621_v32, %v1622_v49  ;;  %v1724_v21 = vmul.f32 %v1722_v15, %v6768_v35  ;;  %v1663_v46 = vsel %vm1147_vm5, %v1661_v38, %v1662_v63  ;;  %v1765_v53 = vmul.f32 %v1762_v44, %v6764_v8  ;;  %v925_v15 = vld [vmem:[%s10067_s7 + $0x68] sm:$0xff]  ;;  %v920_v32 = vld [vmem:[%s10067_s7 + $0x40] sm:$0xff]  ;;  %v935_v33 = vld [vmem:[%s10067_s7 + $0xb8] sm:$0xff] }
 0x3ec   : > { %v1735_v48 = vrot.slane %v1725_v43, 2  ;;  %v1767_v54 = vmul.f32 %v1762_v44, %v6747_v13  ;;  %v1660_v55 = vsel %vm1147_vm5, %v1658_v10, %v1659_v18  ;;  %v1764_v41 = vmul.f32 %v1762_v44, %v6768_v35  ;;  %v934_v38 = vld [vmem:[%s10067_s7 + $0xb0] sm:$0xff]  ;;  %v932_v10 = vld [vmem:[%s10067_s7 + $0xa0] sm:$0xff] }
 0x3ed   : > { %1552 = vrot.lane.b32.xlu1 %v1543_v45, %s10066_s0  ;;  %v1732_v39 = vrot.slane %v1724_v21, 2  ;;  %v1766_v59 = vmul.f32 %v1762_v44, %v6752_v14  ;;  %v1775_v50 = vrot.slane %v1765_v53, 2  ;;  %v1907_v11 = vrot.slane %v6476_v34, 4  ;;  %v940_v34 = vld [vmem:[%s10067_s7 + $0xe0] sm:$0xff]  ;;  %v918_v43 = vld [vmem:[%s10067_s7 + $0x30] sm:$0xff]  ;;  %v933_v44 = vld [vmem:[%s10067_s7 + $0xa8] sm:$0xff] }
 0x3ee   : > { %1550 = vrot.lane.b32.xlu0 %v1542_v47, %s10066_s0  ;;  %v1737_v61 = vsel %vm1262_vm6, %v1735_v48, %v1736_v25  ;;  %v1776_v47 = vrot.slane %v1767_v54, 2  ;;  %v1772_v9 = vrot.slane %v1764_v41, 2  ;;  %v916_v21 = vld [vmem:[%s10067_s7 + $0x20] sm:$0xff]  ;;  %v915_v48 = vld [vmem:[%s10067_s7 + $0x18] sm:$0xff]  ;;  %v930_v53 = vld [vmem:[%s10067_s7 + $0x90] sm:$0xff] }
 0x3ef   : > { %v1734_v45 = vsel %vm1262_vm6, %v1732_v39, %v1733_v27  ;;  %v914_v54 = vld [vmem:[%s10067_s7 + $0x10] sm:$0xff]  ;;  %v814_v39 = vld [vmem:[%s6834_s1] sm:$0xff]  ;;  %v913_v41 = vld [vmem:[%s10067_s7 + $0x8] sm:$0xff] }
 0x3f0   : > { %v1777_v57 = vsel %vm1262_vm6, %v1775_v50, %v1776_v47  ;;  %v910_v50 = vmax.f32 %v814_v39, 0.0 }
 0x3f1   : > { %1556 = vrot.lane.b32.xlu1 %v1545_v4, %s10066_s0  ;;  %v943_v4 = vld [vmem:[%s10067_s7 + $0xf8] sm:$0xff] }
 0x3f2   : > { %1554 = vrot.lane.b32.xlu0 %v1544_v0, %s10066_s0  ;;  %v1773_v0 = vrot.slane %v1766_v59, 2  ;;  %5768 = vmatprep.subr.mxu1 %v943_v4  ;;  %v928_v59 = vld [vmem:[%s10067_s7 + $0x80] sm:$0xff]  ;;  %v1805_v4 = vld [vmem:[%s9879_s12 + $0x48] sm:$0xff] }
 0x3f3   : > { %5769 = vmatpush3.msra.mxu1 %v927_v5  ;;  %v1804_v5 = vld [vmem:[%s9879_s12 + $0x40] sm:$0xff] }
 0x3f4   : > { %v1774_v1 = vsel %vm1262_vm6, %v1772_v9, %v1773_v0  ;;  %v1809_v9 = vld [vmem:[%s9879_s12 + $0x68] sm:$0xff] }
 0x3f5   : > { %1630 = vrot.lane.b32.xlu1 %v1622_v49, %s10065_s9  ;;  %v926_v49 = vld [vmem:[%s10067_s7 + $0x70] sm:$0xff] }
 0x3f6   : > { %1628 = vrot.lane.b32.xlu0 %v1619_v7, %s10065_s9  ;;  %v942_v7 = vld [vmem:[%s10067_s7 + $0xf0] sm:$0xff] }
 0x3f7   : > { %5770 = vmatprep.subr.mxu1 %v942_v7  ;;  %v1803_v7 = vld [vmem:[%s9879_s12 + $0x38] sm:$0xff] }
 0x3f8   : > { %5771 = vmatpush3.msra.mxu1 %v926_v49  ;;  %v1801_v49 = vld [vmem:[%s9879_s12 + $0x28] sm:$0xff] }
 0x3f9   : > { %1668 = vrot.lane.b32.xlu1 %v1659_v18, %s10066_s0  ;;  %5772 = vmatprep.subr.mxu1 %v941_v52  ;;  %v923_v18 = vld [vmem:[%s10067_s7 + $0x58] sm:$0xff]  ;;  %v1800_v52 = vld [vmem:[%s9879_s12 + $0x20] sm:$0xff] }
 0x3fa   : > { %1670 = vrot.lane.b32.xlu0 %v1662_v63, %s10066_s0  ;;  %v924_v63 = vld [vmem:[%s10067_s7 + $0x60] sm:$0xff]  ;;  %5773 = vmatpush3.msra.mxu1 %v925_v15  ;;  %v1799_v15 = vld [vmem:[%s9879_s12 + $0x18] sm:$0xff] }
 0x3fb   : > { %5774 = vmatprep.subr.mxu1 %v940_v34  ;;  %v1798_v34 = vld [vmem:[%s9879_s12 + $0x10] sm:$0xff] }
 0x3fc   : > { %5775 = vmatpush3.msra.mxu1 %v924_v63  ;;  %v1490_v63 = vpop.permute.xlu0 %1489 }
 0x3fd   : > { %1742 = vrot.lane.b32.xlu1 %v1733_v27, %s10065_s9  ;;  %5776 = vmatprep.subr.mxu1 %v939_v17  ;;  %v815_v27 = vld [vmem:[%s6834_s1 + $0x8] sm:$0xff]  ;;  %v1492_v39 = vmul.f32 %v1490_v63, %v6718_v58  ;;  %s10070_s1 = sld [smem:[#allocation56_spill]] }
 0x3fe   : > { %1744 = vrot.lane.b32.xlu0 %v1736_v25, %s10065_s9  ;;  %5777 = vmatpush3.msra.mxu1 %v923_v18  ;;  %v921_v25 = vld [vmem:[%s10067_s7 + $0x48] sm:$0xff]  ;;  %v911_v23 = vmax.f32 %v815_v27, 0.0  ;;  %v1578_v18 = vpop.permute.xlu1 %1577 }
 0x3ff   : > { %5778 = vmatprep.subr.mxu1 %v938_v19 }
 0x400   : > { %5779 = vmatpush3.msra.mxu1 %v922_v20  ;;  %1015 = vmatprep.mubr.f32.mxu1 %v911_v23  ;;  %v1692_v17 = vpop.permute.xlu0 %1691 }
 0x401   : > { %1626 = vrot.lane.b32.xlu1 %v1623_v29, %s10065_s9  ;;  %5780 = vmatprep.subr.mxu1 %v937_v22  ;;  %v917_v29 = vld [vmem:[%s10067_s7 + $0x28] sm:$0xff]  ;;  %v1695_v58 = vmul.f32 %v1692_v17, %v6764_v8 }
 0x402   : > { %1624 = vrot.lane.b32.xlu0 %v1620_v36, %s10065_s9  ;;  %5781 = vmatpush3.msra.mxu1 %v921_v25  ;;  %v919_v36 = vld [vmem:[%s10067_s7 + $0x38] sm:$0xff] }
 0x403   : > { %5782 = vmatprep.subr.mxu1 %v936_v31  ;;  %v1705_v8 = vrot.slane %v1695_v58, 2 }
 0x404   : > { %5783 = vmatpush3.msra.mxu1 %v920_v32 }
 0x405   : > { %1664 = vrot.lane.b32.xlu1 %v1660_v55, %s10066_s0  ;;  %5784 = vmatprep.subr.mxu1 %v935_v33  ;;  %v929_v55 = vld [vmem:[%s10067_s7 + $0x88] sm:$0xff] }
 0x406   : > { %1666 = vrot.lane.b32.xlu0 %v1663_v46, %s10066_s0  ;;  %5785 = vmatpush3.msra.mxu1 %v919_v36  ;;  %v931_v46 = vld [vmem:[%s10067_s7 + $0x98] sm:$0xff] }
 0x407   : > { %5786 = vmatprep.subr.mxu1 %v934_v38  ;;  %v1581_v38 = vmul.f32 %v1578_v18, %v6754_v16 }
 0x408   : > { %5787 = vmatpush3.msra.mxu1 %v918_v43  ;;  %v1583_v43 = vmul.f32 %v1578_v18, %v6736_v62  ;;  %v1494_v62 = vmul.f32 %v1490_v63, %v6724_v60  ;;  %v1697_v60 = vmul.f32 %v1692_v17, %v6747_v13 }
 0x409   : > { %1738 = vrot.lane.b32.xlu1 %v1734_v45, %s10065_s9  ;;  %5788 = vmatprep.subr.mxu1 %v933_v44  ;;  %v1810_v45 = vld [vmem:[%s9879_s12 + $0x70] sm:$0xff] }
 0x40a   : > { %1740 = vrot.lane.b32.xlu0 %v1737_v61, %s10065_s9  ;;  %5789 = vmatpush3.msra.mxu1 %v917_v29  ;;  %v912_v61 = vld [vmem:[%s10067_s7] sm:$0xff]  ;;  %v1493_v29 = vmul.f32 %v1490_v63, %v6715_v56 }
 0x40b   : > { %5790 = vmatprep.subr.mxu1 %v932_v10  ;;  %v1495_v10 = vmul.f32 %v1490_v63, %v6721_v12 }
 0x40c   : > { %5791 = vmatpush3.msra.mxu1 %v916_v21 }
 0x40d   : > { %1778 = vrot.lane.b32.xlu1 %v1774_v1, %s10066_s0  ;;  %5792 = vmatprep.subr.mxu1 %v931_v46  ;;  %v1806_v1 = vld [vmem:[%s9879_s12 + $0x50] sm:$0xff]  ;;  %v1580_v46 = vmul.f32 %v1578_v18, %v6749_v3 }
 0x40e   : > { %1780 = vrot.lane.b32.xlu0 %v1777_v57, %s10066_s0  ;;  %5793 = vmatpush3.msra.mxu1 %v915_v48  ;;  %v1807_v57 = vld [vmem:[%s9879_s12 + $0x58] sm:$0xff]  ;;  %v1582_v48 = vmul.f32 %v1578_v18, %v6732_v51 }
 0x40f   : > { %5794 = vmatprep.subr.mxu1 %v930_v53 }
 0x410   : > { %5795 = vmatpush3.msra.mxu1 %v914_v54 }
 0x411   : > { %1782 = vrot.lane.b32.xlu1 %v1773_v0, %s10066_s0  ;;  %5796 = vmatprep.subr.mxu1 %v929_v55  ;;  %v1808_v0 = vld [vmem:[%s9879_s12 + $0x60] sm:$0xff] }
 0x412   : > { %1784 = vrot.lane.b32.xlu0 %v1776_v47, %s10066_s0  ;;  %5797 = vmatpush3.msra.mxu1 %v913_v41  ;;  %v1811_v47 = vld [vmem:[%s9879_s12 + $0x78] sm:$0xff]  ;;  %v1591_v41 = vrot.slane %v1581_v38, 1 }
 0x413   : > { %5798 = vmatprep.subr.mxu1 %v928_v59  ;;  %v1592_v59 = vrot.slane %v1583_v43, 1 }
 0x414   : > { %5799 = vmatpush3.msra.mxu1 %v912_v61 }
 0x415   : > { %1016 = vmatmul.mubr.f32.vlgmr.msra.gmra.mxu1 %v910_v50  ;;  %5975 = vmatprep.subr.mxu1 %v9914_v2 }
 0x416   : > { %1908 = vrot.lane.b32.xlu0 %v1907_v11, %s10068_s2  ;;  %5976 = vmatpush3.msra.mxu1 %v1811_v47  ;;  %v1802_v11 = vld [vmem:[%s9879_s12 + $0x30] sm:$0xff] }
 0x417   : > { %6007 = vmatprep.mubr.msk.f32.mxu1 %vm6202_vm0, %v9914_v2  ;;  %5977 = vmatprep.subr.mxu1 %v9914_v2 }
 0x418   : > { %5978 = vmatpush3.msra.mxu1 %v1810_v45 }
 0x419   : > { %5979 = vmatprep.subr.mxu1 %v9914_v2 }
 0x41a   : > { %5980 = vmatpush3.msra.mxu1 %v1809_v9  ;;  %v1588_v9 = vrot.slane %v1580_v46, 1 }
 0x41b   : > { %5981 = vmatprep.subr.mxu1 %v9914_v2 }
 0x41c   : > { %5982 = vmatpush3.msra.mxu1 %v1808_v0  ;;  %v1589_v0 = vrot.slane %v1582_v48, 1 }
 0x41d   : > { %5983 = vmatprep.subr.mxu1 %v9914_v2 }
 0x41e   : > { %5984 = vmatpush3.msra.mxu1 %v1807_v57 }
 0x41f   : > { %5985 = vmatprep.subr.mxu1 %v9914_v2 }
 0x420   : > { %5986 = vmatpush3.msra.mxu1 %v1806_v1 }
 0x421   : > { %5987 = vmatprep.subr.mxu1 %v9914_v2 }
 0x422   : > { %5988 = vmatpush3.msra.mxu1 %v1805_v4 }
 0x423   : > { %5989 = vmatprep.subr.mxu1 %v9914_v2 }
 0x424   : > { %5990 = vmatpush3.msra.mxu1 %v1804_v5  ;;  %v1593_v5 = vsel %vm1147_vm5, %v1591_v41, %v1592_v59 }
 0x425   : > { %5991 = vmatprep.subr.mxu1 %v9914_v2 }
 0x426   : > { %5992 = vmatpush3.msra.mxu1 %v1803_v7 }
 0x427   : > { %5993 = vmatprep.subr.mxu1 %v9914_v2 }
 0x428   : > { %5994 = vmatpush3.msra.mxu1 %v1802_v11 }
 0x429   : > { %5995 = vmatprep.subr.mxu1 %v9914_v2 }
 0x42a   : > { %5996 = vmatpush3.msra.mxu1 %v1801_v49 }
 0x42b   : > { %5997 = vmatprep.subr.mxu1 %v9914_v2 }
 0x42c   : > { %5998 = vmatpush3.msra.mxu1 %v1800_v52  ;;  %v1694_v52 = vmul.f32 %v1692_v17, %v6768_v35 }
 0x42d   : > { %5999 = vmatprep.subr.mxu1 %v9914_v2 }
 0x42e   : > { %6000 = vmatpush3.msra.mxu1 %v1799_v15  ;;  %v1696_v15 = vmul.f32 %v1692_v17, %v6752_v14  ;;  %v1702_v38 = vrot.slane %v1694_v52, 2 }
 0x42f   : > { %6001 = vmatprep.subr.mxu1 %v9914_v2 }
 0x430   : > { %6002 = vmatpush3.msra.mxu1 %v1798_v34  ;;  %v1590_v34 = vsel %vm1147_vm5, %v1588_v9, %v1589_v0  ;;  %v1703_v14 = vrot.slane %v1696_v15, 2 }
 0x431   : > { %6003 = vmatprep.subr.mxu1 %v9914_v2 }
 0x457   : > { %v1517_v20 = vpop.permute.xlu1 %1516 }
 0x458   : > { %v1519_v19 = vpop.permute.xlu0 %1518 }
 0x459   : > { %v1524_v53 = vsel %vm1081_vm7, %v1517_v20, %v1519_v19  ;;  %v1531_v55 = vadd.f32 %v1519_v19, %v1493_v29 }
 0x45a   : > { %v1530_v3 = vadd.f32 %v1524_v53, %v1492_v39 }
 0x45b   : > { %v1521_v25 = vpop.permute.xlu1 %1520 }
 0x45c   : > { %v1523_v22 = vpop.permute.xlu0 %1522 }
 0x45d   : > { %v1525_v54 = vsel %vm1081_vm7, %v1521_v25, %v1523_v22  ;;  %v1533_v16 = vadd.f32 %v1523_v22, %v1495_v10  ;;  %v1706_v22 = vrot.slane %v1697_v60, 2 }
 0x45e   : > { %v1532_v50 = vadd.f32 %v1525_v54, %v1494_v62 }
 0x45f   : > { %v1553_v31 = vpop.permute.xlu1 %1552  ;;  %v1707_v46 = vsel %vm1262_vm6, %v1705_v8, %v1706_v22 }
 0x460   : > { %v1551_v27 = vpop.permute.xlu0 %1550  ;;  %v1565_v51 = vadd.f32 %v1553_v31, %v1531_v55 }
 0x461   : > { %v1558_v56 = vsel %vm1116_vm8, %v1551_v27, %v1553_v31 }
 0x462   : > { %v1564_v57 = vadd.f32 %v1558_v56, %v1530_v3  ;;  %v1599_v11 = vadd.f32 %v1593_v5, %v1565_v51 }
 0x463   : > { %v1557_v32 = vpop.permute.xlu1 %1556 }
 0x464   : > { %v1555_v23 = vpop.permute.xlu0 %1554  ;;  %v1567_v47 = vadd.f32 %v1557_v32, %v1533_v16  ;;  %v1598_v19 = vadd.f32 %v1590_v34, %v1564_v57 }
 0x465   : > { %v1559_v12 = vsel %vm1116_vm8, %v1555_v23, %v1557_v32 }
 0x466   : > { %v1566_v1 = vadd.f32 %v1559_v12, %v1532_v50  ;;  %v1601_v7 = vadd.f32 %v1592_v59, %v1567_v47  ;;  %v1796_v12 = vld [vmem:[%s9879_s12] sm:$0xff] }
 0x467   : > { %v1631_v36 = vpop.permute.xlu1 %1630 }
 0x468   : > { %v1629_v33 = vpop.permute.xlu0 %1628  ;;  %v1600_v18 = vadd.f32 %v1589_v0, %v1566_v1  ;;  %v1641_v27 = vadd.f32 %v1631_v36, %v1601_v7 }
 0x469   : > { %v1633_v13 = vsel %vm1081_vm7, %v1629_v33, %v1631_v36  ;;  %v1704_v36 = vsel %vm1262_vm6, %v1702_v38, %v1703_v14  ;;  %v5726_v38 = vld [vmem:[%s10070_s1] ss:$0 sm:$0xff]  ;;  %s10072_s1 = smov 48  }
 0x46a   : > { %v1640_v43 = vadd.f32 %v1633_v13, %v1600_v18 }
 0x46b   : > { %v1669_v21 = vpop.permute.xlu1 %1668 }
 0x46c   : > { %v1671_v44 = vpop.permute.xlu0 %1670 }
 0x46d   : > { %v1673_v35 = vsel %vm1116_vm8, %v1669_v21, %v1671_v44  ;;  %v1681_v29 = vadd.f32 %v1671_v44, %v1641_v27  ;;  %v1797_v44 = vld [vmem:[%s9879_s12 + $0x8] sm:$0xff] }
 0x46e   : > { %v1680_v53 = vadd.f32 %v1673_v35, %v1640_v43  ;;  %6004 = vmatpush3.msra.mxu1 %v1797_v44  ;;  %v5730_v35 = vld [vmem:[%s9880_s13] ss:$0 sm:$0xff] }
 0x46f   : > { %v1743_v45 = vpop.permute.xlu1 %1742  ;;  %v1715_v55 = vadd.f32 %v1706_v22, %v1681_v29  ;;  %6005 = vmatprep.subr.mxu1 %v9914_v2 }
 0x470   : > { %v1745_v61 = vpop.permute.xlu0 %1744  ;;  %v1714_v21 = vadd.f32 %v1703_v14, %v1680_v53  ;;  %6006 = vmatpush3.msra.mxu1 %v1796_v12 }
 0x471   : > { %v1747_v59 = vsel %vm1081_vm7, %v1743_v45, %v1745_v61  ;;  %v1755_v50 = vadd.f32 %v1745_v61, %v1715_v55  ;;  %6045 = vmatprep.subr.mxu1 %v9914_v2 }
 0x472   : > { %v1754_v0 = vadd.f32 %v1747_v59, %v1714_v21 }
 0x473   : > { %v1627_v49 = vpop.permute.xlu1 %1626 }
 0x474   : > { %v1625_v4 = vpop.permute.xlu0 %1624  ;;  %v1639_v20 = vadd.f32 %v1627_v49, %v1599_v11 }
 0x475   : > { %v1632_v63 = vsel %vm1081_vm7, %v1625_v4, %v1627_v49 }
 0x476   : > { %v1638_v31 = vadd.f32 %v1632_v63, %v1598_v19 }
 0x477   : > { %v1665_v32 = vpop.permute.xlu1 %1664 }
 0x478   : > { %v1667_v25 = vpop.permute.xlu0 %1666 }
 0x479   : > { %v1679_v23 = vadd.f32 %v1667_v25, %v1639_v20  ;;  %v1672_v17 = vsel %vm1116_vm8, %v1665_v32, %v1667_v25  ;;  %v2095_v20 = vld [vmem:[%s9881_s14] sm:$0xff] }
 0x47a   : > { %v1678_v10 = vadd.f32 %v1672_v17, %v1638_v31  ;;  %v2120_v8 = vrot.slane %v2095_v20, %v6480_v37  ;;  %v2223_v13 = vrot.slane %v2095_v20, %v6450_v24  ;;  %v2338_v22 = vrot.slane %v2095_v20, %v6456_v26 }
 0x47b   : > { %v1713_v33 = vadd.f32 %v1707_v46, %v1679_v23  ;;  %v1739_v54 = vpop.permute.xlu1 %1738  ;;  %v2104_v25 = vrot.slane %v2095_v20, %v6462_v28  ;;  %v2307_v27 = vrot.slane %v2095_v20, %v6468_v30  ;;  %v2154_v53 = vrot.slane %v2095_v20, %v6373_v6 }
 0x47c   : > { %v1741_v48 = vpop.permute.xlu0 %1740  ;;  %v1712_v39 = vadd.f32 %v1704_v36, %v1678_v10  ;;  %2122 = vrot.lane.b32.xlu0 %v2120_v8, %s10068_s2  ;;  %v2193_v36 = vrot.slane %v2095_v20, %v6493_v42 }
 0x47d   : > { %v1746_v16 = vsel %vm1081_vm7, %v1739_v54, %v1741_v48  ;;  %v1753_v41 = vadd.f32 %v1741_v48, %v1713_v33  ;;  %v2263_v33 = vrot.slane %v2095_v20, %v6486_v40  ;;  %v5731_v54 = vld [vmem:[%s9881_s14 + $0x8] ss:$0 sm:$0xff] }
 0x47e   : > { %v1752_v51 = vadd.f32 %v1746_v16, %v1712_v39 }
 0x47f   : > { %v1779_v56 = vpop.permute.xlu1 %1778 }
 0x480   : > { %v1781_v62 = vpop.permute.xlu0 %1780  ;;  %2225 = vrot.lane.b32.xlu0 %v2223_v13, %s10068_s2 }
 0x481   : > { %v1786_v3 = vsel %vm1116_vm8, %v1779_v56, %v1781_v62  ;;  %v1793_v47 = vadd.f32 %v1781_v62, %v1753_v41 }
 0x482   : > { %v1792_v57 = vadd.f32 %v1786_v3, %v1752_v51 }
 0x483   : > { %v1783_v58 = vpop.permute.xlu1 %1782  ;;  %v1826_v4 = vrot.slane %v1793_v47, 3 }
 0x484   : > { %v1785_v9 = vpop.permute.xlu0 %1784  ;;  %v1823_v11 = vrot.slane %v1792_v57, 3  ;;  %2340 = vrot.lane.b32.xlu0 %v2338_v22, %s10068_s2 }
 0x485   : > { %v1795_v1 = vadd.f32 %v1785_v9, %v1755_v50  ;;  %v1787_v60 = vsel %vm1116_vm8, %v1783_v58, %v1785_v9 }
 0x486   : > { %v1794_v5 = vadd.f32 %v1787_v60, %v1754_v0 }
 0x487   : > { %v1827_v45 = vrot.slane %v1795_v1, 3 }
 0x488   : > { %v1909_v7 = vpop.permute.xlu0 %1908  ;;  %v1824_v61 = vrot.slane %v1794_v5, 3  ;;  %2106 = vrot.lane.b32.xlu0 %v2104_v25, %s6208_s25 }
 0x489   : > { %1911 = vst.msk [vmem:[#allocation2] sm:$0xf0] %vm1027_vm1, %v1909_v7  ;;  %v1828_v49 = vsel %vm1384_vm9, %v1826_v4, %v1827_v45 }
 0x48a   : > { %1912 = vst.msk [vmem:[#allocation2 + $0x8] sm:$0xf0] %vm1029_vm2, %v1909_v7  ;;  %v1825_v52 = vsel %vm1384_vm9, %v1823_v11, %v1824_v61 }
 0x48b   : > { %1913 = vst.msk [vmem:[#allocation2 + $0x10] sm:$0xf] %vm1031_vm3, %v1909_v7  ;;  %v6172_v15 = vpack.i.bf16 %v1828_v49, %v1825_v52 }
 0x48c   : > { %1914 = vst.msk [vmem:[#allocation2 + $0x18] sm:$0xf] %vm1033_vm4, %v1909_v7  ;;  %2309 = vrot.lane.b32.xlu0 %v2307_v27, %s6208_s25 }
 0x48d   : > { %6173 = vrot.lane.b32.xlu1 %v6172_v15, %s10060_s4 }
 0x490   : > { %v7046_v55 = vld [vmem:[#allocation2] sm:$0xf8] }
 0x491   : > { %v7048_v39 = vld [vmem:[#allocation2 + $0x8] sm:$0xf8]  ;;  %v7054_v21 = vld [vmem:[#allocation2] sm:$0xf0] }
 0x492   : > { %v7050_v16 = vld [vmem:[#allocation2 + $0x10] sm:$0x7]  ;;  %v7056_v41 = vld [vmem:[#allocation2 + $0x8] sm:$0xf0]  ;;  %v7062_v12 = vld [vmem:[#allocation2] sm:$0xe0] }
 0x493   : > { %v7052_v62 = vld [vmem:[#allocation2 + $0x18] sm:$0x7]  ;;  %v7058_v56 = vld [vmem:[#allocation2 + $0x10] sm:$0xf]  ;;  %v7064_v59 = vld [vmem:[#allocation2 + $0x8] sm:$0xe0] }
 0x494   : > { %v7060_v44 = vld [vmem:[#allocation2 + $0x18] sm:$0xf]  ;;  %v7066_v3 = vld [vmem:[#allocation2 + $0x10] sm:$0x1f] }
 0x495   : > { %v7068_v50 = vld [vmem:[#allocation2 + $0x18] sm:$0x1f] }
 0x4d5   : > { %v5800_v31 = vpop.f32.mrf.mxu1 }
 0x4d7   : > { %v5801_v23 = vpop.f32.mrf.mxu1 }
 0x4d8   : > { %v5802_v32 = vadd.f32 %v5801_v23, %v5800_v31 }
 0x4da   : > { %v7026_v17 = vadd.f32 %v5802_v32, %v5726_v38 }
 0x4ee   : > { %v2123_v47 = vpop.permute.xlu0 %2122 }
 0x4f2   : > { %v2226_v52 = vpop.permute.xlu0 %2225 }
 0x4f6   : > { %v2341_v23 = vpop.permute.xlu0 %2340 }
 0x4ff   : > { %v6174_v34 = vpop.permute.xlu1 %6173 }
 0x500   : > { %v6176_v63 = vunpack.i.h.bf16 %v6174_v34  ;;  %v6175_v18 = vunpack.i.l.bf16 %v6174_v34 }
 0x502   : > { %v1833_v19 = vsel %vm1395_vm10, %v6175_v18, %v6176_v63 }
 0x503   : > { %6008 = vmatmul.mubr.f32.vlgmr.msra.gmra.mxu1 %v1833_v19 }
 0x504   : > { %6077 = vmatprep.mubr.msk.f32.mxu1 %vm6202_vm0, %v9914_v2 }
 0x5c3   : > { %v1901_v14 = vpop.f32.mrf.mxu1 }
 0x5c4   : > { %v1902_v43 = vadd.f32 %v5730_v35, %v1901_v14 }
 0x5c5   : > { %v6009_v29 = vpop.f32.mrf.mxu1 }
 0x5c6   : > { %v1905_v10 = vadd.f32 %v1902_v43, %v7026_v17 }
 0x5c8   : > { %v2085_v46 = vmax.f32 %v1905_v10, 0.0  ;;  %5644 = vst [vmem:[%s7031_s29] sm:$0xff] %v1905_v10 }
 0x5ca   : > { %v2087_v48 = vrot.slane %v2085_v46, 4 }
 0x5cc   : > { %2088 = vrot.lane.b32.xlu1 %v2087_v48, %s10068_s2 }
 0x5d0   : > { %2156 = vrot.lane.b32.xlu1 %v2154_v53, %s10066_s0 }
 0x5d4   : > { %2265 = vrot.lane.b32.xlu1 %v2263_v33, %s10066_s0 }
 0x5d8   : > { %2380 = vrot.lane.b32.xlu1 %v5731_v54, %s10066_s0 }
 0x5dc   : > { %2195 = vrot.lane.b32.xlu1 %v2193_v36, %s6208_s25 }
 0x63e   : > { %v2089_v51 = vpop.permute.xlu1 %2088 }
 0x63f   : > { %2091 = vst.msk [vmem:[#allocation2] sm:$0xf0] %vm1027_vm1, %v2089_v51 }
 0x640   : > { %2092 = vst.msk [vmem:[#allocation2 + $0x8] sm:$0xf0] %vm1029_vm2, %v2089_v51 }
 0x641   : > { %2093 = vst.msk [vmem:[#allocation2 + $0x10] sm:$0xf] %vm1031_vm3, %v2089_v51 }
 0x642   : > { %2094 = vst.msk [vmem:[#allocation2 + $0x18] sm:$0xf] %vm1033_vm4, %v2089_v51  ;;  %v2157_v5 = vpop.permute.xlu1 %2156 }
 0x646   : > { %v7077_v57 = vld [vmem:[#allocation2] sm:$0xfc]  ;;  %v2266_v63 = vpop.permute.xlu1 %2265 }
 0x647   : > { %v7074_v9 = vld [vmem:[#allocation2 + $0x8] sm:$0xfc]  ;;  %v2125_v1 = vmul.f32 %v2123_v47, %v7077_v57  ;;  %v2159_v7 = vmul.f32 %v2157_v5, %v7077_v57  ;;  %v7108_v27 = vld [vmem:[#allocation2] sm:$0xf0] }
 0x648   : > { %v2126_v0 = vmul.f32 %v2123_v47, %v7074_v9  ;;  %v7083_v60 = vld [vmem:[#allocation2 + $0x10] sm:$0x3]  ;;  %v2160_v61 = vmul.f32 %v2157_v5, %v7074_v9  ;;  %v7113_v32 = vld [vmem:[#allocation2 + $0x8] sm:$0xf0]  ;;  %v2228_v29 = vmul.f32 %v2226_v52, %v7108_v27  ;;  %v2268_v51 = vmul.f32 %v2266_v63, %v7108_v27 }
 0x649   : > { %v7080_v58 = vld [vmem:[#allocation2 + $0x18] sm:$0x3]  ;;  %2133 = vrot.lane.b32.xlu1 %v2125_v1, %s10066_s0  ;;  %v2127_v45 = vmul.f32 %v2123_v47, %v7083_v60  ;;  %v7091_v11 = vld [vmem:[#allocation2 + $0x10] sm:$0xf]  ;;  %v2161_v15 = vmul.f32 %v2157_v5, %v7083_v60  ;;  %v2229_v10 = vmul.f32 %v2226_v52, %v7113_v32  ;;  %v2269_v33 = vmul.f32 %v2266_v63, %v7113_v32  ;;  %v7123_v54 = vld [vmem:[#allocation2 + $0x8] sm:$0xc0] }
 0x64a   : > { %2135 = vrot.lane.b32.xlu0 %v2126_v0, %s10066_s0  ;;  %v2128_v4 = vmul.f32 %v2123_v47, %v7080_v58  ;;  %v7095_v49 = vld [vmem:[#allocation2 + $0x18] sm:$0xf]  ;;  %v2230_v34 = vmul.f32 %v2226_v52, %v7091_v11  ;;  %v2162_v18 = vmul.f32 %v2157_v5, %v7080_v58  ;;  %v2270_v22 = vmul.f32 %v2266_v63, %v7091_v11  ;;  %v7111_v31 = vld [vmem:[#allocation2 + $0x10] sm:$0x3f]  ;;  %v7127_v47 = vld [vmem:[#allocation2] sm:$0xc0] }
 0x64b   : > { %v2231_v19 = vmul.f32 %v2226_v52, %v7095_v49  ;;  %v2271_v8 = vmul.f32 %v2266_v63, %v7095_v49  ;;  %v7106_v25 = vld [vmem:[#allocation2 + $0x18] sm:$0x3f]  ;;  %v2345_v43 = vmul.f32 %v2341_v23, %v7111_v31  ;;  %v2236_v53 = vrot.slane %v2228_v29, 2 }
 0x64c   : > { %v2237_v20 = vrot.slane %v2230_v34, 2  ;;  %v2346_v35 = vmul.f32 %v2341_v23, %v7106_v25  ;;  %v2277_v14 = vrot.slane %v2270_v22, 2  ;;  %v2239_v36 = vrot.slane %v2229_v10, 2 }
 0x64d   : > { %2137 = vrot.lane.b32.xlu1 %v2127_v45, %s10066_s0  ;;  %v2240_v13 = vrot.slane %v2231_v19, 2  ;;  %v2280_v38 = vrot.slane %v2271_v8, 2  ;;  %v2352_v48 = vrot.slane %v2345_v43, 4  ;;  %v2279_v1 = vrot.slane %v2269_v33, 2  ;;  %v2381_v45 = vpop.permute.xlu1 %2380  ;;  %v2430_v33 = vld [vmem:[%s9882_s15 + $0x78] sm:$0xff] }
 0x64e   : > { %2139 = vrot.lane.b32.xlu0 %v2128_v4, %s10066_s0  ;;  %v2355_v46 = vrot.slane %v2346_v35, 4  ;;  %v2238_v0 = vsel %vm1262_vm6, %v2236_v53, %v2237_v20  ;;  %v2344_v4 = vmul.f32 %v2341_v23, %v7123_v54  ;;  %v2384_v34 = vmul.f32 %v2381_v45, %v7123_v54  ;;  %6011 = vmatpush3.msra.mxu0 %v2430_v33 }
 0x64f   : > { %v2241_v5 = vsel %vm1262_vm6, %v2239_v36, %v2240_v13  ;;  %v2281_v52 = vsel %vm1262_vm6, %v2279_v1, %v2280_v38  ;;  %v2386_v63 = vmul.f32 %v2381_v45, %v7106_v25  ;;  %v2385_v8 = vmul.f32 %v2381_v45, %v7111_v31  ;;  %v2429_v36 = vld [vmem:[%s9882_s15 + $0x70] sm:$0xff]  ;;  %6012 = vmatprep.subr.mxu0 %v9914_v2  ;;  %v2427_v1 = vld [vmem:[%s9882_s15 + $0x60] sm:$0xff] }
 0x650   : > { %v2394_v22 = vrot.slane %v2384_v34, 4  ;;  %v1967_v10 = vrot.slane %v7054_v21, 1  ;;  %v2025_v21 = vrot.slane %v7062_v12, 2  ;;  %v2075_v12 = vld [vmem:[%s10071_s28] sm:$0xff]  ;;  %6013 = vmatpush3.msra.mxu0 %v2429_v36  ;;  %v2421_v34 = vld [vmem:[%s9882_s15 + $0x30] sm:$0xff] }
 0x651   : > { %2169 = vrot.lane.b32.xlu1 %v2160_v61, %s10068_s2  ;;  %v2343_v61 = vmul.f32 %v2341_v23, %v7127_v47  ;;  %v2395_v23 = vrot.slane %v2386_v63, 4  ;;  %v2392_v43 = vrot.slane %v2385_v8, 4  ;;  %6014 = vmatprep.subr.mxu0 %v9914_v2 }
 0x652   : > { %2167 = vrot.lane.b32.xlu0 %v2159_v7, %s10068_s2  ;;  %v2276_v7 = vrot.slane %v2268_v51, 2  ;;  %v2534_v51 = vrot.slane %v7026_v17, 4  ;;  %v2426_v17 = vld [vmem:[%s9882_s15 + $0x58] sm:$0xff] }
 0x653   : > { %v2351_v19 = vrot.slane %v2343_v61, 4 }
 0x655   : > { %2173 = vrot.lane.b32.xlu1 %v2162_v18, %s10068_s2  ;;  %v2278_v18 = vsel %vm1262_vm6, %v2276_v7, %v2277_v14  ;;  %v2423_v7 = vld [vmem:[%s9882_s15 + $0x40] sm:$0xff] }
 0x656   : > { %2171 = vrot.lane.b32.xlu0 %v2161_v15, %s10068_s2  ;;  %v2354_v15 = vrot.slane %v2344_v4, 4  ;;  %v2107_v4 = vpop.permute.xlu0 %2106 }
 0x657   : > { %v2110_v33 = vmul.f32 %v2107_v4, %v7074_v9  ;;  %v2112_v36 = vmul.f32 %v2107_v4, %v7080_v58 }
 0x659   : > { %2248 = vrot.lane.b32.xlu1 %v2240_v13, %s10066_s0  ;;  %v2356_v13 = vsel %vm2320_vm11, %v2354_v15, %v2355_v46  ;;  %v2422_v15 = vld [vmem:[%s9882_s15 + $0x38] sm:$0xff] }
 0x65a   : > { %2246 = vrot.lane.b32.xlu0 %v2237_v20, %s10066_s0  ;;  %v2383_v20 = vmul.f32 %v2381_v45, %v7127_v47  ;;  %v2425_v45 = vld [vmem:[%s9882_s15 + $0x50] sm:$0xff]  ;;  %v7230_v61 = vpop.permute.xlu0 %2309 }
 0x65c   : > { %v2391_v35 = vrot.slane %v2383_v20, 4  ;;  %v2419_v20 = vld [vmem:[%s9882_s15 + $0x20] sm:$0xff] }
 0x65d   : > { %2286 = vrot.lane.b32.xlu1 %v2277_v14, %s10068_s2  ;;  %v2396_v14 = vsel %vm2320_vm11, %v2394_v22, %v2395_v23  ;;  %v2418_v22 = vld [vmem:[%s9882_s15 + $0x18] sm:$0xff] }
 0x65e   : > { %2288 = vrot.lane.b32.xlu0 %v2280_v38, %s10068_s2  ;;  %v2353_v38 = vsel %vm2320_vm11, %v2351_v19, %v2352_v48  ;;  %v2393_v29 = vsel %vm2320_vm11, %v2391_v35, %v2392_v43  ;;  %v2420_v19 = vld [vmem:[%s9882_s15 + $0x28] sm:$0xff] }
 0x661   : > { %2361 = vrot.lane.b32.xlu1 %v2352_v48, %s10066_s0 }
 0x662   : > { %2363 = vrot.lane.b32.xlu0 %v2355_v46, %s10066_s0  ;;  %v7162_v46 = vrot.slane %v7058_v56, 1  ;;  %v7178_v56 = vrot.slane %v7066_v3, 2  ;;  %v2077_v3 = vrot.slane %v2075_v12, 5 }
 0x664   : > { %v7168_v48 = vsel %vm1147_vm5, %v1967_v10, %v7162_v46  ;;  %v7184_v53 = vsel %vm1262_vm6, %v2025_v21, %v7178_v56 }
 0x665   : > { %2244 = vrot.lane.b32.xlu1 %v2241_v5, %s10066_s0  ;;  %v2424_v5 = vld [vmem:[%s9882_s15 + $0x48] sm:$0xff] }
 0x666   : > { %2242 = vrot.lane.b32.xlu0 %v2238_v0, %s10066_s0  ;;  %v2428_v0 = vld [vmem:[%s9882_s15 + $0x68] sm:$0xff] }
 0x667   : > { %6015 = vmatpush3.msra.mxu0 %v2428_v0 }
 0x668   : > { %6016 = vmatprep.subr.mxu0 %v9914_v2 }
 0x669   : > { %2282 = vrot.lane.b32.xlu1 %v2278_v18, %s10068_s2  ;;  %6017 = vmatpush3.msra.mxu0 %v2427_v1 }
 0x66a   : > { %2284 = vrot.lane.b32.xlu0 %v2281_v52, %s10068_s2  ;;  %6018 = vmatprep.subr.mxu0 %v9914_v2  ;;  %v2196_v52 = vpop.permute.xlu1 %2195 }
 0x66b   : > { %6019 = vmatpush3.msra.mxu0 %v2426_v17  ;;  %v2199_v21 = vmul.f32 %v2196_v52, %v7113_v32  ;;  %v2201_v12 = vmul.f32 %v2196_v52, %v7095_v49  ;;  %v2198_v0 = vmul.f32 %v2196_v52, %v7108_v27  ;;  %v2200_v1 = vmul.f32 %v2196_v52, %v7091_v11 }
 0x66c   : > { %6020 = vmatprep.subr.mxu0 %v9914_v2  ;;  %v2109_v32 = vmul.f32 %v2107_v4, %v7077_v57  ;;  %v2111_v49 = vmul.f32 %v2107_v4, %v7083_v60  ;;  %v2313_v57 = vmul.f32 %v7230_v61, %v7123_v54  ;;  %v2315_v60 = vmul.f32 %v7230_v61, %v7106_v25 }
 0x66d   : > { %2357 = vrot.lane.b32.xlu1 %v2353_v38, %s10066_s0  ;;  %6021 = vmatpush3.msra.mxu0 %v2425_v45 }
 0x66e   : > { %2359 = vrot.lane.b32.xlu0 %v2356_v13, %s10066_s0  ;;  %6022 = vmatprep.subr.mxu0 %v9914_v2  ;;  %v2324_v25 = vrot.slane %v2313_v57, 4 }
 0x66f   : > { %6023 = vmatpush3.msra.mxu0 %v2424_v5 }
 0x670   : > { %6024 = vmatprep.subr.mxu0 %v9914_v2 }
 0x671   : > { %2397 = vrot.lane.b32.xlu1 %v2393_v29, %s10068_s2  ;;  %6025 = vmatpush3.msra.mxu0 %v2423_v7 }
 0x672   : > { %2399 = vrot.lane.b32.xlu0 %v2396_v14, %s10068_s2  ;;  %6026 = vmatprep.subr.mxu0 %v9914_v2 }
 0x673   : > { %6027 = vmatpush3.msra.mxu0 %v2422_v15  ;;  %v2209_v15 = vrot.slane %v2199_v21, 2 }
 0x674   : > { %6028 = vmatprep.subr.mxu0 %v9914_v2 }
 0x675   : > { %2401 = vrot.lane.b32.xlu1 %v2392_v43, %s10068_s2  ;;  %6029 = vmatpush3.msra.mxu0 %v2421_v34  ;;  %v2210_v34 = vrot.slane %v2201_v12, 2 }
 0x676   : > { %2403 = vrot.lane.b32.xlu0 %v2395_v23, %s10068_s2  ;;  %6030 = vmatprep.subr.mxu0 %v9914_v2  ;;  %v2417_v23 = vld [vmem:[%s9882_s15 + $0x10] sm:$0xff] }
 0x677   : > { %6031 = vmatpush3.msra.mxu0 %v2420_v19 }
 0x678   : > { %6032 = vmatprep.subr.mxu0 %v9914_v2 }
 0x679   : > { %6033 = vmatpush3.msra.mxu0 %v2419_v20 }
 0x67a   : > { %1923 = vrot.lane.b32.xlu0 %v7046_v55, %s10065_s9  ;;  %6034 = vmatprep.subr.mxu0 %v9914_v2 }
 0x67b   : > { %6035 = vmatpush3.msra.mxu0 %v2418_v22  ;;  %v2206_v22 = vrot.slane %v2198_v0, 2 }
 0x67c   : > { %6036 = vmatprep.subr.mxu0 %v9914_v2 }
 0x67d   : > { %6037 = vmatpush3.msra.mxu0 %v2417_v23 }
 0x67e   : > { %1927 = vrot.lane.b32.xlu0 %v7050_v16, %s10065_s9  ;;  %6038 = vmatprep.subr.mxu0 %v9914_v2 }
 0x682   : > { %1941 = vrot.lane.b32.xlu0 %v7046_v55, %s10066_s0 }
 0x686   : > { %1945 = vrot.lane.b32.xlu0 %v7050_v16, %s10066_s0 }
 0x68a   : > { %1981 = vrot.lane.b32.xlu0 %v7168_v48, %s10065_s9 }
 0x68e   : > { %1985 = vrot.lane.b32.xlu0 %v7162_v46, %s10065_s9 }
 0x692   : > { %1999 = vrot.lane.b32.xlu0 %v7168_v48, %s10066_s0 }
 0x696   : > { %2003 = vrot.lane.b32.xlu0 %v7162_v46, %s10066_s0 }
 0x69a   : > { %2039 = vrot.lane.b32.xlu0 %v7184_v53, %s10065_s9 }
 0x69e   : > { %2043 = vrot.lane.b32.xlu0 %v7178_v56, %s10065_s9 }
 0x6a2   : > { %2057 = vrot.lane.b32.xlu0 %v7184_v53, %s10066_s0 }
 0x6a6   : > { %2061 = vrot.lane.b32.xlu0 %v7178_v56, %s10066_s0 }
 0x6aa   : > { %2078 = vrot.lane.b32.xlu0 %v2077_v3, %s10072_s1 }
 0x6ae   : > { %2535 = vrot.lane.b32.xlu0 %v2534_v51, %s10068_s2 }
 0x6bb   : > { %v2134_v18 = vpop.permute.xlu1 %2133 }
 0x6bc   : > { %v2136_v63 = vpop.permute.xlu0 %2135 }
 0x6bd   : > { %v2141_v17 = vsel %vm1116_vm8, %v2134_v18, %v2136_v63  ;;  %v2148_v5 = vadd.f32 %v2136_v63, %v2110_v33 }
 0x6be   : > { %v2147_v27 = vadd.f32 %v2141_v17, %v2109_v32  ;;  %v2325_v17 = vrot.slane %v2315_v60, 4 }
 0x6bf   : > { %v2138_v13 = vpop.permute.xlu1 %2137 }
 0x6c0   : > { %v2140_v8 = vpop.permute.xlu0 %2139 }
 0x6c1   : > { %v2142_v45 = vsel %vm1116_vm8, %v2138_v13, %v2140_v8  ;;  %v2150_v7 = vadd.f32 %v2140_v8, %v2112_v36  ;;  %v2207_v13 = vrot.slane %v2200_v1, 2  ;;  %v2211_v8 = vsel %vm1262_vm6, %v2209_v15, %v2210_v34 }
 0x6c2   : > { %v2149_v20 = vadd.f32 %v2142_v45, %v2111_v49 }
 0x6c3   : > { %v2170_v35 = vpop.permute.xlu1 %2169  ;;  %v2208_v12 = vsel %vm1262_vm6, %v2206_v22, %v2207_v13 }
 0x6c4   : > { %v2168_v38 = vpop.permute.xlu0 %2167  ;;  %v2183_v11 = vadd.f32 %v2170_v35, %v2148_v5 }
 0x6c5   : > { %v2176_v9 = vsel %vm2175_vm12, %v2168_v38, %v2170_v35  ;;  %v2312_v35 = vmul.f32 %v7230_v61, %v7127_v47 }
 0x6c6   : > { %v2182_v63 = vadd.f32 %v2176_v9, %v2147_v27  ;;  %v2326_v27 = vsel %vm2320_vm11, %v2324_v25, %v2325_v17 }
 0x6c7   : > { %v2174_v14 = vpop.permute.xlu1 %2173  ;;  %v2321_v47 = vrot.slane %v2312_v35, 4 }
 0x6c8   : > { %v2172_v43 = vpop.permute.xlu0 %2171  ;;  %v2185_v52 = vadd.f32 %v2174_v14, %v2150_v7  ;;  %v2216_v36 = vadd.f32 %v2208_v12, %v2182_v63 }
 0x6c9   : > { %v2177_v58 = vsel %vm2175_vm12, %v2172_v43, %v2174_v14  ;;  %v2217_v43 = vadd.f32 %v2211_v8, %v2183_v11  ;;  %v2314_v14 = vmul.f32 %v7230_v61, %v7111_v31 }
 0x6ca   : > { %v2184_v23 = vadd.f32 %v2177_v58, %v2149_v20  ;;  %v2219_v38 = vadd.f32 %v2210_v34, %v2185_v52 }
 0x6cb   : > { %v2249_v10 = vpop.permute.xlu1 %2248  ;;  %v2322_v31 = vrot.slane %v2314_v14, 4 }
 0x6cc   : > { %v2247_v29 = vpop.permute.xlu0 %2246  ;;  %v2218_v54 = vadd.f32 %v2207_v13, %v2184_v23  ;;  %v2259_v5 = vadd.f32 %v2249_v10, %v2219_v38 }
 0x6cd   : > { %v2251_v1 = vsel %vm1116_vm8, %v2247_v29, %v2249_v10  ;;  %v2323_v10 = vsel %vm2320_vm11, %v2321_v47, %v2322_v31 }
 0x6ce   : > { %v2258_v9 = vadd.f32 %v2251_v1, %v2218_v54 }
 0x6cf   : > { %v2287_v51 = vpop.permute.xlu1 %2286 }
 0x6d0   : > { %v2289_v3 = vpop.permute.xlu0 %2288 }
 0x6d1   : > { %v2291_v15 = vsel %vm2175_vm12, %v2287_v51, %v2289_v3  ;;  %v2299_v58 = vadd.f32 %v2289_v3, %v2259_v5  ;;  %v2416_v3 = vld [vmem:[%s9882_s15 + $0x8] sm:$0xff] }
 0x6d2   : > { %v2298_v11 = vadd.f32 %v2291_v15, %v2258_v9  ;;  %6039 = vmatpush3.msra.mxu0 %v2416_v3  ;;  %v1970_v9 = vrot.slane %v7056_v41, 1 }
 0x6d3   : > { %v2362_v18 = vpop.permute.xlu1 %2361  ;;  %v2334_v22 = vadd.f32 %v2325_v17, %v2299_v58  ;;  %6040 = vmatprep.subr.mxu0 %v9914_v2  ;;  %v7321_v58 = vrot.slane %v7060_v44, 1 }
 0x6d4   : > { %v2364_v19 = vpop.permute.xlu0 %2363  ;;  %v2333_v51 = vadd.f32 %v2322_v31, %v2298_v11  ;;  %v2028_v11 = vrot.slane %v7064_v59, 2 }
 0x6d5   : > { %v2366_v8 = vsel %vm1116_vm8, %v2362_v18, %v2364_v19 }
 0x6d6   : > { %v2373_v12 = vadd.f32 %v2366_v8, %v2333_v51  ;;  %v2880_v8 = vld [vmem:[%s9884_s17 + $0x10] sm:$0xff] }
 0x6d7   : > { %v2245_v21 = vpop.permute.xlu1 %2244 }
 0x6d8   : > { %v2243_v4 = vpop.permute.xlu0 %2242  ;;  %v2257_v0 = vadd.f32 %v2245_v21, %v2217_v43  ;;  %v2374_v43 = vadd.f32 %v2364_v19, %v2334_v22 }
 0x6d9   : > { %v2250_v33 = vsel %vm1116_vm8, %v2243_v4, %v2245_v21  ;;  %v2415_v4 = vld [vmem:[%s9882_s15] sm:$0xff] }
 0x6da   : > { %v2256_v32 = vadd.f32 %v2250_v33, %v2216_v36  ;;  %6041 = vmatpush3.msra.mxu0 %v2415_v4 }
 0x6db   : > { %v2283_v49 = vpop.permute.xlu1 %2282  ;;  %6080 = vmatprep.subr.mxu0 %v9914_v2 }
 0x6dc   : > { %v2285_v45 = vpop.permute.xlu0 %2284 }
 0x6dd   : > { %v2297_v7 = vadd.f32 %v2285_v45, %v2257_v0  ;;  %v2290_v61 = vsel %vm2175_vm12, %v2283_v49, %v2285_v45 }
 0x6de   : > { %v2296_v34 = vadd.f32 %v2290_v61, %v2256_v32 }
 0x6df   : > { %v2332_v29 = vadd.f32 %v2326_v27, %v2297_v7  ;;  %v2358_v52 = vpop.permute.xlu1 %2357  ;;  %v7329_v27 = vsel %vm1147_vm5, %v1970_v9, %v7321_v58 }
 0x6e0   : > { %v2360_v20 = vpop.permute.xlu0 %2359  ;;  %v2331_v13 = vadd.f32 %v2323_v10, %v2296_v34 }
 0x6e1   : > { %v2365_v63 = vsel %vm1116_vm8, %v2358_v52, %v2360_v20  ;;  %v2372_v57 = vadd.f32 %v2360_v20, %v2332_v29  ;;  %v7345_v29 = vrot.slane %v7068_v50, 2  ;;  %v7368_v50 = vld [vmem:[%s9884_s17] sm:$0xff] }
 0x6e2   : > { %v2371_v21 = vadd.f32 %v2365_v63, %v2331_v13  ;;  %v2905_v63 = vrot.slane %v7368_v50, %v6480_v37  ;;  %v3075_v51 = vrot.slane %v7368_v50, %v6468_v30  ;;  %v3045_v9 = vrot.slane %v7368_v50, %v6486_v40 }
 0x6e3   : > { %v2398_v60 = vpop.permute.xlu1 %2397  ;;  %v7353_v10 = vsel %vm1262_vm6, %v2028_v11, %v7345_v29 }
 0x6e4   : > { %v2400_v23 = vpop.permute.xlu0 %2399 }
 0x6e5   : > { %v2405_v38 = vsel %vm2175_vm12, %v2398_v60, %v2400_v23  ;;  %v2412_v35 = vadd.f32 %v2400_v23, %v2372_v57  ;;  %v2973_v23 = vrot.slane %v7368_v50, %v6493_v42  ;;  %v2879_v57 = vld [vmem:[%s9884_s17 + $0x8] sm:$0xff] }
 0x6e6   : > { %v2411_v33 = vadd.f32 %v2405_v38, %v2371_v21  ;;  %v3155_v60 = vrot.slane %v2879_v57, %v6462_v28  ;;  %v3269_v3 = vrot.slane %v2879_v57, %v6493_v42  ;;  %v3349_v4 = vrot.slane %v2879_v57, %v6486_v40 }
 0x6e7   : > { %v2402_v36 = vpop.permute.xlu1 %2401  ;;  %v2445_v25 = vrot.slane %v2412_v35, 2  ;;  %v3463_v38 = vrot.slane %v2880_v8, %v6462_v28  ;;  %v3657_v21 = vrot.slane %v2880_v8, %v6486_v40 }
 0x6e8   : > { %v2404_v14 = vpop.permute.xlu0 %2403  ;;  %v2442_v19 = vrot.slane %v2411_v33, 2 }
 0x6e9   : > { %v2414_v54 = vadd.f32 %v2404_v14, %v2374_v43  ;;  %v2406_v0 = vsel %vm2175_vm12, %v2402_v36, %v2404_v14  ;;  %v3543_v43 = vrot.slane %v2880_v8, %v6373_v6  ;;  %v2939_v36 = vrot.slane %v7368_v50, %v6373_v6 }
 0x6ea   : > { %v2413_v1 = vadd.f32 %v2406_v0, %v2373_v12  ;;  %v3007_v0 = vrot.slane %v7368_v50, %v6450_v24 }
 0x6eb   : > { %v2446_v18 = vrot.slane %v2414_v54, 2  ;;  %v3737_v54 = vrot.slane %v2880_v8, %v6456_v26  ;;  %2941 = vrot.lane.b32.xlu0 %v2939_v36, %s10068_s2 }
 0x6ec   : > { %v7298_v17 = vpop.permute.xlu0 %1923  ;;  %v2443_v45 = vrot.slane %v2413_v1, 2  ;;  %v3309_v1 = vrot.slane %v2879_v57, %v6450_v24 }
 0x6ed   : > { %v2447_v5 = vsel %vm1262_vm6, %v2445_v25, %v2446_v18  ;;  %v3115_v25 = vrot.slane %v7368_v50, %v6456_v26  ;;  %v3195_v18 = vrot.slane %v2879_v57, %v6480_v37 }
 0x6ee   : > { %v2444_v32 = vsel %vm1262_vm6, %v2442_v19, %v2443_v45  ;;  %v3389_v19 = vrot.slane %v2879_v57, %v6468_v30  ;;  %v3503_v45 = vrot.slane %v2880_v8, %v6480_v37 }
 0x6ef   : > { %v6177_v49 = vpack.i.bf16 %v2447_v5, %v2444_v32  ;;  %3009 = vrot.lane.b32.xlu0 %v3007_v0, %s10066_s0  ;;  %v3583_v5 = vrot.slane %v2880_v8, %v6493_v42  ;;  %v3697_v32 = vrot.slane %v2880_v8, %v6468_v30 }
 0x6f0   : > { %v7302_v7 = vpop.permute.xlu0 %1927 }
 0x6f1   : > { %6178 = vrot.lane.b32.xlu1 %v6177_v49, %s10066_s0  ;;  %v5741_v49 = vld [vmem:[%s9884_s17 + $0x18] ss:$0 sm:$0xff] }
 0x6f3   : > { %3117 = vrot.lane.b32.xlu0 %v3115_v25, %s10068_s2 }
 0x6f4   : > { %v7305_v47 = vpop.permute.xlu0 %1941 }
 0x6f5   : > { %1925 = vrot.lane.b32.xlu1 %v7048_v39, %s10065_s9 }
 0x6f7   : > { %3197 = vrot.lane.b32.xlu0 %v3195_v18, %s10066_s0 }
 0x6f8   : > { %v7309_v15 = vpop.permute.xlu0 %1945 }
 0x6f9   : > { %1929 = vrot.lane.b32.xlu1 %v7052_v62, %s10065_s9 }
 0x6fb   : > { %3311 = vrot.lane.b32.xlu0 %v3309_v1, %s10068_s2 }
 0x6fc   : > { %v7313_v31 = vpop.permute.xlu0 %1981 }
 0x6fd   : > { %1943 = vrot.lane.b32.xlu1 %v7048_v39, %s10066_s0 }
 0x6ff   : > { %3391 = vrot.lane.b32.xlu0 %v3389_v19, %s10066_s0 }
 0x700   : > { %v7317_v61 = vpop.permute.xlu0 %1985 }
 0x701   : > { %1947 = vrot.lane.b32.xlu1 %v7052_v62, %s10066_s0 }
 0x703   : > { %3505 = vrot.lane.b32.xlu0 %v3503_v45, %s10068_s2 }
 0x704   : > { %v7325_v34 = vpop.permute.xlu0 %1999 }
 0x705   : > { %1983 = vrot.lane.b32.xlu1 %v7329_v27, %s10065_s9 }
 0x707   : > { %3585 = vrot.lane.b32.xlu0 %v3583_v5, %s10066_s0 }
 0x708   : > { %v7333_v20 = vpop.permute.xlu0 %2003 }
 0x709   : > { %1987 = vrot.lane.b32.xlu1 %v7321_v58, %s10065_s9 }
 0x70b   : > { %3699 = vrot.lane.b32.xlu0 %v3697_v32, %s10068_s2 }
 0x70c   : > { %v7337_v41 = vpop.permute.xlu0 %2039 }
 0x70d   : > { %2001 = vrot.lane.b32.xlu1 %v7329_v27, %s10066_s0 }
 0x70f   : > { %3779 = vrot.lane.b32.xlu0 %v5741_v49, %s10066_s0 }
 0x710   : > { %v7341_v44 = vpop.permute.xlu0 %2043 }
 0x711   : > { %2005 = vrot.lane.b32.xlu1 %v7321_v58, %s10066_s0 }
 0x713   : > { %3047 = vrot.lane.b32.xlu0 %v3045_v9, %s6208_s25 }
 0x714   : > { %v7349_v52 = vpop.permute.xlu0 %2057 }
 0x715   : > { %2041 = vrot.lane.b32.xlu1 %v7353_v10, %s10065_s9 }
 0x718   : > { %v7357_v22 = vpop.permute.xlu0 %2061 }
 0x719   : > { %2045 = vrot.lane.b32.xlu1 %v7345_v29, %s10065_s9 }
 0x71c   : > { %v7361_v59 = vpop.permute.xlu0 %2078 }
 0x71d   : > { %2059 = vrot.lane.b32.xlu1 %v7353_v10, %s10066_s0 }
 0x720   : > { %v2536_v13 = vpop.permute.xlu0 %2535 }
 0x721   : > { %2538 = vst.msk [vmem:[#allocation2] sm:$0xf0] %vm1027_vm1, %v2536_v13  ;;  %2063 = vrot.lane.b32.xlu1 %v7345_v29, %s10066_s0 }
 0x722   : > { %2539 = vst.msk [vmem:[#allocation2 + $0x8] sm:$0xf0] %vm1029_vm2, %v2536_v13 }
 0x723   : > { %2540 = vst.msk [vmem:[#allocation2 + $0x10] sm:$0xf] %vm1031_vm3, %v2536_v13 }
 0x724   : > { %2541 = vst.msk [vmem:[#allocation2 + $0x18] sm:$0xf] %vm1033_vm4, %v2536_v13  ;;  %v3433_v13 = vrot.slane %v2879_v57, %v6456_v26 }
 0x725   : > { %2907 = vrot.lane.b32.xlu1 %v2905_v63, %s10072_s1 }
 0x726   : > { %3435 = vrot.lane.b32.xlu0 %v3433_v13, %s6208_s25 }
 0x729   : > { %2975 = vrot.lane.b32.xlu1 %v2973_v23, %s10060_s4  ;;  %v5732_v23 = vld [vmem:[%s9883_s16] ss:$0 sm:$0xff] }
 0x72d   : > { %3077 = vrot.lane.b32.xlu1 %v3075_v51, %s10072_s1 }
 0x731   : > { %3157 = vrot.lane.b32.xlu1 %v3155_v60, %s10060_s4 }
 0x735   : > { %3271 = vrot.lane.b32.xlu1 %v3269_v3, %s10072_s1 }
 0x739   : > { %3351 = vrot.lane.b32.xlu1 %v3349_v4, %s10060_s4 }
 0x73d   : > { %3465 = vrot.lane.b32.xlu1 %v3463_v38, %s10072_s1 }
 0x741   : > { %3545 = vrot.lane.b32.xlu1 %v3543_v43, %s10060_s4  ;;  %v2889_v43 = vrot.slane %v7368_v50, %v6462_v28 }
 0x745   : > { %3659 = vrot.lane.b32.xlu1 %v3657_v21, %s10072_s1 }
 0x749   : > { %3739 = vrot.lane.b32.xlu1 %v3737_v54, %s10060_s4 }
 0x763   : > { %v6179_v35 = vpop.permute.xlu1 %6178 }
 0x764   : > { %v6181_v14 = vunpack.i.h.bf16 %v6179_v35  ;;  %v6180_v12 = vunpack.i.l.bf16 %v6179_v35  ;;  %v3239_v35 = vrot.slane %v2879_v57, %v6373_v6 }
 0x766   : > { %v2452_v33 = vsel %vm1116_vm8, %v6180_v12, %v6181_v14  ;;  %v3627_v12 = vrot.slane %v2880_v8, %v6450_v24 }
 0x767   : > { %6043 = vmatmul.mubr.f32.vlgmr.msra.gmra.mxu0 %v2452_v33  ;;  %v1926_v11 = vpop.permute.xlu1 %1925 }
 0x768   : > { %6112 = vmatprep.mubr.msk.f32.mxu0 %vm6202_vm0, %v9914_v2  ;;  %v1931_v32 = vsel %vm1081_vm7, %v7298_v17, %v1926_v11 }
 0x76b   : > { %v1930_v63 = vpop.permute.xlu1 %1929 }
 0x76c   : > { %v1932_v49 = vsel %vm1081_vm7, %v7302_v7, %v1930_v63 }
 0x76f   : > { %v1944_v60 = vpop.permute.xlu1 %1943 }
 0x770   : > { %v1949_v9 = vsel %vm1116_vm8, %v7305_v47, %v1944_v60 }
 0x773   : > { %v1948_v21 = vpop.permute.xlu1 %1947 }
 0x774   : > { %v1950_v13 = vsel %vm1116_vm8, %v7309_v15, %v1948_v21 }
 0x777   : > { %v1984_v14 = vpop.permute.xlu1 %1983 }
 0x778   : > { %v1989_v47 = vsel %vm1081_vm7, %v7313_v31, %v1984_v14 }
 0x77b   : > { %v1988_v33 = vpop.permute.xlu1 %1987 }
 0x77c   : > { %v1990_v15 = vsel %vm1081_vm7, %v7317_v61, %v1988_v33 }
 0x77f   : > { %v2002_v54 = vpop.permute.xlu1 %2001 }
 0x783   : > { %v2006_v36 = vpop.permute.xlu1 %2005 }
 0x787   : > { %v2042_v0 = vpop.permute.xlu1 %2041 }
 0x78b   : > { %v2046_v25 = vpop.permute.xlu1 %2045 }
 0x78f   : > { %v2060_v18 = vpop.permute.xlu1 %2059 }
 0x793   : > { %v2064_v1 = vpop.permute.xlu1 %2063 }
 0x797   : > { %v7449_v50 = vpop.permute.xlu1 %2907 }
 0x79b   : > { %v7451_v19 = vpop.permute.xlu1 %2975 }
 0x79f   : > { %v7453_v45 = vpop.permute.xlu1 %3077 }
 0x7a3   : > { %v7455_v57 = vpop.permute.xlu1 %3157 }
 0x7a7   : > { %v7457_v5 = vpop.permute.xlu1 %3271 }
 0x7ab   : > { %v7459_v8 = vpop.permute.xlu1 %3351 }
 0x827   : > { %v2520_v51 = vpop.f32.mrf.mxu0 }
 0x828   : > { %v2521_v3 = vadd.f32 %v5732_v23, %v2520_v51  ;;  %v7469_v23 = vpop.permute.xlu1 %3465  ;;  %v1937_v51 = vadd.f32 %v1931_v32, %v7046_v55 }
 0x829   : > { %v6044_v4 = vpop.f32.mrf.mxu0 }
 0x82a   : > { %v2525_v38 = vrot.slane %v2521_v3, 5  ;;  %v1938_v3 = vadd.f32 %v1926_v11, %v7048_v39  ;;  %v1939_v4 = vadd.f32 %v1932_v49, %v7050_v16  ;;  %v1955_v17 = vadd.f32 %v1949_v9, %v1937_v51 }
 0x82b   : > { %v2007_v11 = vsel %vm1116_vm8, %v7325_v34, %v2002_v54 }
 0x82c   : > { %2526 = vrot.lane.b32.xlu1 %v2525_v38, %s10072_s1  ;;  %v1940_v38 = vadd.f32 %v1930_v63, %v7052_v62  ;;  %v1977_v55 = vadd.f32 %v7168_v48, %v1955_v17  ;;  %v2008_v63 = vsel %vm1116_vm8, %v7333_v20, %v2006_v36 }
 0x82e   : > { %v1958_v7 = vadd.f32 %v1948_v21, %v1940_v38  ;;  %v1995_v31 = vadd.f32 %v1989_v47, %v1977_v55 }
 0x830   : > { %2891 = vrot.lane.b32.xlu1 %v2889_v43, %s6208_s25  ;;  %v1956_v43 = vadd.f32 %v1944_v60, %v1938_v3  ;;  %v1980_v62 = vadd.f32 %v7321_v58, %v1958_v7  ;;  %v2013_v32 = vadd.f32 %v2007_v11, %v1995_v31  ;;  %v2048_v58 = vsel %vm1081_vm7, %v7341_v44, %v2046_v25 }
 0x832   : > { %v1978_v39 = vadd.f32 %v7329_v27, %v1956_v43  ;;  %v1998_v61 = vadd.f32 %v1988_v33, %v1980_v62  ;;  %v2035_v34 = vadd.f32 %v7184_v53, %v2013_v32  ;;  %v2065_v33 = vsel %vm1116_vm8, %v7349_v52, %v2060_v18  ;;  %v7521_v32 = vpop.permute.xlu0 %2941 }
 0x834   : > { %3241 = vrot.lane.b32.xlu1 %v3239_v35, %s6208_s25  ;;  %v1957_v35 = vadd.f32 %v1950_v13, %v1939_v4  ;;  %v1996_v60 = vadd.f32 %v1984_v14, %v1978_v39  ;;  %v2016_v48 = vadd.f32 %v2006_v36, %v1998_v61 }
 0x836   : > { %v1979_v16 = vadd.f32 %v7162_v46, %v1957_v35  ;;  %v2014_v49 = vadd.f32 %v2002_v54, %v1996_v60  ;;  %v2047_v46 = vsel %vm1081_vm7, %v7337_v41, %v2042_v0  ;;  %v2038_v14 = vadd.f32 %v7345_v29, %v2016_v48 }
 0x837   : > { %v2066_v54 = vsel %vm1116_vm8, %v7357_v22, %v2064_v1  ;;  %v2053_v36 = vadd.f32 %v2047_v46, %v2035_v34 }
 0x838   : > { %3629 = vrot.lane.b32.xlu1 %v3627_v12, %s6208_s25  ;;  %v7479_v12 = vpop.permute.xlu1 %3545  ;;  %v1997_v21 = vadd.f32 %v1990_v15, %v1979_v16  ;;  %v2036_v27 = vadd.f32 %v7353_v10, %v2014_v49  ;;  %v2056_v3 = vadd.f32 %v2046_v25, %v2038_v14  ;;  %v7523_v49 = vpop.permute.xlu0 %3009 }
 0x839   : > { %v2071_v44 = vadd.f32 %v2065_v33, %v2053_v36 }
 0x83a   : > { %v2015_v9 = vadd.f32 %v2008_v63, %v1997_v21  ;;  %v2054_v51 = vadd.f32 %v2042_v0, %v2036_v27  ;;  %v2074_v10 = vadd.f32 %v2064_v1, %v2056_v3  ;;  %v7551_v3 = vld [vmem:[#allocation2] sm:$0xf8] }
 0x83b   : > { %10076 = vst [vmem:[#allocation15_spill] sm:$0xff] %v7551_v3 }
 0x83c   : > { %v7489_v13 = vpop.permute.xlu1 %3659  ;;  %v2037_v20 = vadd.f32 %v7178_v56, %v2015_v9  ;;  %v2072_v53 = vadd.f32 %v2060_v18, %v2054_v51  ;;  %v2081_v56 = vmul.f32 %v7361_v59, %v2071_v44  ;;  %v2084_v52 = vmul.f32 %v7361_v59, %v2074_v10  ;;  %v7525_v9 = vpop.permute.xlu0 %3117  ;;  %v7553_v44 = vld [vmem:[#allocation2] sm:$0xf0] }
 0x83d   : > { %10077 = vst [vmem:[#allocation16_spill] sm:$0xff] %v7553_v44 }
 0x83e   : > { %v2055_v41 = vadd.f32 %v2048_v58, %v2037_v20  ;;  %v2082_v29 = vmul.f32 %v7361_v59, %v2072_v53  ;;  %v7555_v53 = vld [vmem:[#allocation2] sm:$0xe0] }
 0x83f   : > { %10078 = vst [vmem:[#allocation17_spill] sm:$0xff] %v7555_v53 }
 0x840   : > { %v7503_v4 = vpop.permute.xlu1 %3739  ;;  %v2073_v38 = vadd.f32 %v2066_v54, %v2055_v41  ;;  %v7527_v48 = vpop.permute.xlu0 %3197 }
 0x842   : > { %v2083_v17 = vmul.f32 %v7361_v59, %v2073_v38 }
 0x844   : > { %v7529_v46 = vpop.permute.xlu0 %3311 }
 0x848   : > { %v7531_v58 = vpop.permute.xlu0 %3391 }
 0x84c   : > { %v7533_v34 = vpop.permute.xlu0 %3505 }
 0x850   : > { %v7535_v27 = vpop.permute.xlu0 %3585 }
 0x854   : > { %v7537_v20 = vpop.permute.xlu0 %3699 }
 0x858   : > { %v7539_v14 = vpop.permute.xlu0 %3779 }
 0x85c   : > { %v7543_v54 = vpop.permute.xlu0 %3047 }
 0x860   : > { %v7547_v51 = vpop.permute.xlu0 %3435 }
 0x89e   : > { %v2527_v43 = vpop.permute.xlu1 %2526 }
 0x89f   : > { %v2529_v22 = vadd.f32 %v2527_v43, %v2081_v56  ;;  %v2530_v35 = vadd.f32 %v2527_v43, %v2082_v29  ;;  %v2531_v0 = vadd.f32 %v2527_v43, %v2083_v17  ;;  %v2532_v7 = vadd.f32 %v2527_v43, %v2084_v52  ;;  %v7557_v56 = vld [vmem:[#allocation2 + $0x8] sm:$0xf8]  ;;  %v7566_v43 = vld [vmem:[#allocation2 + $0x10] sm:$0x7] }
 0x8a0   : > { %10079 = vst [vmem:[#allocation18_spill] sm:$0xff] %v7557_v56  ;;  %v7559_v29 = vld [vmem:[#allocation2 + $0x8] sm:$0xf0]  ;;  %10082 = vst [vmem:[#allocation21_spill] sm:$0xff] %v7566_v43 }
 0x8a1   : > { %v2845_v25 = vmax.f32 %v2530_v35, 0.0  ;;  %v2844_v47 = vmax.f32 %v2529_v22, 0.0  ;;  %v2847_v15 = vmax.f32 %v2532_v7, 0.0  ;;  %v2846_v55 = vmax.f32 %v2531_v0, 0.0  ;;  %10080 = vst [vmem:[#allocation19_spill] sm:$0xff] %v7559_v29 }
 0x8a2   : > { %v5619_v18 = vrot.slane %v2530_v35, 3  ;;  %v5620_v39 = vrot.slane %v2532_v7, 3  ;;  %v5616_v1 = vrot.slane %v2529_v22, 3  ;;  %v5617_v16 = vrot.slane %v2531_v0, 3  ;;  %v7541_v33 = vpop.permute.xlu1 %2891  ;;  %v7561_v17 = vld [vmem:[#allocation2 + $0x8] sm:$0xe0] }
 0x8a3   : > { %v2854_v62 = vrot.slane %v2845_v25, 7  ;;  %v2853_v11 = vrot.slane %v2844_v47, 7  ;;  %v2857_v63 = vrot.slane %v2847_v15, 7  ;;  %v2855_v31 = vrot.slane %v2846_v55, 7  ;;  %10081 = vst [vmem:[#allocation20_spill] sm:$0xff] %v7561_v17 }
 0x8a4   : > { %v7510_v60 = vsel %vm1384_vm9, %v5619_v18, %v5620_v39  ;;  %v7513_v59 = vsel %vm1384_vm9, %v5616_v1, %v5617_v16  ;;  %v7568_v22 = vld [vmem:[#allocation2 + $0x10] sm:$0xf]  ;;  %v7572_v25 = vld [vmem:[#allocation2 + $0x18] sm:$0x7] }
 0x8a5   : > { %10073 = vst [vmem:[#allocation12_spill] sm:$0xff] %v7510_v60  ;;  %10074 = vst [vmem:[#allocation13_spill] sm:$0xff] %v7513_v59  ;;  %2861 = vrot.lane.b32.xlu0 %v2854_v62, %s6209_s8  ;;  %2859 = vrot.lane.b32.xlu1 %v2853_v11, %s6209_s8  ;;  %v2858_v21 = vsel %vm2852_vm13, %v2854_v62, %v2857_v63  ;;  %v2856_v61 = vsel %vm2852_vm13, %v2853_v11, %v2855_v31  ;;  %v7570_v35 = vld [vmem:[#allocation2 + $0x10] sm:$0x1f]  ;;  %v7574_v47 = vld [vmem:[#allocation2 + $0x18] sm:$0xf] }
 0x8a6   : > { %v7545_v36 = vpop.permute.xlu1 %3241  ;;  %10083 = vst [vmem:[#allocation22_spill] sm:$0xff] %v7568_v22  ;;  %10084 = vst [vmem:[#allocation23_spill] sm:$0xff] %v7570_v35  ;;  %v7576_v15 = vld [vmem:[#allocation2 + $0x18] sm:$0x1f] }
 0x8a7   : > { %10085 = vst [vmem:[#allocation24_spill] sm:$0xff] %v7572_v25  ;;  %10086 = vst [vmem:[#allocation25_spill] sm:$0xff] %v7574_v47 }
 0x8a8   : > { %10087 = vst [vmem:[#allocation26_spill] sm:$0xff] %v7576_v15 }
 0x8a9   : > { %2865 = vrot.lane.b32.xlu0 %v2858_v21, %s6209_s8  ;;  %2863 = vrot.lane.b32.xlu1 %v2856_v61, %s6209_s8 }
 0x8aa   : > { %v7549_v41 = vpop.permute.xlu1 %3629 }
 0x8ab   : > { %10075 = vst [vmem:[#allocation14_spill] sm:$0xff] %v7549_v41 }
 0x917   : > { %v2862_v38 = vpop.permute.xlu0 %2861  ;;  %v2860_v10 = vpop.permute.xlu1 %2859 }
 0x918   : > { %v2868_v52 = vsel %vm2867_vm14, %v2860_v10, %v2862_v38  ;;  %2874 = vst.msk [vmem:[#allocation2] sm:$0xf0] %vm1027_vm1, %v2860_v10 }
 0x919   : > { %2875 = vst.msk [vmem:[#allocation2 + $0x8] sm:$0xf0] %vm1029_vm2, %v2868_v52 }
 0x91b   : > { %v2866_v0 = vpop.permute.xlu0 %2865  ;;  %v2864_v7 = vpop.permute.xlu1 %2863 }
 0x91c   : > { %v2869_v55 = vsel %vm2867_vm14, %v2864_v7, %v2866_v0  ;;  %2876 = vst.msk [vmem:[#allocation2 + $0x10] sm:$0xf] %vm1031_vm3, %v2864_v7 }
 0x91d   : > { %2877 = vst.msk [vmem:[#allocation2 + $0x18] sm:$0xf] %vm1033_vm4, %v2869_v55 }
 0x91f   : > { %v7581_v18 = vld [vmem:[#allocation2] sm:$0xfc] }
 0x920   : > { %v3012_v39 = vmul.f32 %v7523_v49, %v7581_v18  ;;  %v2910_v1 = vmul.f32 %v7449_v50, %v7581_v18  ;;  %v7587_v16 = vld [vmem:[#allocation2 + $0x8] sm:$0xfc]  ;;  %v2944_v62 = vmul.f32 %v7521_v32, %v7581_v18  ;;  %v2978_v63 = vmul.f32 %v7451_v19, %v7581_v18  ;;  %v7728_v53 = vld [vmem:[#allocation2] sm:$0xf8] }
 0x921   : > { %v2911_v11 = vmul.f32 %v7449_v50, %v7587_v16  ;;  %v2945_v31 = vmul.f32 %v7521_v32, %v7587_v16  ;;  %v2979_v61 = vmul.f32 %v7451_v19, %v7587_v16  ;;  %v7841_v30 = vld [vmem:[#allocation2] sm:$0xe0]  ;;  %v7933_v24 = vld [vmem:[#allocation2 + $0x8] sm:$0xf8] }
 0x922   : > { %3020 = vrot.lane.b32.xlu1 %v3012_v39, %s10068_s2  ;;  %2918 = vrot.lane.b32.xlu0 %v2910_v1, %s10065_s9  ;;  %v3013_v39 = vmul.f32 %v7523_v49, %v7587_v16  ;;  %10092 = vst [vmem:[#allocation28_spill] sm:$0xff] %v7841_v30  ;;  %v7901_v37 = vld [vmem:[#allocation2] sm:$0xc0]  ;;  %v7947_v6 = vld [vmem:[#allocation2 + $0x8] sm:$0xf0] }
 0x923   : > { %v7601_v21 = vld [vmem:[#allocation2 + $0x10] sm:$0x3]  ;;  %10097 = vst [vmem:[#allocation29_spill] sm:$0xff] %v7901_v37 }
 0x924   : > { %v2912_v38 = vmul.f32 %v7449_v50, %v7601_v21  ;;  %v3014_v10 = vmul.f32 %v7523_v49, %v7601_v21  ;;  %v2946_v52 = vmul.f32 %v7521_v32, %v7601_v21  ;;  %v7615_v0 = vld [vmem:[#allocation2 + $0x18] sm:$0x3]  ;;  %v2980_v7 = vmul.f32 %v7451_v19, %v7601_v21 }
 0x925   : > { %v2913_v55 = vmul.f32 %v7449_v50, %v7615_v0  ;;  %v2947_v1 = vmul.f32 %v7521_v32, %v7615_v0  ;;  %v2981_v50 = vmul.f32 %v7451_v19, %v7615_v0  ;;  %v7643_v32 = vld [vmem:[#allocation2 + $0x10] sm:$0xf]  ;;  %v7730_v25 = vld [vmem:[#allocation2 + $0x18] sm:$0x7] }
 0x926   : > { %2952 = vrot.lane.b32.xlu0 %v2944_v62, %s10066_s0  ;;  %2920 = vrot.lane.b32.xlu1 %v2911_v11, %s10065_s9  ;;  %v7629_v62 = vld [vmem:[#allocation2 + $0x10] sm:$0x7]  ;;  %v3015_v11 = vmul.f32 %v7523_v49, %v7615_v0  ;;  %v7650_v49 = vmul.f32 %v7457_v5, %v7643_v32  ;;  %v7744_v47 = vmul.f32 %v7453_v45, %v7730_v25 }
 0x927   : > { %v3122_v19 = vmul.f32 %v7525_v9, %v7629_v62  ;;  %v7757_v29 = vmul.f32 %v7525_v9, %v7730_v25  ;;  %v7769_v3 = vmul.f32 %v7455_v57, %v7730_v25 }
 0x928   : > { %v9939_v22 = vrot.slane %v7744_v47, 1 }
 0x92a   : > { %2986 = vrot.lane.b32.xlu0 %v2978_v63, %s10060_s4  ;;  %2954 = vrot.lane.b32.xlu1 %v2945_v31, %s10066_s0  ;;  %v7639_v63 = vmul.f32 %v7527_v48, %v7629_v62  ;;  %v3082_v31 = vmul.f32 %v7453_v45, %v7629_v62 }
 0x92e   : > { %2988 = vrot.lane.b32.xlu1 %v2979_v61, %s10060_s4  ;;  %2922 = vrot.lane.b32.xlu0 %v2912_v38, %s10065_s9  ;;  %v9917_v61 = vrot.slane %v7639_v63, 1  ;;  %v3089_v38 = vrot.slane %v3082_v31, 1  ;;  %v7678_v31 = vld [vmem:[#allocation2 + $0x10] sm:$0x1f] }
 0x92f   : > { %v7688_v2 = vmul.f32 %v7535_v27, %v7678_v31  ;;  %v7710_v15 = vmul.f32 %v7533_v34, %v7678_v31  ;;  %v7726_v35 = vmul.f32 %v7479_v12, %v7678_v31 }
 0x931   : > { %v9936_v43 = vrot.slane %v7726_v35, 3 }
 0x932   : > { %3024 = vrot.lane.b32.xlu1 %v3014_v10, %s10068_s2  ;;  %2956 = vrot.lane.b32.xlu0 %v2946_v52, %s10066_s0  ;;  %v9916_v10 = vrot.slane %v7650_v49, 2  ;;  %v3129_v52 = vrot.slane %v3122_v19, 1 }
 0x936   : > { %2990 = vrot.lane.b32.xlu0 %v2980_v7, %s10060_s4  ;;  %2924 = vrot.lane.b32.xlu1 %v2913_v55, %s10065_s9  ;;  %v7661_v7 = vmul.f32 %v7529_v46, %v7643_v32  ;;  %v3162_v55 = vmul.f32 %v7455_v57, %v7629_v62 }
 0x93a   : > { %3022 = vrot.lane.b32.xlu0 %v3013_v39, %s10068_s2  ;;  %2958 = vrot.lane.b32.xlu1 %v2947_v1, %s10066_s0  ;;  %v9918_v39 = vrot.slane %v7661_v7, 2  ;;  %v3169_v1 = vrot.slane %v3162_v55, 1 }
 0x93e   : > { %3026 = vrot.lane.b32.xlu0 %v3015_v11, %s10068_s2  ;;  %2992 = vrot.lane.b32.xlu1 %v2981_v50, %s10060_s4  ;;  %v7672_v11 = vmul.f32 %v7459_v8, %v7643_v32  ;;  %v7676_v50 = vmul.f32 %v7531_v58, %v7643_v32 }
 0x940   : > { %v9921_v19 = vrot.slane %v7672_v11, 2  ;;  %v9920_v55 = vrot.slane %v7676_v50, 2 }
 0x942   : > { %3218 = vrot.lane.b32.xlu0 %v9917_v61, %s10068_s2  ;;  %3098 = vrot.lane.b32.xlu1 %v3089_v38, %s10065_s9  ;;  %v7694_v61 = vld [vmem:[#allocation2 + $0x10] sm:$0x3f] }
 0x943   : > { %10088 = vst [vmem:[#allocation27_spill] sm:$0xff] %v7694_v61  ;;  %v7706_v60 = vmul.f32 %v7489_v13, %v7694_v61  ;;  %v7722_v17 = vmul.f32 %v7537_v20, %v7694_v61 }
 0x946   : > { %3292 = vrot.lane.b32.xlu0 %v9916_v10, %s10065_s9  ;;  %3138 = vrot.lane.b32.xlu1 %v3129_v52, %s10066_s0  ;;  %v7692_v10 = vmul.f32 %v7469_v23, %v7678_v31 }
 0x948   : > { %v9927_v59 = vrot.slane %v7692_v10, 3 }
 0x94a   : > { %3332 = vrot.lane.b32.xlu0 %v9918_v39, %s10066_s0  ;;  %3178 = vrot.lane.b32.xlu1 %v3169_v1, %s10060_s4  ;;  %v9926_v39 = vrot.slane %v7688_v2, 3 }
 0x94e   : > { %3372 = vrot.lane.b32.xlu0 %v9921_v19, %s10060_s4  ;;  %3412 = vrot.lane.b32.xlu1 %v9920_v55, %s10068_s2  ;;  %v9930_v55 = vrot.slane %v7706_v60, 4  ;;  %v9931_v19 = vrot.slane %v7710_v15, 3 }
 0x952   : > { %3606 = vrot.lane.b32.xlu0 %v9926_v39, %s10068_s2  ;;  %3486 = vrot.lane.b32.xlu1 %v9927_v59, %s10065_s9  ;;  %v3080_v39 = vmul.f32 %v7453_v45, %v7728_v53  ;;  %v9935_v59 = vrot.slane %v7722_v17, 4 }
 0x956   : > { %3680 = vrot.lane.b32.xlu0 %v9930_v55, %s10065_s9  ;;  %3526 = vrot.lane.b32.xlu1 %v9931_v19, %s10066_s0  ;;  %v3088_v55 = vrot.slane %v3080_v39, 1  ;;  %v3120_v19 = vmul.f32 %v7525_v9, %v7728_v53  ;;  %v3160_v39 = vmul.f32 %v7455_v57, %v7728_v53 }
 0x958   : > { %v3090_v44 = vsel %vm1147_vm5, %v3088_v55, %v3089_v38  ;;  %v3168_v38 = vrot.slane %v3160_v39, 1  ;;  %v7781_v55 = vmul.f32 %v7527_v48, %v7730_v25 }
 0x95a   : > { %3720 = vrot.lane.b32.xlu0 %v9935_v59, %s10066_s0  ;;  %3566 = vrot.lane.b32.xlu1 %v9936_v43, %s10060_s4  ;;  %v3128_v59 = vrot.slane %v3120_v19, 1  ;;  %v9940_v43 = vrot.slane %v7757_v29, 1  ;;  %v9943_v19 = vrot.slane %v7769_v3, 1 }
 0x95c   : > { %v3130_v56 = vsel %vm1147_vm5, %v3128_v59, %v3129_v52  ;;  %v3170_v59 = vsel %vm1147_vm5, %v3168_v38, %v3169_v1  ;;  %v7786_v52 = vld [vmem:[#allocation2 + $0x18] sm:$0xf]  ;;  %v10089_v1 = vrot.slane %v7639_v63, 1  ;;  %v10090_v63 = vrot.slane %v7650_v49, 2 }
 0x95d   : > { %v7797_v40 = vmul.f32 %v7457_v5, %v7786_v52  ;;  %v7811_v28 = vmul.f32 %v7529_v46, %v7786_v52  ;;  %v10091_v49 = vrot.slane %v7661_v7, 2  ;;  %v10093_v7 = vrot.slane %v7672_v11, 2 }
 0x95e   : > { %3100 = vrot.lane.b32.xlu0 %v9939_v22, %s10065_s9  ;;  %3094 = vrot.lane.b32.xlu1 %v3090_v44, %s10065_s9  ;;  %v3200_v44 = vmul.f32 %v7527_v48, %v7728_v53  ;;  %v7783_v22 = vld [vmem:[#allocation2] sm:$0xf0]  ;;  %v10094_v11 = vrot.slane %v7676_v50, 2  ;;  %v10095_v50 = vrot.slane %v7692_v10, 3  ;;  %v10096_v10 = vrot.slane %v7710_v15, 3 }
 0x95f   : > { %v3274_v39 = vmul.f32 %v7457_v5, %v7783_v22  ;;  %v10098_v15 = vrot.slane %v7726_v35, 3  ;;  %v10100_v35 = vrot.slane %v7688_v2, 3  ;;  %v10101_v2 = vrot.slane %v7706_v60, 4 }
 0x960   : > { %v10102_v60 = vrot.slane %v7722_v17, 4  ;;  %v10103_v17 = vrot.slane %v7744_v47, 1 }
 0x962   : > { %3140 = vrot.lane.b32.xlu0 %v9940_v43, %s10066_s0  ;;  %3134 = vrot.lane.b32.xlu1 %v3130_v56, %s10066_s0  ;;  %v3208_v56 = vrot.slane %v3200_v44, 1  ;;  %v9946_v43 = vrot.slane %v7781_v55, 1  ;;  %v3282_v44 = vrot.slane %v3274_v39, 2 }
 0x964   : > { %v3210_v38 = vsel %vm1147_vm5, %v3208_v56, %v10089_v1  ;;  %v3284_v56 = vsel %vm1262_vm6, %v3282_v44, %v10090_v63  ;;  %v3354_v1 = vmul.f32 %v7459_v8, %v7783_v22  ;;  %v3394_v63 = vmul.f32 %v7531_v58, %v7783_v22 }
 0x966   : > { %3180 = vrot.lane.b32.xlu0 %v9943_v19, %s10060_s4  ;;  %3174 = vrot.lane.b32.xlu1 %v3170_v59, %s10060_s4  ;;  %v3314_v59 = vmul.f32 %v7529_v46, %v7783_v22  ;;  %v9947_v19 = vrot.slane %v7797_v40, 2 }
 0x968   : > { %v3322_v39 = vrot.slane %v3314_v59, 2  ;;  %v3362_v59 = vrot.slane %v3354_v1, 2  ;;  %v3402_v1 = vrot.slane %v3394_v63, 2 }
 0x96a   : > { %3214 = vrot.lane.b32.xlu0 %v3210_v38, %s10068_s2  ;;  %3220 = vrot.lane.b32.xlu1 %v9946_v43, %s10068_s2  ;;  %v9950_v38 = vrot.slane %v7811_v28, 2  ;;  %v7825_v43 = vmul.f32 %v7459_v8, %v7786_v52  ;;  %v3324_v44 = vsel %vm1262_vm6, %v3322_v39, %v10091_v49  ;;  %v3364_v39 = vsel %vm1262_vm6, %v3362_v59, %v10093_v7  ;;  %v7846_v49 = vld [vmem:[#allocation2 + $0x18] sm:$0x1f] }
 0x96b   : > { %v7857_v42 = vmul.f32 %v7469_v23, %v7846_v49  ;;  %v3404_v59 = vsel %vm1262_vm6, %v3402_v1, %v10094_v11  ;;  %v3508_v7 = vmul.f32 %v7533_v34, %v7841_v30  ;;  %v3548_v11 = vmul.f32 %v7479_v12, %v7841_v30 }
 0x96e   : > { %3288 = vrot.lane.b32.xlu0 %v3284_v56, %s10065_s9  ;;  %3294 = vrot.lane.b32.xlu1 %v9947_v19, %s10065_s9  ;;  %v9953_v56 = vrot.slane %v7825_v43, 2  ;;  %v7839_v19 = vmul.f32 %v7531_v58, %v7786_v52 }
 0x972   : > { %3328 = vrot.lane.b32.xlu0 %v3324_v44, %s10066_s0  ;;  %3334 = vrot.lane.b32.xlu1 %v9950_v38, %s10066_s0  ;;  %v3468_v44 = vmul.f32 %v7469_v23, %v7841_v30  ;;  %v9954_v38 = vrot.slane %v7839_v19, 2 }
 0x974   : > { %v3476_v63 = vrot.slane %v3468_v44, 3  ;;  %v3516_v44 = vrot.slane %v3508_v7, 3  ;;  %v3556_v7 = vrot.slane %v3548_v11, 3 }
 0x976   : > { %3368 = vrot.lane.b32.xlu0 %v3364_v39, %s10060_s4  ;;  %3374 = vrot.lane.b32.xlu1 %v9953_v56, %s10060_s4  ;;  %v9955_v39 = vrot.slane %v7857_v42, 3  ;;  %v7871_v56 = vmul.f32 %v7533_v34, %v7846_v49  ;;  %v3478_v1 = vsel %vm1384_vm9, %v3476_v63, %v10095_v50  ;;  %v3518_v63 = vsel %vm1384_vm9, %v3516_v44, %v10096_v10  ;;  %v7906_v10 = vld [vmem:[#allocation2 + $0x18] sm:$0x3f] }
 0x977   : > { %v3588_v50 = vmul.f32 %v7535_v27, %v7841_v30  ;;  %v3558_v44 = vsel %vm1384_vm9, %v3556_v7, %v10098_v15  ;;  %10099 = vst [vmem:[#allocation30_spill] sm:$0xff] %v7906_v10  ;;  %v7917_v26 = vmul.f32 %v7489_v13, %v7906_v10  ;;  %v3702_v15 = vmul.f32 %v7537_v20, %v7901_v37 }
 0x979   : > { %v3596_v11 = vrot.slane %v3588_v50, 3 }
 0x97a   : > { %3414 = vrot.lane.b32.xlu0 %v9954_v38, %s10068_s2  ;;  %3408 = vrot.lane.b32.xlu1 %v3404_v59, %s10068_s2  ;;  %v9958_v59 = vrot.slane %v7871_v56, 3  ;;  %v7885_v38 = vmul.f32 %v7479_v12, %v7846_v49 }
 0x97b   : > { %v3598_v7 = vsel %vm1384_vm9, %v3596_v11, %v10100_v35  ;;  %v3081_v35 = vmul.f32 %v7453_v45, %v7933_v24  ;;  %v3121_v45 = vmul.f32 %v7525_v9, %v7933_v24 }
 0x97d   : > { %v3131_v9 = vrot.slane %v3121_v45, 1  ;;  %v7988_v45 = vmul.f32 %v7503_v4, %v7694_v61 }
 0x97e   : > { %3488 = vrot.lane.b32.xlu0 %v9955_v39, %s10065_s9  ;;  %3482 = vrot.lane.b32.xlu1 %v3478_v1, %s10065_s9  ;;  %v9961_v1 = vrot.slane %v7885_v38, 3  ;;  %v7899_v39 = vmul.f32 %v7535_v27, %v7846_v49 }
 0x982   : > { %3528 = vrot.lane.b32.xlu0 %v9958_v59, %s10066_s0  ;;  %3522 = vrot.lane.b32.xlu1 %v3518_v63, %s10066_s0  ;;  %v3662_v63 = vmul.f32 %v7489_v13, %v7901_v37  ;;  %v9964_v59 = vrot.slane %v7899_v39, 3 }
 0x984   : > { %v3670_v50 = vrot.slane %v3662_v63, 4  ;;  %v3710_v63 = vrot.slane %v3702_v15, 4  ;;  %v3091_v15 = vrot.slane %v3081_v35, 1 }
 0x986   : > { %3568 = vrot.lane.b32.xlu0 %v9961_v1, %s10060_s4  ;;  %3562 = vrot.lane.b32.xlu1 %v3558_v44, %s10060_s4  ;;  %v9967_v44 = vrot.slane %v7917_v26, 4  ;;  %v7931_v1 = vmul.f32 %v7537_v20, %v7906_v10  ;;  %v3672_v11 = vsel %vm2320_vm11, %v3670_v50, %v10101_v2  ;;  %v3712_v50 = vsel %vm2320_vm11, %v3710_v63, %v10102_v60 }
 0x987   : > { %v3093_v63 = vsel %vm1147_vm5, %v3091_v15, %v10103_v17  ;;  %v10104_v60 = vrot.slane %v7781_v55, 1  ;;  %v10105_v55 = vrot.slane %v7757_v29, 1  ;;  %v3355_v29 = vmul.f32 %v7459_v8, %v7947_v6 }
 0x989   : > { %v3133_v15 = vsel %vm1147_vm5, %v3131_v9, %v10105_v55  ;;  %v10108_v9 = vrot.slane %v7811_v28, 2  ;;  %v3365_v8 = vrot.slane %v3355_v29, 2  ;;  %v3395_v55 = vmul.f32 %v7531_v58, %v7947_v6 }
 0x98a   : > { %3602 = vrot.lane.b32.xlu0 %v3598_v7, %s10068_s2  ;;  %3608 = vrot.lane.b32.xlu1 %v9964_v59, %s10068_s2  ;;  %v3201_v7 = vmul.f32 %v7527_v48, %v7933_v24  ;;  %v9968_v59 = vrot.slane %v7931_v1, 4  ;;  %v3275_v48 = vmul.f32 %v7457_v5, %v7947_v6  ;;  %v3161_v5 = vmul.f32 %v7455_v57, %v7933_v24 }
 0x98b   : > { %v3745_v28 = vmul.f32 %v7503_v4, %v7906_v10  ;;  %v3405_v58 = vrot.slane %v3395_v55, 2 }
 0x98c   : > { %v3211_v2 = vrot.slane %v3201_v7, 1  ;;  %v3285_v35 = vrot.slane %v3275_v48, 2  ;;  %v3315_v7 = vmul.f32 %v7529_v46, %v7947_v6  ;;  %v3171_v57 = vrot.slane %v3161_v5, 1 }
 0x98d   : > { %v3742_v48 = vmul.f32 %v7503_v4, %v7901_v37  ;;  %v3751_v5 = vrot.slane %v7988_v45, 4  ;;  %v10110_v45 = vrot.slane %v7825_v43, 2  ;;  %v10112_v43 = vrot.slane %v7839_v19, 2 }
 0x98e   : > { %3676 = vrot.lane.b32.xlu0 %v3672_v11, %s10065_s9  ;;  %3682 = vrot.lane.b32.xlu1 %v9967_v44, %s10065_s9  ;;  %v3325_v46 = vrot.slane %v3315_v7, 2  ;;  %v10113_v19 = vrot.slane %v7857_v42, 3 }
 0x98f   : > { %v3750_v7 = vrot.slane %v3742_v48, 4 }
 0x992   : > { %3716 = vrot.lane.b32.xlu0 %v3712_v50, %s10066_s0  ;;  %3722 = vrot.lane.b32.xlu1 %v9968_v59, %s10066_s0  ;;  %v3213_v50 = vsel %vm1147_vm5, %v3211_v2, %v10104_v60  ;;  %v10106_v2 = vrot.slane %v7797_v40, 2  ;;  %v10107_v60 = vrot.slane %v7769_v3, 1 }
 0x994   : > { %v7960_v11 = vpop.permute.xlu0 %2918  ;;  %v7962_v44 = vpop.permute.xlu1 %3020  ;;  %v3287_v17 = vsel %vm1262_vm6, %v3285_v35, %v10106_v2  ;;  %v3327_v35 = vsel %vm1262_vm6, %v3325_v46, %v10108_v9  ;;  %v8017_v2 = vld [vmem:[#allocation2 + $0x8] sm:$0xe0] }
 0x995   : > { %10109 = vst [vmem:[#allocation31_spill] sm:$0xff] %v8017_v2  ;;  %v3469_v46 = vmul.f32 %v7469_v23, %v8017_v2  ;;  %v3589_v48 = vmul.f32 %v7535_v27, %v8017_v2  ;;  %v8033_v9 = vld [vmem:[#allocation2 + $0x8] sm:$0xc0]  ;;  %v3509_v27 = vmul.f32 %v7533_v34, %v8017_v2 }
 0x996   : > { %3096 = vrot.lane.b32.xlu0 %v3093_v63, %s10065_s9  ;;  %3216 = vrot.lane.b32.xlu1 %v3213_v50, %s10068_s2  ;;  %v3173_v50 = vsel %vm1147_vm5, %v3171_v57, %v10107_v60  ;;  %v3367_v57 = vsel %vm1262_vm6, %v3365_v8, %v10110_v45  ;;  %10111 = vst [vmem:[#allocation32_spill] sm:$0xff] %v8033_v9  ;;  %v10114_v45 = vrot.slane %v7899_v39, 3  ;;  %v10115_v39 = vrot.slane %v7871_v56, 3 }
 0x997   : > { %v3599_v23 = vrot.slane %v3589_v48, 3  ;;  %v3663_v8 = vmul.f32 %v7489_v13, %v8033_v9  ;;  %v3519_v34 = vrot.slane %v3509_v27, 3  ;;  %v3549_v13 = vmul.f32 %v7479_v12, %v8017_v2 }
 0x998   : > { %v7976_v59 = vpop.permute.xlu0 %2952  ;;  %v7978_v47 = vpop.permute.xlu1 %2920  ;;  %v10117_v56 = vrot.slane %v7885_v38, 3  ;;  %v3782_v38 = vmul.f32 %v7539_v14, %v7901_v37 }
 0x999   : > { %v3559_v12 = vrot.slane %v3549_v13, 3 }
 0x99a   : > { %3136 = vrot.lane.b32.xlu0 %v3133_v15, %s10066_s0  ;;  %3290 = vrot.lane.b32.xlu1 %v3287_v17, %s10065_s9  ;;  %v3752_v17 = vsel %vm2320_vm11, %v3750_v7, %v3751_v5  ;;  %v3479_v7 = vrot.slane %v3469_v46, 3  ;;  %v3703_v46 = vmul.f32 %v7537_v20, %v8033_v9  ;;  %v3743_v20 = vmul.f32 %v7503_v4, %v8033_v9 }
 0x99c   : > { %v7996_v63 = vpop.permute.xlu0 %2986  ;;  %v7998_v40 = vpop.permute.xlu1 %2954  ;;  %v3753_v4 = vrot.slane %v3743_v20, 4 }
 0x99e   : > { %3176 = vrot.lane.b32.xlu0 %v3173_v50, %s10060_s4  ;;  %3330 = vrot.lane.b32.xlu1 %v3327_v35, %s10066_s0  ;;  %v3754_v50 = vrot.slane %v3745_v28, 4  ;;  %v3407_v35 = vsel %vm1262_vm6, %v3405_v58, %v10112_v43  ;;  %v3673_v58 = vrot.slane %v3663_v8, 4  ;;  %v3521_v43 = vsel %vm1384_vm9, %v3519_v34, %v10115_v39 }
 0x99f   : > { %v3783_v34 = vmul.f32 %v7539_v14, %v8033_v9 }
 0x9a0   : > { %v8011_v15 = vpop.permute.xlu0 %2922  ;;  %v8013_v3 = vpop.permute.xlu1 %2988  ;;  %v3755_v13 = vsel %vm2320_vm11, %v3753_v4, %v3754_v50  ;;  %v3825_v4 = vld [vmem:[%s9885_s18 + $0x58] sm:$0xff] }
 0x9a2   : > { %3756 = vrot.lane.b32.xlu0 %v3752_v17, %s10060_s4  ;;  %3370 = vrot.lane.b32.xlu1 %v3367_v57, %s10060_s4  ;;  %v3481_v17 = vsel %vm1384_vm9, %v3479_v7, %v10113_v19  ;;  %v3601_v57 = vsel %vm1384_vm9, %v3599_v23, %v10114_v45  ;;  %v3713_v23 = vrot.slane %v3703_v46, 4  ;;  %v3561_v19 = vsel %vm1384_vm9, %v3559_v12, %v10117_v56 }
 0x9a3   : > { %v3784_v45 = vmul.f32 %v7539_v14, %v7694_v61 }
 0x9a4   : > { %v8029_v29 = vpop.permute.xlu0 %2956  ;;  %v8031_v60 = vpop.permute.xlu1 %3024 }
 0x9a5   : > { %v3791_v46 = vrot.slane %v3784_v45, 4 }
 0x9a6   : > { %3410 = vrot.lane.b32.xlu0 %v3407_v35, %s10068_s2  ;;  %3762 = vrot.lane.b32.xlu1 %v3754_v50, %s10060_s4  ;;  %v10116_v35 = vrot.slane %v7917_v26, 4  ;;  %v10118_v26 = vrot.slane %v7931_v1, 4  ;;  %v3829_v50 = vld [vmem:[%s9885_s18 + $0x78] sm:$0xff] }
 0x9a7   : > { %6046 = vmatpush3.msra.mxu1 %v3829_v50 }
 0x9a8   : > { %v8044_v55 = vpop.permute.xlu0 %2990  ;;  %v8046_v28 = vpop.permute.xlu1 %2924  ;;  %v3675_v7 = vsel %vm2320_vm11, %v3673_v58, %v10116_v35  ;;  %v3793_v35 = vrot.slane %v3783_v34, 4 }
 0x9aa   : > { %3484 = vrot.lane.b32.xlu0 %v3481_v17, %s10065_s9  ;;  %3604 = vrot.lane.b32.xlu1 %v3601_v57, %s10068_s2  ;;  %v3715_v17 = vsel %vm2320_vm11, %v3713_v23, %v10118_v26  ;;  %v3785_v57 = vmul.f32 %v7539_v14, %v7906_v10  ;;  %v3827_v26 = vld [vmem:[%s9885_s18 + $0x68] sm:$0xff] }
 0x9ac   : > { %v8060_v48 = vpop.permute.xlu0 %3022  ;;  %v8062_v42 = vpop.permute.xlu1 %2958  ;;  %v3794_v39 = vrot.slane %v3785_v57, 4 }
 0x9ae   : > { %3524 = vrot.lane.b32.xlu0 %v3521_v43, %s10066_s0  ;;  %3678 = vrot.lane.b32.xlu1 %v3675_v7, %s10065_s9  ;;  %v3790_v43 = vrot.slane %v3782_v38, 4  ;;  %v3795_v23 = vsel %vm2320_vm11, %v3793_v35, %v3794_v39  ;;  %v3824_v38 = vld [vmem:[%s9885_s18 + $0x50] sm:$0xff] }
 0x9b0   : > { %v8074_v27 = vpop.permute.xlu0 %3026  ;;  %v8076_v8 = vpop.permute.xlu1 %2992  ;;  %v3792_v14 = vsel %vm2320_vm11, %v3790_v43, %v3791_v46 }
 0x9b2   : > { %3564 = vrot.lane.b32.xlu0 %v3561_v19, %s10060_s4  ;;  %3718 = vrot.lane.b32.xlu1 %v3715_v17, %s10066_s0  ;;  %v10119_v19 = vmov 0.0   ;;  %v3826_v17 = vld [vmem:[%s9885_s18 + $0x60] sm:$0xff] }
 0x9b3   : > { %6047 = vmatprep.subr.mxu1 %v10119_v19 }
 0x9b4   : > { %v8094_v1 = vpop.permute.xlu0 %3218  ;;  %v8096_v58 = vpop.permute.xlu1 %3098 }
 0x9b6   : > { %3760 = vrot.lane.b32.xlu0 %v3751_v5, %s10060_s4  ;;  %3758 = vrot.lane.b32.xlu1 %v3755_v13, %s10060_s4  ;;  %v3828_v5 = vld [vmem:[%s9885_s18 + $0x70] sm:$0xff] }
 0x9b7   : > { %6048 = vmatpush3.msra.mxu1 %v3828_v5 }
 0x9b8   : > { %v8101_v7 = vpop.permute.xlu0 %3292  ;;  %v8103_v12 = vpop.permute.xlu1 %3138  ;;  %6049 = vmatprep.subr.mxu1 %v10119_v19 }
 0x9b9   : > { %6050 = vmatpush3.msra.mxu1 %v3827_v26  ;;  %v3819_v26 = vld [vmem:[%s9885_s18 + $0x28] sm:$0xff] }
 0x9ba   : > { %3796 = vrot.lane.b32.xlu0 %v3792_v14, %s10068_s2  ;;  %3798 = vrot.lane.b32.xlu1 %v3795_v23, %s10068_s2  ;;  %v3821_v14 = vld [vmem:[%s9885_s18 + $0x38] sm:$0xff]  ;;  %v3820_v23 = vld [vmem:[%s9885_s18 + $0x30] sm:$0xff] }
 0x9bb   : > { %6051 = vmatprep.subr.mxu1 %v10119_v19 }
 0x9bc   : > { %v8115_v20 = vpop.permute.xlu0 %3332  ;;  %v8117_v56 = vpop.permute.xlu1 %3178  ;;  %6052 = vmatpush3.msra.mxu1 %v3826_v17  ;;  %v3818_v17 = vld [vmem:[%s9885_s18 + $0x20] sm:$0xff] }
 0x9bd   : > { %6053 = vmatprep.subr.mxu1 %v10119_v19 }
 0x9be   : > { %3800 = vrot.lane.b32.xlu0 %v3791_v46, %s10068_s2  ;;  %3802 = vrot.lane.b32.xlu1 %v3794_v39, %s10068_s2  ;;  %v3823_v46 = vld [vmem:[%s9885_s18 + $0x48] sm:$0xff]  ;;  %v3822_v39 = vld [vmem:[%s9885_s18 + $0x40] sm:$0xff] }
 0x9bf   : > { %6054 = vmatpush3.msra.mxu1 %v3825_v4 }
 0x9c0   : > { %v8129_v45 = vpop.permute.xlu0 %3372  ;;  %v8131_v57 = vpop.permute.xlu1 %3412  ;;  %6055 = vmatprep.subr.mxu1 %v10119_v19 }
 0x9c1   : > { %6056 = vmatpush3.msra.mxu1 %v3824_v38 }
 0x9c2   : > { %6057 = vmatprep.subr.mxu1 %v10119_v19 }
 0x9c3   : > { %6058 = vmatpush3.msra.mxu1 %v3823_v46  ;;  %v3817_v46 = vld [vmem:[%s9885_s18 + $0x18] sm:$0xff] }
 0x9c4   : > { %v8141_v34 = vpop.permute.xlu0 %3606  ;;  %v8143_v13 = vpop.permute.xlu1 %3486  ;;  %6059 = vmatprep.subr.mxu1 %v10119_v19 }
 0x9c5   : > { %10120 = vst [vmem:[#allocation33_spill] sm:$0xff] %v8141_v34  ;;  %10121 = vst [vmem:[#allocation34_spill] sm:$0xff] %v8143_v13  ;;  %6060 = vmatpush3.msra.mxu1 %v3822_v39  ;;  %v3816_v39 = vld [vmem:[%s9885_s18 + $0x10] sm:$0xff]  ;;  %v2927_v13 = vsel %vm1081_vm7, %v8011_v15, %v8046_v28  ;;  %v2995_v15 = vsel %vm1395_vm10, %v8044_v55, %v8076_v8 }
 0x9c6   : > { %6061 = vmatprep.subr.mxu1 %v10119_v19 }
 0x9c7   : > { %6062 = vmatpush3.msra.mxu1 %v3821_v14 }
 0x9c8   : > { %v8153_v43 = vpop.permute.xlu0 %3680  ;;  %v8155_v35 = vpop.permute.xlu1 %3526  ;;  %6063 = vmatprep.subr.mxu1 %v10119_v19 }
 0x9c9   : > { %10122 = vst [vmem:[#allocation35_spill] sm:$0xff] %v8153_v43  ;;  %10123 = vst [vmem:[#allocation36_spill] sm:$0xff] %v8155_v35  ;;  %6064 = vmatpush3.msra.mxu1 %v3820_v23  ;;  %v2897_v35 = vmul.f32 %v7541_v33, %v7615_v0 }
 0x9ca   : > { %6065 = vmatprep.subr.mxu1 %v10119_v19 }
 0x9cb   : > { %6066 = vmatpush3.msra.mxu1 %v3819_v26 }
 0x9cc   : > { %v8165_v50 = vpop.permute.xlu0 %3720  ;;  %v8167_v5 = vpop.permute.xlu1 %3566  ;;  %6067 = vmatprep.subr.mxu1 %v10119_v19 }
 0x9cd   : > { %10124 = vst [vmem:[#allocation37_spill] sm:$0xff] %v8165_v50  ;;  %10125 = vst [vmem:[#allocation38_spill] sm:$0xff] %v8167_v5  ;;  %6068 = vmatpush3.msra.mxu1 %v3818_v17 }
 0x9ce   : > { %6069 = vmatprep.subr.mxu1 %v10119_v19 }
 0x9cf   : > { %6070 = vmatpush3.msra.mxu1 %v3817_v46 }
 0x9d0   : > { %v8177_v4 = vpop.permute.xlu0 %3100  ;;  %v8179_v38 = vpop.permute.xlu1 %3094  ;;  %6071 = vmatprep.subr.mxu1 %v10119_v19 }
 0x9d1   : > { %6072 = vmatpush3.msra.mxu1 %v3816_v39 }
 0x9d2   : > { %6073 = vmatprep.subr.mxu1 %v10119_v19 }
 0x9d4   : > { %v3141_v14 = vpop.permute.xlu0 %3140  ;;  %v8189_v23 = vpop.permute.xlu1 %3134 }
 0x9d8   : > { %v8193_v26 = vpop.permute.xlu0 %3180  ;;  %v8195_v50 = vpop.permute.xlu1 %3174 }
 0x9dc   : > { %v8197_v17 = vpop.permute.xlu0 %3214  ;;  %v8199_v43 = vpop.permute.xlu1 %3220 }
 0x9e0   : > { %v8201_v37 = vpop.permute.xlu0 %3288  ;;  %v8203_v9 = vpop.permute.xlu1 %3294 }
 0x9e1   : > { %10126 = vst [vmem:[#allocation39_spill] sm:$0xff] %v8201_v37 }
 0x9e4   : > { %v8205_v34 = vpop.permute.xlu0 %3328  ;;  %v8207_v46 = vpop.permute.xlu1 %3334 }
 0x9e5   : > { %10127 = vst [vmem:[#allocation40_spill] sm:$0xff] %v8205_v34  ;;  %v2935_v34 = vadd.f32 %v8046_v28, %v2897_v35 }
 0x9e7   : > { %v2969_v0 = vadd.f32 %v8062_v42, %v2935_v34 }
 0x9e8   : > { %v8209_v10 = vpop.permute.xlu0 %3368  ;;  %v8211_v39 = vpop.permute.xlu1 %3374 }
 0x9e9   : > { %10128 = vst [vmem:[#allocation41_spill] sm:$0xff] %v8209_v10  ;;  %v2896_v10 = vmul.f32 %v7541_v33, %v7601_v21  ;;  %v3003_v21 = vadd.f32 %v8076_v8, %v2969_v0 }
 0x9eb   : > { %v2934_v2 = vadd.f32 %v2927_v13, %v2896_v10  ;;  %v3053_v10 = vmul.f32 %v7543_v54, %v7730_v25  ;;  %v3037_v55 = vadd.f32 %v8074_v27, %v3003_v21  ;;  %v2895_v13 = vmul.f32 %v7541_v33, %v7587_v16 }
 0x9ec   : > { %v8213_v19 = vpop.permute.xlu0 %3414  ;;  %v8215_v41 = vpop.permute.xlu1 %3408  ;;  %v2926_v25 = vsel %vm1081_vm7, %v7960_v11, %v7978_v47  ;;  %v2960_v16 = vsel %vm1116_vm8, %v7976_v59, %v7998_v40  ;;  %v3183_v59 = vsel %vm1395_vm10, %v8117_v56, %v8193_v26 }
 0x9ed   : > { %10129 = vst [vmem:[#allocation42_spill] sm:$0xff] %v8215_v41  ;;  %v2961_v41 = vsel %vm1116_vm8, %v8029_v29, %v8062_v42  ;;  %v3052_v29 = vmul.f32 %v7543_v54, %v7629_v62  ;;  %v3029_v42 = vsel %vm2175_vm12, %v8031_v60, %v8074_v27  ;;  %v3062_v8 = vrot.slane %v3053_v10, 1 }
 0x9ee   : > { %v2968_v30 = vadd.f32 %v2961_v41, %v2934_v2  ;;  %v3103_v60 = vsel %vm1081_vm7, %v8096_v58, %v8177_v4  ;;  %v2933_v21 = vadd.f32 %v7978_v47, %v2895_v13  ;;  %v3143_v10 = vsel %vm1116_vm8, %v8103_v12, %v3141_v14 }
 0x9ef   : > { %v3059_v34 = vrot.slane %v3052_v29, 1  ;;  %v3071_v62 = vadd.f32 %v3062_v8, %v3037_v55  ;;  %v2994_v47 = vsel %vm1395_vm10, %v7996_v63, %v8013_v3  ;;  %v3028_v63 = vsel %vm2175_vm12, %v7962_v44, %v8060_v48 }
 0x9f0   : > { %v8217_v61 = vpop.permute.xlu0 %3488  ;;  %v8219_v5 = vpop.permute.xlu1 %3482  ;;  %v3002_v37 = vadd.f32 %v2995_v15, %v2968_v30 }
 0x9f1   : > { %10130 = vst [vmem:[#allocation43_spill] sm:$0xff] %v8217_v61  ;;  %10131 = vst [vmem:[#allocation44_spill] sm:$0xff] %v8219_v5  ;;  %v3111_v11 = vadd.f32 %v8177_v4, %v3071_v62 }
 0x9f2   : > { %v3036_v41 = vadd.f32 %v3029_v42, %v3002_v37  ;;  %v2894_v37 = vmul.f32 %v7541_v33, %v7581_v18  ;;  %v8280_v33 = vmul.f32 %v7545_v36, %v7786_v52  ;;  %v2967_v18 = vadd.f32 %v7998_v40, %v2933_v21 }
 0x9f3   : > { %v3151_v42 = vadd.f32 %v3141_v14, %v3111_v11  ;;  %v3050_v52 = vmul.f32 %v7543_v54, %v7728_v53  ;;  %v3051_v40 = vmul.f32 %v7543_v54, %v7933_v24  ;;  %v3223_v14 = vsel %vm2175_vm12, %v8094_v1, %v8199_v43 }
 0x9f4   : > { %v8232_v61 = vpop.permute.xlu0 %3528  ;;  %v8234_v5 = vpop.permute.xlu1 %3522  ;;  %v3070_v27 = vadd.f32 %v3059_v34, %v3036_v41  ;;  %v2932_v58 = vadd.f32 %v2926_v25, %v2894_v37  ;;  %v3001_v13 = vadd.f32 %v8013_v3, %v2967_v18  ;;  %v3246_v53 = vmul.f32 %v7545_v36, %v7643_v32 }
 0x9f5   : > { %v3191_v56 = vadd.f32 %v8193_v26, %v3151_v42  ;;  %v3061_v37 = vrot.slane %v3051_v40, 1  ;;  %v3256_v26 = vrot.slane %v8280_v33, 2  ;;  %v3058_v21 = vrot.slane %v3050_v52, 1 }
 0x9f6   : > { %v3110_v29 = vadd.f32 %v3103_v60, %v3070_v27  ;;  %v2966_v4 = vadd.f32 %v2960_v16, %v2932_v58  ;;  %v3035_v60 = vadd.f32 %v8060_v48, %v3001_v13  ;;  %v3253_v16 = vrot.slane %v3246_v53, 2 }
 0x9f7   : > { %v3231_v24 = vadd.f32 %v8199_v43, %v3191_v56  ;;  %v3063_v1 = vsel %vm1147_vm5, %v3061_v37, %v3062_v8 }
 0x9f8   : > { %v8241_v28 = vpop.permute.xlu0 %3568  ;;  %v8243_v35 = vpop.permute.xlu1 %3562  ;;  %v3150_v55 = vadd.f32 %v3143_v10, %v3110_v29  ;;  %v3000_v25 = vadd.f32 %v2994_v47, %v2966_v4  ;;  %v3060_v10 = vsel %vm1147_vm5, %v3058_v21, %v3059_v34  ;;  %v3069_v58 = vadd.f32 %v3063_v1, %v3035_v60 }
 0x9f9   : > { %v3265_v11 = vadd.f32 %v3256_v26, %v3231_v24  ;;  %v3297_v47 = vsel %vm1081_vm7, %v8101_v7, %v8203_v9  ;;  %v3244_v34 = vmul.f32 %v7545_v36, %v7783_v22  ;;  %v3337_v4 = vsel %vm1116_vm8, %v8115_v20, %v8207_v46 }
 0x9fa   : > { %v3190_v62 = vadd.f32 %v3183_v59, %v3150_v55  ;;  %v3034_v54 = vadd.f32 %v3028_v63, %v3000_v25  ;;  %v3245_v59 = vmul.f32 %v7545_v36, %v7947_v6  ;;  %v3441_v7 = vmul.f32 %v7547_v51, %v7846_v49 }
 0x9fb   : > { %v3377_v6 = vsel %vm1395_vm10, %v8129_v45, %v8211_v39  ;;  %v3252_v56 = vrot.slane %v3244_v34, 2  ;;  %v3417_v49 = vsel %vm2175_vm12, %v8131_v57, %v8213_v19  ;;  %v3440_v45 = vmul.f32 %v7547_v51, %v7678_v31 }
 0x9fc   : > { %v8253_v2 = vpop.permute.xlu0 %3602  ;;  %v8255_v30 = vpop.permute.xlu1 %3608  ;;  %v3230_v3 = vadd.f32 %v3223_v14, %v3190_v62  ;;  %v3068_v43 = vadd.f32 %v3060_v10, %v3034_v54  ;;  %v3255_v14 = vrot.slane %v3245_v59, 2  ;;  %v3450_v21 = vrot.slane %v3441_v7, 3  ;;  %v10138_v59 = vld [vmem:[#allocation41_spill] sm:$0xff] }
 0x9fe   : > { %v3264_v48 = vadd.f32 %v3253_v16, %v3230_v3  ;;  %v3257_v60 = vsel %vm1262_vm6, %v3255_v14, %v3256_v26  ;;  %v3254_v3 = vsel %vm1262_vm6, %v3252_v56, %v3253_v16  ;;  %v10133_v26 = vld [vmem:[#allocation28_spill] sm:$0xff] }
 0xa00   : > { %v8267_v0 = vpop.permute.xlu0 %3676  ;;  %v8269_v15 = vpop.permute.xlu1 %3682  ;;  %v3304_v52 = vadd.f32 %v3297_v47, %v3264_v48  ;;  %v10134_v48 = vld [vmem:[#allocation31_spill] sm:$0xff] }
 0xa04   : > { %v8289_v12 = vpop.permute.xlu0 %3716  ;;  %v8291_v41 = vpop.permute.xlu1 %3722 }
 0xa08   : > { %v3097_v27 = vpop.permute.xlu0 %3096  ;;  %v3217_v44 = vpop.permute.xlu1 %3216 }
 0xa09   : > { %v3102_v32 = vsel %vm1081_vm7, %v8179_v38, %v3097_v27  ;;  %v3109_v33 = vadd.f32 %v3097_v27, %v3069_v58  ;;  %v3305_v38 = vadd.f32 %v8203_v9, %v3265_v11  ;;  %v3344_v9 = vadd.f32 %v3337_v4, %v3304_v52 }
 0xa0a   : > { %v3108_v8 = vadd.f32 %v3102_v32, %v3068_v43  ;;  %v3447_v11 = vrot.slane %v3440_v45, 3  ;;  %v3438_v32 = vmul.f32 %v7547_v51, %v10133_v26  ;;  %v10135_v43 = vld [vmem:[#allocation40_spill] sm:$0xff]  ;;  %v10142_v45 = vld [vmem:[#allocation27_spill] sm:$0xff] }
 0xa0b   : > { %v3345_v63 = vadd.f32 %v8207_v46, %v3305_v38  ;;  %v3222_v46 = vsel %vm2175_vm12, %v8197_v17, %v3217_v44  ;;  %v3384_v53 = vadd.f32 %v3377_v6, %v3344_v9  ;;  %v10132_v17 = vld [vmem:[#allocation39_spill] sm:$0xff]  ;;  %v10140_v6 = vld [vmem:[#allocation42_spill] sm:$0xff] }
 0xa0c   : > { %v3137_v29 = vpop.permute.xlu0 %3136  ;;  %v3291_v18 = vpop.permute.xlu1 %3290  ;;  %v3446_v52 = vrot.slane %v3438_v32, 3 }
 0xa0d   : > { %v3142_v42 = vsel %vm1116_vm8, %v8189_v23, %v3137_v29  ;;  %v3149_v55 = vadd.f32 %v3137_v29, %v3109_v33  ;;  %v3385_v25 = vadd.f32 %v8211_v39, %v3345_v63  ;;  %v3424_v57 = vadd.f32 %v3417_v49, %v3384_v53  ;;  %v10139_v63 = vld [vmem:[#allocation36_spill] sm:$0xff] }
 0xa0e   : > { %v3148_v40 = vadd.f32 %v3142_v42, %v3108_v8  ;;  %v10136_v8 = vld [vmem:[#allocation43_spill] sm:$0xff] }
 0xa0f   : > { %v3425_v39 = vadd.f32 %v8213_v19, %v3385_v25  ;;  %v3439_v19 = vmul.f32 %v7547_v51, %v10134_v48  ;;  %v3458_v33 = vadd.f32 %v3447_v11, %v3424_v57  ;;  %v10141_v25 = vld [vmem:[#allocation38_spill] sm:$0xff] }
 0xa10   : > { %v3177_v23 = vpop.permute.xlu0 %3176  ;;  %v3331_v13 = vpop.permute.xlu1 %3330  ;;  %v3571_v49 = vsel %vm1395_vm10, %v10141_v25, %v8241_v28 }
 0xa11   : > { %v3182_v36 = vsel %vm1395_vm10, %v8195_v50, %v3177_v23  ;;  %v3189_v22 = vadd.f32 %v3177_v23, %v3149_v55  ;;  %v3459_v16 = vadd.f32 %v3450_v21, %v3425_v39  ;;  %v3336_v29 = vsel %vm1116_vm8, %v10135_v43, %v3331_v13 }
 0xa12   : > { %v3188_v20 = vadd.f32 %v3182_v36, %v3148_v40  ;;  %v3449_v7 = vrot.slane %v3439_v19, 3 }
 0xa13   : > { %v3229_v62 = vadd.f32 %v3217_v44, %v3189_v22  ;;  %v3296_v44 = vsel %vm1081_vm7, %v10132_v17, %v3291_v18  ;;  %v3499_v23 = vadd.f32 %v10136_v8, %v3459_v16  ;;  %v10146_v17 = vld [vmem:[#allocation44_spill] sm:$0xff] }
 0xa14   : > { %v3228_v50 = vadd.f32 %v3222_v46, %v3188_v20  ;;  %v8344_v24 = vpop.permute.xlu0 %3756  ;;  %v3371_v54 = vpop.permute.xlu1 %3370  ;;  %v3451_v56 = vsel %vm1384_vm9, %v3449_v7, %v3450_v21  ;;  %v3448_v46 = vsel %vm1384_vm9, %v3446_v52, %v3447_v11 }
 0xa15   : > { %v3263_v37 = vadd.f32 %v3257_v60, %v3229_v62  ;;  %v3376_v38 = vsel %vm1395_vm10, %v10138_v59, %v3371_v54  ;;  %v3539_v14 = vadd.f32 %v8232_v61, %v3499_v23 }
 0xa16   : > { %v3262_v27 = vadd.f32 %v3254_v3, %v3228_v50  ;;  %v10143_v50 = vld [vmem:[#allocation14_spill] sm:$0xff] }
 0xa17   : > { %v3303_v1 = vadd.f32 %v3291_v18, %v3263_v37  ;;  %v10137_v18 = vld [vmem:[#allocation34_spill] sm:$0xff]  ;;  %v3634_v60 = vmul.f32 %v10143_v50, %v10142_v45 }
 0xa18   : > { %v3302_v31 = vadd.f32 %v3296_v44, %v3262_v27  ;;  %v3411_v10 = vpop.permute.xlu0 %3410  ;;  %v8350_v58 = vpop.permute.xlu1 %3762  ;;  %v3491_v34 = vsel %vm1081_vm7, %v10137_v18, %v10136_v8  ;;  %v3579_v27 = vadd.f32 %v8241_v28, %v3539_v14  ;;  %v10148_v28 = vld [vmem:[#allocation29_spill] sm:$0xff] }
 0xa19   : > { %v3343_v47 = vadd.f32 %v3331_v13, %v3303_v1  ;;  %v3531_v13 = vsel %vm1116_vm8, %v10139_v63, %v8232_v61  ;;  %v3416_v36 = vsel %vm2175_vm12, %v10140_v6, %v3411_v10  ;;  %v3498_v9 = vadd.f32 %v3491_v34, %v3458_v33  ;;  %v10145_v61 = vld [vmem:[#allocation33_spill] sm:$0xff] }
 0xa1a   : > { %v3342_v42 = vadd.f32 %v3336_v29, %v3302_v31  ;;  %v3611_v21 = vsel %vm2175_vm12, %v10145_v61, %v8255_v30  ;;  %v3619_v32 = vadd.f32 %v8255_v30, %v3579_v27  ;;  %v3632_v16 = vmul.f32 %v10143_v50, %v10148_v28 }
 0xa1b   : > { %v3383_v4 = vadd.f32 %v3371_v54, %v3343_v47  ;;  %v3538_v53 = vadd.f32 %v3531_v13, %v3498_v9  ;;  %v10144_v54 = vld [vmem:[#allocation30_spill] sm:$0xff]  ;;  %v3641_v8 = vrot.slane %v3634_v60, 4  ;;  %v10149_v13 = vld [vmem:[#allocation35_spill] sm:$0xff] }
 0xa1c   : > { %v3382_v55 = vadd.f32 %v3376_v38, %v3342_v42  ;;  %v3485_v40 = vpop.permute.xlu0 %3484  ;;  %v3605_v51 = vpop.permute.xlu1 %3604  ;;  %v3635_v39 = vmul.f32 %v10143_v50, %v10144_v54  ;;  %v3685_v6 = vsel %vm1081_vm7, %v10149_v13, %v8269_v15 }
 0xa1d   : > { %v3423_v22 = vadd.f32 %v3411_v10, %v3383_v4  ;;  %v3490_v44 = vsel %vm1081_vm7, %v10146_v17, %v3485_v40  ;;  %v3578_v11 = vadd.f32 %v3571_v49, %v3538_v53  ;;  %v10147_v10 = vld [vmem:[#allocation32_spill] sm:$0xff] }
 0xa1e   : > { %v3422_v20 = vadd.f32 %v3416_v36, %v3382_v55  ;;  %v3633_v26 = vmul.f32 %v10143_v50, %v10147_v10  ;;  %v3644_v29 = vrot.slane %v3635_v39, 4  ;;  %v3640_v55 = vrot.slane %v3632_v16, 4  ;;  %v10152_v17 = vld [vmem:[#allocation4_spill] sm:$0xff] }
 0xa1f   : > { %v3457_v62 = vadd.f32 %v3451_v56, %v3423_v22  ;;  %v3618_v43 = vadd.f32 %v3611_v21, %v3578_v11  ;;  %v10151_v39 = vmov 0.0  }
 0xa20   : > { %v3456_v3 = vadd.f32 %v3448_v46, %v3422_v20  ;;  %v3525_v37 = vpop.permute.xlu0 %3524  ;;  %v3679_v57 = vpop.permute.xlu1 %3678  ;;  %v3643_v38 = vrot.slane %v3633_v26, 4  ;;  %v3653_v30 = vadd.f32 %v3644_v29, %v3619_v32  ;;  %v10153_v26 = vld [vmem:[#allocation5_spill] sm:$0xff] }
 0xa21   : > { %v3497_v1 = vadd.f32 %v3485_v40, %v3457_v62  ;;  %v3530_v48 = vsel %vm1116_vm8, %v8234_v5, %v3525_v37  ;;  %v3610_v5 = vsel %vm2175_vm12, %v8253_v2, %v3605_v51  ;;  %v3652_v52 = vadd.f32 %v3641_v8, %v3618_v43  ;;  %v10150_v2 = vld [vmem:[#allocation37_spill] sm:$0xff] }
 0xa22   : > { %v3496_v31 = vadd.f32 %v3490_v44, %v3456_v3  ;;  %v3645_v40 = vsel %vm2320_vm11, %v3643_v38, %v3644_v29  ;;  %v3693_v9 = vadd.f32 %v8269_v15, %v3653_v30  ;;  %v3684_v20 = vsel %vm1081_vm7, %v8267_v0, %v3679_v57  ;;  %v3815_v62 = vld [vmem:[%s9885_s18 + $0x8] sm:$0xff]  ;;  %v3814_v15 = vld [vmem:[%s9885_s18] sm:$0xff]  ;;  %v10156_v38 = vld [vmem:[#allocation11_spill] sm:$0xff] }
 0xa23   : > { %v3537_v19 = vadd.f32 %v3525_v37, %v3497_v1  ;;  %v3692_v14 = vadd.f32 %v3685_v6, %v3652_v52  ;;  %6074 = vmatpush3.msra.mxu1 %v3815_v62 }
 0xa24   : > { %v3536_v47 = vadd.f32 %v3530_v48, %v3496_v31  ;;  %v3565_v33 = vpop.permute.xlu0 %3564  ;;  %v3719_v42 = vpop.permute.xlu1 %3718  ;;  %v3733_v53 = vadd.f32 %v8291_v41, %v3693_v9  ;;  %6075 = vmatprep.subr.mxu1 %v10151_v39 }
 0xa25   : > { %v3570_v18 = vsel %vm1395_vm10, %v8243_v35, %v3565_v33  ;;  %v3577_v34 = vadd.f32 %v3565_v33, %v3537_v19  ;;  %v3642_v35 = vsel %vm2320_vm11, %v3640_v55, %v3641_v8  ;;  %v3724_v45 = vsel %vm1116_vm8, %v8289_v12, %v3719_v42  ;;  %6076 = vmatpush3.msra.mxu1 %v3814_v15  ;;  %v8425_v12 = vld [vmem:[%s9887_s20] sm:$0xff]  ;;  %v3934_v8 = vld [vmem:[%s9887_s20 + $0x8] sm:$0xff] }
 0xa26   : > { %v3576_v59 = vadd.f32 %v3570_v18, %v3536_v47  ;;  %v3773_v3 = vadd.f32 %v8350_v58, %v3733_v53  ;;  %v3994_v44 = vrot.slane %v8425_v12, %v10152_v17  ;;  %6115 = vmatprep.subr.mxu1 %v10151_v39  ;;  %v4062_v32 = vrot.slane %v8425_v12, %v10153_v26  ;;  %v10154_v47 = vld [vmem:[#allocation6_spill] sm:$0xff]  ;;  %v10155_v18 = vld [vmem:[#allocation9_spill] sm:$0xff] }
 0xa27   : > { %v3617_v4 = vadd.f32 %v3605_v51, %v3577_v34  ;;  %v3725_v51 = vsel %vm1116_vm8, %v10150_v2, %v8291_v41  ;;  %v4170_v33 = vrot.slane %v8425_v12, %v10154_v47  ;;  %v3960_v34 = vrot.slane %v8425_v12, %v10155_v18  ;;  %v5743_v2 = vld [vmem:[%s9887_s20 + $0x18] ss:$0 sm:$0xff] }
 0xa28   : > { %v3616_v7 = vadd.f32 %v3610_v5, %v3576_v59  ;;  %v3761_v23 = vpop.permute.xlu0 %3760  ;;  %v3759_v63 = vpop.permute.xlu1 %3758  ;;  %v3732_v60 = vadd.f32 %v3725_v51, %v3692_v14  ;;  %3996 = vrot.lane.b32.xlu1 %v3994_v44, %s10068_s2  ;;  %v4250_v59 = vrot.slane %v3934_v8, %v10155_v18  ;;  %v4028_v30 = vrot.slane %v8425_v12, %v10156_v38 }
 0xa29   : > { %v3651_v36 = vadd.f32 %v3645_v40, %v3617_v4  ;;  %v3765_v0 = vsel %vm1395_vm10, %v3761_v23, %v8350_v58  ;;  %v3764_v37 = vsel %vm1395_vm10, %v8344_v24, %v3759_v63  ;;  %v4364_v5 = vrot.slane %v3934_v8, %v10153_v26  ;;  %v10157_v4 = vld [vmem:[#allocation8_spill] sm:$0xff]  ;;  %v10158_v40 = vld [vmem:[#allocation7_spill] sm:$0xff] }
 0xa2a   : > { %v3650_v22 = vadd.f32 %v3642_v35, %v3616_v7  ;;  %v3772_v41 = vadd.f32 %v3765_v0, %v3732_v60  ;;  %v4130_v55 = vrot.slane %v8425_v12, %v10157_v4  ;;  %v4444_v52 = vrot.slane %v3934_v8, %v10157_v4  ;;  %v3935_v7 = vld [vmem:[%s9887_s20 + $0x10] sm:$0xff]  ;;  %v5742_v0 = vld [vmem:[%s9886_s19] ss:$0 sm:$0xff] }
 0xa2b   : > { %v3691_v56 = vadd.f32 %v3679_v57, %v3651_v36  ;;  %v4210_v23 = vrot.slane %v3934_v8, %v10158_v40  ;;  %v4324_v13 = vrot.slane %v3934_v8, %v10156_v38  ;;  %v4638_v6 = vrot.slane %v3935_v7, %v10156_v38  ;;  %v10159_v35 = vld [vmem:[#allocation10_spill] sm:$0xff] }
 0xa2c   : > { %v3690_v25 = vadd.f32 %v3684_v20, %v3650_v22  ;;  %v3797_v49 = vpop.permute.xlu0 %3796  ;;  %v3799_v46 = vpop.permute.xlu1 %3798  ;;  %4064 = vrot.lane.b32.xlu1 %v4062_v32, %s10066_s0  ;;  %v4404_v36 = vrot.slane %v3934_v8, %v10159_v35  ;;  %v4752_v22 = vrot.slane %v3935_v7, %v10157_v4  ;;  %v4518_v9 = vrot.slane %v3935_v7, %v10158_v40 }
 0xa2d   : > { %v3731_v50 = vadd.f32 %v3719_v42, %v3691_v56  ;;  %v3804_v58 = vsel %vm2175_vm12, %v3797_v49, %v3799_v46  ;;  %v4598_v51 = vrot.slane %v3935_v7, %v10152_v17  ;;  %v4100_v20 = vrot.slane %v8425_v12, %v10159_v35 }
 0xa2e   : > { %v3730_v54 = vadd.f32 %v3724_v45, %v3690_v25  ;;  %v4712_v56 = vrot.slane %v3935_v7, %v10159_v35  ;;  %v4488_v62 = vrot.slane %v3934_v8, %v10154_v47  ;;  %v4792_v15 = vrot.slane %v3935_v7, %v10154_v47 }
 0xa2f   : > { %v3771_v57 = vadd.f32 %v3759_v63, %v3731_v50  ;;  %v4558_v63 = vrot.slane %v3935_v7, %v10155_v18  ;;  %v3944_v53 = vrot.slane %v8425_v12, %v10158_v40  ;;  %v4294_v45 = vrot.slane %v3934_v8, %v10152_v17 }
 0xa30   : > { %v3770_v27 = vadd.f32 %v3764_v37, %v3730_v54  ;;  %v3801_v61 = vpop.permute.xlu0 %3800  ;;  %v3803_v21 = vpop.permute.xlu1 %3802  ;;  %4172 = vrot.lane.b32.xlu1 %v4170_v33, %s10068_s2  ;;  %v4682_v50 = vrot.slane %v3935_v7, %v10153_v26 }
 0xa31   : > { %v3811_v1 = vadd.f32 %v3799_v46, %v3771_v57  ;;  %v3805_v24 = vsel %vm2175_vm12, %v3801_v61, %v3803_v21  ;;  %v3813_v11 = vadd.f32 %v3803_v21, %v3773_v3 }
 0xa32   : > { %v3810_v31 = vadd.f32 %v3804_v58, %v3770_v27  ;;  %v3812_v10 = vadd.f32 %v3805_v24, %v3772_v41 }
 0xa33   : > { %v3844_v48 = vrot.slane %v3811_v1, 2  ;;  %v3845_v19 = vrot.slane %v3813_v11, 2 }
 0xa34   : > { %v3841_v28 = vrot.slane %v3810_v31, 2  ;;  %v3842_v16 = vrot.slane %v3812_v10, 2  ;;  %4252 = vrot.lane.b32.xlu1 %v4250_v59, %s10066_s0 }
 0xa35   : > { %v3846_v43 = vsel %vm1262_vm6, %v3844_v48, %v3845_v19 }
 0xa36   : > { %v3843_v29 = vsel %vm1262_vm6, %v3841_v28, %v3842_v16 }
 0xa37   : > { %v6182_v42 = vpack.i.bf16 %v3846_v43, %v3843_v29 }
 0xa38   : > { %4366 = vrot.lane.b32.xlu1 %v4364_v5, %s10068_s2 }
 0xa39   : > { %6183 = vrot.lane.b32.xlu0 %v6182_v42, %s10066_s0 }
 0xa3c   : > { %4446 = vrot.lane.b32.xlu1 %v4444_v52, %s10066_s0 }
 0xa3d   : > { %3962 = vrot.lane.b32.xlu0 %v3960_v34, %s10072_s1 }
 0xa40   : > { %4560 = vrot.lane.b32.xlu1 %v4558_v63, %s10068_s2 }
 0xa41   : > { %4030 = vrot.lane.b32.xlu0 %v4028_v30, %s10060_s4 }
 0xa44   : > { %4640 = vrot.lane.b32.xlu1 %v4638_v6, %s10066_s0 }
 0xa45   : > { %4132 = vrot.lane.b32.xlu0 %v4130_v55, %s10072_s1 }
 0xa48   : > { %4754 = vrot.lane.b32.xlu1 %v4752_v22, %s10068_s2 }
 0xa49   : > { %4212 = vrot.lane.b32.xlu0 %v4210_v23, %s10060_s4 }
 0xa4c   : > { %4834 = vrot.lane.b32.xlu1 %v5743_v2, %s10066_s0 }
 0xa4d   : > { %4326 = vrot.lane.b32.xlu0 %v4324_v13, %s10072_s1 }
 0xa50   : > { %4102 = vrot.lane.b32.xlu1 %v4100_v20, %s6208_s25 }
 0xa51   : > { %4406 = vrot.lane.b32.xlu0 %v4404_v36, %s10060_s4 }
 0xa54   : > { %4490 = vrot.lane.b32.xlu1 %v4488_v62, %s6208_s25 }
 0xa55   : > { %4520 = vrot.lane.b32.xlu0 %v4518_v9, %s10072_s1 }
 0xa59   : > { %4600 = vrot.lane.b32.xlu0 %v4598_v51, %s10060_s4 }
 0xa5d   : > { %4714 = vrot.lane.b32.xlu0 %v4712_v56, %s10072_s1 }
 0xa61   : > { %4794 = vrot.lane.b32.xlu0 %v4792_v15, %s10060_s4 }
 0xa65   : > { %3946 = vrot.lane.b32.xlu0 %v3944_v53, %s6208_s25 }
 0xa69   : > { %4296 = vrot.lane.b32.xlu0 %v4294_v45, %s6208_s25 }
 0xa6d   : > { %4684 = vrot.lane.b32.xlu0 %v4682_v50, %s6208_s25 }
 0xa9a   : > { %v3997_v12 = vpop.permute.xlu1 %3996 }
 0xa9e   : > { %v4065_v41 = vpop.permute.xlu1 %4064 }
 0xaa2   : > { %v8506_v27 = vpop.permute.xlu1 %4172 }
 0xaa6   : > { %v8508_v61 = vpop.permute.xlu1 %4252 }
 0xaaa   : > { %v8510_v21 = vpop.permute.xlu1 %4366 }
 0xaab   : > { %v6184_v14 = vpop.permute.xlu0 %6183 }
 0xaac   : > { %v6186_v25 = vunpack.i.h.bf16 %v6184_v14  ;;  %v6185_v49 = vunpack.i.l.bf16 %v6184_v14 }
 0xaae   : > { %v3851_v46 = vsel %vm1116_vm8, %v6185_v49, %v6186_v25  ;;  %v8512_v44 = vpop.permute.xlu1 %4446 }
 0xaaf   : > { %6078 = vmatmul.mubr.f32.vlgmr.msra.gmra.mxu1 %v3851_v46  ;;  %v3963_v48 = vpop.permute.xlu0 %3962 }
 0xab0   : > { %6147 = vmatprep.mubr.msk.f32.mxu1 %vm6202_vm0, %v10151_v39  ;;  %vm5085_vm0 = vcmask 261120  }
 0xab2   : > { %v8514_v58 = vpop.permute.xlu1 %4560 }
 0xab3   : > { %v4031_v55 = vpop.permute.xlu0 %4030 }
 0xab6   : > { %v8516_v1 = vpop.permute.xlu1 %4640 }
 0xab7   : > { %v8570_v9 = vpop.permute.xlu0 %4132 }
 0xaba   : > { %v8518_v24 = vpop.permute.xlu1 %4754 }
 0xabb   : > { %v8600_v62 = vpop.permute.xlu0 %4212 }
 0xabe   : > { %v8520_v11 = vpop.permute.xlu1 %4834 }
 0xac2   : > { %v8522_v31 = vpop.permute.xlu1 %4102 }
 0xac3   : > { %10160 = vst [vmem:[#allocation39_spill] sm:$0xff] %v8522_v31 }
 0xac6   : > { %v8524_v10 = vpop.permute.xlu1 %4490 }
 0xac7   : > { %10161 = vst [vmem:[#allocation28_spill] sm:$0xff] %v8524_v10 }
 0xb6f   : > { %v3919_v60 = vpop.f32.mrf.mxu1 }
 0xb70   : > { %v3920_v54 = vadd.f32 %v5742_v0, %v3919_v60 }
 0xb71   : > { %v6079_v3 = vpop.f32.mrf.mxu1 }
 0xb72   : > { %v3923_v37 = vmax.f32 %v3920_v54, 0.0 }
 0xb74   : > { %v3925_v57 = vrot.slane %v3923_v37, 4 }
 0xb76   : > { %3926 = vrot.lane.b32.xlu1 %v3925_v57, %s10068_s2 }
 0xbe8   : > { %v3927_v32 = vpop.permute.xlu1 %3926 }
 0xbe9   : > { %3929 = vst.msk [vmem:[#allocation2] sm:$0xf0] %vm1027_vm1, %v3927_v32 }
 0xbea   : > { %3930 = vst.msk [vmem:[#allocation2 + $0x8] sm:$0xf0] %vm1029_vm2, %v3927_v32 }
 0xbeb   : > { %3931 = vst.msk [vmem:[#allocation2 + $0x10] sm:$0xf] %vm1031_vm3, %v3927_v32 }
 0xbec   : > { %3932 = vst.msk [vmem:[#allocation2 + $0x18] sm:$0xf] %vm1033_vm4, %v3927_v32 }
 0xbf0   : > { %v8532_v28 = vld [vmem:[#allocation2] sm:$0xfc] }
 0xbf1   : > { %v8530_v19 = vld [vmem:[#allocation2 + $0x8] sm:$0xfc]  ;;  %10162 = vst [vmem:[#allocation31_spill] sm:$0xff] %v8532_v28  ;;  %v3965_v43 = vmul.f32 %v3963_v48, %v8532_v28  ;;  %v3999_v59 = vmul.f32 %v3997_v12, %v8532_v28  ;;  %v4033_v7 = vmul.f32 %v4031_v55, %v8532_v28  ;;  %v4067_v13 = vmul.f32 %v4065_v41, %v8532_v28 }
 0xbf2   : > { %v3966_v16 = vmul.f32 %v3963_v48, %v8530_v19  ;;  %v8538_v33 = vld [vmem:[#allocation2 + $0x10] sm:$0x3]  ;;  %v4000_v34 = vmul.f32 %v3997_v12, %v8530_v19  ;;  %v4034_v52 = vmul.f32 %v4031_v55, %v8530_v19  ;;  %v4068_v6 = vmul.f32 %v4065_v41, %v8530_v19 }
 0xbf3   : > { %v8536_v29 = vld [vmem:[#allocation2 + $0x18] sm:$0x3]  ;;  %10164 = vst [vmem:[#allocation43_spill] sm:$0xff] %v8538_v33  ;;  %3973 = vrot.lane.b32.xlu1 %v3965_v43, %s10065_s9  ;;  %v3967_v8 = vmul.f32 %v3963_v48, %v8538_v33  ;;  %v4001_v5 = vmul.f32 %v3997_v12, %v8538_v33  ;;  %v4035_v63 = vmul.f32 %v4031_v55, %v8538_v33  ;;  %v8564_v36 = vld [vmem:[#allocation2 + $0x10] sm:$0x7] }
 0xbf4   : > { %10163 = vst [vmem:[#allocation40_spill] sm:$0xff] %v8536_v29  ;;  %3975 = vrot.lane.b32.xlu0 %v3966_v16, %s10065_s9  ;;  %v3968_v42 = vmul.f32 %v3963_v48, %v8536_v29  ;;  %v4002_v30 = vmul.f32 %v3997_v12, %v8536_v29  ;;  %v4036_v23 = vmul.f32 %v4031_v55, %v8536_v29  ;;  %10165 = vst [vmem:[#allocation34_spill] sm:$0xff] %v8564_v36  ;;  %v8566_v22 = vld [vmem:[#allocation2 + $0x18] sm:$0x7]  ;;  %v8630_v57 = vld [vmem:[#allocation2 + $0x10] sm:$0xf]  ;;  %v8638_v12 = vpop.permute.xlu0 %4326 }
 0xbf5   : > { %10166 = vst [vmem:[#allocation41_spill] sm:$0xff] %v8566_v22  ;;  %v4069_v2 = vmul.f32 %v4065_v41, %v8538_v33  ;;  %v4070_v51 = vmul.f32 %v4065_v41, %v8536_v29  ;;  %v8576_v20 = vmul.f32 %v8570_v9, %v8564_v36  ;;  %v8580_v56 = vmul.f32 %v8570_v9, %v8566_v22  ;;  %v8628_v37 = vld [vmem:[#allocation2 + $0x18] sm:$0xf]  ;;  %v8774_v35 = vld [vmem:[#allocation2 + $0x10] sm:$0x3f] }
 0xbf6   : > { %v8588_v49 = vmul.f32 %v8506_v27, %v8564_v36  ;;  %v8592_v46 = vmul.f32 %v8506_v27, %v8566_v22  ;;  %v8606_v45 = vmul.f32 %v8600_v62, %v8564_v36  ;;  %v8610_v50 = vmul.f32 %v8600_v62, %v8566_v22  ;;  %10167 = vst [vmem:[#allocation36_spill] sm:$0xff] %v8628_v37  ;;  %v8870_v29 = vld [vmem:[#allocation2 + $0x8] sm:$0xf0] }
 0xbf7   : > { %3977 = vrot.lane.b32.xlu1 %v3967_v8, %s10065_s9  ;;  %v9995_v14 = vrot.slane %v8576_v20, 1  ;;  %v9994_v25 = vrot.slane %v8580_v56, 1  ;;  %v8622_v54 = vmul.f32 %v8508_v61, %v8566_v22  ;;  %v8626_v3 = vmul.f32 %v8508_v61, %v8564_v36  ;;  %10168 = vst [vmem:[#allocation42_spill] sm:$0xff] %v8630_v57 }
 0xbf8   : > { %3979 = vrot.lane.b32.xlu0 %v3968_v42, %s10065_s9  ;;  %v9993_v15 = vrot.slane %v8588_v49, 1  ;;  %v9990_v53 = vrot.slane %v8592_v46, 1  ;;  %v9989_v0 = vrot.slane %v8606_v45, 1  ;;  %v9988_v60 = vrot.slane %v8610_v50, 1 }
 0xbf9   : > { %v9985_v41 = vrot.slane %v8622_v54, 1  ;;  %v9984_v32 = vrot.slane %v8626_v3, 1  ;;  %v8644_v48 = vmul.f32 %v8638_v12, %v8628_v37  ;;  %v8648_v16 = vmul.f32 %v8638_v12, %v8630_v57 }
 0xbfa   : > { %v8660_v8 = vmul.f32 %v8510_v21, %v8628_v37  ;;  %v8808_v4 = vmul.f32 %v8518_v24, %v8774_v35 }
 0xbfb   : > { %4007 = vrot.lane.b32.xlu1 %v3999_v59, %s10066_s0  ;;  %v9981_v43 = vrot.slane %v8644_v48, 2  ;;  %v9980_v42 = vrot.slane %v8648_v16, 2  ;;  %v8672_v59 = vpop.permute.xlu0 %4406 }
 0xbfc   : > { %4009 = vrot.lane.b32.xlu0 %v4000_v34, %s10066_s0  ;;  %v8664_v34 = vmul.f32 %v8510_v21, %v8630_v57  ;;  %v8678_v55 = vmul.f32 %v8672_v59, %v8628_v37 }
 0xbff   : > { %4011 = vrot.lane.b32.xlu1 %v4001_v5, %s10066_s0  ;;  %v9978_v5 = vrot.slane %v8664_v34, 2 }
 0xc00   : > { %4013 = vrot.lane.b32.xlu0 %v4002_v30, %s10066_s0  ;;  %v9979_v30 = vrot.slane %v8660_v8, 2 }
 0xc03   : > { %4041 = vrot.lane.b32.xlu1 %v4033_v7, %s10060_s4  ;;  %v9983_v7 = vrot.slane %v8678_v55, 2 }
 0xc04   : > { %4043 = vrot.lane.b32.xlu0 %v4034_v52, %s10060_s4  ;;  %v8682_v52 = vmul.f32 %v8672_v59, %v8630_v57 }
 0xc07   : > { %4045 = vrot.lane.b32.xlu1 %v4035_v63, %s10060_s4  ;;  %v8694_v63 = vmul.f32 %v8512_v44, %v8630_v57 }
 0xc08   : > { %4047 = vrot.lane.b32.xlu0 %v4036_v23, %s10060_s4  ;;  %v9982_v23 = vrot.slane %v8682_v52, 2 }
 0xc0b   : > { %4077 = vrot.lane.b32.xlu1 %v4068_v6, %s10068_s2  ;;  %v8700_v6 = vld [vmem:[#allocation2 + $0x10] sm:$0x1f] }
 0xc0c   : > { %4075 = vrot.lane.b32.xlu0 %v4067_v13, %s10068_s2  ;;  %v8698_v13 = vmul.f32 %v8512_v44, %v8628_v37  ;;  %10169 = vst [vmem:[#allocation38_spill] sm:$0xff] %v8700_v6 }
 0xc0f   : > { %4081 = vrot.lane.b32.xlu1 %v4070_v51, %s10068_s2  ;;  %v8710_v51 = vpop.permute.xlu0 %4520 }
 0xc10   : > { %4079 = vrot.lane.b32.xlu0 %v4069_v2, %s10068_s2  ;;  %v8702_v2 = vld [vmem:[#allocation2 + $0x18] sm:$0x1f] }
 0xc11   : > { %10170 = vst [vmem:[#allocation27_spill] sm:$0xff] %v8702_v2 }
 0xc13   : > { %4155 = vrot.lane.b32.xlu1 %v9994_v25, %s10065_s9  ;;  %v8770_v25 = vmul.f32 %v8516_v1, %v8700_v6 }
 0xc14   : > { %4153 = vrot.lane.b32.xlu0 %v9995_v14, %s10065_s9  ;;  %v8772_v14 = vld [vmem:[#allocation2 + $0x18] sm:$0x3f] }
 0xc15   : > { %v10006_v26 = vrot.slane %v8770_v25, 3  ;;  %v8804_v38 = vmul.f32 %v8518_v24, %v8772_v14 }
 0xc17   : > { %4195 = vrot.lane.b32.xlu1 %v9990_v53, %s10066_s0  ;;  %v10021_v17 = vrot.slane %v8804_v38, 4 }
 0xc18   : > { %4193 = vrot.lane.b32.xlu0 %v9993_v15, %s10066_s0  ;;  %v8766_v15 = vmul.f32 %v8516_v1, %v8702_v2 }
 0xc1b   : > { %4235 = vrot.lane.b32.xlu1 %v9988_v60, %s10060_s4 }
 0xc1c   : > { %4233 = vrot.lane.b32.xlu0 %v9989_v0, %s10060_s4 }
 0xc1f   : > { %4273 = vrot.lane.b32.xlu1 %v9984_v32, %s10068_s2  ;;  %v8732_v32 = vmul.f32 %v8514_v58, %v8700_v6 }
 0xc20   : > { %4275 = vrot.lane.b32.xlu0 %v9985_v41, %s10068_s2  ;;  %v8736_v41 = vmul.f32 %v8514_v58, %v8702_v2 }
 0xc22   : > { %v9997_v60 = vrot.slane %v8736_v41, 3 }
 0xc23   : > { %4347 = vrot.lane.b32.xlu1 %v9980_v42, %s10065_s9  ;;  %v8716_v42 = vmul.f32 %v8710_v51, %v8700_v6 }
 0xc24   : > { %4349 = vrot.lane.b32.xlu0 %v9981_v43, %s10065_s9  ;;  %v8720_v43 = vmul.f32 %v8710_v51, %v8702_v2 }
 0xc27   : > { %4387 = vrot.lane.b32.xlu1 %v9978_v5, %s10066_s0  ;;  %v9987_v5 = vrot.slane %v8694_v63, 2 }
 0xc28   : > { %4389 = vrot.lane.b32.xlu0 %v9979_v30, %s10066_s0  ;;  %v9986_v30 = vrot.slane %v8698_v13, 2 }
 0xc2b   : > { %4427 = vrot.lane.b32.xlu1 %v9982_v23, %s10060_s4  ;;  %v9992_v23 = vrot.slane %v8716_v42, 3 }
 0xc2c   : > { %4429 = vrot.lane.b32.xlu0 %v9983_v7, %s10060_s4  ;;  %v9991_v7 = vrot.slane %v8720_v43, 3 }
 0xc2f   : > { %4469 = vrot.lane.b32.xlu1 %v9986_v30, %s10068_s2  ;;  %v8744_v30 = vpop.permute.xlu0 %4600 }
 0xc30   : > { %4467 = vrot.lane.b32.xlu0 %v9987_v5, %s10068_s2  ;;  %v9998_v5 = vrot.slane %v8732_v32, 3  ;;  %v8750_v0 = vmul.f32 %v8744_v30, %v8700_v6  ;;  %v8754_v53 = vmul.f32 %v8744_v30, %v8702_v2  ;;  %v10020_v2 = vrot.slane %v8808_v4, 4 }
 0xc33   : > { %4543 = vrot.lane.b32.xlu1 %v9991_v7, %s10065_s9  ;;  %v10003_v7 = vrot.slane %v8750_v0, 3 }
 0xc34   : > { %4541 = vrot.lane.b32.xlu0 %v9992_v23, %s10065_s9  ;;  %v10002_v23 = vrot.slane %v8754_v53, 3 }
 0xc37   : > { %4583 = vrot.lane.b32.xlu1 %v9997_v60, %s10066_s0  ;;  %v8782_v60 = vpop.permute.xlu0 %4714 }
 0xc38   : > { %4581 = vrot.lane.b32.xlu0 %v9998_v5, %s10066_s0  ;;  %v10007_v5 = vrot.slane %v8766_v15, 3  ;;  %v8788_v47 = vmul.f32 %v8782_v60, %v8772_v14  ;;  %v8792_v40 = vmul.f32 %v8782_v60, %v8774_v35 }
 0xc3b   : > { %4623 = vrot.lane.b32.xlu1 %v10002_v23, %s10060_s4  ;;  %v10012_v23 = vrot.slane %v8788_v47, 4  ;;  %v8820_v18 = vpop.permute.xlu0 %4794 }
 0xc3c   : > { %4621 = vrot.lane.b32.xlu0 %v10003_v7, %s10060_s4  ;;  %v10013_v7 = vrot.slane %v8792_v40, 4  ;;  %v8826_v10 = vmul.f32 %v8820_v18, %v8772_v14 }
 0xc3e   : > { %v10024_v57 = vrot.slane %v8826_v10, 4 }
 0xc3f   : > { %4661 = vrot.lane.b32.xlu1 %v10006_v26, %s10068_s2  ;;  %v8816_v26 = vld [vmem:[#allocation2] sm:$0xf8] }
 0xc40   : > { %4663 = vrot.lane.b32.xlu0 %v10007_v5, %s10068_s2  ;;  %v8818_v5 = vld [vmem:[#allocation2 + $0x8] sm:$0xf8]  ;;  %v4175_v36 = vmul.f32 %v8506_v27, %v8816_v26 }
 0xc41   : > { %v4136_v6 = vmul.f32 %v8570_v9, %v8818_v5 }
 0xc42   : > { %v4183_v28 = vrot.slane %v4175_v36, 1 }
 0xc43   : > { %4735 = vrot.lane.b32.xlu1 %v10013_v7, %s10065_s9  ;;  %v4135_v7 = vmul.f32 %v8570_v9, %v8816_v26  ;;  %v4146_v31 = vrot.slane %v4136_v6, 1  ;;  %v4176_v9 = vmul.f32 %v8506_v27, %v8818_v5  ;;  %v10171_v6 = vrot.slane %v8576_v20, 1 }
 0xc44   : > { %4737 = vrot.lane.b32.xlu0 %v10012_v23, %s10065_s9  ;;  %v8830_v23 = vmul.f32 %v8820_v18, %v8774_v35  ;;  %v10172_v27 = vrot.slane %v8580_v56, 1 }
 0xc45   : > { %v4143_v22 = vrot.slane %v4135_v7, 1  ;;  %v4216_v7 = vmul.f32 %v8600_v62, %v8818_v5 }
 0xc46   : > { %v10025_v37 = vrot.slane %v8830_v23, 4  ;;  %v4148_v33 = vsel %vm1147_vm5, %v4146_v31, %v10172_v27  ;;  %v10174_v31 = vrot.slane %v8592_v46, 1 }
 0xc47   : > { %4775 = vrot.lane.b32.xlu1 %v10020_v2, %s10066_s0  ;;  %v4215_v2 = vmul.f32 %v8600_v62, %v8816_v26  ;;  %v4255_v62 = vmul.f32 %v8508_v61, %v8816_v26 }
 0xc48   : > { %4777 = vrot.lane.b32.xlu0 %v10021_v17, %s10066_s0  ;;  %v4145_v17 = vsel %vm1147_vm5, %v4143_v22, %v10171_v6  ;;  %v10173_v22 = vrot.slane %v8588_v49, 1  ;;  %v4330_v49 = vmul.f32 %v8638_v12, %v8870_v29 }
 0xc49   : > { %v4223_v56 = vrot.slane %v4215_v2, 1 }
 0xc4a   : > { %v4185_v20 = vsel %vm1147_vm5, %v4183_v28, %v10173_v22  ;;  %v10175_v28 = vrot.slane %v8606_v45, 1  ;;  %v4340_v22 = vrot.slane %v4330_v49, 2  ;;  %v10178_v45 = vrot.slane %v8626_v3, 1 }
 0xc4b   : > { %4815 = vrot.lane.b32.xlu1 %v10025_v37, %s10060_s4  ;;  %v4256_v37 = vmul.f32 %v8508_v61, %v8818_v5 }
 0xc4c   : > { %4817 = vrot.lane.b32.xlu0 %v10024_v57, %s10060_s4  ;;  %v4186_v57 = vrot.slane %v4176_v9, 1  ;;  %v8878_v9 = vld [vmem:[#allocation2] sm:$0xf0]  ;;  %v4225_v46 = vsel %vm1147_vm5, %v4223_v56, %v10175_v28 }
 0xc4d   : > { %v4266_v61 = vrot.slane %v4256_v37, 1  ;;  %v4329_v6 = vmul.f32 %v8638_v12, %v8878_v9  ;;  %v10177_v37 = vrot.slane %v8622_v54, 1  ;;  %v4369_v12 = vmul.f32 %v8510_v21, %v8878_v9 }
 0xc4e   : > { %v4188_v36 = vsel %vm1147_vm5, %v4186_v57, %v10174_v31  ;;  %v10176_v57 = vrot.slane %v8610_v50, 1  ;;  %v4410_v54 = vmul.f32 %v8672_v59, %v8870_v29  ;;  %v4409_v3 = vmul.f32 %v8672_v59, %v8878_v9 }
 0xc4f   : > { %4151 = vrot.lane.b32.xlu1 %v4148_v33, %s10065_s9  ;;  %v8882_v33 = vpop.permute.xlu0 %3946  ;;  %v4268_v27 = vsel %vm1147_vm5, %v4266_v61, %v10177_v37  ;;  %v4337_v50 = vrot.slane %v4329_v6, 2  ;;  %v4377_v49 = vrot.slane %v4369_v12, 2  ;;  %v10181_v59 = vrot.slane %v8660_v8, 2  ;;  %v8934_v37 = vld [vmem:[#allocation2] sm:$0xe0] }
 0xc50   : > { %4149 = vrot.lane.b32.xlu0 %v4145_v17, %s10065_s9  ;;  %v4226_v17 = vrot.slane %v4216_v7, 1  ;;  %v4263_v7 = vrot.slane %v4255_v62, 1  ;;  %v4370_v62 = vmul.f32 %v8510_v21, %v8870_v29  ;;  %v4450_v6 = vmul.f32 %v8512_v44, %v8870_v29 }
 0xc52   : > { %v4228_v2 = vsel %vm1147_vm5, %v4226_v17, %v10176_v57  ;;  %v10180_v17 = vrot.slane %v8648_v16, 2  ;;  %v4380_v61 = vrot.slane %v4370_v62, 2  ;;  %v4417_v57 = vrot.slane %v4409_v3, 2 }
 0xc53   : > { %4191 = vrot.lane.b32.xlu1 %v4188_v36, %s10066_s0  ;;  %v8906_v31 = vpop.permute.xlu0 %4296  ;;  %v10179_v36 = vrot.slane %v8644_v48, 2  ;;  %v4460_v12 = vrot.slane %v4450_v6, 2 }
 0xc54   : > { %4189 = vrot.lane.b32.xlu0 %v4185_v20, %s10066_s0  ;;  %v4265_v20 = vsel %vm1147_vm5, %v4263_v7, %v10178_v45  ;;  %v4339_v21 = vsel %vm1262_vm6, %v4337_v50, %v10180_v17  ;;  %v4382_v48 = vsel %vm1262_vm6, %v4380_v61, %v10181_v59  ;;  %v4449_v7 = vmul.f32 %v8512_v44, %v8878_v9 }
 0xc55   : > { %v4342_v56 = vsel %vm1262_vm6, %v4340_v22, %v10179_v36  ;;  %v10184_v44 = vrot.slane %v8682_v52, 2  ;;  %v10185_v52 = vrot.slane %v8694_v63, 2  ;;  %v10187_v63 = vrot.slane %v8716_v42, 3 }
 0xc56   : > { %v4457_v62 = vrot.slane %v4449_v7, 2 }
 0xc57   : > { %4231 = vrot.lane.b32.xlu1 %v4228_v2, %s10060_s4  ;;  %v8922_v28 = vpop.permute.xlu0 %4684  ;;  %v10182_v2 = vrot.slane %v8664_v34, 2  ;;  %v10183_v34 = vrot.slane %v8678_v55, 2  ;;  %v4419_v50 = vsel %vm1262_vm6, %v4417_v57, %v10184_v44 }
 0xc58   : > { %4229 = vrot.lane.b32.xlu0 %v4225_v46, %s10060_s4  ;;  %v4420_v46 = vrot.slane %v4410_v54, 2  ;;  %v4459_v17 = vsel %vm1262_vm6, %v4457_v62, %v10185_v52 }
 0xc59   : > { %v4379_v16 = vsel %vm1262_vm6, %v4377_v49, %v10182_v2 }
 0xc5a   : > { %v4422_v45 = vsel %vm1262_vm6, %v4420_v46, %v10183_v34 }
 0xc5b   : > { %4269 = vrot.lane.b32.xlu1 %v4265_v20, %s10068_s2  ;;  %v4523_v20 = vmul.f32 %v8710_v51, %v8934_v37 }
 0xc5c   : > { %4271 = vrot.lane.b32.xlu0 %v4268_v27, %s10068_s2  ;;  %v8938_v27 = vld [vmem:[#allocation2 + $0x8] sm:$0xe0] }
 0xc5d   : > { %v4524_v54 = vmul.f32 %v8710_v51, %v8938_v27  ;;  %v4531_v36 = vrot.slane %v4523_v20, 3  ;;  %v4564_v49 = vmul.f32 %v8514_v58, %v8938_v27  ;;  %v4604_v7 = vmul.f32 %v8744_v30, %v8938_v27 }
 0xc5e   : > { %v10189_v20 = vrot.slane %v8732_v32, 3  ;;  %v10191_v32 = vrot.slane %v8750_v0, 3 }
 0xc5f   : > { %4343 = vrot.lane.b32.xlu1 %v4339_v21, %s10065_s9  ;;  %v10186_v21 = vrot.slane %v8698_v13, 2  ;;  %v4534_v61 = vrot.slane %v4524_v54, 3  ;;  %v4533_v59 = vsel %vm1384_vm9, %v4531_v36, %v10187_v63  ;;  %v4603_v13 = vmul.f32 %v8744_v30, %v8934_v37  ;;  %v9004_v54 = vld [vmem:[#allocation2] sm:$0xc0] }
 0xc60   : > { %4345 = vrot.lane.b32.xlu0 %v4342_v56, %s10065_s9  ;;  %v4563_v56 = vmul.f32 %v8514_v58, %v8934_v37  ;;  %v10190_v30 = vrot.slane %v8736_v41, 3  ;;  %v4614_v62 = vrot.slane %v4604_v7, 3 }
 0xc61   : > { %v4462_v51 = vsel %vm1262_vm6, %v4460_v12, %v10186_v21  ;;  %v4611_v34 = vrot.slane %v4603_v13, 3  ;;  %v4643_v12 = vmul.f32 %v8516_v1, %v8934_v37 }
 0xc62   : > { %v4571_v58 = vrot.slane %v4563_v56, 3 }
 0xc63   : > { %4383 = vrot.lane.b32.xlu1 %v4379_v16, %s10066_s0  ;;  %v4574_v16 = vrot.slane %v4564_v49, 3  ;;  %v4613_v41 = vsel %vm1384_vm9, %v4611_v34, %v10191_v32  ;;  %v10198_v32 = vrot.slane %v8808_v4, 4 }
 0xc64   : > { %4385 = vrot.lane.b32.xlu0 %v4382_v48, %s10066_s0  ;;  %v10188_v48 = vrot.slane %v8720_v43, 3  ;;  %v8994_v43 = vld [vmem:[#allocation2 + $0x8] sm:$0xc0]  ;;  %v4573_v44 = vsel %vm1384_vm9, %v4571_v58, %v10189_v20  ;;  %v10196_v20 = vrot.slane %v8792_v40, 4 }
 0xc65   : > { %v8942_v22 = vpop.permute.xlu1 %3973  ;;  %v4718_v52 = vmul.f32 %v8782_v60, %v8994_v43  ;;  %v4758_v63 = vmul.f32 %v8518_v24, %v8994_v43 }
 0xc66   : > { %v8940_v8 = vpop.permute.xlu0 %3975  ;;  %v4536_v2 = vsel %vm1384_vm9, %v4534_v61, %v10188_v48  ;;  %v4717_v61 = vmul.f32 %v8782_v60, %v9004_v54  ;;  %v10194_v60 = vrot.slane %v8770_v25, 3 }
 0xc67   : > { %4423 = vrot.lane.b32.xlu1 %v4419_v50, %s10060_s4  ;;  %v4576_v50 = vsel %vm1384_vm9, %v4574_v16, %v10190_v30  ;;  %v4768_v34 = vrot.slane %v4758_v63, 4  ;;  %v4797_v30 = vmul.f32 %v8820_v18, %v9004_v54 }
 0xc68   : > { %4425 = vrot.lane.b32.xlu0 %v4422_v45, %s10060_s4  ;;  %v4644_v45 = vmul.f32 %v8516_v1, %v8938_v27  ;;  %v4725_v58 = vrot.slane %v4717_v61, 4 }
 0xc69   : > { %v8958_v55 = vpop.permute.xlu1 %3977 }
 0xc6a   : > { %v8956_v3 = vpop.permute.xlu0 %3979  ;;  %v4654_v21 = vrot.slane %v4644_v45, 3  ;;  %v10195_v45 = vrot.slane %v8788_v47, 4 }
 0xc6b   : > { %4465 = vrot.lane.b32.xlu1 %v4462_v51, %s10068_s2  ;;  %v4651_v51 = vrot.slane %v4643_v12, 3  ;;  %v10197_v12 = vrot.slane %v8804_v38, 4  ;;  %v4839_v38 = vmul.f32 %v8520_v11, %v8774_v35 }
 0xc6c   : > { %4463 = vrot.lane.b32.xlu0 %v4459_v17, %s10068_s2  ;;  %v10192_v17 = vrot.slane %v8754_v53, 3  ;;  %v4757_v53 = vmul.f32 %v8518_v24, %v9004_v54 }
 0xc6d   : > { %v8974_v57 = vpop.permute.xlu1 %4007  ;;  %v4653_v48 = vsel %vm1384_vm9, %v4651_v51, %v10194_v60  ;;  %v4770_v47 = vsel %vm2320_vm11, %v4768_v34, %v10197_v12  ;;  %v10199_v51 = vrot.slane %v8826_v10, 4 }
 0xc6e   : > { %v8972_v46 = vpop.permute.xlu0 %4009  ;;  %v4616_v1 = vsel %vm1384_vm9, %v4614_v62, %v10192_v17  ;;  %v4765_v24 = vrot.slane %v4757_v53, 4  ;;  %v4840_v17 = vmul.f32 %v8520_v11, %v8772_v14  ;;  %v10200_v53 = vrot.slane %v8830_v23, 4  ;;  %v5733_v23 = vld [vmem:[%s10201_s6 + $0x8] sm:$0xff] }
 0xc6f   : > { %4539 = vrot.lane.b32.xlu1 %v4536_v2, %s10065_s9  ;;  %v4728_v2 = vrot.slane %v4718_v52, 4  ;;  %v4805_v52 = vrot.slane %v4797_v30, 4  ;;  %v5739_v30 = vld [vmem:[%s10201_s6 + $0x38] sm:$0xff] }
 0xc70   : > { %4537 = vrot.lane.b32.xlu0 %v4533_v59, %s10065_s9  ;;  %v10193_v59 = vrot.slane %v8766_v15, 3  ;;  %v4798_v15 = vmul.f32 %v8820_v18, %v8994_v43  ;;  %v4767_v40 = vsel %vm2320_vm11, %v4765_v24, %v10198_v32  ;;  %v4838_v18 = vmul.f32 %v8520_v11, %v8994_v43 }
 0xc71   : > { %v8990_v42 = vpop.permute.xlu1 %4011  ;;  %v4730_v25 = vsel %vm2320_vm11, %v4728_v2, %v10195_v45  ;;  %v5736_v45 = vld [vmem:[%s10201_s6 + $0x20] sm:$0xff]  ;;  %v2769_v32 = vrot.slane %v5739_v30, 3 }
 0xc72   : > { %v8988_v6 = vpop.permute.xlu0 %4013  ;;  %v4656_v13 = vsel %vm1384_vm9, %v4654_v21, %v10193_v59  ;;  %v4848_v63 = vrot.slane %v4838_v18, 4  ;;  %v4807_v59 = vsel %vm2320_vm11, %v4805_v52, %v10200_v53 }
 0xc73   : > { %4579 = vrot.lane.b32.xlu1 %v4576_v50, %s10066_s0 }
 0xc74   : > { %4577 = vrot.lane.b32.xlu0 %v4573_v44, %s10066_s0  ;;  %v4727_v44 = vsel %vm2320_vm11, %v4725_v58, %v10196_v20 }
 0xc75   : > { %v9010_v56 = vpop.permute.xlu1 %4041 }
 0xc76   : > { %v9008_v36 = vpop.permute.xlu0 %4043 }
 0xc77   : > { %4619 = vrot.lane.b32.xlu1 %v4616_v1, %s10060_s4  ;;  %v4837_v1 = vmul.f32 %v8520_v11, %v9004_v54  ;;  %v4846_v11 = vrot.slane %v4839_v38, 4  ;;  %v4884_v38 = vld [vmem:[%s9888_s21 + $0x78] sm:$0xff] }
 0xc78   : > { %4617 = vrot.lane.b32.xlu0 %v4613_v41, %s10060_s4  ;;  %v4808_v41 = vrot.slane %v4798_v15, 4  ;;  %v2559_v15 = vrot.slane %v5733_v23, 5  ;;  %6081 = vmatpush3.msra.mxu0 %v4884_v38 }
 0xc79   : > { %v9026_v0 = vpop.permute.xlu1 %4045  ;;  %v4845_v60 = vrot.slane %v4837_v1, 4  ;;  %6082 = vmatprep.subr.mxu0 %v10151_v39 }
 0xc7a   : > { %v9024_v49 = vpop.permute.xlu0 %4047  ;;  %v4810_v61 = vsel %vm2320_vm11, %v4808_v41, %v10199_v51  ;;  %v4883_v51 = vld [vmem:[%s9888_s21 + $0x70] sm:$0xff] }
 0xc7b   : > { %4657 = vrot.lane.b32.xlu1 %v4653_v48, %s10068_s2  ;;  %v4847_v58 = vsel %vm2320_vm11, %v4845_v60, %v4846_v11  ;;  %6083 = vmatpush3.msra.mxu0 %v4883_v51 }
 0xc7c   : > { %4659 = vrot.lane.b32.xlu0 %v4656_v13, %s10068_s2  ;;  %v4849_v13 = vrot.slane %v4840_v17, 4  ;;  %6084 = vmatprep.subr.mxu0 %v10151_v39 }
 0xc7d   : > { %v9042_v7 = vpop.permute.xlu1 %4077 }
 0xc7e   : > { %v9040_v16 = vpop.permute.xlu0 %4075  ;;  %v4850_v10 = vsel %vm2320_vm11, %v4848_v63, %v4849_v13 }
 0xc7f   : > { %4731 = vrot.lane.b32.xlu1 %v4727_v44, %s10065_s9  ;;  %v2658_v44 = vrot.slane %v5736_v45, 4  ;;  %v4877_v45 = vld [vmem:[%s9888_s21 + $0x40] sm:$0xff] }
 0xc80   : > { %4733 = vrot.lane.b32.xlu0 %v4730_v25, %s10065_s9 }
 0xc81   : > { %v9058_v62 = vpop.permute.xlu1 %4081 }
 0xc82   : > { %v9056_v50 = vpop.permute.xlu0 %4079 }
 0xc83   : > { %4771 = vrot.lane.b32.xlu1 %v4767_v40, %s10066_s0  ;;  %v2546_v40 = vld [vmem:[%s10201_s6] sm:$0xff] }
 0xc84   : > { %4773 = vrot.lane.b32.xlu0 %v4770_v47, %s10066_s0  ;;  %v2548_v52 = vrot.slane %v2546_v40, 5  ;;  %v4875_v40 = vld [vmem:[%s9888_s21 + $0x30] sm:$0xff] }
 0xc85   : > { %v9078_v21 = vpop.permute.xlu1 %4155 }
 0xc86   : > { %v9076_v4 = vpop.permute.xlu0 %4153 }
 0xc87   : > { %4811 = vrot.lane.b32.xlu1 %v4807_v59, %s10060_s4  ;;  %v4881_v59 = vld [vmem:[%s9888_s21 + $0x60] sm:$0xff] }
 0xc88   : > { %4813 = vrot.lane.b32.xlu0 %v4810_v61, %s10060_s4  ;;  %v4882_v61 = vld [vmem:[%s9888_s21 + $0x68] sm:$0xff] }
 0xc89   : > { %v9090_v2 = vpop.permute.xlu1 %4195  ;;  %6085 = vmatpush3.msra.mxu0 %v4882_v61  ;;  %v4873_v61 = vld [vmem:[%s9888_s21 + $0x20] sm:$0xff] }
 0xc8a   : > { %v9088_v48 = vpop.permute.xlu0 %4193  ;;  %6086 = vmatprep.subr.mxu0 %v10151_v39 }
 0xc8b   : > { %4851 = vrot.lane.b32.xlu1 %v4847_v58, %s10068_s2  ;;  %6087 = vmatpush3.msra.mxu0 %v4881_v59  ;;  %v4878_v58 = vld [vmem:[%s9888_s21 + $0x48] sm:$0xff]  ;;  %v4872_v59 = vld [vmem:[%s9888_s21 + $0x18] sm:$0xff] }
 0xc8c   : > { %4853 = vrot.lane.b32.xlu0 %v4850_v10, %s10068_s2  ;;  %6088 = vmatprep.subr.mxu0 %v10151_v39  ;;  %v4879_v10 = vld [vmem:[%s9888_s21 + $0x50] sm:$0xff] }
 0xc8d   : > { %v9101_v24 = vpop.permute.xlu1 %4235 }
 0xc8e   : > { %v9099_v34 = vpop.permute.xlu0 %4233 }
 0xc8f   : > { %4855 = vrot.lane.b32.xlu1 %v4846_v11, %s10068_s2 }
 0xc90   : > { %4857 = vrot.lane.b32.xlu0 %v4849_v13, %s10068_s2  ;;  %v4880_v13 = vld [vmem:[%s9888_s21 + $0x58] sm:$0xff] }
 0xc91   : > { %v9110_v20 = vpop.permute.xlu1 %4273  ;;  %6089 = vmatpush3.msra.mxu0 %v4880_v13 }
 0xc92   : > { %v9108_v25 = vpop.permute.xlu0 %4275  ;;  %6090 = vmatprep.subr.mxu0 %v10151_v39 }
 0xc93   : > { %6091 = vmatpush3.msra.mxu0 %v4879_v10 }
 0xc94   : > { %2560 = vrot.lane.b32.xlu0 %v2559_v15, %s10068_s2  ;;  %6092 = vmatprep.subr.mxu0 %v10151_v39 }
 0xc95   : > { %v9118_v47 = vpop.permute.xlu1 %4347  ;;  %6093 = vmatpush3.msra.mxu0 %v4878_v58 }
 0xc96   : > { %v9116_v12 = vpop.permute.xlu0 %4349  ;;  %6094 = vmatprep.subr.mxu0 %v10151_v39 }
 0xc97   : > { %6095 = vmatpush3.msra.mxu0 %v4877_v45 }
 0xc98   : > { %2659 = vrot.lane.b32.xlu0 %v2658_v44, %s10068_s2  ;;  %v4876_v44 = vld [vmem:[%s9888_s21 + $0x38] sm:$0xff]  ;;  %6096 = vmatprep.subr.mxu0 %v10151_v39 }
 0xc99   : > { %v9126_v18 = vpop.permute.xlu1 %4387  ;;  %6097 = vmatpush3.msra.mxu0 %v4876_v44 }
 0xc9a   : > { %v9124_v41 = vpop.permute.xlu0 %4389  ;;  %6098 = vmatprep.subr.mxu0 %v10151_v39 }
 0xc9b   : > { %6099 = vmatpush3.msra.mxu0 %v4875_v40 }
 0xc9c   : > { %2770 = vrot.lane.b32.xlu0 %v2769_v32, %s10068_s2  ;;  %6100 = vmatprep.subr.mxu0 %v10151_v39 }
 0xc9d   : > { %v9131_v1 = vpop.permute.xlu1 %4427 }
 0xc9e   : > { %v9129_v17 = vpop.permute.xlu0 %4429 }
 0xca0   : > { %2549 = vrot.lane.b32.xlu0 %v2548_v52, %s10072_s1  ;;  %v4874_v52 = vld [vmem:[%s9888_s21 + $0x28] sm:$0xff] }
 0xca1   : > { %v9146_v53 = vpop.permute.xlu1 %4469  ;;  %6101 = vmatpush3.msra.mxu0 %v4874_v52 }
 0xca2   : > { %v9144_v63 = vpop.permute.xlu0 %4467  ;;  %6102 = vmatprep.subr.mxu0 %v10151_v39 }
 0xca3   : > { %6103 = vmatpush3.msra.mxu0 %v4873_v61  ;;  %v3981_v61 = vsel %vm1081_vm7, %v8942_v22, %v8940_v8 }
 0xca4   : > { %6104 = vmatprep.subr.mxu0 %v10151_v39 }
 0xca5   : > { %v9158_v11 = vpop.permute.xlu1 %4543  ;;  %6105 = vmatpush3.msra.mxu0 %v4872_v59  ;;  %v10214_v59 = vld [vmem:[#allocation40_spill] sm:$0xff] }
 0xca6   : > { %v9156_v60 = vpop.permute.xlu0 %4541  ;;  %6106 = vmatprep.subr.mxu0 %v10151_v39  ;;  %v3952_v39 = vmul.f32 %v8882_v33, %v10214_v59 }
 0xca8   : > { %v3990_v59 = vadd.f32 %v8956_v3, %v3952_v39 }
 0xca9   : > { %v9170_v15 = vpop.permute.xlu1 %4583 }
 0xcaa   : > { %v9168_v23 = vpop.permute.xlu0 %4581  ;;  %10203 = vst [vmem:[#allocation30_spill] sm:$0xff] %v9170_v15 }
 0xcab   : > { %10202 = vst [vmem:[#allocation14_spill] sm:$0xff] %v9168_v23 }
 0xcad   : > { %v9182_v32 = vpop.permute.xlu1 %4623 }
 0xcae   : > { %v9180_v30 = vpop.permute.xlu0 %4621  ;;  %10205 = vst [vmem:[#allocation44_spill] sm:$0xff] %v9182_v32  ;;  %v10219_v32 = vld [vmem:[#allocation41_spill] sm:$0xff] }
 0xcaf   : > { %10204 = vst [vmem:[#allocation33_spill] sm:$0xff] %v9180_v30  ;;  %v10218_v30 = vld [vmem:[#allocation39_spill] sm:$0xff] }
 0xcb0   : > { %v4108_v23 = vmul.f32 %v10218_v30, %v10219_v32  ;;  %v4106_v32 = vmul.f32 %v10218_v30, %v8818_v5 }
 0xcb1   : > { %v9194_v51 = vpop.permute.xlu1 %4661 }
 0xcb2   : > { %v9192_v38 = vpop.permute.xlu0 %4663  ;;  %10207 = vst [vmem:[#allocation29_spill] sm:$0xff] %v9194_v51 }
 0xcb3   : > { %10206 = vst [vmem:[#allocation32_spill] sm:$0xff] %v9192_v38  ;;  %v10217_v38 = vld [vmem:[#allocation34_spill] sm:$0xff] }
 0xcb5   : > { %v9206_v10 = vpop.permute.xlu1 %4735 }
 0xcb6   : > { %v9204_v13 = vpop.permute.xlu0 %4737  ;;  %10209 = vst [vmem:[#allocation37_spill] sm:$0xff] %v9206_v10 }
 0xcb7   : > { %10208 = vst [vmem:[#allocation35_spill] sm:$0xff] %v9204_v13  ;;  %v3950_v13 = vmul.f32 %v8882_v33, %v8530_v19  ;;  %v4107_v19 = vmul.f32 %v10218_v30, %v10217_v38  ;;  %v4105_v38 = vmul.f32 %v10218_v30, %v8816_v26 }
 0xcb9   : > { %v9212_v45 = vpop.permute.xlu1 %4775  ;;  %v3988_v22 = vadd.f32 %v8940_v8, %v3950_v13 }
 0xcba   : > { %v9210_v58 = vpop.permute.xlu0 %4777  ;;  %10211 = vst [vmem:[#allocation46_spill] sm:$0xff] %v9212_v45  ;;  %v3982_v45 = vsel %vm1081_vm7, %v8958_v55, %v8956_v3  ;;  %v4015_v55 = vsel %vm1116_vm8, %v8974_v57, %v8972_v46  ;;  %v4024_v3 = vadd.f32 %v8988_v6, %v3990_v59  ;;  %v4049_v57 = vsel %vm1395_vm10, %v9010_v56, %v9008_v36 }
 0xcbb   : > { %10210 = vst [vmem:[#allocation45_spill] sm:$0xff] %v9210_v58  ;;  %v10215_v58 = vld [vmem:[#allocation31_spill] sm:$0xff]  ;;  %v4022_v39 = vadd.f32 %v8972_v46, %v3988_v22  ;;  %v4083_v46 = vsel %vm2175_vm12, %v9040_v16, %v9042_v7  ;;  %v4114_v22 = vrot.slane %v4107_v19, 1 }
 0xcbc   : > { %v4058_v5 = vadd.f32 %v9024_v49, %v4024_v3 }
 0xcbd   : > { %v9216_v40 = vpop.permute.xlu1 %4815  ;;  %v4056_v26 = vadd.f32 %v9008_v36, %v4022_v39 }
 0xcbe   : > { %v9214_v44 = vpop.permute.xlu0 %4817  ;;  %10213 = vst [vmem:[#allocation48_spill] sm:$0xff] %v9216_v40  ;;  %v10216_v40 = vld [vmem:[#allocation43_spill] sm:$0xff]  ;;  %v4092_v36 = vadd.f32 %v9058_v62, %v4058_v5 }
 0xcbf   : > { %10212 = vst [vmem:[#allocation47_spill] sm:$0xff] %v9214_v44  ;;  %v3949_v44 = vmul.f32 %v8882_v33, %v10215_v58  ;;  %v3951_v10 = vmul.f32 %v8882_v33, %v10216_v40  ;;  %v4016_v58 = vsel %vm1116_vm8, %v8990_v42, %v8988_v6  ;;  %v4050_v42 = vsel %vm1395_vm10, %v9026_v0, %v9024_v49 }
 0xcc0   : > { %v4084_v6 = vsel %vm2175_vm12, %v9056_v50, %v9058_v62  ;;  %v4113_v49 = vrot.slane %v4105_v38, 1  ;;  %v4158_v62 = vsel %vm1081_vm7, %v9076_v4, %v9078_v21  ;;  %v4198_v4 = vsel %vm1116_vm8, %v9088_v48, %v9090_v2 }
 0xcc1   : > { %v4152_v51 = vpop.permute.xlu1 %4151  ;;  %v3987_v15 = vadd.f32 %v3981_v61, %v3949_v44  ;;  %v3989_v33 = vadd.f32 %v3982_v45, %v3951_v10  ;;  %v4117_v45 = vrot.slane %v4108_v23, 1  ;;  %v4116_v44 = vrot.slane %v4106_v32, 1 }
 0xcc2   : > { %v4150_v52 = vpop.permute.xlu0 %4149  ;;  %v4115_v50 = vsel %vm1147_vm5, %v4113_v49, %v4114_v22  ;;  %v4299_v32 = vmul.f32 %v8906_v31, %v8878_v9 }
 0xcc3   : > { %v4021_v13 = vadd.f32 %v4015_v55, %v3987_v15  ;;  %v4023_v10 = vadd.f32 %v4016_v58, %v3989_v33  ;;  %v4090_v15 = vadd.f32 %v9042_v7, %v4056_v26  ;;  %v4118_v16 = vsel %vm1147_vm5, %v4116_v44, %v4117_v45  ;;  %v10221_v26 = vld [vmem:[#allocation42_spill] sm:$0xff] }
 0xcc4   : > { %v4126_v39 = vadd.f32 %v4117_v45, %v4092_v36  ;;  %v4157_v23 = vsel %vm1081_vm7, %v4150_v52, %v4152_v51  ;;  %v4301_v52 = vmul.f32 %v8906_v31, %v10221_v26  ;;  %v10224_v26 = vld [vmem:[#allocation27_spill] sm:$0xff] }
 0xcc5   : > { %v4192_v8 = vpop.permute.xlu1 %4191  ;;  %v4055_v30 = vadd.f32 %v4049_v57, %v4021_v13  ;;  %v4057_v56 = vadd.f32 %v4050_v42, %v4023_v10  ;;  %v4124_v3 = vadd.f32 %v4118_v16, %v4090_v15  ;;  %v4300_v42 = vmul.f32 %v8906_v31, %v8870_v29  ;;  %v10220_v13 = vld [vmem:[#allocation36_spill] sm:$0xff] }
 0xcc6   : > { %v4190_v40 = vpop.permute.xlu0 %4189  ;;  %v4302_v10 = vmul.f32 %v8906_v31, %v10220_v13  ;;  %v4238_v31 = vsel %vm1395_vm10, %v9099_v34, %v9101_v24 }
 0xcc7   : > { %v4089_v59 = vadd.f32 %v4083_v46, %v4055_v30  ;;  %v4091_v55 = vadd.f32 %v4084_v6, %v4057_v56  ;;  %v4164_v19 = vadd.f32 %v4152_v51, %v4124_v3  ;;  %v4197_v38 = vsel %vm1116_vm8, %v4190_v40, %v4192_v8 }
 0xcc8   : > { %v4166_v6 = vadd.f32 %v9078_v21, %v4126_v39  ;;  %v4307_v30 = vrot.slane %v4299_v32, 2  ;;  %v4310_v21 = vrot.slane %v4300_v42, 2 }
 0xcc9   : > { %v4232_v0 = vpop.permute.xlu1 %4231  ;;  %v4125_v7 = vadd.f32 %v4114_v22, %v4091_v55  ;;  %v4123_v57 = vadd.f32 %v4115_v50, %v4089_v59  ;;  %v4204_v51 = vadd.f32 %v4192_v8, %v4164_v19  ;;  %v4311_v22 = vrot.slane %v4302_v10, 2  ;;  %v10223_v19 = vld [vmem:[#allocation28_spill] sm:$0xff] }
 0xcca   : > { %v4230_v61 = vpop.permute.xlu0 %4229  ;;  %v4206_v45 = vadd.f32 %v9090_v2, %v4166_v6  ;;  %v4278_v59 = vsel %vm2175_vm12, %v9110_v20, %v9108_v25  ;;  %v4308_v2 = vrot.slane %v4301_v52, 2  ;;  %v10222_v20 = vld [vmem:[#allocation38_spill] sm:$0xff]  ;;  %v4496_v52 = vmul.f32 %v10223_v19, %v10224_v26  ;;  %v10227_v26 = vld [vmem:[#allocation44_spill] sm:$0xff] }
 0xccb   : > { %v4163_v5 = vadd.f32 %v4157_v23, %v4123_v57  ;;  %v4237_v40 = vsel %vm1395_vm10, %v4230_v61, %v4232_v0  ;;  %v4165_v29 = vadd.f32 %v4158_v62, %v4125_v7  ;;  %v4244_v44 = vadd.f32 %v4232_v0, %v4204_v51 }
 0xccc   : > { %v4246_v61 = vadd.f32 %v9101_v24, %v4206_v45  ;;  %v4309_v32 = vsel %vm1262_vm6, %v4307_v30, %v4308_v2  ;;  %v4494_v6 = vmul.f32 %v10223_v19, %v8938_v27  ;;  %v4392_v51 = vsel %vm1116_vm8, %v9126_v18, %v9124_v41 }
 0xccd   : > { %v4270_v33 = vpop.permute.xlu1 %4269  ;;  %v4203_v56 = vadd.f32 %v4197_v38, %v4163_v5  ;;  %v4205_v36 = vadd.f32 %v4198_v4, %v4165_v29 }
 0xcce   : > { %v4272_v58 = vpop.permute.xlu0 %4271  ;;  %v4286_v34 = vadd.f32 %v9108_v25, %v4246_v61  ;;  %v4352_v25 = vsel %vm1081_vm7, %v9118_v47, %v9116_v12 }
 0xccf   : > { %v4277_v15 = vsel %vm2175_vm12, %v4270_v33, %v4272_v58  ;;  %v4243_v49 = vadd.f32 %v4237_v40, %v4203_v56  ;;  %v4284_v55 = vadd.f32 %v4272_v58, %v4244_v44  ;;  %v4245_v16 = vadd.f32 %v4238_v31, %v4205_v36 }
 0xcd0   : > { %v4312_v33 = vsel %vm1262_vm6, %v4310_v21, %v4311_v22  ;;  %v4320_v24 = vadd.f32 %v4311_v22, %v4286_v34  ;;  %v4495_v58 = vmul.f32 %v10223_v19, %v10222_v20  ;;  %v4504_v21 = vrot.slane %v4494_v6, 3 }
 0xcd1   : > { %v4344_v46 = vpop.permute.xlu1 %4343  ;;  %v4283_v39 = vadd.f32 %v4277_v15, %v4243_v49  ;;  %v4285_v0 = vadd.f32 %v4278_v59, %v4245_v16  ;;  %v4318_v23 = vadd.f32 %v4312_v33, %v4284_v55  ;;  %v4505_v15 = vrot.slane %v4496_v52, 3  ;;  %v10228_v52 = vld [vmem:[#allocation33_spill] sm:$0xff] }
 0xcd2   : > { %v4346_v9 = vpop.permute.xlu0 %4345  ;;  %v4360_v4 = vadd.f32 %v9116_v12, %v4320_v24  ;;  %v4502_v30 = vrot.slane %v4495_v58, 3  ;;  %v4472_v22 = vsel %vm2175_vm12, %v9144_v63, %v9146_v53  ;;  %v4690_v24 = vmul.f32 %v8922_v28, %v8772_v14  ;;  %v10225_v58 = vld [vmem:[#allocation30_spill] sm:$0xff] }
 0xcd3   : > { %v4317_v7 = vadd.f32 %v4309_v32, %v4283_v39  ;;  %v4351_v57 = vsel %vm1081_vm7, %v4344_v46, %v4346_v9  ;;  %v4319_v62 = vadd.f32 %v4308_v2, %v4285_v0  ;;  %v4358_v13 = vadd.f32 %v4346_v9, %v4318_v23 }
 0xcd4   : > { %v4493_v46 = vmul.f32 %v10223_v19, %v8934_v37  ;;  %v4400_v31 = vadd.f32 %v9124_v41, %v4360_v4  ;;  %v4432_v37 = vsel %vm1395_vm10, %v9131_v1, %v9129_v17  ;;  %v4506_v55 = vsel %vm1384_vm9, %v4504_v21, %v4505_v15 }
 0xcd5   : > { %v4384_v8 = vpop.permute.xlu1 %4383  ;;  %v4357_v5 = vadd.f32 %v4351_v57, %v4317_v7  ;;  %v4359_v40 = vadd.f32 %v4352_v25, %v4319_v62  ;;  %v4688_v7 = vmul.f32 %v8922_v28, %v8994_v43  ;;  %v4689_v57 = vmul.f32 %v8922_v28, %v8774_v35 }
 0xcd6   : > { %v4386_v48 = vpop.permute.xlu0 %4385  ;;  %v4440_v36 = vadd.f32 %v9129_v17, %v4400_v31  ;;  %v4626_v35 = vsel %vm1395_vm10, %v10228_v52, %v10227_v26  ;;  %v4699_v6 = vrot.slane %v4690_v24, 4  ;;  %v10235_v24 = vmov 0.0  }
 0xcd7   : > { %v4391_v10 = vsel %vm1116_vm8, %v4384_v8, %v4386_v48  ;;  %v4398_v47 = vadd.f32 %v4386_v48, %v4358_v13  ;;  %v4399_v44 = vadd.f32 %v4392_v51, %v4359_v40  ;;  %v4501_v48 = vrot.slane %v4493_v46, 3  ;;  %v10229_v40 = vld [vmem:[#allocation32_spill] sm:$0xff] }
 0xcd8   : > { %v4397_v29 = vadd.f32 %v4391_v10, %v4357_v5  ;;  %v4480_v1 = vadd.f32 %v9146_v53, %v4440_v36  ;;  %v4546_v53 = vsel %vm1081_vm7, %v9156_v60, %v9158_v11 }
 0xcd9   : > { %v4424_v3 = vpop.permute.xlu1 %4423  ;;  %v4439_v41 = vadd.f32 %v4432_v37, %v4399_v44  ;;  %v4503_v16 = vsel %vm1384_vm9, %v4501_v48, %v4502_v30 }
 0xcda   : > { %v4426_v50 = vpop.permute.xlu0 %4425  ;;  %v4514_v33 = vadd.f32 %v4505_v15, %v4480_v1  ;;  %v10232_v1 = vld [vmem:[#allocation37_spill] sm:$0xff] }
 0xcdb   : > { %v4431_v9 = vsel %vm1395_vm10, %v4424_v3, %v4426_v50  ;;  %v4438_v27 = vadd.f32 %v4426_v50, %v4398_v47  ;;  %v4479_v2 = vadd.f32 %v4472_v22, %v4439_v41  ;;  %v4687_v50 = vmul.f32 %v8922_v28, %v9004_v54 }
 0xcdc   : > { %v4437_v18 = vadd.f32 %v4431_v9, %v4397_v29  ;;  %v4554_v19 = vadd.f32 %v9158_v11, %v4514_v33  ;;  %v4698_v11 = vrot.slane %v4688_v7, 4  ;;  %v10234_v33 = vld [vmem:[#allocation46_spill] sm:$0xff] }
 0xcdd   : > { %v4466_v42 = vpop.permute.xlu1 %4465  ;;  %v4513_v3 = vadd.f32 %v4502_v30, %v4479_v2  ;;  %v4695_v13 = vrot.slane %v4687_v50, 4  ;;  %v10230_v30 = vld [vmem:[#allocation29_spill] sm:$0xff] }
 0xcde   : > { %v4464_v38 = vpop.permute.xlu0 %4463  ;;  %v4478_v49 = vadd.f32 %v4466_v42, %v4438_v27  ;;  %v4594_v14 = vadd.f32 %v10225_v58, %v4554_v19  ;;  %v4666_v29 = vsel %vm2175_vm12, %v10230_v30, %v10229_v40  ;;  %v4700_v44 = vsel %vm2320_vm11, %v4698_v11, %v4699_v6  ;;  %v10237_v19 = vld [vmem:[#allocation48_spill] sm:$0xff] }
 0xcdf   : > { %v4471_v12 = vsel %vm2175_vm12, %v4464_v38, %v4466_v42  ;;  %v10226_v38 = vld [vmem:[#allocation14_spill] sm:$0xff]  ;;  %v4553_v43 = vadd.f32 %v4546_v53, %v4513_v3 }
 0xce0   : > { %v4477_v8 = vadd.f32 %v4471_v12, %v4437_v18  ;;  %v4512_v39 = vadd.f32 %v4506_v55, %v4478_v49  ;;  %v4586_v60 = vsel %vm1116_vm8, %v10226_v38, %v10225_v58  ;;  %v4634_v9 = vadd.f32 %v10227_v26, %v4594_v14 }
 0xce1   : > { %v4540_v45 = vpop.permute.xlu1 %4539  ;;  %v4593_v46 = vadd.f32 %v4586_v60, %v4553_v43 }
 0xce2   : > { %v4538_v56 = vpop.permute.xlu0 %4537  ;;  %v4511_v34 = vadd.f32 %v4503_v16, %v4477_v8  ;;  %v4552_v23 = vadd.f32 %v4540_v45, %v4512_v39  ;;  %v4674_v27 = vadd.f32 %v10229_v40, %v4634_v9  ;;  %v10238_v9 = vld [vmem:[#allocation18_spill] sm:$0xff] }
 0xce3   : > { %v4545_v63 = vsel %vm1081_vm7, %v4538_v56, %v4540_v45  ;;  %v4696_v56 = vrot.slane %v4689_v57, 4  ;;  %v4633_v31 = vadd.f32 %v4626_v35, %v4593_v46  ;;  %v4870_v57 = vld [vmem:[%s9888_s21 + $0x8] sm:$0xff] }
 0xce4   : > { %v4551_v62 = vadd.f32 %v4545_v63, %v4511_v34  ;;  %v4708_v49 = vadd.f32 %v4699_v6, %v4674_v27  ;;  %v4871_v34 = vld [vmem:[%s9888_s21 + $0x10] sm:$0xff]  ;;  %v5740_v27 = vld [vmem:[%s10201_s6 + $0x40] sm:$0xff] }
 0xce5   : > { %v4580_v59 = vpop.permute.xlu1 %4579  ;;  %v4673_v12 = vadd.f32 %v4666_v29, %v4633_v31  ;;  %v4697_v36 = vsel %vm2320_vm11, %v4695_v13, %v4696_v56  ;;  %6107 = vmatpush3.msra.mxu0 %v4871_v34  ;;  %v5734_v29 = vld [vmem:[%s10201_s6 + $0x10] sm:$0xff]  ;;  %v5737_v31 = vld [vmem:[%s10201_s6 + $0x28] sm:$0xff] }
 0xce6   : > { %v4578_v61 = vpop.permute.xlu0 %4577  ;;  %v4592_v42 = vadd.f32 %v4580_v59, %v4552_v23  ;;  %6108 = vmatprep.subr.mxu0 %v10235_v24 }
 0xce7   : > { %v4585_v32 = vsel %vm1116_vm8, %v4578_v61, %v4580_v59  ;;  %v4707_v41 = vadd.f32 %v4696_v56, %v4673_v12  ;;  %v10231_v59 = vld [vmem:[#allocation35_spill] sm:$0xff]  ;;  %6109 = vmatpush3.msra.mxu0 %v4870_v57  ;;  %v2808_v12 = vrot.slane %v5740_v27, 3 }
 0xce8   : > { %v4591_v10 = vadd.f32 %v4585_v32, %v4551_v62  ;;  %v4740_v2 = vsel %vm1081_vm7, %v10232_v1, %v10231_v59  ;;  %v4869_v62 = vld [vmem:[%s9888_s21] sm:$0xff]  ;;  %6110 = vmatprep.subr.mxu0 %v10235_v24 }
 0xce9   : > { %v4620_v0 = vpop.permute.xlu1 %4619  ;;  %v4747_v53 = vadd.f32 %v4740_v2, %v4707_v41  ;;  %6111 = vmatpush3.msra.mxu0 %v4869_v62  ;;  %v10240_v1 = vld [vmem:[#allocation16_spill] sm:$0xff]  ;;  %v5738_v62 = vld [vmem:[%s10201_s6 + $0x30] sm:$0xff] }
 0xcea   : > { %v4618_v17 = vpop.permute.xlu0 %4617  ;;  %v4632_v28 = vadd.f32 %v4620_v0, %v4592_v42 }
 0xceb   : > { %v4625_v25 = vsel %vm1395_vm10, %v4618_v17, %v4620_v0  ;;  %v4748_v17 = vadd.f32 %v10231_v59, %v4708_v49  ;;  %v10233_v0 = vld [vmem:[#allocation45_spill] sm:$0xff] }
 0xcec   : > { %v4631_v4 = vadd.f32 %v4625_v25, %v4591_v10  ;;  %v4780_v63 = vsel %vm1116_vm8, %v10234_v33, %v10233_v0  ;;  %v10244_v33 = vld [vmem:[#allocation21_spill] sm:$0xff] }
 0xced   : > { %v4658_v54 = vpop.permute.xlu1 %4657  ;;  %v4787_v42 = vadd.f32 %v4780_v63, %v4747_v53 }
 0xcee   : > { %v4660_v20 = vpop.permute.xlu0 %4659 }
 0xcef   : > { %v4665_v5 = vsel %vm2175_vm12, %v4658_v54, %v4660_v20  ;;  %v4672_v45 = vadd.f32 %v4660_v20, %v4632_v28  ;;  %v4788_v20 = vadd.f32 %v10233_v0, %v4748_v17  ;;  %v10236_v54 = vld [vmem:[#allocation47_spill] sm:$0xff]  ;;  %v10243_v17 = vld [vmem:[#allocation25_spill] sm:$0xff] }
 0xcf0   : > { %v4671_v37 = vadd.f32 %v4665_v5, %v4631_v4  ;;  %v4820_v58 = vsel %vm1395_vm10, %v10237_v19, %v10236_v54 }
 0xcf1   : > { %v4732_v47 = vpop.permute.xlu1 %4731  ;;  %v4706_v21 = vadd.f32 %v4700_v44, %v4672_v45  ;;  %v4828_v13 = vadd.f32 %v10236_v54, %v4788_v20  ;;  %v4827_v10 = vadd.f32 %v4820_v58, %v4787_v42  ;;  %v2592_v45 = vrot.slane %v5734_v29, 5  ;;  %v5735_v44 = vld [vmem:[%s10201_s6 + $0x18] sm:$0xff] }
 0xcf2   : > { %v4734_v51 = vpop.permute.xlu0 %4733  ;;  %v4705_v22 = vadd.f32 %v4697_v36, %v4671_v37  ;;  %v2697_v37 = vrot.slane %v5737_v31, 4 }
 0xcf3   : > { %v4739_v48 = vsel %vm1081_vm7, %v4732_v47, %v4734_v51  ;;  %v4746_v55 = vadd.f32 %v4734_v51, %v4706_v21  ;;  %v2629_v21 = vrot.slane %v5735_v44, 4 }
 0xcf4   : > { %v4745_v39 = vadd.f32 %v4739_v48, %v4705_v22 }
 0xcf5   : > { %v4772_v18 = vpop.permute.xlu1 %4771 }
 0xcf6   : > { %v4774_v15 = vpop.permute.xlu0 %4773 }
 0xcf7   : > { %v4779_v16 = vsel %vm1116_vm8, %v4772_v18, %v4774_v15  ;;  %v4786_v50 = vadd.f32 %v4774_v15, %v4746_v55  ;;  %v10239_v15 = vld [vmem:[#allocation15_spill] sm:$0xff] }
 0xcf8   : > { %v4785_v23 = vadd.f32 %v4779_v16, %v4745_v39  ;;  %v10241_v55 = vld [vmem:[#allocation19_spill] sm:$0xff]  ;;  %v10242_v39 = vld [vmem:[#allocation22_spill] sm:$0xff] }
 0xcf9   : > { %v4812_v61 = vpop.permute.xlu1 %4811 }
 0xcfa   : > { %v4814_v8 = vpop.permute.xlu0 %4813 }
 0xcfb   : > { %v4819_v3 = vsel %vm1395_vm10, %v4812_v61, %v4814_v8  ;;  %v4826_v38 = vadd.f32 %v4814_v8, %v4786_v50  ;;  %v10245_v50 = vld [vmem:[#allocation24_spill] sm:$0xff] }
 0xcfc   : > { %v4825_v25 = vadd.f32 %v4819_v3, %v4785_v23 }
 0xcfd   : > { %v4852_v7 = vpop.permute.xlu1 %4851 }
 0xcfe   : > { %v4854_v32 = vpop.permute.xlu0 %4853 }
 0xcff   : > { %v4859_v60 = vsel %vm2175_vm12, %v4852_v7, %v4854_v32  ;;  %v4866_v43 = vadd.f32 %v4854_v32, %v4826_v38  ;;  %v2740_v38 = vrot.slane %v5738_v62, 3 }
 0xd00   : > { %v4865_v14 = vadd.f32 %v4859_v60, %v4825_v25 }
 0xd01   : > { %v4856_v52 = vpop.permute.xlu1 %4855  ;;  %v4899_v11 = vrot.slane %v4866_v43, 2 }
 0xd02   : > { %v4858_v26 = vpop.permute.xlu0 %4857  ;;  %v4896_v6 = vrot.slane %v4865_v14, 2  ;;  %v10246_v14 = vld [vmem:[#allocation17_spill] sm:$0xff] }
 0xd03   : > { %v4868_v35 = vadd.f32 %v4858_v26, %v4828_v13  ;;  %v4860_v28 = vsel %vm2175_vm12, %v4856_v52, %v4858_v26 }
 0xd04   : > { %v4867_v5 = vadd.f32 %v4860_v28, %v4827_v10 }
 0xd05   : > { %v4900_v46 = vrot.slane %v4868_v35, 2  ;;  %v10247_v35 = vld [vmem:[#allocation23_spill] sm:$0xff] }
 0xd06   : > { %v4897_v4 = vrot.slane %v4867_v5, 2  ;;  %v2561_v51 = vpop.permute.xlu0 %2560 }
 0xd07   : > { %v4901_v47 = vsel %vm1262_vm6, %v4899_v11, %v4900_v46  ;;  %v2564_v40 = vadd.f32 %v2561_v51, %v10238_v9  ;;  %v2563_v18 = vadd.f32 %v2561_v51, %v10239_v15  ;;  %v2565_v63 = vadd.f32 %v2561_v51, %v10244_v33 }
 0xd08   : > { %v4898_v30 = vsel %vm1262_vm6, %v4896_v6, %v4897_v4  ;;  %v2566_v3 = vadd.f32 %v2561_v51, %v10245_v50  ;;  %v10248_v6 = vld [vmem:[#allocation20_spill] sm:$0xff]  ;;  %v10249_v51 = vld [vmem:[#allocation26_spill] sm:$0xff] }
 0xd09   : > { %2573 = vrot.lane.b32.xlu0 %v2564_v40, %s10065_s9  ;;  %v6187_v56 = vpack.i.bf16 %v4901_v47, %v4898_v30 }
 0xd0a   : > { %v2660_v48 = vpop.permute.xlu0 %2659 }
 0xd0b   : > { %6188 = vrot.lane.b32.xlu1 %v6187_v56, %s10066_s0  ;;  %v2662_v2 = vadd.f32 %v2660_v48, %v10240_v1  ;;  %v2663_v16 = vadd.f32 %v2660_v48, %v10241_v55  ;;  %v2664_v34 = vadd.f32 %v2660_v48, %v10242_v39  ;;  %v2665_v0 = vadd.f32 %v2660_v48, %v10243_v17 }
 0xd0d   : > { %v2670_v53 = vrot.slane %v2662_v2, 1  ;;  %v2671_v23 = vrot.slane %v2664_v34, 1  ;;  %v2673_v32 = vrot.slane %v2663_v16, 1  ;;  %v2674_v7 = vrot.slane %v2665_v0, 1 }
 0xd0e   : > { %v2771_v42 = vpop.permute.xlu0 %2770 }
 0xd0f   : > { %2593 = vrot.lane.b32.xlu1 %v2592_v45, %s10060_s4  ;;  %v2675_v19 = vsel %vm1147_vm5, %v2673_v32, %v2674_v7  ;;  %v2672_v58 = vsel %vm1147_vm5, %v2670_v53, %v2671_v23  ;;  %v2773_v26 = vadd.f32 %v2771_v42, %v10246_v14  ;;  %v2775_v28 = vadd.f32 %v2771_v42, %v10247_v35 }
 0xd10   : > { %v2774_v4 = vadd.f32 %v2771_v42, %v10248_v6  ;;  %v2776_v47 = vadd.f32 %v2771_v42, %v10249_v51 }
 0xd11   : > { %v2781_v40 = vrot.slane %v2773_v26, 2  ;;  %v2782_v30 = vrot.slane %v2775_v28, 2 }
 0xd12   : > { %v2784_v45 = vrot.slane %v2774_v4, 2  ;;  %v2785_v31 = vrot.slane %v2776_v47, 2  ;;  %v2550_v0 = vpop.permute.xlu0 %2549 }
 0xd13   : > { %2698 = vrot.lane.b32.xlu1 %v2697_v37, %s10060_s4 }
 0xd14   : > { %v2786_v44 = vsel %vm1262_vm6, %v2784_v45, %v2785_v31  ;;  %v2554_v45 = vadd.f32 %v2550_v0, %v10244_v33 }
 0xd17   : > { %2809 = vrot.lane.b32.xlu1 %v2808_v12, %s10060_s4  ;;  %v2783_v12 = vsel %vm1262_vm6, %v2781_v40, %v2782_v30 }
 0xd1b   : > { %2571 = vrot.lane.b32.xlu1 %v2563_v18, %s10065_s9 }
 0xd1f   : > { %2630 = vrot.lane.b32.xlu1 %v2629_v21, %s10072_s1 }
 0xd7d   : > { %v6189_v36 = vpop.permute.xlu1 %6188 }
 0xd7e   : > { %v6191_v22 = vunpack.i.h.bf16 %v6189_v36  ;;  %v6190_v49 = vunpack.i.l.bf16 %v6189_v36 }
 0xd80   : > { %v4906_v41 = vsel %vm1116_vm8, %v6190_v49, %v6191_v22 }
 0xd81   : > { %v2594_v8 = vpop.permute.xlu1 %2593  ;;  %6113 = vmatmul.mubr.f32.vlgmr.msra.gmra.mxu0 %v4906_v41 }
 0xd82   : > { %v2596_v61 = vadd.f32 %v2594_v8, %v10239_v15  ;;  %v2597_v59 = vadd.f32 %v2594_v8, %v10238_v9  ;;  %v2598_v60 = vadd.f32 %v2594_v8, %v10244_v33  ;;  %v2599_v52 = vadd.f32 %v2594_v8, %v10245_v50 }
 0xd84   : > { %2606 = vrot.lane.b32.xlu1 %v2597_v59, %s10066_s0  ;;  %2604 = vrot.lane.b32.xlu0 %v2596_v61, %s10066_s0  ;;  %v5744_v61 = vld [vmem:[%s9889_s22] ss:$0 sm:$0xff] }
 0xd85   : > { %v2699_v57 = vpop.permute.xlu1 %2698 }
 0xd86   : > { %v2701_v20 = vadd.f32 %v2699_v57, %v10240_v1  ;;  %v2703_v54 = vadd.f32 %v2699_v57, %v10242_v39  ;;  %v2702_v25 = vadd.f32 %v2699_v57, %v10241_v55  ;;  %v2704_v13 = vadd.f32 %v2699_v57, %v10243_v17 }
 0xd88   : > { %2577 = vrot.lane.b32.xlu1 %v2566_v3, %s10065_s9  ;;  %2575 = vrot.lane.b32.xlu0 %v2565_v63, %s10065_s9  ;;  %v2709_v43 = vrot.slane %v2701_v20, 1  ;;  %v2710_v10 = vrot.slane %v2703_v54, 1  ;;  %v2712_v5 = vrot.slane %v2702_v25, 1  ;;  %v2713_v11 = vrot.slane %v2704_v13, 1  ;;  %v2574_v3 = vpop.permute.xlu0 %2573 }
 0xd89   : > { %v2810_v56 = vpop.permute.xlu1 %2809 }
 0xd8a   : > { %v2711_v46 = vsel %vm1147_vm5, %v2709_v43, %v2710_v10  ;;  %v2714_v29 = vsel %vm1147_vm5, %v2712_v5, %v2713_v11  ;;  %v2812_v37 = vadd.f32 %v2810_v56, %v10246_v14  ;;  %v2814_v27 = vadd.f32 %v2810_v56, %v10247_v35 }
 0xd8b   : > { %v2813_v18 = vadd.f32 %v2810_v56, %v10248_v6  ;;  %v2815_v21 = vadd.f32 %v2810_v56, %v10249_v51  ;;  %v2553_v5 = vadd.f32 %v2550_v0, %v10238_v9 }
 0xd8c   : > { %2678 = vrot.lane.b32.xlu1 %v2675_v19, %s10065_s9  ;;  %2676 = vrot.lane.b32.xlu0 %v2672_v58, %s10065_s9  ;;  %v2820_v36 = vrot.slane %v2812_v37, 2  ;;  %v2821_v22 = vrot.slane %v2814_v27, 2 }
 0xd8d   : > { %v2823_v49 = vrot.slane %v2813_v18, 2  ;;  %v2824_v48 = vrot.slane %v2815_v21, 2  ;;  %v2572_v63 = vpop.permute.xlu1 %2571 }
 0xd8e   : > { %v2822_v41 = vsel %vm1262_vm6, %v2820_v36, %v2821_v22 }
 0xd8f   : > { %v2825_v8 = vsel %vm1262_vm6, %v2823_v49, %v2824_v48 }
 0xd90   : > { %2608 = vrot.lane.b32.xlu1 %v2598_v60, %s10066_s0  ;;  %2741 = vrot.lane.b32.xlu0 %v2740_v38, %s10072_s1 }
 0xd91   : > { %v2631_v53 = vpop.permute.xlu1 %2630 }
 0xd92   : > { %v2633_v13 = vadd.f32 %v2631_v53, %v10240_v1  ;;  %v2635_v43 = vadd.f32 %v2631_v53, %v10242_v39  ;;  %v2636_v26 = vadd.f32 %v2631_v53, %v10243_v17  ;;  %v2555_v17 = vadd.f32 %v2550_v0, %v10245_v50 }
 0xd94   : > { %2610 = vrot.lane.b32.xlu0 %v2599_v52, %s10066_s0  ;;  %2715 = vrot.lane.b32.xlu1 %v2711_v46, %s10066_s0  ;;  %v2579_v52 = vsel %vm1081_vm7, %v2572_v63, %v2574_v3  ;;  %v2641_v46 = vrot.slane %v2633_v13, 1  ;;  %v2642_v4 = vrot.slane %v2635_v43, 1  ;;  %v2645_v39 = vrot.slane %v2636_v26, 1 }
 0xd98   : > { %2717 = vrot.lane.b32.xlu0 %v2714_v29, %s10066_s0  ;;  %2680 = vrot.lane.b32.xlu1 %v2671_v23, %s10065_s9 }
 0xd9c   : > { %2682 = vrot.lane.b32.xlu0 %v2674_v7, %s10065_s9  ;;  %2787 = vrot.lane.b32.xlu1 %v2783_v12, %s10065_s9 }
 0xda0   : > { %2789 = vrot.lane.b32.xlu0 %v2786_v44, %s10065_s9  ;;  %2719 = vrot.lane.b32.xlu1 %v2710_v10, %s10066_s0  ;;  %v2634_v10 = vadd.f32 %v2631_v53, %v10241_v55 }
 0xda2   : > { %v2644_v29 = vrot.slane %v2634_v10, 1 }
 0xda4   : > { %2721 = vrot.lane.b32.xlu0 %v2713_v11, %s10066_s0  ;;  %2826 = vrot.lane.b32.xlu1 %v2822_v41, %s10066_s0  ;;  %v2552_v11 = vadd.f32 %v2550_v0, %v10239_v15  ;;  %v2646_v27 = vsel %vm1147_vm5, %v2644_v29, %v2645_v39 }
 0xda6   : > { %v2585_v1 = vmax.f32 %v2552_v11, %v2579_v52 }
 0xda8   : > { %2828 = vrot.lane.b32.xlu0 %v2825_v8, %s10066_s0  ;;  %2793 = vrot.lane.b32.xlu1 %v2785_v31, %s10065_s9  ;;  %v2643_v31 = vsel %vm1147_vm5, %v2641_v46, %v2642_v4 }
 0xdac   : > { %2791 = vrot.lane.b32.xlu0 %v2782_v30, %s10065_s9  ;;  %v2586_v30 = vmax.f32 %v2553_v5, %v2574_v3 }
 0xdb0   : > { %2830 = vrot.lane.b32.xlu0 %v2821_v22, %s10066_s0 }
 0xdf6   : > { %v2605_v23 = vpop.permute.xlu0 %2604  ;;  %v2607_v32 = vpop.permute.xlu1 %2606 }
 0xdf7   : > { %v2612_v47 = vsel %vm1116_vm8, %v2605_v23, %v2607_v32  ;;  %v2619_v55 = vmax.f32 %v2586_v30, %v2607_v32 }
 0xdf8   : > { %v2618_v56 = vmax.f32 %v2585_v1, %v2612_v47 }
 0xdf9   : > { %v2652_v22 = vmax.f32 %v2619_v55, %v2646_v27 }
 0xdfa   : > { %v2576_v7 = vpop.permute.xlu0 %2575  ;;  %v2578_v57 = vpop.permute.xlu1 %2577  ;;  %v2651_v33 = vmax.f32 %v2618_v56, %v2643_v31 }
 0xdfb   : > { %v2580_v15 = vsel %vm1081_vm7, %v2576_v7, %v2578_v57  ;;  %v2588_v37 = vmax.f32 %v2555_v17, %v2578_v57 }
 0xdfc   : > { %v2587_v41 = vmax.f32 %v2554_v45, %v2580_v15 }
 0xdfe   : > { %v2677_v62 = vpop.permute.xlu0 %2676  ;;  %v2679_v20 = vpop.permute.xlu1 %2678 }
 0xdff   : > { %v2684_v44 = vsel %vm1081_vm7, %v2677_v62, %v2679_v20 }
 0xe02   : > { %v2742_v54 = vpop.permute.xlu0 %2741  ;;  %v2609_v19 = vpop.permute.xlu1 %2608 }
 0xe03   : > { %v2744_v12 = vadd.f32 %v2742_v54, %v10246_v14  ;;  %v2745_v18 = vadd.f32 %v2742_v54, %v10248_v6  ;;  %v2746_v21 = vadd.f32 %v2742_v54, %v10247_v35  ;;  %v2747_v50 = vadd.f32 %v2742_v54, %v10249_v51 }
 0xe05   : > { %v2752_v14 = vrot.slane %v2744_v12, 2 }
 0xe06   : > { %v2611_v58 = vpop.permute.xlu0 %2610  ;;  %v2716_v38 = vpop.permute.xlu1 %2715 }
 0xe07   : > { %v2613_v49 = vsel %vm1116_vm8, %v2609_v19, %v2611_v58 }
 0xe08   : > { %v2620_v6 = vmax.f32 %v2587_v41, %v2613_v49 }
 0xe0a   : > { %v2718_v60 = vpop.permute.xlu0 %2717  ;;  %v2681_v42 = vpop.permute.xlu1 %2680  ;;  %v2653_v32 = vmax.f32 %v2620_v6, %v2642_v4  ;;  %v10253_v6 = vld [vmem:[#allocation11_spill] sm:$0xff] }
 0xe0b   : > { %v2723_v8 = vsel %vm1116_vm8, %v2716_v38, %v2718_v60 }
 0xe0e   : > { %v2683_v25 = vpop.permute.xlu0 %2682  ;;  %v2788_v28 = vpop.permute.xlu1 %2787 }
 0xe0f   : > { %v2685_v53 = vsel %vm1081_vm7, %v2681_v42, %v2683_v25 }
 0xe10   : > { %v2692_v38 = vmax.f32 %v2653_v32, %v2685_v53 }
 0xe12   : > { %v2790_v40 = vpop.permute.xlu0 %2789  ;;  %v2720_v9 = vpop.permute.xlu1 %2719 }
 0xe13   : > { %v2795_v62 = vsel %vm1081_vm7, %v2788_v28, %v2790_v40 }
 0xe16   : > { %v2722_v36 = vpop.permute.xlu0 %2721  ;;  %v2827_v0 = vpop.permute.xlu1 %2826 }
 0xe17   : > { %v2724_v19 = vsel %vm1116_vm8, %v2720_v9, %v2722_v36 }
 0xe18   : > { %v2731_v42 = vmax.f32 %v2692_v38, %v2724_v19 }
 0xe1a   : > { %v2829_v3 = vpop.permute.xlu0 %2828  ;;  %v2794_v13 = vpop.permute.xlu1 %2793 }
 0xe41   : > { %v4974_v59 = vpop.f32.mrf.mxu0 }
 0xe42   : > { %v4975_v2 = vadd.f32 %v5744_v61, %v4974_v59  ;;  %v2690_v61 = vmax.f32 %v2651_v33, %v2684_v44  ;;  %v2691_v59 = vmax.f32 %v2652_v22, %v2679_v20  ;;  %v9503_v33 = vld [vmem:[%s9890_s23] sm:$0xff] }
 0xe43   : > { %v6114_v16 = vpop.f32.mrf.mxu0 }
 0xe44   : > { %v4979_v34 = vrot.slane %v4975_v2, 5  ;;  %v2753_v2 = vrot.slane %v2746_v21, 2  ;;  %v2755_v16 = vrot.slane %v2745_v18, 2  ;;  %v2729_v35 = vmax.f32 %v2690_v61, %v2723_v8  ;;  %v10250_v61 = vld [vmem:[#allocation4_spill] sm:$0xff] }
 0xe45   : > { %v2730_v63 = vmax.f32 %v2691_v59, %v2718_v60  ;;  %v2834_v60 = vsel %vm1116_vm8, %v2827_v0, %v2829_v3  ;;  %v5053_v59 = vrot.slane %v9503_v33, %v10250_v61  ;;  %v5072_v0 = vrot.slane %v9503_v33, %v10253_v6 }
 0xe46   : > { %4980 = vrot.lane.b32.xlu1 %v4979_v34, %s10072_s1  ;;  %v2756_v34 = vrot.slane %v2747_v50, 2  ;;  %v2754_v7 = vsel %vm1262_vm6, %v2752_v14, %v2753_v2  ;;  %v2764_v47 = vmax.f32 %v2731_v42, %v2753_v2  ;;  %v10251_v14 = vld [vmem:[#allocation9_spill] sm:$0xff] }
 0xe47   : > { %v2762_v20 = vmax.f32 %v2729_v35, %v2754_v7  ;;  %v5034_v2 = vrot.slane %v9503_v33, %v10251_v14  ;;  %v9528_v35 = vld [vmem:[%s9890_s23 + $0x8] sm:$0xff] }
 0xe48   : > { %v2757_v57 = vsel %vm1262_vm6, %v2755_v16, %v2756_v34  ;;  %v10252_v16 = vld [vmem:[#allocation8_spill] sm:$0xff]  ;;  %v5232_v7 = vrot.slane %v9528_v35, %v10253_v6 }
 0xe49   : > { %v2763_v54 = vmax.f32 %v2730_v63, %v2757_v57  ;;  %v2801_v43 = vmax.f32 %v2762_v20, %v2795_v62  ;;  %v10254_v63 = vld [vmem:[#allocation7_spill] sm:$0xff]  ;;  %v9545_v57 = vld [vmem:[%s9890_s23 + $0x10] sm:$0xff] }
 0xe4a   : > { %2832 = vrot.lane.b32.xlu1 %v2824_v48, %s10066_s0  ;;  %v2621_v48 = vmax.f32 %v2588_v37, %v2611_v58  ;;  %v5350_v62 = vrot.slane %v9545_v57, %v10254_v63  ;;  %v10257_v20 = vld [vmem:[#allocation10_spill] sm:$0xff]  ;;  %v5408_v19 = vrot.slane %v9545_v57, %v10250_v61  ;;  %v5477_v38 = vrot.slane %v9545_v57, %v10252_v16 }
 0xe4b   : > { %v2802_v10 = vmax.f32 %v2763_v54, %v2790_v40  ;;  %v2840_v26 = vmax.f32 %v2801_v43, %v2834_v60  ;;  %v5290_v54 = vrot.slane %v9528_v35, %v10257_v20  ;;  %v5458_v60 = vrot.slane %v9545_v57, %v10257_v20 }
 0xe4c   : > { %v2654_v51 = vmax.f32 %v2621_v48, %v2645_v39 }
 0xe4d   : > { %v2841_v52 = vmax.f32 %v2802_v10, %v2829_v3  ;;  %v10255_v3 = vld [vmem:[#allocation6_spill] sm:$0xff] }
 0xe4e   : > { %v2693_v23 = vmax.f32 %v2654_v51, %v2683_v25  ;;  %v2792_v25 = vpop.permute.xlu0 %2791  ;;  %v5173_v51 = vrot.slane %v9528_v35, %v10254_v63  ;;  %v5144_v53 = vrot.slane %v9503_v33, %v10255_v3 }
 0xe4f   : > { %v2796_v46 = vsel %vm1081_vm7, %v2792_v25, %v2794_v13 }
 0xe50   : > { %v2732_v58 = vmax.f32 %v2693_v23, %v2722_v36  ;;  %v2803_v39 = vmax.f32 %v2764_v47, %v2796_v46  ;;  %v10256_v23 = vld [vmem:[#allocation5_spill] sm:$0xff] }
 0xe51   : > { %v5261_v32 = vrot.slane %v9528_v35, %v10256_v23 }
 0xe52   : > { %v2765_v5 = vmax.f32 %v2732_v58, %v2756_v34  ;;  %v2831_v56 = vpop.permute.xlu0 %2830  ;;  %v5115_v34 = vrot.slane %v9503_v33, %v10252_v16  ;;  %v5379_v58 = vrot.slane %v9545_v57, %v10251_v14 }
 0xe54   : > { %v2804_v30 = vmax.f32 %v2765_v5, %v2794_v13  ;;  %v5496_v13 = vrot.slane %v9545_v57, %v10255_v3 }
 0xeb8   : > { %v4981_v11 = vpop.permute.xlu1 %4980 }
 0xeb9   : > { %v4983_v28 = vadd.f32 %v4981_v11, %v2840_v26  ;;  %v4984_v4 = vadd.f32 %v4981_v11, %v2841_v52 }
 0xebb   : > { %v4987_v1 = vmax.f32 %v4983_v28, 0.0  ;;  %v4988_v29 = vmax.f32 %v4984_v4, 0.0  ;;  %v5635_v27 = vrot.slane %v4984_v4, 3  ;;  %v5632_v18 = vrot.slane %v4983_v28, 3 }
 0xebc   : > { %v2833_v55 = vpop.permute.xlu1 %2832 }
 0xebd   : > { %v2835_v17 = vsel %vm1116_vm8, %v2831_v56, %v2833_v55  ;;  %v2843_v40 = vmax.f32 %v2804_v30, %v2833_v55  ;;  %v4996_v45 = vrot.slane %v4988_v29, 7  ;;  %v4995_v31 = vrot.slane %v4987_v1, 7 }
 0xebe   : > { %v2842_v9 = vmax.f32 %v2803_v39, %v2835_v17 }
 0xebf   : > { %v4986_v15 = vadd.f32 %v4981_v11, %v2843_v40  ;;  %5003 = vrot.lane.b32.xlu1 %v4996_v45, %s6209_s8  ;;  %5001 = vrot.lane.b32.xlu0 %v4995_v31, %s6209_s8 }
 0xec0   : > { %v4985_v37 = vadd.f32 %v4981_v11, %v2842_v9 }
 0xec1   : > { %v4990_v12 = vmax.f32 %v4986_v15, 0.0  ;;  %v5636_v44 = vrot.slane %v4986_v15, 3 }
 0xec2   : > { %v4989_v21 = vmax.f32 %v4985_v37, 0.0  ;;  %v5633_v50 = vrot.slane %v4985_v37, 3 }
 0xec3   : > { %v4999_v36 = vrot.slane %v4990_v12, 7  ;;  %v9506_v22 = vsel %vm1384_vm9, %v5635_v27, %v5636_v44  ;;  %v5102_v44 = vrot.slane %v9503_v33, %v10257_v20 }
 0xec4   : > { %v4997_v49 = vrot.slane %v4989_v21, 7  ;;  %v9509_v48 = vsel %vm1384_vm9, %v5632_v18, %v5633_v50  ;;  %v5202_v21 = vrot.slane %v9528_v35, %v10251_v14  ;;  %v9614_v14 = vrot.slane %v9528_v35, %v10252_v16 }
 0xec5   : > { %v5000_v41 = vsel %vm2852_vm13, %v4996_v45, %v4999_v36 }
 0xec6   : > { %5007 = vrot.lane.b32.xlu1 %v5000_v41, %s6209_s8  ;;  %v4998_v8 = vsel %vm2852_vm13, %v4995_v31, %v4997_v49 }
 0xec7   : > { %5005 = vrot.lane.b32.xlu0 %v4998_v8, %s6209_s8 }
 0xeca   : > { %5055 = vrot.lane.b32.xlu1 %v5053_v59, %s10068_s2 }
 0xecb   : > { %5036 = vrot.lane.b32.xlu0 %v5034_v2, %s6208_s25 }
 0xece   : > { %5117 = vrot.lane.b32.xlu1 %v5115_v34, %s6208_s25  ;;  %v5219_v34 = vrot.slane %v9528_v35, %v10250_v61 }
 0xecf   : > { %5074 = vrot.lane.b32.xlu0 %v5072_v0, %s10066_s0  ;;  %v9608_v0 = vrot.slane %v9528_v35, %v10255_v3 }
 0xed2   : > { %5175 = vrot.lane.b32.xlu1 %v5173_v51, %s10066_s0 }
 0xed3   : > { %5146 = vrot.lane.b32.xlu0 %v5144_v53, %s10068_s2 }
 0xed6   : > { %5263 = vrot.lane.b32.xlu1 %v5261_v32, %s10068_s2  ;;  %v9618_v32 = vrot.slane %v9545_v57, %v10253_v6 }
 0xed7   : > { %5234 = vrot.lane.b32.xlu0 %v5232_v7, %s6208_s25 }
 0xeda   : > { %5352 = vrot.lane.b32.xlu1 %v5350_v62, %s6208_s25 }
 0xedb   : > { %5292 = vrot.lane.b32.xlu0 %v5290_v54, %s10066_s0 }
 0xede   : > { %5410 = vrot.lane.b32.xlu1 %v5408_v19, %s10066_s0 }
 0xedf   : > { %5381 = vrot.lane.b32.xlu0 %v5379_v58, %s10068_s2 }
 0xee2   : > { %5479 = vrot.lane.b32.xlu1 %v5477_v38, %s10068_s2 }
 0xee3   : > { %5460 = vrot.lane.b32.xlu0 %v5458_v60, %s6208_s25 }
 0xee7   : > { %5498 = vrot.lane.b32.xlu0 %v5496_v13, %s10066_s0 }
 0xf31   : > { %v5002_v43 = vpop.permute.xlu0 %5001  ;;  %v5004_v10 = vpop.permute.xlu1 %5003 }
 0xf32   : > { %5015 = vst.msk [vmem:[#allocation2] sm:$0xf0] %vm1027_vm1, %v5002_v43  ;;  %v5009_v42 = vsel %vm2867_vm14, %v5002_v43, %v5004_v10 }
 0xf33   : > { %5016 = vst.msk [vmem:[#allocation2 + $0x8] sm:$0xf0] %vm1029_vm2, %v5009_v42 }
 0xf38   : > { %v5008_v25 = vpop.permute.xlu1 %5007 }
 0xf39   : > { %v5006_v26 = vpop.permute.xlu0 %5005  ;;  %v9576_v11 = vld [vmem:[#allocation2] sm:$0xff] }
 0xf3a   : > { %v5010_v52 = vsel %vm2867_vm14, %v5006_v26, %v5008_v25  ;;  %5017 = vst.msk [vmem:[#allocation2 + $0x10] sm:$0xf] %vm1031_vm3, %v5006_v26  ;;  %v9578_v46 = vld [vmem:[#allocation2 + $0x8] sm:$0xff]  ;;  %v5095_v17 = vld [vmem:[#allocation2] sm:$0xfc] }
 0xf3b   : > { %5018 = vst.msk [vmem:[#allocation2 + $0x18] sm:$0xf] %vm1033_vm4, %v5010_v52  ;;  %v5096_v9 = vld [vmem:[#allocation2 + $0x8] sm:$0xfc]  ;;  %v9610_v53 = vmul.f32 %v5102_v44, %v5095_v17  ;;  %v5212_v61 = vld [vmem:[#allocation2] sm:$0xf0] }
 0xf3c   : > { %v5056_v5 = vpop.permute.xlu1 %5055  ;;  %v9621_v54 = vld [vmem:[#allocation2 + $0x8] sm:$0xf0]  ;;  %v9623_v3 = vld [vmem:[#allocation2] sm:$0xc0]  ;;  %v9625_v19 = vmul.f32 %v5202_v21, %v5096_v9  ;;  %v9635_v25 = vmul.f32 %v5219_v34, %v5212_v61 }
 0xf3d   : > { %v5037_v28 = vpop.permute.xlu0 %5036  ;;  %v5058_v29 = vmul.f32 %v5056_v5, %v9576_v11  ;;  %v5059_v39 = vmul.f32 %v5056_v5, %v9578_v46  ;;  %v9629_v60 = vld [vmem:[#allocation2 + $0x8] sm:$0xc0]  ;;  %v5107_v42 = vrot.slane %v9610_v53, 2  ;;  %v9639_v26 = vmul.f32 %v9614_v14, %v9621_v54  ;;  %v5530_v53 = vld [vmem:[%s10258_s5 + $0x60] sm:$0xff] }
 0xf3e   : > { %v5039_v4 = vmul.f32 %v5037_v28, %v9576_v11  ;;  %v5040_v47 = vmul.f32 %v5037_v28, %v9578_v46  ;;  %v9643_v52 = vmul.f32 %v9608_v0, %v9623_v3 }
 0xf40   : > { %5043 = vrot.lane.b32.xlu1 %v5039_v4, %s10066_s0  ;;  %5045 = vrot.lane.b32.xlu0 %v5040_v47, %s10066_s0  ;;  %v5118_v30 = vpop.permute.xlu1 %5117 }
 0xf41   : > { %v5075_v1 = vpop.permute.xlu0 %5074  ;;  %v9586_v56 = vld [vmem:[#allocation2 + $0x10] sm:$0x3]  ;;  %v5120_v40 = vmul.f32 %v5118_v30, %v5095_v17  ;;  %v5121_v12 = vmul.f32 %v5118_v30, %v5096_v9 }
 0xf42   : > { %v9588_v55 = vld [vmem:[#allocation2 + $0x18] sm:$0x3]  ;;  %v5122_v45 = vmul.f32 %v5118_v30, %v9586_v56  ;;  %v5077_v15 = vmul.f32 %v5075_v1, %v9576_v11  ;;  %v5078_v37 = vmul.f32 %v5075_v1, %v9578_v46  ;;  %v5214_v4 = vld [vmem:[#allocation2 + $0x10] sm:$0xf]  ;;  %v9648_v1 = vmul.f32 %v9618_v32, %v9629_v60 }
 0xf43   : > { %v5123_v31 = vmul.f32 %v5118_v30, %v9588_v55  ;;  %v5128_v18 = vrot.slane %v5120_v40, 2  ;;  %v5131_v51 = vrot.slane %v5121_v12, 2  ;;  %v5207_v30 = vrot.slane %v9625_v19, 2 }
 0xf44   : > { %5064 = vrot.lane.b32.xlu0 %v5059_v39, %s10068_s2  ;;  %5062 = vrot.lane.b32.xlu1 %v5058_v29, %s10068_s2  ;;  %v5129_v50 = vrot.slane %v5122_v45, 2  ;;  %v5176_v49 = vpop.permute.xlu1 %5175  ;;  %v5215_v39 = vld [vmem:[#allocation2 + $0x18] sm:$0xf]  ;;  %v5104_v12 = vmul.f32 %v5102_v44, %v9586_v56 }
 0xf45   : > { %v5147_v27 = vpop.permute.xlu0 %5146  ;;  %v5132_v36 = vrot.slane %v5123_v31, 2  ;;  %v5178_v7 = vmul.f32 %v5176_v49, %v5095_v17  ;;  %v5179_v62 = vmul.f32 %v5176_v49, %v5096_v9  ;;  %v5180_v20 = vmul.f32 %v5176_v49, %v9586_v56 }
 0xf46   : > { %v5150_v41 = vmul.f32 %v5147_v27, %v5096_v9  ;;  %v5152_v8 = vmul.f32 %v5147_v27, %v9588_v55  ;;  %v5149_v59 = vmul.f32 %v5147_v27, %v5095_v17  ;;  %v5151_v2 = vmul.f32 %v5147_v27, %v9586_v56 }
 0xf47   : > { %v5133_v16 = vsel %vm1262_vm6, %v5131_v51, %v5132_v36  ;;  %v5130_v35 = vsel %vm1262_vm6, %v5128_v18, %v5129_v50  ;;  %v5181_v6 = vmul.f32 %v5176_v49, %v9588_v55  ;;  %v5186_v5 = vrot.slane %v5178_v7, 2  ;;  %v5533_v50 = vld [vmem:[%s10258_s5 + $0x78] sm:$0xff] }
 0xf48   : > { %5083 = vrot.lane.b32.xlu0 %v5078_v37, %s6208_s25  ;;  %5081 = vrot.lane.b32.xlu1 %v5077_v15, %s6208_s25  ;;  %v5160_v58 = vrot.slane %v5150_v41, 2  ;;  %v5161_v38 = vrot.slane %v5152_v8, 2  ;;  %v5157_v13 = vrot.slane %v5149_v59, 2  ;;  %v5158_v43 = vrot.slane %v5151_v2, 2  ;;  %v5264_v47 = vpop.permute.xlu1 %5263 }
 0xf49   : > { %v5235_v10 = vpop.permute.xlu0 %5234  ;;  %v5187_v28 = vrot.slane %v5180_v20, 2  ;;  %v5189_v29 = vrot.slane %v5179_v62, 2  ;;  %v5190_v31 = vrot.slane %v5181_v6, 2  ;;  %v9654_v27 = vmul.f32 %v5264_v47, %v5212_v61  ;;  %6116 = vmatpush3.msra.mxu1 %v5533_v50 }
 0xf4a   : > { %v5237_v17 = vmul.f32 %v5235_v10, %v5212_v61  ;;  %v5239_v40 = vmul.f32 %v5235_v10, %v5214_v4  ;;  %v5162_v45 = vsel %vm1262_vm6, %v5160_v58, %v5161_v38  ;;  %v5238_v9 = vmul.f32 %v5235_v10, %v9621_v54  ;;  %6117 = vmatprep.subr.mxu1 %v10235_v24 }
 0xf4b   : > { %v5240_v15 = vmul.f32 %v5235_v10, %v5215_v39  ;;  %v5159_v37 = vsel %vm1262_vm6, %v5157_v13, %v5158_v43  ;;  %v5224_v18 = vrot.slane %v9635_v25, 4  ;;  %v5324_v36 = vrot.slane %v9639_v26, 4  ;;  %v5331_v26 = vld [vmem:[#allocation2 + $0x10] sm:$0x3f] }
 0xf4c   : > { %5136 = vrot.lane.b32.xlu0 %v5133_v16, %s10066_s0  ;;  %5134 = vrot.lane.b32.xlu1 %v5130_v35, %s10066_s0  ;;  %v5267_v49 = vmul.f32 %v5264_v47, %v9621_v54  ;;  %v5268_v41 = vmul.f32 %v5264_v47, %v5214_v4  ;;  %v5204_v59 = vmul.f32 %v5202_v21, %v9588_v55  ;;  %v5245_v7 = vrot.slane %v5237_v17, 4  ;;  %v5353_v58 = vpop.permute.xlu1 %5352 }
 0xf4d   : > { %v5293_v8 = vpop.permute.xlu0 %5292  ;;  %v5221_v2 = vmul.f32 %v5219_v34, %v5214_v4  ;;  %v5269_v51 = vmul.f32 %v5264_v47, %v5215_v39  ;;  %v5246_v62 = vrot.slane %v5239_v40, 4  ;;  %v5342_v56 = vrot.slane %v9643_v52, 6  ;;  %v5332_v47 = vld [vmem:[#allocation2 + $0x18] sm:$0x3f] }
 0xf4e   : > { %v5248_v44 = vrot.slane %v5238_v9, 4  ;;  %v5249_v20 = vrot.slane %v5240_v15, 4  ;;  %v5191_v38 = vsel %vm1262_vm6, %v5189_v29, %v5190_v31  ;;  %v5188_v16 = vsel %vm1262_vm6, %v5186_v5, %v5187_v28  ;;  %v5532_v28 = vld [vmem:[%s10258_s5 + $0x70] sm:$0xff] }
 0xf4f   : > { %v5274_v35 = vrot.slane %v9654_v27, 4  ;;  %v9670_v55 = vmul.f32 %v5293_v8, %v5212_v61  ;;  %v5108_v21 = vrot.slane %v5104_v12, 2  ;;  %v5321_v34 = vmul.f32 %v9614_v14, %v5215_v39  ;;  %6118 = vmatpush3.msra.mxu1 %v5532_v28 }
 0xf50   : > { %5165 = vrot.lane.b32.xlu0 %v5162_v45, %s10068_s2  ;;  %5163 = vrot.lane.b32.xlu1 %v5159_v37, %s10068_s2  ;;  %v5275_v6 = vrot.slane %v5268_v41, 4  ;;  %v5277_v13 = vrot.slane %v5267_v49, 4  ;;  %v5208_v43 = vrot.slane %v5204_v59, 2  ;;  %v5225_v10 = vrot.slane %v5221_v2, 4  ;;  %v5531_v45 = vld [vmem:[%s10258_s5 + $0x68] sm:$0xff] }
 0xf51   : > { %v5278_v25 = vrot.slane %v5269_v51, 4  ;;  %v9676_v52 = vmul.f32 %v5353_v58, %v9623_v3  ;;  %v5296_v5 = vmul.f32 %v5293_v8, %v9621_v54  ;;  %v5297_v61 = vmul.f32 %v5293_v8, %v5214_v4  ;;  %6119 = vmatprep.subr.mxu1 %v10235_v24 }
 0xf52   : > { %v9683_v29 = vmul.f32 %v5353_v58, %v9629_v60  ;;  %v5298_v14 = vmul.f32 %v5293_v8, %v5215_v39  ;;  %v5250_v17 = vsel %vm2320_vm11, %v5248_v44, %v5249_v20  ;;  %v5247_v40 = vsel %vm2320_vm11, %v5245_v7, %v5246_v62  ;;  %6120 = vmatpush3.msra.mxu1 %v5531_v45  ;;  %v5411_v44 = vpop.permute.xlu1 %5410  ;;  %v5524_v45 = vld [vmem:[%s10258_s5 + $0x30] sm:$0xff] }
 0xf53   : > { %v5357_v54 = vmul.f32 %v5353_v58, %v5331_v26  ;;  %v5358_v4 = vmul.f32 %v5353_v58, %v5332_v47  ;;  %v5303_v31 = vrot.slane %v9670_v55, 4  ;;  %v5325_v9 = vrot.slane %v5321_v34, 4  ;;  %6121 = vmatprep.subr.mxu1 %v10235_v24 }
 0xf54   : > { %5194 = vrot.lane.b32.xlu0 %v5191_v38, %s6208_s25  ;;  %5192 = vrot.lane.b32.xlu1 %v5188_v16, %s6208_s25  ;;  %v9696_v39 = vsel %vm1262_vm6, %v5107_v42, %v5108_v21  ;;  %v9701_v15 = vsel %vm1262_vm6, %v5207_v30, %v5208_v43  ;;  %v9704_v37 = vsel %vm2320_vm11, %v5224_v18, %v5225_v10  ;;  %v5304_v12 = vrot.slane %v5297_v61, 4  ;;  %v5382_v30 = vpop.permute.xlu0 %5381 }
 0xf55   : > { %v5338_v27 = vmul.f32 %v9608_v0, %v5331_v26  ;;  %v5306_v50 = vrot.slane %v5296_v5, 4  ;;  %v9709_v49 = vsel %vm2320_vm11, %v5324_v36, %v5325_v9  ;;  %v5439_v19 = vmul.f32 %v9618_v32, %v5332_v47  ;;  %v5529_v36 = vld [vmem:[%s10258_s5 + $0x58] sm:$0xff]  ;;  %6122 = vmatpush3.msra.mxu1 %v5530_v53  ;;  %v5523_v9 = vld [vmem:[%s10258_s5 + $0x28] sm:$0xff] }
 0xf56   : > { %v5307_v42 = vrot.slane %v5298_v14, 4  ;;  %v5279_v18 = vsel %vm2320_vm11, %v5277_v13, %v5278_v25  ;;  %v5276_v41 = vsel %vm2320_vm11, %v5274_v35, %v5275_v6  ;;  %v5442_v8 = vrot.slane %v9648_v1, 6  ;;  %6123 = vmatprep.subr.mxu1 %v10235_v24  ;;  %v5527_v25 = vld [vmem:[%s10258_s5 + $0x48] sm:$0xff] }
 0xf57   : > { %v5343_v0 = vrot.slane %v5338_v27, 6  ;;  %v5443_v32 = vrot.slane %v5439_v19, 6  ;;  %v5363_v59 = vrot.slane %v9676_v52, 6  ;;  %v5364_v2 = vrot.slane %v5357_v54, 6  ;;  %6124 = vmatpush3.msra.mxu1 %v5529_v36  ;;  %v9776_v27 = vld [vmem:[#allocation2 + $0x10] sm:$0xff]  ;;  %v5480_v19 = vpop.permute.xlu1 %5479 }
 0xf58   : > { %5253 = vrot.lane.b32.xlu0 %v5250_v17, %s10066_s0  ;;  %5251 = vrot.lane.b32.xlu1 %v5247_v40, %s10066_s0  ;;  %v5366_v51 = vrot.slane %v9683_v29, 6  ;;  %v5367_v62 = vrot.slane %v5358_v4, 6  ;;  %v5384_v20 = vmul.f32 %v5382_v30, %v9623_v3  ;;  %v5385_v58 = vmul.f32 %v5382_v30, %v9629_v60  ;;  %v5525_v40 = vld [vmem:[%s10258_s5 + $0x38] sm:$0xff]  ;;  %v5461_v54 = vpop.permute.xlu0 %5460  ;;  %v5520_v36 = vld [vmem:[%s10258_s5 + $0x10] sm:$0xff] }
 0xf59   : > { %v9727_v7 = vsel %vm5341_vm15, %v5342_v56, %v5343_v0  ;;  %v9733_v1 = vsel %vm5341_vm15, %v5442_v8, %v5443_v32  ;;  %v5386_v38 = vmul.f32 %v5382_v30, %v5331_v26  ;;  %v5387_v16 = vmul.f32 %v5382_v30, %v5332_v47  ;;  %v5528_v56 = vld [vmem:[%s10258_s5 + $0x50] sm:$0xff]  ;;  %6125 = vmatprep.subr.mxu1 %v10235_v24 }
 0xf5a   : > { %v5308_v35 = vsel %vm2320_vm11, %v5306_v50, %v5307_v42  ;;  %v5305_v55 = vsel %vm2320_vm11, %v5303_v31, %v5304_v12  ;;  %v5413_v21 = vmul.f32 %v5411_v44, %v9623_v3  ;;  %v5414_v34 = vmul.f32 %v5411_v44, %v9629_v60  ;;  %6126 = vmatpush3.msra.mxu1 %v5528_v56  ;;  %v5526_v3 = vld [vmem:[%s10258_s5 + $0x40] sm:$0xff]  ;;  %v9778_v12 = vld [vmem:[#allocation2 + $0x18] sm:$0xff] }
 0xf5b   : > { %v5415_v6 = vmul.f32 %v5411_v44, %v5331_v26  ;;  %v5416_v13 = vmul.f32 %v5411_v44, %v5332_v47  ;;  %v5392_v43 = vrot.slane %v5384_v20, 6  ;;  %v5395_v10 = vrot.slane %v5385_v58, 6  ;;  %6127 = vmatprep.subr.mxu1 %v10235_v24  ;;  %v5522_v42 = vld [vmem:[%s10258_s5 + $0x20] sm:$0xff] }
 0xf5c   : > { %5282 = vrot.lane.b32.xlu0 %v5279_v18, %s10068_s2  ;;  %5280 = vrot.lane.b32.xlu1 %v5276_v41, %s10068_s2  ;;  %v5393_v52 = vrot.slane %v5386_v38, 6  ;;  %v5396_v5 = vrot.slane %v5387_v16, 6  ;;  %v5368_v61 = vsel %vm5341_vm15, %v5366_v51, %v5367_v62  ;;  %v5365_v28 = vsel %vm5341_vm15, %v5363_v59, %v5364_v2  ;;  %v5521_v41 = vld [vmem:[%s10258_s5 + $0x18] sm:$0xff]  ;;  %v5499_v0 = vpop.permute.xlu0 %5498  ;;  %v5519_v59 = vld [vmem:[%s10258_s5 + $0x8] sm:$0xff]  ;;  %v10259_v51 = vld [vmem:[#allocation12_spill] sm:$0xff] }
 0xf5d   : > { %6128 = vmatpush3.msra.mxu1 %v5527_v25  ;;  %v5421_v60 = vrot.slane %v5413_v21, 6  ;;  %v5424_v26 = vrot.slane %v5414_v34, 6  ;;  %v5422_v47 = vrot.slane %v5415_v6, 6  ;;  %v5425_v29 = vrot.slane %v5416_v13, 6  ;;  %v5518_v2 = vld [vmem:[%s10258_s5] sm:$0xff]  ;;  %v10260_v62 = vld [vmem:[#allocation13_spill] sm:$0xff] }
 0xf5e   : > { %6129 = vmatprep.subr.mxu1 %v10235_v24  ;;  %v5397_v14 = vsel %vm5341_vm15, %v5395_v10, %v5396_v5  ;;  %v5394_v17 = vsel %vm5341_vm15, %v5392_v43, %v5393_v52  ;;  %v5463_v50 = vmul.f32 %v5461_v54, %v9776_v27  ;;  %v5464_v53 = vmul.f32 %v5461_v54, %v9778_v12 }
 0xf5f   : > { %6130 = vmatpush3.msra.mxu1 %v5526_v3  ;;  %v5426_v4 = vsel %vm5341_vm15, %v5424_v26, %v5425_v29  ;;  %v5423_v31 = vsel %vm5341_vm15, %v5421_v60, %v5422_v47  ;;  %v5482_v30 = vmul.f32 %v5480_v19, %v9776_v27  ;;  %v5483_v18 = vmul.f32 %v5480_v19, %v9778_v12 }
 0xf60   : > { %5311 = vrot.lane.b32.xlu0 %v5308_v35, %s6208_s25  ;;  %5309 = vrot.lane.b32.xlu1 %v5305_v55, %s6208_s25  ;;  %v5501_v8 = vmul.f32 %v5499_v0, %v9776_v27  ;;  %v5502_v32 = vmul.f32 %v5499_v0, %v9778_v12  ;;  %v5028_v20 = vrot.slane %v9503_v33, %v10254_v63 }
 0xf61   : > { %6131 = vmatprep.subr.mxu1 %v10235_v24 }
 0xf62   : > { %6132 = vmatpush3.msra.mxu1 %v5525_v40  ;;  %v5029_v38 = vmul.f32 %v5028_v20, %v9576_v11 }
 0xf63   : > { %6133 = vmatprep.subr.mxu1 %v10235_v24 }
 0xf64   : > { %5371 = vrot.lane.b32.xlu0 %v5368_v61, %s10066_s0  ;;  %5369 = vrot.lane.b32.xlu1 %v5365_v28, %s10066_s0 }
 0xf65   : > { %6134 = vmatpush3.msra.mxu1 %v5524_v45 }
 0xf66   : > { %6135 = vmatprep.subr.mxu1 %v10235_v24 }
 0xf67   : > { %6136 = vmatpush3.msra.mxu1 %v5523_v9 }
 0xf68   : > { %5400 = vrot.lane.b32.xlu0 %v5397_v14, %s10068_s2  ;;  %5398 = vrot.lane.b32.xlu1 %v5394_v17, %s10068_s2 }
 0xf69   : > { %6137 = vmatprep.subr.mxu1 %v10235_v24 }
 0xf6a   : > { %6138 = vmatpush3.msra.mxu1 %v5522_v42 }
 0xf6b   : > { %6139 = vmatprep.subr.mxu1 %v10235_v24 }
 0xf6c   : > { %5429 = vrot.lane.b32.xlu0 %v5426_v4, %s6208_s25  ;;  %5427 = vrot.lane.b32.xlu1 %v5423_v31, %s6208_s25 }
 0xf6d   : > { %6140 = vmatpush3.msra.mxu1 %v5521_v41 }
 0xf6e   : > { %6141 = vmatprep.subr.mxu1 %v10235_v24 }
 0xf6f   : > { %6142 = vmatpush3.msra.mxu1 %v5520_v36 }
 0xf70   : > { %5469 = vrot.lane.b32.xlu0 %v5464_v53, %s10066_s0  ;;  %5467 = vrot.lane.b32.xlu1 %v5463_v50, %s10066_s0 }
 0xf71   : > { %6143 = vmatprep.subr.mxu1 %v10235_v24 }
 0xf72   : > { %6144 = vmatpush3.msra.mxu1 %v5519_v59 }
 0xf73   : > { %6145 = vmatprep.subr.mxu1 %v10235_v24 }
 0xf74   : > { %5488 = vrot.lane.b32.xlu0 %v5483_v18, %s10068_s2  ;;  %5486 = vrot.lane.b32.xlu1 %v5482_v30, %s10068_s2 }
 0xf75   : > { %6146 = vmatpush3.msra.mxu1 %v5518_v2 }
 0xf78   : > { %5507 = vrot.lane.b32.xlu0 %v5502_v32, %s6208_s25  ;;  %5505 = vrot.lane.b32.xlu1 %v5501_v8, %s6208_s25 }
 0xf7c   : > { %5624 = vrot.lane.b32.xlu0 %v10259_v51, %s10060_s4  ;;  %5622 = vrot.lane.b32.xlu1 %v10260_v62, %s10060_s4  ;;  %v5452_v62 = vrot.slane %v9545_v57, %v10256_v23 }
 0xf80   : > { %5640 = vrot.lane.b32.xlu0 %v9506_v22, %s10060_s4  ;;  %5638 = vrot.lane.b32.xlu1 %v9509_v48, %s10060_s4  ;;  %v5092_v22 = vrot.slane %v9503_v33, %v10256_v23  ;;  %v5745_v23 = vld [vmem:[%s9890_s23 + $0x18] ss:$0 sm:$0xff] }
 0xf82   : > { %v5093_v63 = vmul.f32 %v5092_v22, %v9578_v46 }
 0xfb2   : > { %v5046_v44 = vpop.permute.xlu0 %5045  ;;  %v5044_v58 = vpop.permute.xlu1 %5043 }
 0xfb3   : > { %v5047_v24 = vsel %vm1116_vm8, %v5044_v58, %v5046_v44 }
 0xfb4   : > { %v5049_v56 = vadd.f32 %v5047_v24, %v5029_v38 }
 0xfb6   : > { %v5065_v16 = vpop.permute.xlu0 %5064  ;;  %v5063_v35 = vpop.permute.xlu1 %5062 }
 0xfb7   : > { %v5066_v55 = vsel %vm2175_vm12, %v5063_v35, %v5065_v16 }
 0xfb8   : > { %v5068_v21 = vadd.f32 %v5066_v55, %v5049_v56 }
 0xfba   : > { %v5084_v48 = vpop.permute.xlu0 %5083  ;;  %v5082_v34 = vpop.permute.xlu1 %5081 }
 0xfbb   : > { %v5086_v6 = vsel %vm5085_vm0, %v5082_v34, %v5084_v48  ;;  %v5516_v48 = vmul.f32 %v5745_v23, %v9778_v12 }
 0xfbc   : > { %v5088_v13 = vadd.f32 %v5086_v6, %v5068_v21 }
 0xfbe   : > { %v5094_v43 = vadd.f32 %v5093_v63, %v5088_v13  ;;  %v5137_v10 = vpop.permute.xlu0 %5136  ;;  %v5135_v25 = vpop.permute.xlu1 %5134 }
 0xfbf   : > { %v5138_v52 = vsel %vm1116_vm8, %v5135_v25, %v5137_v10 }
 0xfc0   : > { %v5111_v11 = vadd.f32 %v9696_v39, %v5094_v43 }
 0xfc2   : > { %v5166_v5 = vpop.permute.xlu0 %5165  ;;  %v5140_v61 = vadd.f32 %v5138_v52, %v5111_v11  ;;  %v5164_v28 = vpop.permute.xlu1 %5163  ;;  %v5746_v52 = vld [vmem:[%s10261_s10] ss:$0 sm:$0xff] }
 0xfc3   : > { %v5167_v33 = vsel %vm2175_vm12, %v5164_v28, %v5166_v5  ;;  %v6192_v28 = vld [vmem:[%s7031_s29] sm:$0xff] }
 0xfc4   : > { %v5169_v3 = vadd.f32 %v5167_v33, %v5140_v61 }
 0xfc6   : > { %v5195_v60 = vpop.permute.xlu0 %5194  ;;  %v5193_v26 = vpop.permute.xlu1 %5192 }
 0xfc7   : > { %v5196_v47 = vsel %vm5085_vm0, %v5193_v26, %v5195_v60 }
 0xfc8   : > { %v5198_v29 = vadd.f32 %v5196_v47, %v5169_v3 }
 0xfca   : > { %v5211_v46 = vadd.f32 %v9701_v15, %v5198_v29  ;;  %v5254_v14 = vpop.permute.xlu0 %5253  ;;  %v5252_v17 = vpop.permute.xlu1 %5251 }
 0xfcb   : > { %v5255_v40 = vsel %vm1116_vm8, %v5252_v17, %v5254_v14 }
 0xfcc   : > { %v5228_v39 = vadd.f32 %v9704_v37, %v5211_v46 }
 0xfce   : > { %v5257_v45 = vadd.f32 %v5255_v40, %v5228_v39  ;;  %v5283_v54 = vpop.permute.xlu0 %5282  ;;  %v5281_v4 = vpop.permute.xlu1 %5280 }
 0xfcf   : > { %v5284_v31 = vsel %vm2175_vm12, %v5281_v4, %v5283_v54 }
 0xfd0   : > { %v5286_v9 = vadd.f32 %v5284_v31, %v5257_v45 }
 0xfd2   : > { %v5312_v50 = vpop.permute.xlu0 %5311  ;;  %v5310_v53 = vpop.permute.xlu1 %5309 }
 0xfd3   : > { %v5313_v19 = vsel %vm5085_vm0, %v5310_v53, %v5312_v50 }
 0xfd4   : > { %v5315_v42 = vadd.f32 %v5313_v19, %v5286_v9 }
 0xfd6   : > { %v5328_v30 = vadd.f32 %v9709_v49, %v5315_v42  ;;  %v5372_v15 = vpop.permute.xlu0 %5371  ;;  %v5370_v18 = vpop.permute.xlu1 %5369 }
 0xfd7   : > { %v5373_v37 = vsel %vm1116_vm8, %v5370_v18, %v5372_v15 }
 0xfd8   : > { %v5346_v41 = vadd.f32 %v9727_v7, %v5328_v30  ;;  %v5453_v7 = vmul.f32 %v5452_v62, %v9776_v27 }
 0xfda   : > { %v5375_v0 = vadd.f32 %v5373_v37, %v5346_v41  ;;  %v5401_v36 = vpop.permute.xlu0 %5400  ;;  %v5399_v8 = vpop.permute.xlu1 %5398 }
 0xfdb   : > { %v5402_v32 = vsel %vm2175_vm12, %v5399_v8, %v5401_v36 }
 0xfdc   : > { %v5404_v59 = vadd.f32 %v5402_v32, %v5375_v0 }
 0xfde   : > { %v5430_v2 = vpop.permute.xlu0 %5429  ;;  %v5428_v51 = vpop.permute.xlu1 %5427 }
 0xfdf   : > { %v5431_v44 = vsel %vm5085_vm0, %v5428_v51, %v5430_v2 }
 0xfe0   : > { %v5433_v49 = vadd.f32 %v5431_v44, %v5404_v59 }
 0xfe2   : > { %v5446_v20 = vadd.f32 %v9733_v1, %v5433_v49  ;;  %v5470_v58 = vpop.permute.xlu0 %5469  ;;  %v5468_v24 = vpop.permute.xlu1 %5467 }
 0xfe3   : > { %v5471_v16 = vsel %vm1116_vm8, %v5468_v24, %v5470_v58 }
 0xfe4   : > { %v5454_v38 = vadd.f32 %v5453_v7, %v5446_v20 }
 0xfe6   : > { %v5473_v35 = vadd.f32 %v5471_v16, %v5454_v38  ;;  %v5489_v55 = vpop.permute.xlu0 %5488  ;;  %v5487_v56 = vpop.permute.xlu1 %5486 }
 0xfe7   : > { %v5490_v22 = vsel %vm2175_vm12, %v5487_v56, %v5489_v55 }
 0xfe8   : > { %v5492_v57 = vadd.f32 %v5490_v22, %v5473_v35 }
 0xfea   : > { %v5508_v1 = vpop.permute.xlu0 %5507  ;;  %v5506_v21 = vpop.permute.xlu1 %5505 }
 0xfeb   : > { %v5509_v27 = vsel %vm5085_vm0, %v5506_v21, %v5508_v1 }
 0xfec   : > { %v5511_v34 = vadd.f32 %v5509_v27, %v5492_v57 }
 0xfee   : > { %v5517_v6 = vadd.f32 %v5516_v48, %v5511_v34  ;;  %v5625_v63 = vpop.permute.xlu0 %5624  ;;  %v5623_v13 = vpop.permute.xlu1 %5622 }
 0xfef   : > { %v5626_v43 = vsel %vm1395_vm10, %v5623_v13, %v5625_v63 }
 0xff0   : > { %5645 = vst [vmem:[%s7031_s29 + $0x8] sm:$0xff] %v5626_v43  ;;  %6148 = vmatmul.mubr.f32.vlgmr.msra.gmra.mxu1 %v5517_v6 }
 0xff2   : > { %v5641_v10 = vpop.permute.xlu0 %5640  ;;  %v5639_v11 = vpop.permute.xlu1 %5638 }
 0xff3   : > { %v5642_v25 = vsel %vm1395_vm10, %v5639_v11, %v5641_v10 }
 0xff4   : > { %5646 = vst [vmem:[%s7031_s29 + $0x10] sm:$0xff] %v5642_v25 }
0x10b0   : > { %v5607_v12 = vpop.f32.mrf.mxu1 }
0x10b1   : > { %v5608_v5 = vadd.f32 %v5746_v52, %v5607_v12 }
0x10b2   : > { %v6149_v61 = vpop.f32.mrf.mxu1 }
0x10b3   : > { %v5611_v33 = vadd.f32 %v6192_v28, %v5608_v5 }
0x10b5   : > { %5647 = vst [vmem:[%s7031_s29 + $0x18] sm:$0xff] %v5611_v33 }
0x10b6 PF: > { %s10262_s27 = sld [smem:[#allocation3_spill]] }
0x10bc   : > { %s36_s27 = sadd.s32 1, %s10262_s27  }
0x10bd   : > { %p33_p4 = scmp.ge.s32.totalorder %s36_s27, 6  }
0x10bf   :  { %35 = sbr.rel (!%p33_p4) target bundleno = 15 (0xf), region = 165 }

</bundles_post_ra>
